<compile_context>
chip_gen: v5e
topology: v5e:2x2
jax: 0.10.0
libtpu: 0.0.40
codegen_flags: <defaults>
</compile_context>

<pallas_src>
import functools
import numpy as np

import jax
import jax.numpy as jnp
from jax import lax
from jax.experimental import pallas as pl
from jax.experimental.pallas import tpu as pltpu

LEAKY_SLOPE = 0.2
BN_EPS = 1e-5


def _lrelu(v):
    return jnp.where(v > 0, v, LEAKY_SLOPE * v)


# ------------------------- the single fused kernel ---------------------------

def _generator_kernel(*refs, n_extra, n_bn):
    """lin_gen_class + concat + lin_gen + deconv/BN/LeakyReLU stack + pool."""
    it = iter(refs)
    z_ref = next(it); y_ref = next(it)
    wc_ref = next(it); bc_ref = next(it)
    w1z_ref = next(it); w1y_ref = next(it); b1_ref = next(it)
    extra = [(next(it), next(it)) for _ in range(n_extra)]
    bn_layers = [(next(it), next(it), next(it), next(it), next(it))
                 for _ in range(n_bn)]            # (M, Ind, IndT, gamma, beta)
    mfin_ref = next(it); bfin_ref = next(it)
    o_ref = next(it)

    f32 = jnp.float32
    B = z_ref.shape[0]

    # ---- linear head: lrelu(y @ Wc + bc); concat([z, yc]) @ W1 folded into a
    #      row-split of W1 (no concat); then the (LeakyReLU'd) linear stack. --
    yc = _lrelu(jnp.dot(y_ref[...], wc_ref[...], preferred_element_type=f32)
                + bc_ref[...])
    x = _lrelu(jnp.dot(z_ref[...], w1z_ref[...], preferred_element_type=f32)
               + jnp.dot(yc, w1y_ref[...], preferred_element_type=f32)
               + b1_ref[...])
    for w_ref, b_ref in extra:
        x = _lrelu(jnp.dot(x, w_ref[...], preferred_element_type=f32)
                   + b_ref[...])

    # ---- deconv stack on flat [B, C*L] activations (batch on sublanes).
    #      `x` is already the flat layout the conv matrices expect: the
    #      PyTorch reshape(B, C0, L0) is row-major -> flat index c*L0 + l. ----
    for m_ref, ind_ref, indt_ref, gam_ref, bet_ref in bn_layers:
        yf = jnp.dot(x, m_ref[...], preferred_element_type=f32)  # [B, Co*Lo]
        # Train-mode BatchNorm1d, single pass (sum & sum-of-squares); the conv
        # bias is omitted because BN's mean subtraction cancels it exactly.
        d_out = m_ref.shape[1]
        c_out = ind_ref.shape[1]
        inv_n = c_out / (B * d_out)                       # == 1 / (B * L_out)
        col1 = jnp.sum(yf, axis=0, keepdims=True)                 # [1, D_out]
        col2 = jnp.sum(yf * yf, axis=0, keepdims=True)            # [1, D_out]
        s1 = jnp.dot(col1, ind_ref[...], preferred_element_type=f32)   # [1, C]
        s2 = jnp.dot(col2, ind_ref[...], preferred_element_type=f32)   # [1, C]
        mean = s1 * inv_n
        var = s2 * inv_n - mean * mean
        scale = gam_ref[...] * lax.rsqrt(var + BN_EPS)             # [1, C]
        shift = bet_ref[...] - mean * scale                        # [1, C]
        scale_f = jnp.dot(scale, indt_ref[...], preferred_element_type=f32)
        shift_f = jnp.dot(shift, indt_ref[...], preferred_element_type=f32)
        x = _lrelu(yf * scale_f + shift_f)

    # ---- final ConvTranspose1d (out_channels=1, no BN / no activation) with
    #      AdaptiveAvgPool1d folded into its matrix host-side; the scalar bias
    #      survives the average pool unchanged (pool columns sum to 1). -------
    o_ref[...] = (jnp.dot(x, mfin_ref[...], preferred_element_type=f32)
                  + bfin_ref[...])


# ------------------------------ pallas wrapper --------------------------------

def _generator_pallas(z, y, lin_params, bn_layer_params, final_params):
    B = z.shape[0]
    wc, bc, w1z, w1y, b1, extra = lin_params
    mfin, bfin = final_params
    P = mfin.shape[1]

    args = [z, y, wc, bc, w1z, w1y, b1]
    for w, b in extra:
        args += [w, b]
    for m, ind, indt, gam, bet in bn_layer_params:
        args += [m, ind, indt, gam, bet]
    args += [mfin, bfin]

    # advisory cost estimate so XLA schedules around the custom call sensibly
    flops = 2 * B * (wc.size + w1z.size + w1y.size
                     + sum(int(w.size) for w, _ in extra)
                     + sum(int(m.size) for m, _, _, _, _ in bn_layer_params)
                     + mfin.size)
    flops += 4 * sum(int(ind.size) + int(indt.size)
                     for _, ind, indt, _, _ in bn_layer_params)
    transcendentals = sum(int(ind.shape[1]) for _, ind, _, _, _ in bn_layer_params)
    bytes_accessed = sum(int(a.size) * 4 for a in args) + B * P * 4

    vmem_spec = pl.BlockSpec(memory_space=pltpu.MemorySpace.VMEM)
    return pl.pallas_call(
        functools.partial(_generator_kernel,
                          n_extra=len(extra), n_bn=len(bn_layer_params)),
        out_shape=jax.ShapeDtypeStruct((B, P), jnp.float32),
        in_specs=[vmem_spec] * len(args),
        out_specs=vmem_spec,
        cost_estimate=pl.CostEstimate(flops=int(flops),
                                      transcendentals=int(transcendentals),
                                      bytes_accessed=int(bytes_accessed)),
        compiler_params=pltpu.CompilerParams(
            vmem_limit_bytes=40 * 1024 * 1024),
    )(*args)


# ----------------------- Generator (params + forward) ------------------------

class Generator:
    # TODO(synk): BatchNorm1d is train-mode only (batch stats, biased var);
    # no running-stats tracking / eval() path is implemented.
    # TODO(synk): no v7x dual-TensorCore batch split — at B=2 the BN-stat
    # exchange/sync would outweigh the gain.
    def __init__(self, key, latent_dim=16, n_classes=2,
                 lin_num_neurons=(64 * 12,),
                 deconv_kernel_size=5, deconv_stride=2, deconv_padding=2,
                 deconv_filters=(32, 16, 8), output_shape=200):
        self.latent_dim = latent_dim
        self.n_classes = n_classes
        self.K = deconv_kernel_size
        self.stride = deconv_stride
        self.padding = deconv_padding
        self.output_shape = output_shape
        self.initial_length = 12
        self.initial_channels = lin_num_neurons[-1] // self.initial_length

        keys = jax.random.split(key, 64)
        kit = iter(keys)

        def lin_init(k, fan_in, fan_out):
            kw, kb = jax.random.split(k)
            s = 1.0 / np.sqrt(fan_in)
            W = jax.random.uniform(kw, (fan_in, fan_out), jnp.float32, -s, s)
            b = jax.random.uniform(kb, (1, fan_out), jnp.float32, -s, s)
            return W, b

        # lin_gen_class: Linear(n_classes -> latent_dim) + LeakyReLU
        self.Wc, self.bc = lin_init(next(kit), n_classes, latent_dim)

        # lin_gen: Linear(2*latent -> N0) [+ deeper], each + LeakyReLU.
        W1, self.b1 = lin_init(next(kit), 2 * latent_dim, lin_num_neurons[0])
        self.W1z, self.W1y = W1[:latent_dim], W1[latent_dim:]
        self.extra_lin = [lin_init(next(kit), lin_num_neurons[i],
                                   lin_num_neurons[i + 1])
                          for i in range(len(lin_num_neurons) - 1)]

        # deconv stack: C0 -> f0 -> ... -> f_last -> 1 ; BN on all but the last.
        chans = [self.initial_channels] + list(deconv_filters) + [1]
        has_bn = [True] * len(deconv_filters) + [False]
        K, stride, padding = self.K, self.stride, self.padding

        def dense_deconv_matrix(w_pt, L_in, L_out):
            """M[ci*L_in + l, co*L_out + t] = w_pt[ci, co, k], t = l*s - p + k."""
            cin, cout, _ = w_pt.shape
            M = np.zeros((cin * L_in, cout * L_out), np.float32)
            w = np.asarray(w_pt)
            for k in range(K):
                for l in range(L_in):
                    t = l * stride - padding + k
                    if 0 <= t < L_out:
                        M[l::L_in, t::L_out] += w[:, :, k]
            return M

        self.bn_layer_params = []     # kernel form: (M, Ind, IndT, gamma, beta)
        self.deconv_layers_ref = []   # PyTorch form: (w_pt [Ci,Co,K], bias, bn)
        last_M = None
        L = self.initial_length
        for cin, cout, bn_flag in zip(chans[:-1], chans[1:], has_bn):
            L_out = (L - 1) * stride - 2 * padding + K
            kw, kb = jax.random.split(next(kit))
            s = 1.0 / np.sqrt(cout * K)  # PyTorch ConvTranspose1d fan_in = Co*K
            # weight kept in PyTorch ConvTranspose1d orientation [C_in, C_out, K]
            w_pt = jax.random.uniform(kw, (cin, cout, K), jnp.float32, -s, s)
            bias = jax.random.uniform(kb, (1, cout), jnp.float32, -s, s)
            M = dense_deconv_matrix(w_pt, L, L_out)
            if bn_flag:
                # channel indicator for per-channel BN reductions / expansion
                ind = np.zeros((cout * L_out, cout), np.float32)
                for co in range(cout):
                    ind[co * L_out:(co + 1) * L_out, co] = 1.0
                gamma = jnp.ones((1, cout), jnp.float32)
                beta = jnp.zeros((1, cout), jnp.float32)
                self.bn_layer_params.append(
                    (jnp.asarray(M), jnp.asarray(ind), jnp.asarray(ind.T),
                     gamma, beta))
                bn_ref = (gamma, beta)
            else:
                last_M = M            # final (bias-only) layer, handled below
                bn_ref = None
            self.deconv_layers_ref.append((w_pt, bias, bn_ref))
            L = L_out
        self.final_len = L

        # AdaptiveAvgPool1d(output_shape) as an averaging matrix [L_final, P]
        Pm = np.zeros((L, output_shape), np.float32)
        for j in range(output_shape):
            start = (j * L) // output_shape
            end = -((-(j + 1) * L) // output_shape)      # ceil((j+1)*L / P)
            Pm[start:end, j] = 1.0 / (end - start)
        self.pool_mat = jnp.asarray(Pm)

        # fold the pool into the (BN-free) final deconv matrix host-side; its
        # scalar bias passes through the average pool unchanged.
        self.M_final = jnp.asarray(last_M @ Pm)          # [C_last*L_in_last, P]
        self.b_final = self.deconv_layers_ref[-1][1].reshape(1, 1)

        # whole forward compiled once: a single pallas_call + a free reshape
        self._forward = jax.jit(self._forward_impl)

    def _forward_impl(self, z, y):
        lin_params = (self.Wc, self.bc, self.W1z, self.W1y, self.b1,
                      self.extra_lin)
        out = _generator_pallas(z, y, lin_params, self.bn_layer_params,
                                (self.M_final, self.b_final))       # [B, P]
        return out.reshape(out.shape[0], 1, self.output_shape)

    def __call__(self, z, y):
        return self._forward(z, y)


# ------------------------- pure-JAX reference (check) ------------------------

def _reference_forward(gen, z, y):
    hp = lax.Precision.HIGHEST
    yc = _lrelu(jnp.dot(y, gen.Wc, precision=hp) + gen.bc)
    h = _lrelu(jnp.dot(z, gen.W1z, precision=hp)
               + jnp.dot(yc, gen.W1y, precision=hp) + gen.b1)
    for w, b in gen.extra_lin:
        h = _lrelu(jnp.dot(h, w, precision=hp) + b)
    x = h.reshape(-1, gen.initial_channels, gen.initial_length)
    q = gen.K - 1 - gen.padding
    for w_pt, b, bn in gen.deconv_layers_ref:
        # ConvTranspose1d == lhs-dilated cross-correlation with the transposed
        # and flipped kernel.
        w_conv = jnp.flip(jnp.transpose(w_pt, (1, 0, 2)), axis=2)  # [Co,Ci,K]
        x = lax.conv_general_dilated(
            x, w_conv, window_strides=(1,), padding=[(q, q)],
            lhs_dilation=(gen.stride,), rhs_dilation=(1,),
            dimension_numbers=("NCH", "OIH", "NCH"), precision=hp)
        x = x + b.reshape(1, -1, 1)                  # ConvTranspose1d bias
        if bn is not None:
            mean = x.mean(axis=(0, 2), keepdims=True)
            var = ((x - mean) ** 2).mean(axis=(0, 2), keepdims=True)
            x = ((x - mean) * lax.rsqrt(var + BN_EPS) * bn[0].reshape(1, -1, 1)
                 + bn[1].reshape(1, -1, 1))
            x = _lrelu(x)
    B = x.shape[0]
    pooled = jnp.dot(x.reshape(B, -1), gen.pool_mat, precision=hp)
    return pooled.reshape(B, 1, -1)


if __name__ == "__main__":
    key = jax.random.PRNGKey(0)
    k_params, k_z, k_y = jax.random.split(key, 3)

    gen = Generator(k_params)

    B = 2
    z = jax.random.normal(k_z, (B, gen.latent_dim), jnp.float32)
    labels = jax.random.randint(k_y, (B,), 0, gen.n_classes)
    y = jax.nn.one_hot(labels, gen.n_classes, dtype=jnp.float32)

    out = gen(z, y)
    out = jax.block_until_ready(out)

    assert out.shape == (B, 1, gen.output_shape), out.shape
    assert bool(jnp.all(jnp.isfinite(out)))

    ref = _reference_forward(gen, z, y)
    # Tightened vs. the previous 2e-2 (per review); kept above 1e-4 only to
    # stay robust to MXU f32 multi-pass / summation-order differences between
    # the fused dense-matmul formulation and the HIGHEST-precision reference.
    max_err = float(jnp.max(jnp.abs(out - ref)))
    assert bool(jnp.allclose(out, ref, rtol=5e-3, atol=5e-3)), max_err

    print("KERNEL_OK")
</pallas_src>

<mosaic_0001>
module attributes {stable_mosaic.version = 11 : i64} {
  func.func @_generator_kernel(%arg0: memref<2x16xf32, #tpu.memory_space<vmem>>, %arg1: memref<2x2xf32, #tpu.memory_space<vmem>>, %arg2: memref<2x16xf32, #tpu.memory_space<vmem>>, %arg3: memref<1x16xf32, #tpu.memory_space<vmem>>, %arg4: memref<16x768xf32, #tpu.memory_space<vmem>>, %arg5: memref<16x768xf32, #tpu.memory_space<vmem>>, %arg6: memref<1x768xf32, #tpu.memory_space<vmem>>, %arg7: memref<768x736xf32, #tpu.memory_space<vmem>>, %arg8: memref<736x32xf32, #tpu.memory_space<vmem>>, %arg9: memref<32x736xf32, #tpu.memory_space<vmem>>, %arg10: memref<1x32xf32, #tpu.memory_space<vmem>>, %arg11: memref<1x32xf32, #tpu.memory_space<vmem>>, %arg12: memref<736x720xf32, #tpu.memory_space<vmem>>, %arg13: memref<720x16xf32, #tpu.memory_space<vmem>>, %arg14: memref<16x720xf32, #tpu.memory_space<vmem>>, %arg15: memref<1x16xf32, #tpu.memory_space<vmem>>, %arg16: memref<1x16xf32, #tpu.memory_space<vmem>>, %arg17: memref<720x712xf32, #tpu.memory_space<vmem>>, %arg18: memref<712x8xf32, #tpu.memory_space<vmem>>, %arg19: memref<8x712xf32, #tpu.memory_space<vmem>>, %arg20: memref<1x8xf32, #tpu.memory_space<vmem>>, %arg21: memref<1x8xf32, #tpu.memory_space<vmem>>, %arg22: memref<712x200xf32, #tpu.memory_space<vmem>>, %arg23: memref<1x1xf32, #tpu.memory_space<vmem>>, %arg24: memref<2x200xf32, #tpu.memory_space<vmem>>) attributes {dimension_semantics = [], scalar_prefetch = 0 : i64, scratch_operands = 0 : i64, tpu.core_type = #tpu.core_type<tc>} {
    %c0 = arith.constant 0 : index
    %c0_0 = arith.constant 0 : index
    %0 = vector.load %arg1[%c0, %c0_0] : memref<2x2xf32, #tpu.memory_space<vmem>>, vector<2x2xf32>
    %c0_1 = arith.constant 0 : index
    %c0_2 = arith.constant 0 : index
    %1 = vector.load %arg2[%c0_1, %c0_2] : memref<2x16xf32, #tpu.memory_space<vmem>>, vector<2x16xf32>
    %cst = arith.constant dense<0.000000e+00> : vector<2x16xf32>
    %2 = tpu.matmul %0, %1, %cst {dimension_numbers = #tpu.dot_dimension_numbers<[1], [0], [0], [1], [0, 0, 1, 1], [], []>} : vector<2x2xf32>, vector<2x16xf32>, vector<2x16xf32> -> vector<2x16xf32>
    %c0_3 = arith.constant 0 : index
    %c0_4 = arith.constant 0 : index
    %3 = vector.load %arg3[%c0_3, %c0_4] : memref<1x16xf32, #tpu.memory_space<vmem>>, vector<1x16xf32>
    %4 = vector.broadcast %3 : vector<1x16xf32> to vector<2x16xf32>
    %5 = arith.addf %2, %4 : vector<2x16xf32>
    %cst_5 = arith.constant 0.000000e+00 : f32
    %6 = vector.broadcast %cst_5 : f32 to vector<2x16xf32>
    %7 = arith.cmpf ogt, %5, %6 : vector<2x16xf32>
    %cst_6 = arith.constant 2.000000e-01 : f32
    %8 = vector.broadcast %cst_6 : f32 to vector<2x16xf32>
    %9 = arith.mulf %8, %5 : vector<2x16xf32>
    %10 = arith.select %7, %5, %9 : vector<2x16xi1>, vector<2x16xf32>
    %c0_7 = arith.constant 0 : index
    %c0_8 = arith.constant 0 : index
    %11 = vector.load %arg0[%c0_7, %c0_8] : memref<2x16xf32, #tpu.memory_space<vmem>>, vector<2x16xf32>
    %c0_9 = arith.constant 0 : index
    %c0_10 = arith.constant 0 : index
    %12 = vector.load %arg4[%c0_9, %c0_10] : memref<16x768xf32, #tpu.memory_space<vmem>>, vector<16x768xf32>
    %cst_11 = arith.constant dense<0.000000e+00> : vector<2x768xf32>
    %13 = tpu.matmul %11, %12, %cst_11 {dimension_numbers = #tpu.dot_dimension_numbers<[1], [0], [0], [1], [0, 0, 1, 1], [], []>} : vector<2x16xf32>, vector<16x768xf32>, vector<2x768xf32> -> vector<2x768xf32>
    %c0_12 = arith.constant 0 : index
    %c0_13 = arith.constant 0 : index
    %14 = vector.load %arg5[%c0_12, %c0_13] : memref<16x768xf32, #tpu.memory_space<vmem>>, vector<16x768xf32>
    %cst_14 = arith.constant dense<0.000000e+00> : vector<2x768xf32>
    %15 = tpu.matmul %10, %14, %cst_14 {dimension_numbers = #tpu.dot_dimension_numbers<[1], [0], [0], [1], [0, 0, 1, 1], [], []>} : vector<2x16xf32>, vector<16x768xf32>, vector<2x768xf32> -> vector<2x768xf32>
    %16 = arith.addf %13, %15 : vector<2x768xf32>
    %c0_15 = arith.constant 0 : index
    %c0_16 = arith.constant 0 : index
    %17 = vector.load %arg6[%c0_15, %c0_16] : memref<1x768xf32, #tpu.memory_space<vmem>>, vector<1x768xf32>
    %18 = vector.broadcast %17 : vector<1x768xf32> to vector<2x768xf32>
    %19 = arith.addf %16, %18 : vector<2x768xf32>
    %cst_17 = arith.constant 0.000000e+00 : f32
    %20 = vector.broadcast %cst_17 : f32 to vector<2x768xf32>
    %21 = arith.cmpf ogt, %19, %20 : vector<2x768xf32>
    %cst_18 = arith.constant 2.000000e-01 : f32
    %22 = vector.broadcast %cst_18 : f32 to vector<2x768xf32>
    %23 = arith.mulf %22, %19 : vector<2x768xf32>
    %24 = arith.select %21, %19, %23 : vector<2x768xi1>, vector<2x768xf32>
    %c0_19 = arith.constant 0 : index
    %c0_20 = arith.constant 0 : index
    %25 = vector.load %arg7[%c0_19, %c0_20] : memref<768x736xf32, #tpu.memory_space<vmem>>, vector<768x736xf32>
    %cst_21 = arith.constant dense<0.000000e+00> : vector<2x736xf32>
    %26 = tpu.matmul %24, %25, %cst_21 {dimension_numbers = #tpu.dot_dimension_numbers<[1], [0], [0], [1], [0, 0, 1, 1], [], []>} : vector<2x768xf32>, vector<768x736xf32>, vector<2x736xf32> -> vector<2x736xf32>
    %cst_22 = arith.constant dense<0.000000e+00> : vector<736xf32>
    %27 = vector.multi_reduction <add>, %26, %cst_22 [0] : vector<2x736xf32> to vector<736xf32>
    %28 = vector.shape_cast %27 : vector<736xf32> to vector<1x736xf32>
    %29 = arith.mulf %26, %26 : vector<2x736xf32>
    %cst_23 = arith.constant dense<0.000000e+00> : vector<736xf32>
    %30 = vector.multi_reduction <add>, %29, %cst_23 [0] : vector<2x736xf32> to vector<736xf32>
    %31 = vector.shape_cast %30 : vector<736xf32> to vector<1x736xf32>
    %c0_24 = arith.constant 0 : index
    %c0_25 = arith.constant 0 : index
    %32 = vector.load %arg8[%c0_24, %c0_25] : memref<736x32xf32, #tpu.memory_space<vmem>>, vector<736x32xf32>
    %cst_26 = arith.constant dense<0.000000e+00> : vector<1x32xf32>
    %33 = tpu.matmul %28, %32, %cst_26 {dimension_numbers = #tpu.dot_dimension_numbers<[1], [0], [0], [1], [0, 0, 1, 1], [], []>} : vector<1x736xf32>, vector<736x32xf32>, vector<1x32xf32> -> vector<1x32xf32>
    %c0_27 = arith.constant 0 : index
    %c0_28 = arith.constant 0 : index
    %34 = vector.load %arg8[%c0_27, %c0_28] : memref<736x32xf32, #tpu.memory_space<vmem>>, vector<736x32xf32>
    %cst_29 = arith.constant dense<0.000000e+00> : vector<1x32xf32>
    %35 = tpu.matmul %31, %34, %cst_29 {dimension_numbers = #tpu.dot_dimension_numbers<[1], [0], [0], [1], [0, 0, 1, 1], [], []>} : vector<1x736xf32>, vector<736x32xf32>, vector<1x32xf32> -> vector<1x32xf32>
    %cst_30 = arith.constant 0.0217391308 : f32
    %36 = vector.broadcast %cst_30 : f32 to vector<1x32xf32>
    %37 = arith.mulf %33, %36 : vector<1x32xf32>
    %cst_31 = arith.constant 0.0217391308 : f32
    %38 = vector.broadcast %cst_31 : f32 to vector<1x32xf32>
    %39 = arith.mulf %35, %38 : vector<1x32xf32>
    %40 = arith.mulf %37, %37 : vector<1x32xf32>
    %41 = arith.subf %39, %40 : vector<1x32xf32>
    %c0_32 = arith.constant 0 : index
    %c0_33 = arith.constant 0 : index
    %42 = vector.load %arg10[%c0_32, %c0_33] : memref<1x32xf32, #tpu.memory_space<vmem>>, vector<1x32xf32>
    %cst_34 = arith.constant 9.99999974E-6 : f32
    %43 = vector.broadcast %cst_34 : f32 to vector<1x32xf32>
    %44 = arith.addf %41, %43 : vector<1x32xf32>
    %45 = math.rsqrt %44 : vector<1x32xf32>
    %46 = arith.mulf %42, %45 : vector<1x32xf32>
    %c0_35 = arith.constant 0 : index
    %c0_36 = arith.constant 0 : index
    %47 = vector.load %arg11[%c0_35, %c0_36] : memref<1x32xf32, #tpu.memory_space<vmem>>, vector<1x32xf32>
    %48 = arith.mulf %37, %46 : vector<1x32xf32>
    %49 = arith.subf %47, %48 : vector<1x32xf32>
    %c0_37 = arith.constant 0 : index
    %c0_38 = arith.constant 0 : index
    %50 = vector.load %arg9[%c0_37, %c0_38] : memref<32x736xf32, #tpu.memory_space<vmem>>, vector<32x736xf32>
    %cst_39 = arith.constant dense<0.000000e+00> : vector<1x736xf32>
    %51 = tpu.matmul %46, %50, %cst_39 {dimension_numbers = #tpu.dot_dimension_numbers<[1], [0], [0], [1], [0, 0, 1, 1], [], []>} : vector<1x32xf32>, vector<32x736xf32>, vector<1x736xf32> -> vector<1x736xf32>
    %c0_40 = arith.constant 0 : index
    %c0_41 = arith.constant 0 : index
    %52 = vector.load %arg9[%c0_40, %c0_41] : memref<32x736xf32, #tpu.memory_space<vmem>>, vector<32x736xf32>
    %cst_42 = arith.constant dense<0.000000e+00> : vector<1x736xf32>
    %53 = tpu.matmul %49, %52, %cst_42 {dimension_numbers = #tpu.dot_dimension_numbers<[1], [0], [0], [1], [0, 0, 1, 1], [], []>} : vector<1x32xf32>, vector<32x736xf32>, vector<1x736xf32> -> vector<1x736xf32>
    %54 = vector.broadcast %51 : vector<1x736xf32> to vector<2x736xf32>
    %55 = arith.mulf %26, %54 : vector<2x736xf32>
    %56 = vector.broadcast %53 : vector<1x736xf32> to vector<2x736xf32>
    %57 = arith.addf %55, %56 : vector<2x736xf32>
    %cst_43 = arith.constant 0.000000e+00 : f32
    %58 = vector.broadcast %cst_43 : f32 to vector<2x736xf32>
    %59 = arith.cmpf ogt, %57, %58 : vector<2x736xf32>
    %cst_44 = arith.constant 2.000000e-01 : f32
    %60 = vector.broadcast %cst_44 : f32 to vector<2x736xf32>
    %61 = arith.mulf %60, %57 : vector<2x736xf32>
    %62 = arith.select %59, %57, %61 : vector<2x736xi1>, vector<2x736xf32>
    %c0_45 = arith.constant 0 : index
    %c0_46 = arith.constant 0 : index
    %63 = vector.load %arg12[%c0_45, %c0_46] : memref<736x720xf32, #tpu.memory_space<vmem>>, vector<736x720xf32>
    %cst_47 = arith.constant dense<0.000000e+00> : vector<2x720xf32>
    %64 = tpu.matmul %62, %63, %cst_47 {dimension_numbers = #tpu.dot_dimension_numbers<[1], [0], [0], [1], [0, 0, 1, 1], [], []>} : vector<2x736xf32>, vector<736x720xf32>, vector<2x720xf32> -> vector<2x720xf32>
    %cst_48 = arith.constant dense<0.000000e+00> : vector<720xf32>
    %65 = vector.multi_reduction <add>, %64, %cst_48 [0] : vector<2x720xf32> to vector<720xf32>
    %66 = vector.shape_cast %65 : vector<720xf32> to vector<1x720xf32>
    %67 = arith.mulf %64, %64 : vector<2x720xf32>
    %cst_49 = arith.constant dense<0.000000e+00> : vector<720xf32>
    %68 = vector.multi_reduction <add>, %67, %cst_49 [0] : vector<2x720xf32> to vector<720xf32>
    %69 = vector.shape_cast %68 : vector<720xf32> to vector<1x720xf32>
    %c0_50 = arith.constant 0 : index
    %c0_51 = arith.constant 0 : index
    %70 = vector.load %arg13[%c0_50, %c0_51] : memref<720x16xf32, #tpu.memory_space<vmem>>, vector<720x16xf32>
    %cst_52 = arith.constant dense<0.000000e+00> : vector<1x16xf32>
    %71 = tpu.matmul %66, %70, %cst_52 {dimension_numbers = #tpu.dot_dimension_numbers<[1], [0], [0], [1], [0, 0, 1, 1], [], []>} : vector<1x720xf32>, vector<720x16xf32>, vector<1x16xf32> -> vector<1x16xf32>
    %c0_53 = arith.constant 0 : index
    %c0_54 = arith.constant 0 : index
    %72 = vector.load %arg13[%c0_53, %c0_54] : memref<720x16xf32, #tpu.memory_space<vmem>>, vector<720x16xf32>
    %cst_55 = arith.constant dense<0.000000e+00> : vector<1x16xf32>
    %73 = tpu.matmul %69, %72, %cst_55 {dimension_numbers = #tpu.dot_dimension_numbers<[1], [0], [0], [1], [0, 0, 1, 1], [], []>} : vector<1x720xf32>, vector<720x16xf32>, vector<1x16xf32> -> vector<1x16xf32>
    %cst_56 = arith.constant 0.0111111114 : f32
    %74 = vector.broadcast %cst_56 : f32 to vector<1x16xf32>
    %75 = arith.mulf %71, %74 : vector<1x16xf32>
    %cst_57 = arith.constant 0.0111111114 : f32
    %76 = vector.broadcast %cst_57 : f32 to vector<1x16xf32>
    %77 = arith.mulf %73, %76 : vector<1x16xf32>
    %78 = arith.mulf %75, %75 : vector<1x16xf32>
    %79 = arith.subf %77, %78 : vector<1x16xf32>
    %c0_58 = arith.constant 0 : index
    %c0_59 = arith.constant 0 : index
    %80 = vector.load %arg15[%c0_58, %c0_59] : memref<1x16xf32, #tpu.memory_space<vmem>>, vector<1x16xf32>
    %cst_60 = arith.constant 9.99999974E-6 : f32
    %81 = vector.broadcast %cst_60 : f32 to vector<1x16xf32>
    %82 = arith.addf %79, %81 : vector<1x16xf32>
    %83 = math.rsqrt %82 : vector<1x16xf32>
    %84 = arith.mulf %80, %83 : vector<1x16xf32>
    %c0_61 = arith.constant 0 : index
    %c0_62 = arith.constant 0 : index
    %85 = vector.load %arg16[%c0_61, %c0_62] : memref<1x16xf32, #tpu.memory_space<vmem>>, vector<1x16xf32>
    %86 = arith.mulf %75, %84 : vector<1x16xf32>
    %87 = arith.subf %85, %86 : vector<1x16xf32>
    %c0_63 = arith.constant 0 : index
    %c0_64 = arith.constant 0 : index
    %88 = vector.load %arg14[%c0_63, %c0_64] : memref<16x720xf32, #tpu.memory_space<vmem>>, vector<16x720xf32>
    %cst_65 = arith.constant dense<0.000000e+00> : vector<1x720xf32>
    %89 = tpu.matmul %84, %88, %cst_65 {dimension_numbers = #tpu.dot_dimension_numbers<[1], [0], [0], [1], [0, 0, 1, 1], [], []>} : vector<1x16xf32>, vector<16x720xf32>, vector<1x720xf32> -> vector<1x720xf32>
    %c0_66 = arith.constant 0 : index
    %c0_67 = arith.constant 0 : index
    %90 = vector.load %arg14[%c0_66, %c0_67] : memref<16x720xf32, #tpu.memory_space<vmem>>, vector<16x720xf32>
    %cst_68 = arith.constant dense<0.000000e+00> : vector<1x720xf32>
    %91 = tpu.matmul %87, %90, %cst_68 {dimension_numbers = #tpu.dot_dimension_numbers<[1], [0], [0], [1], [0, 0, 1, 1], [], []>} : vector<1x16xf32>, vector<16x720xf32>, vector<1x720xf32> -> vector<1x720xf32>
    %92 = vector.broadcast %89 : vector<1x720xf32> to vector<2x720xf32>
    %93 = arith.mulf %64, %92 : vector<2x720xf32>
    %94 = vector.broadcast %91 : vector<1x720xf32> to vector<2x720xf32>
    %95 = arith.addf %93, %94 : vector<2x720xf32>
    %cst_69 = arith.constant 0.000000e+00 : f32
    %96 = vector.broadcast %cst_69 : f32 to vector<2x720xf32>
    %97 = arith.cmpf ogt, %95, %96 : vector<2x720xf32>
    %cst_70 = arith.constant 2.000000e-01 : f32
    %98 = vector.broadcast %cst_70 : f32 to vector<2x720xf32>
    %99 = arith.mulf %98, %95 : vector<2x720xf32>
    %100 = arith.select %97, %95, %99 : vector<2x720xi1>, vector<2x720xf32>
    %c0_71 = arith.constant 0 : index
    %c0_72 = arith.constant 0 : index
    %101 = vector.load %arg17[%c0_71, %c0_72] : memref<720x712xf32, #tpu.memory_space<vmem>>, vector<720x712xf32>
    %cst_73 = arith.constant dense<0.000000e+00> : vector<2x712xf32>
    %102 = tpu.matmul %100, %101, %cst_73 {dimension_numbers = #tpu.dot_dimension_numbers<[1], [0], [0], [1], [0, 0, 1, 1], [], []>} : vector<2x720xf32>, vector<720x712xf32>, vector<2x712xf32> -> vector<2x712xf32>
    %cst_74 = arith.constant dense<0.000000e+00> : vector<712xf32>
    %103 = vector.multi_reduction <add>, %102, %cst_74 [0] : vector<2x712xf32> to vector<712xf32>
    %104 = vector.shape_cast %103 : vector<712xf32> to vector<1x712xf32>
    %105 = arith.mulf %102, %102 : vector<2x712xf32>
    %cst_75 = arith.constant dense<0.000000e+00> : vector<712xf32>
    %106 = vector.multi_reduction <add>, %105, %cst_75 [0] : vector<2x712xf32> to vector<712xf32>
    %107 = vector.shape_cast %106 : vector<712xf32> to vector<1x712xf32>
    %c0_76 = arith.constant 0 : index
    %c0_77 = arith.constant 0 : index
    %108 = vector.load %arg18[%c0_76, %c0_77] : memref<712x8xf32, #tpu.memory_space<vmem>>, vector<712x8xf32>
    %cst_78 = arith.constant dense<0.000000e+00> : vector<1x8xf32>
    %109 = tpu.matmul %104, %108, %cst_78 {dimension_numbers = #tpu.dot_dimension_numbers<[1], [0], [0], [1], [0, 0, 1, 1], [], []>} : vector<1x712xf32>, vector<712x8xf32>, vector<1x8xf32> -> vector<1x8xf32>
    %c0_79 = arith.constant 0 : index
    %c0_80 = arith.constant 0 : index
    %110 = vector.load %arg18[%c0_79, %c0_80] : memref<712x8xf32, #tpu.memory_space<vmem>>, vector<712x8xf32>
    %cst_81 = arith.constant dense<0.000000e+00> : vector<1x8xf32>
    %111 = tpu.matmul %107, %110, %cst_81 {dimension_numbers = #tpu.dot_dimension_numbers<[1], [0], [0], [1], [0, 0, 1, 1], [], []>} : vector<1x712xf32>, vector<712x8xf32>, vector<1x8xf32> -> vector<1x8xf32>
    %cst_82 = arith.constant 0.00561797759 : f32
    %112 = vector.broadcast %cst_82 : f32 to vector<1x8xf32>
    %113 = arith.mulf %109, %112 : vector<1x8xf32>
    %cst_83 = arith.constant 0.00561797759 : f32
    %114 = vector.broadcast %cst_83 : f32 to vector<1x8xf32>
    %115 = arith.mulf %111, %114 : vector<1x8xf32>
    %116 = arith.mulf %113, %113 : vector<1x8xf32>
    %117 = arith.subf %115, %116 : vector<1x8xf32>
    %c0_84 = arith.constant 0 : index
    %c0_85 = arith.constant 0 : index
    %118 = vector.load %arg20[%c0_84, %c0_85] : memref<1x8xf32, #tpu.memory_space<vmem>>, vector<1x8xf32>
    %cst_86 = arith.constant 9.99999974E-6 : f32
    %119 = vector.broadcast %cst_86 : f32 to vector<1x8xf32>
    %120 = arith.addf %117, %119 : vector<1x8xf32>
    %121 = math.rsqrt %120 : vector<1x8xf32>
    %122 = arith.mulf %118, %121 : vector<1x8xf32>
    %c0_87 = arith.constant 0 : index
    %c0_88 = arith.constant 0 : index
    %123 = vector.load %arg21[%c0_87, %c0_88] : memref<1x8xf32, #tpu.memory_space<vmem>>, vector<1x8xf32>
    %124 = arith.mulf %113, %122 : vector<1x8xf32>
    %125 = arith.subf %123, %124 : vector<1x8xf32>
    %c0_89 = arith.constant 0 : index
    %c0_90 = arith.constant 0 : index
    %126 = vector.load %arg19[%c0_89, %c0_90] : memref<8x712xf32, #tpu.memory_space<vmem>>, vector<8x712xf32>
    %cst_91 = arith.constant dense<0.000000e+00> : vector<1x712xf32>
    %127 = tpu.matmul %122, %126, %cst_91 {dimension_numbers = #tpu.dot_dimension_numbers<[1], [0], [0], [1], [0, 0, 1, 1], [], []>} : vector<1x8xf32>, vector<8x712xf32>, vector<1x712xf32> -> vector<1x712xf32>
    %c0_92 = arith.constant 0 : index
    %c0_93 = arith.constant 0 : index
    %128 = vector.load %arg19[%c0_92, %c0_93] : memref<8x712xf32, #tpu.memory_space<vmem>>, vector<8x712xf32>
    %cst_94 = arith.constant dense<0.000000e+00> : vector<1x712xf32>
    %129 = tpu.matmul %125, %128, %cst_94 {dimension_numbers = #tpu.dot_dimension_numbers<[1], [0], [0], [1], [0, 0, 1, 1], [], []>} : vector<1x8xf32>, vector<8x712xf32>, vector<1x712xf32> -> vector<1x712xf32>
    %130 = vector.broadcast %127 : vector<1x712xf32> to vector<2x712xf32>
    %131 = arith.mulf %102, %130 : vector<2x712xf32>
    %132 = vector.broadcast %129 : vector<1x712xf32> to vector<2x712xf32>
    %133 = arith.addf %131, %132 : vector<2x712xf32>
    %cst_95 = arith.constant 0.000000e+00 : f32
    %134 = vector.broadcast %cst_95 : f32 to vector<2x712xf32>
    %135 = arith.cmpf ogt, %133, %134 : vector<2x712xf32>
    %cst_96 = arith.constant 2.000000e-01 : f32
    %136 = vector.broadcast %cst_96 : f32 to vector<2x712xf32>
    %137 = arith.mulf %136, %133 : vector<2x712xf32>
    %138 = arith.select %135, %133, %137 : vector<2x712xi1>, vector<2x712xf32>
    %c0_97 = arith.constant 0 : index
    %c0_98 = arith.constant 0 : index
    %139 = vector.load %arg22[%c0_97, %c0_98] : memref<712x200xf32, #tpu.memory_space<vmem>>, vector<712x200xf32>
    %cst_99 = arith.constant dense<0.000000e+00> : vector<2x200xf32>
    %140 = tpu.matmul %138, %139, %cst_99 {dimension_numbers = #tpu.dot_dimension_numbers<[1], [0], [0], [1], [0, 0, 1, 1], [], []>} : vector<2x712xf32>, vector<712x200xf32>, vector<2x200xf32> -> vector<2x200xf32>
    %c0_100 = arith.constant 0 : index
    %c0_101 = arith.constant 0 : index
    %141 = vector.load %arg23[%c0_100, %c0_101] : memref<1x1xf32, #tpu.memory_space<vmem>>, vector<1x1xf32>
    %142 = vector.broadcast %141 : vector<1x1xf32> to vector<2x200xf32>
    %143 = arith.addf %140, %142 : vector<2x200xf32>
    %c0_102 = arith.constant 0 : index
    %c0_103 = arith.constant 0 : index
    %144 = vector.load %arg24[%c0_102, %c0_103] : memref<2x200xf32, #tpu.memory_space<vmem>>, vector<2x200xf32>
    tpu.vector_store %arg24[%c0_102, %c0_103], %143 {strides = array<i32>} : memref<2x200xf32, #tpu.memory_space<vmem>>, vector<2x200xf32>,
    return
  }
}

</mosaic_0001>

<bundles_post_ra>
// kernel: _forward_impl.1
= control target key start
LH: loop header
LB: loop body
LE: loop exit
PB: predicated region body
PF: predicated region fallthrough
CT: control target
= control target key end

     0   :  { %s9399_s0 = inlined_call_operand.hbm [shape: f32[2,16], index: 0, kind: input, shape index: {}]   ;;  %s9400_s1 = inlined_call_operand.hbm [shape: f32[2,2], index: 1, kind: input, shape index: {}]   ;;  %s9401_s2 = inlined_call_operand.hbm [shape: f32[2,16], index: 2, kind: input, shape index: {}]   ;;  %s9402_s3 = inlined_call_operand.hbm [shape: f32[1,16], index: 3, kind: input, shape index: {}]   ;;  %s9403_s4 = inlined_call_operand.hbm [shape: f32[16,768], index: 4, kind: input, shape index: {}]   ;;  %s9404_s5 = inlined_call_operand.hbm [shape: f32[16,768], index: 5, kind: input, shape index: {}]   ;;  %s9405_s6 = inlined_call_operand.hbm [shape: f32[1,768], index: 6, kind: input, shape index: {}]   ;;  %s9406_s7 = inlined_call_operand.hbm [shape: f32[768,736], index: 7, kind: input, shape index: {}]   ;;  %s9407_s8 = inlined_call_operand.hbm [shape: f32[736,32], index: 8, kind: input, shape index: {}]   ;;  %s9408_s9 = inlined_call_operand.hbm [shape: f32[32,736], index: 9, kind: input, shape index: {}]   ;;  %s9409_s10 = inlined_call_operand.vmem [shape: f32[1,32], index: 10, kind: input, shape index: {}]   ;;  %s9410_s11 = inlined_call_operand.vmem [shape: f32[1,32], index: 11, kind: input, shape index: {}]   ;;  %s9411_s12 = inlined_call_operand.hbm [shape: f32[736,720], index: 12, kind: input, shape index: {}]   ;;  %s9412_s13 = inlined_call_operand.hbm [shape: f32[720,16], index: 13, kind: input, shape index: {}]   ;;  %s9413_s14 = inlined_call_operand.hbm [shape: f32[16,720], index: 14, kind: input, shape index: {}]   ;;  %s9414_s15 = inlined_call_operand.vmem [shape: f32[1,16], index: 15, kind: input, shape index: {}]   ;;  %s9415_s16 = inlined_call_operand.vmem [shape: f32[1,16], index: 16, kind: input, shape index: {}]   ;;  %s9416_s17 = inlined_call_operand.hbm [shape: f32[720,712], index: 17, kind: input, shape index: {}]   ;;  %s9417_s18 = inlined_call_operand.hbm [shape: f32[712,8], index: 18, kind: input, shape index: {}]   ;;  %s9418_s19 = inlined_call_operand.hbm [shape: f32[8,712], index: 19, kind: input, shape index: {}]   ;;  %s9419_s20 = inlined_call_operand.vmem [shape: f32[1,8], index: 20, kind: input, shape index: {}]   ;;  %s9420_s21 = inlined_call_operand.vmem [shape: f32[1,8], index: 21, kind: input, shape index: {}]   ;;  %s9421_s22 = inlined_call_operand.hbm [shape: f32[712,200], index: 22, kind: input, shape index: {}]   ;;  %s9422_s23 = inlined_call_operand.<no memory space> [shape: f32[1,1], index: 23, kind: input, shape index: {}]   ;;  %s9423_s24 = inlined_call_operand.vmem [shape: f32[2,200], index: 24, kind: output, shape index: {}]  }
   0x1   :  { %9469 = sst [smem:[#allocation56_spill]] %s9399_s0  ;;  %v29_v0 = vstv %s9422_s23 }
   0x2   :  { %9470 = sst [smem:[#allocation57_spill]] %s9400_s1  ;;  %30 = vst [vmem:[#allocation2] sm:$0x1] %v29_v0 }
   0x3   :  { %9471 = sst [smem:[#allocation58_spill]] %s9401_s2 }
   0x4   :  { %9472 = sst [smem:[#allocation59_spill]] %s9402_s3 }
   0x5   :  { %9473 = sst [smem:[#allocation60_spill]] %s9403_s4 }
   0x6   :  { %9474 = sst [smem:[#allocation61_spill]] %s9404_s5 }
   0x7   :  { %9475 = sst [smem:[#allocation62_spill]] %s9405_s6 }
   0x8   :  { %9476 = sst [smem:[#allocation63_spill]] %s9406_s7 }
   0x9   :  { %9477 = sst [smem:[#allocation64_spill]] %s9407_s8 }
   0xa   :  { %9478 = sst [smem:[#allocation65_spill]] %s9420_s21 }
   0xb   :  { %9479 = sst [smem:[#allocation66_spill]] %s9423_s24 }
   0xc   :  { %31 = vsyncpa [#allocation4], 0 }
   0xd   :  { %32 = vsyncpa [#allocation6], 0 }
   0xe   :  { %33 = vsyncpa [#allocation9], 0 }
   0xf   :  { %34 = vsyncpa [#allocation12], 0 }
  0x10   :  { %35 = vsyncpa [#allocation15], 0 }
  0x11   :  { %36 = vsyncpa [#allocation18], 0 }
  0x12   :  { %37 = vsyncpa [#allocation21], 0 }
  0x13   :  { %38 = vsyncpa [#allocation24], 0  ;;  %s9480_s6 = sld [smem:[#allocation57_spill]] }
  0x19   :  { %s56_s2 = sshll.u32 %s9480_s6, 4  ;;  %s57_s2 = int_to_ptr.hbm [resolvable:$true] %s56_s2 }
  0x1a   :  { %39 = vsyncpa [#allocation27], 0  ;;  %s7743_s29 = smov [#allocation5]   ;;  %s9481_s30 = sld [smem:[#allocation59_spill]] }
  0x1b   :  { %s58_s0 = sshll.u32 %s7743_s29, 4  ;;  %s7744_s25 = smov [#allocation8]   ;;  %s59_s0 = int_to_ptr.vmem [resolvable:$true] %s58_s0 }
  0x1c   :  { %61 = dma.hbm_to_vmem [thread:$0]  %s57_s2, 32, %s59_s0, [#allocation6]  }
  0x1d   :  { %s80_s8 = sshll.u32 %s7744_s25, 4  ;;  %s9482_s5 = sld [smem:[#allocation61_spill]]  ;;  %s81_s8 = int_to_ptr.vmem [resolvable:$true] %s80_s8 }
  0x1e   :  { %s7745_s27 = smov [#allocation11]   ;;  %s9483_s24 = sld [smem:[#allocation63_spill]] }
  0x1f   :  { %s103_s28 = sshll.u32 %s7745_s27, 4  ;;  %s7746_s7 = smov 768   ;;  %s104_s28 = int_to_ptr.vmem [resolvable:$true] %s103_s28 }
  0x20   :  { %s78_s3 = sshll.u32 %s9481_s30, 4  ;;  %s7747_s23 = smov 48   ;;  %s79_s3 = int_to_ptr.hbm [resolvable:$true] %s78_s3 }
  0x21   :  { %83 = dma.hbm_to_vmem [thread:$0]  %s79_s3, 16, %s81_s8, [#allocation9]  }
  0x22   :  { %s7748_s2 = smov [#allocation14]   ;;  %s151_s25 = sshll.u32 %s9408_s9, 4  ;;  %s152_s25 = int_to_ptr.hbm [resolvable:$true] %s151_s25 }
  0x23   :  { %s101_s26 = sshll.u32 %s9482_s5, 4  ;;  %s127_s0 = sshll.u32 %s7748_s2, 4  ;;  %s102_s26 = int_to_ptr.hbm [resolvable:$true] %s101_s26  ;;  %s128_s0 = int_to_ptr.vmem [resolvable:$true] %s127_s0 }
  0x24   :  { %s125_s21 = sshll.u32 %s9483_s24, 4  ;;  %s7749_s24 = smov [#allocation17]   ;;  %s126_s21 = int_to_ptr.hbm [resolvable:$true] %s125_s21 }
  0x25   :  { %109 = dma.hbm_to_vmem [thread:$0]  %s102_s26, 1536, %s104_s28, [#allocation12], %s7746_s7, %s7746_s7, %s7747_s23  }
  0x26   :  { %133 = dma.hbm_to_vmem [thread:$0]  %s126_s21, 73728, %s128_s0, [#allocation15], %s7746_s7, %s7746_s7, %s7747_s23  }
  0x27   :  { %s153_s8 = sshll.u32 %s7749_s24, 4  ;;  %s181_s5 = sshll.u32 %s9412_s13, 4  ;;  %s154_s8 = int_to_ptr.vmem [resolvable:$true] %s153_s8  ;;  %s182_s5 = int_to_ptr.hbm [resolvable:$true] %s181_s5 }
  0x28   :  { %159 = dma.hbm_to_vmem [thread:$0]  %s152_s25, 3072, %s154_s8, [#allocation18], %s7746_s7, %s7746_s7, %s7747_s23  }
  0x29   :  { %s7750_s26 = smov [#allocation20]   ;;  %s211_s6 = sshll.u32 %s9416_s17, 4  ;;  %s212_s6 = int_to_ptr.hbm [resolvable:$true] %s211_s6 }
  0x2a   :  { %s183_s9 = sshll.u32 %s7750_s26, 4  ;;  %s7751_s21 = smov 128   ;;  %s184_s9 = int_to_ptr.vmem [resolvable:$true] %s183_s9 }
  0x2b   :  { %s7752_s29 = smov 8   ;;  %s238_s0 = sshll.u32 %s9418_s19, 4  ;;  %s239_s0 = int_to_ptr.hbm [resolvable:$true] %s238_s0 }
  0x2c   :  { %189 = dma.hbm_to_vmem [thread:$0]  %s182_s5, 11520, %s184_s9, [#allocation21], %s7751_s21, %s7751_s21, %s7752_s29  }
  0x2d   :  { %s7753_s30 = smov [#allocation23]   ;;  %s7754_s17 = smov [#allocation26]  }
  0x2e   :  { %s213_s3 = sshll.u32 %s7753_s30, 4  ;;  %s240_s25 = sshll.u32 %s7754_s17, 4  ;;  %s214_s3 = int_to_ptr.vmem [resolvable:$true] %s213_s3  ;;  %s241_s25 = int_to_ptr.vmem [resolvable:$true] %s240_s25 }
  0x2f   :  { %219 = dma.hbm_to_vmem [thread:$0]  %s212_s6, 69120, %s214_s3, [#allocation24], %s7746_s7, %s7746_s7, %s7747_s23  }
  0x30   :  { %s9484_s4 = sld [smem:[#allocation56_spill]]  ;;  %s7755_s27 = smov [#allocation3]  }
  0x31   :  { %243 = dma.hbm_to_vmem [thread:$0]  %s239_s0, 768, %s241_s25, [#allocation27]  }
  0x32   :  { %s9485_s19 = sld [smem:[#allocation58_spill]]  ;;  %s47_s28 = sshll.u32 %s7755_s27, 4  ;;  %s48_s28 = int_to_ptr.vmem [resolvable:$true] %s47_s28 }
  0x33   :  { %s7756_s13 = smov [#allocation7]   ;;  %s9486_s3 = sld [smem:[#allocation60_spill]] }
  0x34   :  { %s69_s6 = sshll.u32 %s7756_s13, 4  ;;  %s9487_s25 = sld [smem:[#allocation62_spill]]  ;;  %s70_s6 = int_to_ptr.vmem [resolvable:$true] %s69_s6 }
  0x35   :  { %s168_s2 = sshll.u32 %s9411_s12, 4  ;;  %s7759_s30 = smov [#allocation16]   ;;  %s169_s2 = int_to_ptr.hbm [resolvable:$true] %s168_s2 }
  0x36   :  { %s45_s1 = sshll.u32 %s9484_s4, 4  ;;  %s7757_s4 = smov [#allocation10]   ;;  %s46_s1 = int_to_ptr.hbm [resolvable:$true] %s45_s1 }
  0x37   :  { %50 = dma.hbm_to_vmem [thread:$0]  %s46_s1, 32, %s48_s28, [#allocation4]  }
  0x38   :  { %s67_s9 = sshll.u32 %s9485_s19, 4  ;;  %s90_s5 = sshll.u32 %s7757_s4, 4  ;;  %s68_s9 = int_to_ptr.hbm [resolvable:$true] %s67_s9  ;;  %s91_s5 = int_to_ptr.vmem [resolvable:$true] %s90_s5 }
  0x39   :  { %s88_s17 = sshll.u32 %s9486_s3, 4  ;;  %s7758_s1 = smov [#allocation13]   ;;  %s89_s17 = int_to_ptr.hbm [resolvable:$true] %s88_s17 }
  0x3a   :  { %72 = dma.hbm_to_vmem [thread:$0]  %s68_s9, 32, %s70_s6, [#allocation6]  }
  0x3b   :  { %s115_s8 = sshll.u32 %s9487_s25, 4  ;;  %s117_s26 = sshll.u32 %s7758_s1, 4  ;;  %s116_s8 = int_to_ptr.hbm [resolvable:$true] %s115_s8  ;;  %s118_s26 = int_to_ptr.vmem [resolvable:$true] %s117_s26 }
  0x3c   :  { %96 = dma.hbm_to_vmem [thread:$0]  %s89_s17, 1536, %s91_s5, [#allocation9], %s7746_s7, %s7746_s7, %s7747_s23  }
  0x3d   :  { %s9488_s28 = sld [smem:[#allocation64_spill]]  ;;  %s140_s3 = sshll.u32 %s7759_s30, 4  ;;  %s141_s3 = int_to_ptr.vmem [resolvable:$true] %s140_s3 }
  0x3e   :  { %120 = dma.hbm_to_vmem [thread:$0]  %s116_s8, 96, %s118_s26, [#allocation12]  }
  0x3f   :  { %s7760_s17 = smov [#allocation19]   ;;  %s194_s4 = sshll.u32 %s9413_s14, 4  ;;  %s195_s4 = int_to_ptr.hbm [resolvable:$true] %s194_s4 }
  0x40   :  { %s170_s24 = sshll.u32 %s7760_s17, 4  ;;  %s224_s5 = sshll.u32 %s9417_s18, 4  ;;  %s171_s24 = int_to_ptr.vmem [resolvable:$true] %s170_s24  ;;  %s225_s5 = int_to_ptr.hbm [resolvable:$true] %s224_s5 }
  0x41   :  { %176 = dma.hbm_to_vmem [thread:$0]  %s169_s2, 70656, %s171_s24, [#allocation18], %s7746_s7, %s7746_s7, %s7747_s23  }
  0x42   :  { %s7761_s1 = smov [#allocation22]   ;;  %s7762_s19 = smov [#allocation25]  }
  0x43   :  { %s138_s13 = sshll.u32 %s9488_s28, 4  ;;  %s196_s26 = sshll.u32 %s7761_s1, 4  ;;  %s139_s13 = int_to_ptr.hbm [resolvable:$true] %s138_s13  ;;  %s197_s26 = int_to_ptr.vmem [resolvable:$true] %s196_s26 }
  0x44   :  { %146 = dma.hbm_to_vmem [thread:$0]  %s139_s13, 11776, %s141_s3, [#allocation15], %s7751_s21, %s7751_s21, %s7752_s29  }
  0x45   :  { %202 = dma.hbm_to_vmem [thread:$0]  %s195_s4, 1536, %s197_s26, [#allocation21], %s7746_s7, %s7746_s7, %s7747_s23  }
  0x46   :  { %s226_s14 = sshll.u32 %s7762_s19, 4  ;;  %s252_s13 = sshll.u32 %s9421_s22, 4  ;;  %s227_s14 = int_to_ptr.vmem [resolvable:$true] %s226_s14  ;;  %s253_s13 = int_to_ptr.hbm [resolvable:$true] %s252_s13 }
  0x47   :  { %232 = dma.hbm_to_vmem [thread:$0]  %s225_s5, 11392, %s227_s14, [#allocation24], %s7751_s21, %s7751_s21, %s7752_s29  }
  0x48   :  { %s7763_s18 = smov [#allocation28]   ;;  %s7764_s6 = smov 256  }
  0x49   :  { %s254_s9 = sshll.u32 %s7763_s18, 4  ;;  %s7765_s2 = smov 16   ;;  %s255_s9 = int_to_ptr.vmem [resolvable:$true] %s254_s9 }
  0x4a   :  { %260 = dma.hbm_to_vmem [thread:$0]  %s253_s13, 22784, %s255_s9, [#allocation27], %s7764_s6, %s7764_s6, %s7765_s2  }
  0x4b   :  { %7725 = dma.done.wait [#allocation4], 32  }
  0x4c   :  { %7726 = vsyncadd [#allocation4], 4294967264 }
  0x4d   :  { %7727 = dma.done.wait [#allocation6], 64  }
  0x4e   :  { %7728 = vsyncadd [#allocation6], 4294967232 }
  0x4f   :  { %7729 = dma.done.wait [#allocation9], 1552  }
  0x50   :  { %7730 = vsyncadd [#allocation9], 4294965744 }
  0x51   :  { %7731 = dma.done.wait [#allocation12], 1632  }
  0x52   :  { %7732 = vsyncadd [#allocation12], 4294965664 }
  0x53   :  { %7733 = dma.done.wait [#allocation15], 85504  }
  0x54   :  { %7734 = vsyncadd [#allocation15], 4294881792 }
  0x55   :  { %7735 = dma.done.wait [#allocation18], 73728  }
  0x56   :  { %7736 = vsyncadd [#allocation18], 4294893568 }
  0x57   :  { %7737 = dma.done.wait [#allocation21], 13056  }
  0x58   :  { %7738 = vsyncadd [#allocation21], 4294954240 }
  0x59   :  { %7739 = dma.done.wait [#allocation24], 80512  }
  0x5a   :  { %7740 = vsyncadd [#allocation24], 4294886784 }
  0x5b   :  { %7741 = dma.done.wait [#allocation27], 23552  }
  0x5c   :  { %7742 = vsyncadd [#allocation27], 4294943744  ;;  %vm341_vm0 = vcmask 1041408   ;;  %vm337_vm1 = vcmask 15360   ;;  %v332_v1 = vld [vmem:[#allocation7] sm:$0x3] }
  0x5d   :  { %v331_v2 = vld [vmem:[#allocation5] sm:$0x3]  ;;  %7214 = vmatpush.msk.msra.mxu3 %vm341_vm0, %v332_v1  ;;  %v387_v3 = vld [vmem:[#allocation11 + $0x30] sm:$0xff]  ;;  %v389_v4 = vld [vmem:[#allocation11 + $0x40] sm:$0xff]  ;;  %vm393_vm3 = vcmask 130048   ;;  %vm2009_vm10 = vcmask 779264  }
  0x5e   :  { %7215 = vmatmul.msk.f32.vlgmr.msra.gmra.mxu3 %vm337_vm1, %v331_v2  ;;  %v390_v5 = vld [vmem:[#allocation11 + $0x48] sm:$0xff]  ;;  %411 = vmatpush.msra.mxu2 %v387_v3  ;;  %v391_v6 = vld [vmem:[#allocation11 + $0x50] sm:$0xff]  ;;  %v381_v7 = vld [vmem:[#allocation11] sm:$0xff]  ;;  %vm2157_vm11 = vcmask 785408   ;;  %vm2448_vm15 = vcmask 261120   ;;  %s9572_s24 = sld [smem:[#allocation65_spill]] }
  0x5f   :  { %451 = vmatpush.msrb.mxu3 %v389_v4  ;;  %471 = vmatpush.msra.mxu0 %v390_v5  ;;  %v383_v8 = vld [vmem:[#allocation11 + $0x10] sm:$0xff]  ;;  %v384_v9 = vld [vmem:[#allocation11 + $0x18] sm:$0xff]  ;;  %v385_v10 = vld [vmem:[#allocation11 + $0x20] sm:$0xff]  ;;  %s9574_s25 = sld [smem:[#allocation66_spill]] }
  0x60   :  { %491 = vmatpush.msra.mxu1 %v391_v6  ;;  %412 = vmatpush.msra.mxu2 %v381_v7  ;;  %v388_v11 = vld [vmem:[#allocation11 + $0x38] sm:$0xff]  ;;  %v375_v12 = vld [vmem:[#allocation10 + $0x30] sm:$0xff]  ;;  %v377_v13 = vld [vmem:[#allocation10 + $0x40] sm:$0xff] }
  0x61   :  { %452 = vmatpush.msrb.mxu3 %v383_v8  ;;  %472 = vmatpush.msra.mxu0 %v384_v9  ;;  %v382_v14 = vld [vmem:[#allocation11 + $0x8] sm:$0xff]  ;;  %v369_v15 = vld [vmem:[#allocation10] sm:$0xff]  ;;  %v371_v16 = vld [vmem:[#allocation10 + $0x10] sm:$0xff] }
  0x62   :  { %492 = vmatpush.msra.mxu1 %v385_v10  ;;  %431 = vmatpush.msrb.mxu2 %v388_v11  ;;  %v376_v17 = vld [vmem:[#allocation10 + $0x38] sm:$0xff]  ;;  %v370_v18 = vld [vmem:[#allocation10 + $0x8] sm:$0xff]  ;;  %v379_v25 = vld [vmem:[#allocation10 + $0x50] sm:$0xff] }
  0x63   :  { %534 = vmatpush.msra.mxu3 %v375_v12  ;;  %554 = vmatpush.msrb.mxu0 %v376_v17  ;;  %v7309_v19 = vld [vmem:[#allocation8] ss:$0 sm:$0xff]  ;;  %v768_v27 = vld [vmem:[#allocation14 + $0x2d0] sm:$0xff]  ;;  %v386_v28 = vld [vmem:[#allocation11 + $0x28] sm:$0xff] }
  0x64   :  { %574 = vmatpush.msrb.mxu1 %v377_v13  ;;  %432 = vmatpush.msrb.mxu2 %v382_v14  ;;  %v392_v24 = vld [vmem:[#allocation11 + $0x58] sm:$0xff]  ;;  %v373_v29 = vld [vmem:[#allocation10 + $0x20] sm:$0xff]  ;;  %v374_v30 = vld [vmem:[#allocation10 + $0x28] sm:$0xff] }
  0x65   :  { %535 = vmatpush.msra.mxu3 %v369_v15  ;;  %555 = vmatpush.msrb.mxu0 %v370_v18  ;;  %v380_v26 = vld [vmem:[#allocation10 + $0x58] sm:$0xff]  ;;  %v762_v31 = vld [vmem:[#allocation14 + $0x2a0] sm:$0xff] }
  0x66   :  { %575 = vmatpush.msrb.mxu1 %v371_v16  ;;  %v756_v32 = vld [vmem:[#allocation14 + $0x270] sm:$0xff]  ;;  %v378_v34 = vld [vmem:[#allocation10 + $0x48] sm:$0xff] }
  0x67   :  { %v7981_v33 = vld [vmem:[#allocation3] sm:$0x3]  ;;  %v750_v36 = vld [vmem:[#allocation14 + $0x240] sm:$0xff] }
  0x68   :  { %v960_v35 = vld [vmem:[#allocation14 + $0x8d0] sm:$0xff]  ;;  %v954_v39 = vld [vmem:[#allocation14 + $0x8a0] sm:$0xff] }
  0x69   :  { %v1056_v37 = vld [vmem:[#allocation14 + $0xbd0] sm:$0xff]  ;;  %v1050_v41 = vld [vmem:[#allocation14 + $0xba0] sm:$0xff] }
  0x6a   :  { %v372_v38 = vld [vmem:[#allocation10 + $0x18] sm:$0xff]  ;;  %v738_v43 = vld [vmem:[#allocation14 + $0x1e0] sm:$0xff] }
  0x6b   :  { %v744_v40 = vld [vmem:[#allocation14 + $0x210] sm:$0xff]  ;;  %v942_v46 = vld [vmem:[#allocation14 + $0x840] sm:$0xff] }
  0x6c   :  { %v948_v42 = vld [vmem:[#allocation14 + $0x870] sm:$0xff]  ;;  %v858_v48 = vld [vmem:[#allocation14 + $0x5a0] sm:$0xff] }
  0x6d   :  { %v1044_v44 = vld [vmem:[#allocation14 + $0xb70] sm:$0xff]  ;;  %v1038_v49 = vld [vmem:[#allocation14 + $0xb40] sm:$0xff] }
  0x6e   :  { %v864_v45 = vld [vmem:[#allocation14 + $0x5d0] sm:$0xff]  ;;  %v726_v51 = vld [vmem:[#allocation14 + $0x180] sm:$0xff] }
  0x6f   :  { %v732_v47 = vld [vmem:[#allocation14 + $0x1b0] sm:$0xff]  ;;  %v930_v54 = vld [vmem:[#allocation14 + $0x7e0] sm:$0xff] }
  0x70   :  { %v936_v50 = vld [vmem:[#allocation14 + $0x810] sm:$0xff]  ;;  %v846_v56 = vld [vmem:[#allocation14 + $0x540] sm:$0xff] }
  0x71   :  { %v852_v52 = vld [vmem:[#allocation14 + $0x570] sm:$0xff]  ;;  %v1026_v57 = vld [vmem:[#allocation14 + $0xae0] sm:$0xff] }
  0x72   :  { %v1032_v53 = vld [vmem:[#allocation14 + $0xb10] sm:$0xff]  ;;  %v714_v60 = vld [vmem:[#allocation14 + $0x120] sm:$0xff] }
  0x73   :  { %v720_v55 = vld [vmem:[#allocation14 + $0x150] sm:$0xff]  ;;  %v918_v61 = vld [vmem:[#allocation14 + $0x780] sm:$0xff] }
  0x74   :  { %v924_v58 = vld [vmem:[#allocation14 + $0x7b0] sm:$0xff]  ;;  %v834_v63 = vld [vmem:[#allocation14 + $0x4e0] sm:$0xff] }
  0x75   :  { %v840_v59 = vld [vmem:[#allocation14 + $0x510] sm:$0xff]  ;;  %v1014_v2 = vld [vmem:[#allocation14 + $0xa80] sm:$0xff] }
  0x76   :  { %v1020_v62 = vld [vmem:[#allocation14 + $0xab0] sm:$0xff]  ;;  %v702_v4 = vld [vmem:[#allocation14 + $0xc0] sm:$0xff] }
  0x77   :  { %v708_v0 = vld [vmem:[#allocation14 + $0xf0] sm:$0xff]  ;;  %v906_v5 = vld [vmem:[#allocation14 + $0x720] sm:$0xff] }
  0x78   :  { %v912_v1 = vld [vmem:[#allocation14 + $0x750] sm:$0xff]  ;;  %v822_v7 = vld [vmem:[#allocation14 + $0x480] sm:$0xff] }
  0x79   :  { %v828_v3 = vld [vmem:[#allocation14 + $0x4b0] sm:$0xff]  ;;  %v1002_v10 = vld [vmem:[#allocation14 + $0xa20] sm:$0xff] }
  0x7a   :  { %v1008_v6 = vld [vmem:[#allocation14 + $0xa50] sm:$0xff]  ;;  %v690_v12 = vld [vmem:[#allocation14 + $0x60] sm:$0xff] }
  0x7b   :  { %v696_v8 = vld [vmem:[#allocation14 + $0x90] sm:$0xff]  ;;  %v894_v13 = vld [vmem:[#allocation14 + $0x6c0] sm:$0xff] }
  0x7c   :  { %v900_v9 = vld [vmem:[#allocation14 + $0x6f0] sm:$0xff]  ;;  %v810_v15 = vld [vmem:[#allocation14 + $0x420] sm:$0xff] }
  0x7d   :  { %v816_v11 = vld [vmem:[#allocation14 + $0x450] sm:$0xff]  ;;  %v990_v18 = vld [vmem:[#allocation14 + $0x9c0] sm:$0xff] }
  0x7e   :  { %v996_v14 = vld [vmem:[#allocation14 + $0x9f0] sm:$0xff] }
  0x7f   :  { %v684_v16 = vld [vmem:[#allocation14 + $0x30] sm:$0xff] }
  0x80   :  { %v888_v17 = vld [vmem:[#allocation14 + $0x690] sm:$0xff] }
  0xe1   :  { %v362_v20 = vpop.f32.mrf.mxu3 }
  0xe2   :  { %v363_v21 = vadd.f32 %v7309_v19, %v362_v20  ;;  %v804_v19 = vld [vmem:[#allocation14 + $0x3f0] sm:$0xff]  ;;  %v678_v20 = vld [vmem:[#allocation14] sm:$0xff] }
  0xe4   :  { %vm365_vm2 = vcmp.gt.f32.partialorder %v363_v21, 0.0  ;;  %v366_v22 = vmul.f32 0.2, %v363_v21 }
  0xe6   :  { %v367_v23 = vsel %vm365_vm2, %v363_v21, %v366_v22  ;;  %v882_v21 = vld [vmem:[#allocation14 + $0x660] sm:$0xff]  ;;  %v1152_v22 = vld [vmem:[#allocation14 + $0xed0] sm:$0xff] }
  0xe7   :  { %7216 = vmatmul.msk.f32.vlgmr.msra.gmra.mxu2 %vm393_vm3, %v367_v23  ;;  %7218 = vmatmul.msk.f32.vlgmr.msrb.gmra.mxu3 %vm393_vm3, %v367_v23 }
  0xe8   :  { %7219 = vmatmul.msk.f32.vlgmr.msra.gmra.mxu0 %vm393_vm3, %v367_v23  ;;  %7220 = vmatmul.msk.f32.vlgmr.msra.gmra.mxu1 %vm393_vm3, %v367_v23 }
  0xe9   :  { %511 = vmatpush.msra.mxu2 %v392_v24  ;;  %614 = vmatpush.msrb.mxu3 %v379_v25  ;;  %v876_v24 = vld [vmem:[#allocation14 + $0x630] sm:$0xff]  ;;  %v1146_v25 = vld [vmem:[#allocation14 + $0xea0] sm:$0xff] }
  0xea   :  { %634 = vmatpush.msra.mxu0 %v380_v26  ;;  %1254 = vmatpush.msra.mxu1 %v768_v27  ;;  %v792_v26 = vld [vmem:[#allocation14 + $0x390] sm:$0xff]  ;;  %v870_v27 = vld [vmem:[#allocation14 + $0x600] sm:$0xff] }
  0xeb   :  { %512 = vmatpush.msra.mxu2 %v386_v28  ;;  %615 = vmatpush.msrb.mxu3 %v373_v29  ;;  %v1140_v28 = vld [vmem:[#allocation14 + $0xe70] sm:$0xff]  ;;  %v769_v29 = vld [vmem:[#allocation14 + $0x2d8] sm:$0xff] }
  0xec   :  { %635 = vmatpush.msra.mxu0 %v374_v30  ;;  %1255 = vmatpush.msra.mxu1 %v762_v31  ;;  %v786_v30 = vld [vmem:[#allocation14 + $0x360] sm:$0xff] }
  0xed   :  { %v1134_v31 = vld [vmem:[#allocation14 + $0xe40] sm:$0xff] }
  0xee   :  { %1256 = vmatpush.msra.mxu1 %v756_v32  ;;  %v763_v32 = vld [vmem:[#allocation14 + $0x2a8] sm:$0xff] }
  0xef   :  { %7217 = vmatmul.msk.f32.vlgmr.msrb.gmra.mxu2 %vm393_vm3, %v367_v23  ;;  %7222 = vmatmul.msk.f32.vlgmr.msra.gmra.mxu3 %vm393_vm3, %v7981_v33 }
  0xf0   :  { %7224 = vmatmul.msk.f32.vlgmr.msrb.gmra.mxu1 %vm393_vm3, %v7981_v33  ;;  %7223 = vmatmul.msk.f32.vlgmr.msrb.gmra.mxu0 %vm393_vm3, %v7981_v33 }
  0xf1   :  { %594 = vmatpush.msrb.mxu2 %v378_v34  ;;  %1294 = vmatpush.msra.mxu3 %v960_v35  ;;  %v1128_v34 = vld [vmem:[#allocation14 + $0xe10] sm:$0xff]  ;;  %v757_v35 = vld [vmem:[#allocation14 + $0x278] sm:$0xff] }
  0xf2   :  { %1257 = vmatpush.msra.mxu1 %v750_v36  ;;  %1314 = vmatpush.msrb.mxu0 %v1056_v37  ;;  %v774_v36 = vld [vmem:[#allocation14 + $0x300] sm:$0xff]  ;;  %v1248_v37 = vld [vmem:[#allocation14 + $0x11d0] sm:$0xff] }
  0xf3   :  { %595 = vmatpush.msrb.mxu2 %v372_v38  ;;  %1295 = vmatpush.msra.mxu3 %v954_v39  ;;  %v751_v38 = vld [vmem:[#allocation14 + $0x248] sm:$0xff]  ;;  %v1242_v39 = vld [vmem:[#allocation14 + $0x11a0] sm:$0xff] }
  0xf4   :  { %1258 = vmatpush.msra.mxu1 %v744_v40  ;;  %1315 = vmatpush.msrb.mxu0 %v1050_v41  ;;  %v745_v40 = vld [vmem:[#allocation14 + $0x218] sm:$0xff]  ;;  %v1236_v41 = vld [vmem:[#allocation14 + $0x1170] sm:$0xff] }
  0xf5   :  { %1296 = vmatpush.msra.mxu3 %v948_v42  ;;  %v739_v42 = vld [vmem:[#allocation14 + $0x1e8] sm:$0xff] }
  0xf6   :  { %1259 = vmatpush.msra.mxu1 %v738_v43  ;;  %1316 = vmatpush.msrb.mxu0 %v1044_v44  ;;  %v1230_v43 = vld [vmem:[#allocation14 + $0x1140] sm:$0xff]  ;;  %v733_v44 = vld [vmem:[#allocation14 + $0x1b8] sm:$0xff] }
  0xf7   :  { %7221 = vmatmul.msk.f32.vlgmr.msra.gmra.mxu2 %vm393_vm3, %v367_v23  ;;  %7226 = vmatmul.msk.f32.vlgmr.msrb.gmra.mxu3 %vm393_vm3, %v7981_v33  ;;  %v798_v23 = vld [vmem:[#allocation14 + $0x3c0] sm:$0xff] }
  0xf8   :  { %7227 = vmatmul.msk.f32.vlgmr.msra.gmra.mxu0 %vm393_vm3, %v7981_v33  ;;  %1274 = vmatpush.msra.mxu2 %v864_v45  ;;  %v1224_v45 = vld [vmem:[#allocation14 + $0x1110] sm:$0xff] }
  0xf9   :  { %1297 = vmatpush.msra.mxu3 %v942_v46  ;;  %1260 = vmatpush.msra.mxu1 %v732_v47  ;;  %v727_v46 = vld [vmem:[#allocation14 + $0x188] sm:$0xff]  ;;  %v984_v47 = vld [vmem:[#allocation14 + $0x990] sm:$0xff] }
  0xfa   :  { %1275 = vmatpush.msra.mxu2 %v858_v48  ;;  %1317 = vmatpush.msrb.mxu0 %v1038_v49  ;;  %v1122_v48 = vld [vmem:[#allocation14 + $0xde0] sm:$0xff] }
  0xfb   :  { %1298 = vmatpush.msra.mxu3 %v936_v50  ;;  %1261 = vmatpush.msra.mxu1 %v726_v51  ;;  %v1218_v49 = vld [vmem:[#allocation14 + $0x10e0] sm:$0xff]  ;;  %v721_v50 = vld [vmem:[#allocation14 + $0x158] sm:$0xff] }
  0xfc   :  { %1276 = vmatpush.msra.mxu2 %v852_v52  ;;  %1318 = vmatpush.msrb.mxu0 %v1032_v53  ;;  %v978_v51 = vld [vmem:[#allocation14 + $0x960] sm:$0xff]  ;;  %v1116_v52 = vld [vmem:[#allocation14 + $0xdb0] sm:$0xff] }
  0xfd   :  { %1299 = vmatpush.msra.mxu3 %v930_v54  ;;  %1262 = vmatpush.msra.mxu1 %v720_v55  ;;  %v1212_v53 = vld [vmem:[#allocation14 + $0x10b0] sm:$0xff]  ;;  %v715_v54 = vld [vmem:[#allocation14 + $0x128] sm:$0xff] }
  0xfe   :  { %1277 = vmatpush.msra.mxu2 %v846_v56  ;;  %1319 = vmatpush.msrb.mxu0 %v1026_v57  ;;  %v972_v55 = vld [vmem:[#allocation14 + $0x930] sm:$0xff]  ;;  %v1110_v56 = vld [vmem:[#allocation14 + $0xd80] sm:$0xff] }
  0xff   :  { %7225 = vmatmul.msk.f32.vlgmr.msrb.gmra.mxu2 %vm393_vm3, %v7981_v33  ;;  %1300 = vmatpush.msra.mxu3 %v924_v58  ;;  %v780_v33 = vld [vmem:[#allocation14 + $0x330] sm:$0xff]  ;;  %v1206_v57 = vld [vmem:[#allocation14 + $0x1080] sm:$0xff]  ;;  %v709_v58 = vld [vmem:[#allocation14 + $0xf8] sm:$0xff] }
 0x100   :  { %1278 = vmatpush.msra.mxu2 %v840_v59  ;;  %1263 = vmatpush.msra.mxu1 %v714_v60  ;;  %v966_v59 = vld [vmem:[#allocation14 + $0x900] sm:$0xff]  ;;  %v1104_v60 = vld [vmem:[#allocation14 + $0xd50] sm:$0xff] }
 0x101   :  { %1301 = vmatpush.msra.mxu3 %v918_v61  ;;  %1320 = vmatpush.msrb.mxu0 %v1020_v62  ;;  %v1200_v61 = vld [vmem:[#allocation14 + $0x1050] sm:$0xff]  ;;  %v703_v62 = vld [vmem:[#allocation14 + $0xc8] sm:$0xff] }
 0x102   :  { %1279 = vmatpush.msra.mxu2 %v834_v63  ;;  %1264 = vmatpush.msra.mxu1 %v708_v0  ;;  %v865_v63 = vld [vmem:[#allocation14 + $0x5d8] sm:$0xff]  ;;  %v1098_v0 = vld [vmem:[#allocation14 + $0xd20] sm:$0xff] }
 0x103   :  { %1302 = vmatpush.msra.mxu3 %v912_v1  ;;  %1321 = vmatpush.msrb.mxu0 %v1014_v2  ;;  %v1194_v1 = vld [vmem:[#allocation14 + $0x1020] sm:$0xff]  ;;  %v697_v2 = vld [vmem:[#allocation14 + $0x98] sm:$0xff] }
 0x104   :  { %1280 = vmatpush.msra.mxu2 %v828_v3  ;;  %1265 = vmatpush.msra.mxu1 %v702_v4  ;;  %v859_v3 = vld [vmem:[#allocation14 + $0x5a8] sm:$0xff]  ;;  %v1092_v4 = vld [vmem:[#allocation14 + $0xcf0] sm:$0xff] }
 0x105   :  { %1303 = vmatpush.msra.mxu3 %v906_v5  ;;  %1322 = vmatpush.msrb.mxu0 %v1008_v6  ;;  %v1188_v5 = vld [vmem:[#allocation14 + $0xff0] sm:$0xff]  ;;  %v691_v6 = vld [vmem:[#allocation14 + $0x68] sm:$0xff] }
 0x106   :  { %1281 = vmatpush.msra.mxu2 %v822_v7  ;;  %1266 = vmatpush.msra.mxu1 %v696_v8  ;;  %v853_v7 = vld [vmem:[#allocation14 + $0x578] sm:$0xff]  ;;  %v1086_v8 = vld [vmem:[#allocation14 + $0xcc0] sm:$0xff] }
 0x107   :  { %1304 = vmatpush.msra.mxu3 %v900_v9  ;;  %1323 = vmatpush.msrb.mxu0 %v1002_v10  ;;  %v1182_v9 = vld [vmem:[#allocation14 + $0xfc0] sm:$0xff]  ;;  %v685_v10 = vld [vmem:[#allocation14 + $0x38] sm:$0xff] }
 0x108   :  { %1282 = vmatpush.msra.mxu2 %v816_v11  ;;  %1267 = vmatpush.msra.mxu1 %v690_v12  ;;  %v847_v11 = vld [vmem:[#allocation14 + $0x548] sm:$0xff]  ;;  %v1080_v12 = vld [vmem:[#allocation14 + $0xc90] sm:$0xff] }
 0x109   :  { %1305 = vmatpush.msra.mxu3 %v894_v13  ;;  %1324 = vmatpush.msrb.mxu0 %v996_v14  ;;  %v1176_v13 = vld [vmem:[#allocation14 + $0xf90] sm:$0xff]  ;;  %v679_v14 = vld [vmem:[#allocation14 + $0x8] sm:$0xff] }
 0x10a   :  { %1283 = vmatpush.msra.mxu2 %v810_v15  ;;  %1268 = vmatpush.msra.mxu1 %v684_v16  ;;  %v841_v15 = vld [vmem:[#allocation14 + $0x518] sm:$0xff]  ;;  %v1074_v16 = vld [vmem:[#allocation14 + $0xc60] sm:$0xff] }
 0x10b   :  { %1306 = vmatpush.msra.mxu3 %v888_v17  ;;  %1325 = vmatpush.msrb.mxu0 %v990_v18  ;;  %v1170_v17 = vld [vmem:[#allocation14 + $0xf60] sm:$0xff]  ;;  %v835_v18 = vld [vmem:[#allocation14 + $0x4e8] sm:$0xff] }
 0x10c   :  { %1284 = vmatpush.msra.mxu2 %v804_v19  ;;  %1269 = vmatpush.msra.mxu1 %v678_v20  ;;  %v1068_v19 = vld [vmem:[#allocation14 + $0xc30] sm:$0xff] }
 0x10d   :  { %1307 = vmatpush.msra.mxu3 %v882_v21  ;;  %1326 = vmatpush.msrb.mxu0 %v984_v47  ;;  %v1164_v20 = vld [vmem:[#allocation14 + $0xf30] sm:$0xff]  ;;  %v829_v21 = vld [vmem:[#allocation14 + $0x4b8] sm:$0xff] }
 0x10e   :  { %1334 = vmatpush.msrb.mxu1 %v1152_v22  ;;  %1285 = vmatpush.msra.mxu2 %v798_v23  ;;  %v1062_v22 = vld [vmem:[#allocation14 + $0xc00] sm:$0xff] }
 0x10f   :  { %1308 = vmatpush.msra.mxu3 %v876_v24  ;;  %1327 = vmatpush.msrb.mxu0 %v978_v51  ;;  %v1158_v23 = vld [vmem:[#allocation14 + $0xf00] sm:$0xff]  ;;  %v823_v24 = vld [vmem:[#allocation14 + $0x488] sm:$0xff] }
 0x110   :  { %1335 = vmatpush.msrb.mxu1 %v1146_v25  ;;  %1286 = vmatpush.msra.mxu2 %v792_v26  ;;  %v817_v25 = vld [vmem:[#allocation14 + $0x458] sm:$0xff]  ;;  %v811_v26 = vld [vmem:[#allocation14 + $0x428] sm:$0xff] }
 0x111   :  { %1309 = vmatpush.msra.mxu3 %v870_v27  ;;  %1328 = vmatpush.msrb.mxu0 %v972_v55  ;;  %v805_v27 = vld [vmem:[#allocation14 + $0x3f8] sm:$0xff] }
 0x112   :  { %1336 = vmatpush.msrb.mxu1 %v1140_v28  ;;  %1287 = vmatpush.msra.mxu2 %v786_v30  ;;  %v799_v28 = vld [vmem:[#allocation14 + $0x3c8] sm:$0xff]  ;;  %v793_v30 = vld [vmem:[#allocation14 + $0x398] sm:$0xff] }
 0x113   :  { %1374 = vmatpush.msrb.mxu3 %v769_v29  ;;  %1329 = vmatpush.msrb.mxu0 %v966_v59  ;;  %v1141_v55 = vld [vmem:[#allocation14 + $0xe78] sm:$0xff] }
 0x114   :  { %1337 = vmatpush.msrb.mxu1 %v1134_v31  ;;  %1288 = vmatpush.msra.mxu2 %v780_v33  ;;  %v7999_v33 = vld [vmem:[#allocation13] sm:$0x3f] }
 0x115   :  { %1375 = vmatpush.msrb.mxu3 %v763_v32  ;;  %1394 = vmatpush.msra.mxu0 %v865_v63  ;;  %v787_v32 = vld [vmem:[#allocation14 + $0x368] sm:$0xff]  ;;  %v961_v59 = vld [vmem:[#allocation14 + $0x8d8] sm:$0xff]  ;;  %v647_v63 = vperm.slane %v7999_v33, 5 }
 0x116   :  { %1338 = vmatpush.msrb.mxu1 %v1128_v34  ;;  %1289 = vmatpush.msra.mxu2 %v774_v36  ;;  %v781_v34 = vld [vmem:[#allocation14 + $0x338] sm:$0xff] }
 0x117   :  { %1376 = vmatpush.msrb.mxu3 %v757_v35  ;;  %1395 = vmatpush.msra.mxu0 %v859_v3 }
 0x118   :  { %1354 = vmatpush.msrb.mxu2 %v1248_v37  ;;  %1339 = vmatpush.msrb.mxu1 %v1122_v48  ;;  %v775_v37 = vld [vmem:[#allocation14 + $0x308] sm:$0xff] }
 0x119   :  { %1377 = vmatpush.msrb.mxu3 %v751_v38  ;;  %1396 = vmatpush.msra.mxu0 %v853_v7  ;;  %v644_v38 = vperm.slane %v7999_v33, 2  ;;  %v1051_v7 = vld [vmem:[#allocation14 + $0xba8] sm:$0xff] }
 0x11a   :  { %1355 = vmatpush.msrb.mxu2 %v1242_v39  ;;  %1340 = vmatpush.msrb.mxu1 %v1116_v52 }
 0x11b   :  { %1378 = vmatpush.msrb.mxu3 %v745_v40  ;;  %1397 = vmatpush.msra.mxu0 %v847_v11 }
 0x11c   :  { %1356 = vmatpush.msrb.mxu2 %v1236_v41  ;;  %1341 = vmatpush.msrb.mxu1 %v1110_v56 }
 0x11d   :  { %1379 = vmatpush.msrb.mxu3 %v739_v42  ;;  %1398 = vmatpush.msra.mxu0 %v841_v15  ;;  %v1039_v15 = vld [vmem:[#allocation14 + $0xb48] sm:$0xff] }
 0x11e   :  { %1357 = vmatpush.msrb.mxu2 %v1230_v43  ;;  %1342 = vmatpush.msrb.mxu1 %v1104_v60  ;;  %v642_v43 = vperm.slane %v7999_v33, 0 }
 0x11f   :  { %1380 = vmatpush.msrb.mxu3 %v733_v44  ;;  %1399 = vmatpush.msra.mxu0 %v835_v18  ;;  %v643_v44 = vperm.slane %v7999_v33, 1 }
 0x120   :  { %1358 = vmatpush.msrb.mxu2 %v1224_v45  ;;  %1343 = vmatpush.msrb.mxu1 %v1098_v0  ;;  %v1057_v0 = vld [vmem:[#allocation14 + $0xbd8] sm:$0xff] }
 0x121   :  { %1381 = vmatpush.msrb.mxu3 %v727_v46  ;;  %1400 = vmatpush.msra.mxu0 %v829_v21  ;;  %v645_v21 = vperm.slane %v7999_v33, 3 }
 0x122   :  { %1359 = vmatpush.msrb.mxu2 %v1218_v49  ;;  %1344 = vmatpush.msrb.mxu1 %v1092_v4  ;;  %v955_v4 = vld [vmem:[#allocation14 + $0x8a8] sm:$0xff] }
 0x123   :  { %1382 = vmatpush.msrb.mxu3 %v721_v50  ;;  %1401 = vmatpush.msra.mxu0 %v823_v24  ;;  %v1153_v50 = vld [vmem:[#allocation14 + $0xed8] sm:$0xff] }
 0x124   :  { %1360 = vmatpush.msrb.mxu2 %v1212_v53  ;;  %1345 = vmatpush.msrb.mxu1 %v1086_v8  ;;  %v1129_v8 = vld [vmem:[#allocation14 + $0xe18] sm:$0xff] }
 0x125   :  { %1383 = vmatpush.msrb.mxu3 %v715_v54  ;;  %1402 = vmatpush.msra.mxu0 %v817_v25  ;;  %v1147_v54 = vld [vmem:[#allocation14 + $0xea8] sm:$0xff] }
 0x126   :  { %1361 = vmatpush.msrb.mxu2 %v1206_v57  ;;  %1346 = vmatpush.msrb.mxu1 %v1080_v12  ;;  %v1045_v12 = vld [vmem:[#allocation14 + $0xb78] sm:$0xff]  ;;  %v1111_v25 = vld [vmem:[#allocation14 + $0xd88] sm:$0xff] }
 0x127   :  { %1384 = vmatpush.msrb.mxu3 %v709_v58  ;;  %1403 = vmatpush.msra.mxu0 %v811_v26 }
 0x128   :  { %1362 = vmatpush.msrb.mxu2 %v1200_v61  ;;  %1347 = vmatpush.msrb.mxu1 %v1074_v16  ;;  %v1117_v16 = vld [vmem:[#allocation14 + $0xdb8] sm:$0xff] }
 0x129   :  { %1385 = vmatpush.msrb.mxu3 %v703_v62  ;;  %1404 = vmatpush.msra.mxu0 %v805_v27  ;;  %v646_v62 = vperm.slane %v7999_v33, 4  ;;  %v931_v27 = vld [vmem:[#allocation14 + $0x7e8] sm:$0xff]  ;;  %v1021_v33 = vld [vmem:[#allocation14 + $0xab8] sm:$0xff] }
 0x12a   :  { %1363 = vmatpush.msrb.mxu2 %v1194_v1  ;;  %1348 = vmatpush.msrb.mxu1 %v1068_v19  ;;  %v1135_v1 = vld [vmem:[#allocation14 + $0xe48] sm:$0xff] }
 0x12b   :  { %1386 = vmatpush.msrb.mxu3 %v697_v2  ;;  %1405 = vmatpush.msra.mxu0 %v799_v28  ;;  %v1027_v28 = vld [vmem:[#allocation14 + $0xae8] sm:$0xff] }
 0x12c   :  { %1364 = vmatpush.msrb.mxu2 %v1188_v5  ;;  %1349 = vmatpush.msrb.mxu1 %v1062_v22  ;;  %v937_v22 = vld [vmem:[#allocation14 + $0x818] sm:$0xff] }
 0x12d   :  { %1387 = vmatpush.msrb.mxu3 %v691_v6  ;;  %1406 = vmatpush.msra.mxu0 %v793_v30 }
 0x12e   :  { %1365 = vmatpush.msrb.mxu2 %v1182_v9  ;;  %v949_v9 = vld [vmem:[#allocation14 + $0x878] sm:$0xff] }
 0x12f   :  { %1388 = vmatpush.msrb.mxu3 %v685_v10  ;;  %1407 = vmatpush.msra.mxu0 %v787_v32  ;;  %v925_v32 = vld [vmem:[#allocation14 + $0x7b8] sm:$0xff] }
 0x130   :  { %1366 = vmatpush.msrb.mxu2 %v1176_v13  ;;  %v1123_v13 = vld [vmem:[#allocation14 + $0xde8] sm:$0xff] }
 0x131   :  { %1389 = vmatpush.msrb.mxu3 %v679_v14  ;;  %1408 = vmatpush.msra.mxu0 %v781_v34  ;;  %v943_v14 = vld [vmem:[#allocation14 + $0x848] sm:$0xff] }
 0x132   :  { %1367 = vmatpush.msrb.mxu2 %v1170_v17  ;;  %v1099_v34 = vld [vmem:[#allocation14 + $0xd28] sm:$0xff] }
 0x133   :  { %1409 = vmatpush.msra.mxu0 %v775_v37  ;;  %v1093_v37 = vld [vmem:[#allocation14 + $0xcf8] sm:$0xff] }
 0x134   :  { %1368 = vmatpush.msrb.mxu2 %v1164_v20 }
 0x136   :  { %1369 = vmatpush.msrb.mxu2 %v1158_v23  ;;  %v1033_v23 = vld [vmem:[#allocation14 + $0xb18] sm:$0xff] }
 0x165   :  { %v494_v29 = vpop.f32.mrf.mxu1  ;;  %v7997_v31 = vpop.f32.mrf.mxu0 }
 0x16a   :  { %v414_v35 = vpop.f32.mrf.mxu2  ;;  %v454_v36 = vpop.f32.mrf.mxu3 }
 0x16d   :  { %v577_v39 = vpop.f32.mrf.mxu1  ;;  %v557_v41 = vpop.f32.mrf.mxu0 }
 0x16e   :  { %v578_v40 = vadd.f32 %v577_v39, %v454_v36  ;;  %v1015_v36 = vld [vmem:[#allocation14 + $0xa88] sm:$0xff]  ;;  %v913_v39 = vld [vmem:[#allocation14 + $0x758] sm:$0xff] }
 0x170   :  { %v656_v42 = vadd.f32 %v644_v38, %v578_v40  ;;  %v1009_v40 = vld [vmem:[#allocation14 + $0xa58] sm:$0xff] }
 0x172   :  { %vm662_vm4 = vcmp.gt.f32.partialorder %v656_v42, 0.0  ;;  %v668_v45 = vmul.f32 0.2, %v656_v42  ;;  %v434_v46 = vpop.f32.mrf.mxu2  ;;  %v537_v47 = vpop.f32.mrf.mxu3 }
 0x173   :  { %v538_v48 = vadd.f32 %v537_v47, %v414_v35  ;;  %v558_v49 = vadd.f32 %v557_v41, %v434_v46  ;;  %v1087_v41 = vld [vmem:[#allocation14 + $0xcc8] sm:$0xff]  ;;  %v901_v47 = vld [vmem:[#allocation14 + $0x6f8] sm:$0xff] }
 0x174   :  { %v8004_v51 = vsel %vm662_vm4, %v656_v42, %v668_v45  ;;  %v1249_v42 = vld [vmem:[#allocation14 + $0x11d8] sm:$0xff]  ;;  %v1243_v46 = vld [vmem:[#allocation14 + $0x11a8] sm:$0xff] }
 0x175   :  { %v654_v52 = vadd.f32 %v642_v43, %v538_v48  ;;  %v655_v53 = vadd.f32 %v643_v44, %v558_v49  ;;  %1310 = vmatmul.f32.vlgmr.msra.gmra.mxu3 %v8004_v51  ;;  %v637_v58 = vpop.f32.mrf.mxu0  ;;  %v907_v43 = vld [vmem:[#allocation14 + $0x728] sm:$0xff]  ;;  %v1081_v45 = vld [vmem:[#allocation14 + $0xc98] sm:$0xff] }
 0x176   :  { %1454 = vmatpush.msra.mxu3 %v1153_v50  ;;  %v1003_v44 = vld [vmem:[#allocation14 + $0xa28] sm:$0xff]  ;;  %v997_v48 = vld [vmem:[#allocation14 + $0x9f8] sm:$0xff] }
 0x177   :  { %vm660_vm5 = vcmp.gt.f32.partialorder %v654_v52, 0.0  ;;  %v666_v56 = vmul.f32 0.2, %v654_v52  ;;  %vm661_vm6 = vcmp.gt.f32.partialorder %v655_v53, 0.0  ;;  %v667_v57 = vmul.f32 0.2, %v655_v53 }
 0x178   :  { %1455 = vmatpush.msra.mxu3 %v1147_v54  ;;  %v1075_v49 = vld [vmem:[#allocation14 + $0xc68] sm:$0xff]  ;;  %v1237_v50 = vld [vmem:[#allocation14 + $0x1178] sm:$0xff] }
 0x179   :  { %v8007_v60 = vsel %vm660_vm5, %v654_v52, %v666_v56  ;;  %v8009_v61 = vsel %vm661_vm6, %v655_v53, %v667_v57  ;;  %v895_v52 = vld [vmem:[#allocation14 + $0x6c8] sm:$0xff]  ;;  %v1069_v54 = vld [vmem:[#allocation14 + $0xc38] sm:$0xff] }
 0x17a   :  { %1456 = vmatpush.msra.mxu3 %v1141_v55  ;;  %v514_v2 = vpop.f32.mrf.mxu2  ;;  %v617_v3 = vpop.f32.mrf.mxu3  ;;  %1270 = vmatmul.f32.vlgmr.msra.gmra.mxu1 %v8007_v60  ;;  %v991_v53 = vld [vmem:[#allocation14 + $0x9c8] sm:$0xff]  ;;  %v889_v56 = vld [vmem:[#allocation14 + $0x698] sm:$0xff] }
 0x17b   :  { %v618_v5 = vadd.f32 %v617_v3, %v494_v29  ;;  %v638_v6 = vadd.f32 %v637_v58, %v514_v2  ;;  %1290 = vmatmul.f32.vlgmr.msra.gmra.mxu2 %v8009_v61  ;;  %1414 = vmatpush.msra.mxu1 %v961_v59  ;;  %v1105_v29 = vld [vmem:[#allocation14 + $0xd58] sm:$0xff]  ;;  %v1231_v55 = vld [vmem:[#allocation14 + $0x1148] sm:$0xff]  ;;  %v956_v2 = vld [vmem:[#allocation14 + $0x8b0] sm:$0xff] }
 0x17c   :  { %1434 = vmatpush.msra.mxu2 %v1057_v0  ;;  %1457 = vmatpush.msra.mxu3 %v1135_v1  ;;  %v985_v57 = vld [vmem:[#allocation14 + $0x998] sm:$0xff]  ;;  %v1063_v58 = vld [vmem:[#allocation14 + $0xc08] sm:$0xff] }
 0x17d   :  { %v658_v10 = vadd.f32 %v646_v62, %v618_v5  ;;  %v659_v11 = vadd.f32 %v647_v63, %v638_v6  ;;  %1390 = vmatmul.f32.vlgmr.msrb.gmra.mxu3 %v8007_v60  ;;  %1415 = vmatpush.msra.mxu1 %v955_v4  ;;  %v1225_v59 = vld [vmem:[#allocation14 + $0x1118] sm:$0xff]  ;;  %v962_v62 = vld [vmem:[#allocation14 + $0x8e0] sm:$0xff]  ;;  %v883_v63 = vld [vmem:[#allocation14 + $0x668] sm:$0xff] }
 0x17e   :  { %1435 = vmatpush.msra.mxu2 %v1051_v7  ;;  %1458 = vmatpush.msra.mxu3 %v1129_v8  ;;  %v979_v0 = vld [vmem:[#allocation14 + $0x968] sm:$0xff]  ;;  %v877_v3 = vld [vmem:[#allocation14 + $0x638] sm:$0xff]  ;;  %v950_v6 = vld [vmem:[#allocation14 + $0x880] sm:$0xff] }
 0x17f   :  { %vm664_vm7 = vcmp.gt.f32.partialorder %v658_v10, 0.0  ;;  %v670_v17 = vmul.f32 0.2, %v658_v10  ;;  %vm665_vm8 = vcmp.gt.f32.partialorder %v659_v11, 0.0  ;;  %v671_v18 = vmul.f32 0.2, %v659_v11  ;;  %1416 = vmatpush.msra.mxu1 %v949_v9 }
 0x180   :  { %1436 = vmatpush.msra.mxu2 %v1045_v12  ;;  %1459 = vmatpush.msra.mxu3 %v1123_v13  ;;  %v1219_v1 = vld [vmem:[#allocation14 + $0x10e8] sm:$0xff]  ;;  %v973_v4 = vld [vmem:[#allocation14 + $0x938] sm:$0xff]  ;;  %v944_v12 = vld [vmem:[#allocation14 + $0x850] sm:$0xff] }
 0x181   :  { %v8016_v19 = vsel %vm664_vm7, %v658_v10, %v670_v17  ;;  %v8018_v20 = vsel %vm665_vm8, %v659_v11, %v671_v18  ;;  %1417 = vmatpush.msra.mxu1 %v943_v14  ;;  %v1213_v5 = vld [vmem:[#allocation14 + $0x10b8] sm:$0xff]  ;;  %v871_v7 = vld [vmem:[#allocation14 + $0x608] sm:$0xff]  ;;  %v770_v10 = vld [vmem:[#allocation14 + $0x2e0] sm:$0xff]  ;;  %vm4047_vm8 = vcmask 648192  }
 0x182   :  { %1437 = vmatpush.msra.mxu2 %v1039_v15  ;;  %1460 = vmatpush.msra.mxu3 %v1117_v16  ;;  %v597_v24 = vpop.f32.mrf.mxu2  ;;  %v967_v8 = vld [vmem:[#allocation14 + $0x908] sm:$0xff]  ;;  %v866_v11 = vld [vmem:[#allocation14 + $0x5e0] sm:$0xff]  ;;  %v1201_v13 = vld [vmem:[#allocation14 + $0x1058] sm:$0xff] }
 0x183   :  { %v598_v26 = vadd.f32 %v597_v24, %v7997_v31  ;;  %1350 = vmatmul.f32.vlgmr.msrb.gmra.mxu1 %v8016_v19  ;;  %1370 = vmatmul.f32.vlgmr.msrb.gmra.mxu2 %v8018_v20  ;;  %v919_v31 = vld [vmem:[#allocation14 + $0x788] sm:$0xff]  ;;  %v764_v14 = vld [vmem:[#allocation14 + $0x2b0] sm:$0xff]  ;;  %v938_v16 = vld [vmem:[#allocation14 + $0x820] sm:$0xff] }
 0x184   :  { %1418 = vmatpush.msra.mxu1 %v937_v22  ;;  %1438 = vmatpush.msra.mxu2 %v1033_v23  ;;  %v1207_v9 = vld [vmem:[#allocation14 + $0x1088] sm:$0xff]  ;;  %v860_v15 = vld [vmem:[#allocation14 + $0x5b0] sm:$0xff]  ;;  %v758_v18 = vld [vmem:[#allocation14 + $0x280] sm:$0xff] }
 0x185   :  { %v657_v30 = vadd.f32 %v645_v21, %v598_v26  ;;  %1461 = vmatpush.msra.mxu3 %v1111_v25  ;;  %v1195_v17 = vld [vmem:[#allocation14 + $0x1028] sm:$0xff]  ;;  %v854_v21 = vld [vmem:[#allocation14 + $0x580] sm:$0xff]  ;;  %v932_v22 = vld [vmem:[#allocation14 + $0x7f0] sm:$0xff] }
 0x186   :  { %1419 = vmatpush.msra.mxu1 %v931_v27  ;;  %1439 = vmatpush.msra.mxu2 %v1027_v28  ;;  %v1189_v23 = vld [vmem:[#allocation14 + $0xff8] sm:$0xff]  ;;  %v752_v24 = vld [vmem:[#allocation14 + $0x250] sm:$0xff]  ;;  %v926_v26 = vld [vmem:[#allocation14 + $0x7c0] sm:$0xff] }
 0x187   :  { %vm663_vm9 = vcmp.gt.f32.partialorder %v657_v30, 0.0  ;;  %v669_v35 = vmul.f32 0.2, %v657_v30  ;;  %1462 = vmatpush.msra.mxu3 %v1105_v29  ;;  %v848_v25 = vld [vmem:[#allocation14 + $0x550] sm:$0xff]  ;;  %v1183_v27 = vld [vmem:[#allocation14 + $0xfc8] sm:$0xff]  ;;  %v746_v28 = vld [vmem:[#allocation14 + $0x220] sm:$0xff] }
 0x188   :  { %1420 = vmatpush.msra.mxu1 %v925_v32  ;;  %1440 = vmatpush.msra.mxu2 %v1021_v33  ;;  %v842_v29 = vld [vmem:[#allocation14 + $0x520] sm:$0xff]  ;;  %v1177_v32 = vld [vmem:[#allocation14 + $0xf98] sm:$0xff]  ;;  %v740_v33 = vld [vmem:[#allocation14 + $0x1f0] sm:$0xff] }
 0x189   :  { %v8024_v38 = vsel %vm663_vm9, %v657_v30, %v669_v35  ;;  %1463 = vmatpush.msra.mxu3 %v1099_v34  ;;  %v920_v30 = vld [vmem:[#allocation14 + $0x790] sm:$0xff]  ;;  %v914_v35 = vld [vmem:[#allocation14 + $0x760] sm:$0xff]  ;;  %vm4193_vm9 = vcmask 654336  }
 0x18a   :  { %1421 = vmatpush.msra.mxu1 %v919_v31  ;;  %1441 = vmatpush.msra.mxu2 %v1015_v36  ;;  %v836_v34 = vld [vmem:[#allocation14 + $0x4f0] sm:$0xff]  ;;  %v1171_v31 = vld [vmem:[#allocation14 + $0xf68] sm:$0xff]  ;;  %v734_v36 = vld [vmem:[#allocation14 + $0x1c0] sm:$0xff] }
 0x18b   :  { %1464 = vmatpush.msra.mxu3 %v1093_v37  ;;  %1330 = vmatmul.f32.vlgmr.msrb.gmra.mxu0 %v8024_v38  ;;  %v830_v37 = vld [vmem:[#allocation14 + $0x4c0] sm:$0xff] }
 0x18c   :  { %1422 = vmatpush.msra.mxu1 %v913_v39  ;;  %1442 = vmatpush.msra.mxu2 %v1009_v40  ;;  %v908_v39 = vld [vmem:[#allocation14 + $0x730] sm:$0xff]  ;;  %v1165_v40 = vld [vmem:[#allocation14 + $0xf38] sm:$0xff] }
 0x18d   :  { %1465 = vmatpush.msra.mxu3 %v1087_v41  ;;  %1474 = vmatpush.msrb.mxu0 %v1249_v42  ;;  %v728_v41 = vld [vmem:[#allocation14 + $0x190] sm:$0xff] }
 0x18e   :  { %1423 = vmatpush.msra.mxu1 %v907_v43  ;;  %1443 = vmatpush.msra.mxu2 %v1003_v44  ;;  %v824_v42 = vld [vmem:[#allocation14 + $0x490] sm:$0xff]  ;;  %v902_v43 = vld [vmem:[#allocation14 + $0x700] sm:$0xff]  ;;  %v1159_v44 = vld [vmem:[#allocation14 + $0xf08] sm:$0xff] }
 0x18f   :  { %1466 = vmatpush.msra.mxu3 %v1081_v45  ;;  %1475 = vmatpush.msrb.mxu0 %v1243_v46  ;;  %v722_v45 = vld [vmem:[#allocation14 + $0x160] sm:$0xff] }
 0x190   :  { %1424 = vmatpush.msra.mxu1 %v901_v47  ;;  %1444 = vmatpush.msra.mxu2 %v997_v48  ;;  %v818_v46 = vld [vmem:[#allocation14 + $0x460] sm:$0xff]  ;;  %v896_v47 = vld [vmem:[#allocation14 + $0x6d0] sm:$0xff] }
 0x191   :  { %1467 = vmatpush.msra.mxu3 %v1075_v49  ;;  %1476 = vmatpush.msrb.mxu0 %v1237_v50  ;;  %v1058_v48 = vld [vmem:[#allocation14 + $0xbe0] sm:$0xff]  ;;  %v716_v49 = vld [vmem:[#allocation14 + $0x130] sm:$0xff] }
 0x192   :  { %1425 = vmatpush.msra.mxu1 %v895_v52  ;;  %1445 = vmatpush.msra.mxu2 %v991_v53  ;;  %v812_v50 = vld [vmem:[#allocation14 + $0x430] sm:$0xff]  ;;  %v890_v52 = vld [vmem:[#allocation14 + $0x6a0] sm:$0xff] }
 0x193   :  { %1468 = vmatpush.msra.mxu3 %v1069_v54  ;;  %1477 = vmatpush.msrb.mxu0 %v1231_v55  ;;  %v1052_v53 = vld [vmem:[#allocation14 + $0xbb0] sm:$0xff]  ;;  %v710_v54 = vld [vmem:[#allocation14 + $0x100] sm:$0xff] }
 0x194   :  { %1410 = vmatmul.f32.vlgmr.msra.gmra.mxu0 %v8009_v61  ;;  %1426 = vmatpush.msra.mxu1 %v889_v56  ;;  %v806_v55 = vld [vmem:[#allocation14 + $0x400] sm:$0xff]  ;;  %v884_v56 = vld [vmem:[#allocation14 + $0x670] sm:$0xff] }
 0x195   :  { %1446 = vmatpush.msra.mxu2 %v985_v57  ;;  %1469 = vmatpush.msra.mxu3 %v1063_v58  ;;  %v1046_v57 = vld [vmem:[#allocation14 + $0xb80] sm:$0xff]  ;;  %v704_v58 = vld [vmem:[#allocation14 + $0xd0] sm:$0xff] }
 0x196   :  { %1478 = vmatpush.msrb.mxu0 %v1225_v59  ;;  %1470 = vmatmul.f32.vlgmr.msra.gmra.mxu3 %v8016_v19  ;;  %v800_v59 = vld [vmem:[#allocation14 + $0x3d0] sm:$0xff] }
 0x197   :  { %1534 = vmatpush.msrb.mxu3 %v962_v62  ;;  %1427 = vmatpush.msra.mxu1 %v883_v63  ;;  %v878_v62 = vld [vmem:[#allocation14 + $0x640] sm:$0xff]  ;;  %v1040_v63 = vld [vmem:[#allocation14 + $0xb50] sm:$0xff] }
 0x198   :  { %1447 = vmatpush.msra.mxu2 %v979_v0  ;;  %1479 = vmatpush.msrb.mxu0 %v1219_v1  ;;  %v698_v0 = vld [vmem:[#allocation14 + $0xa0] sm:$0xff] }
 0x199   :  { %1535 = vmatpush.msrb.mxu3 %v956_v2  ;;  %1428 = vmatpush.msra.mxu1 %v877_v3  ;;  %v794_v1 = vld [vmem:[#allocation14 + $0x3a0] sm:$0xff]  ;;  %v872_v2 = vld [vmem:[#allocation14 + $0x610] sm:$0xff] }
 0x19a   :  { %1448 = vmatpush.msra.mxu2 %v973_v4  ;;  %1480 = vmatpush.msrb.mxu0 %v1213_v5  ;;  %v1034_v3 = vld [vmem:[#allocation14 + $0xb20] sm:$0xff]  ;;  %v771_v4 = vld [vmem:[#allocation14 + $0x2e8] sm:$0xff]  ;;  %v692_v5 = vld [vmem:[#allocation14 + $0x70] sm:$0xff] }
 0x19b   :  { %1536 = vmatpush.msrb.mxu3 %v950_v6  ;;  %1429 = vmatpush.msra.mxu1 %v871_v7  ;;  %v788_v6 = vld [vmem:[#allocation14 + $0x370] sm:$0xff] }
 0x19c   :  { %1449 = vmatpush.msra.mxu2 %v967_v8  ;;  %1481 = vmatpush.msrb.mxu0 %v1207_v9  ;;  %v1028_v7 = vld [vmem:[#allocation14 + $0xaf0] sm:$0xff]  ;;  %v765_v8 = vld [vmem:[#allocation14 + $0x2b8] sm:$0xff]  ;;  %v686_v9 = vld [vmem:[#allocation14 + $0x40] sm:$0xff] }
 0x19d   :  { %1430 = vmatmul.f32.vlgmr.msra.gmra.mxu1 %v8004_v51  ;;  %1450 = vmatmul.f32.vlgmr.msra.gmra.mxu2 %v8024_v38 }
 0x19e   :  { %1494 = vmatpush.msrb.mxu1 %v770_v10  ;;  %1514 = vmatpush.msrb.mxu2 %v866_v11  ;;  %v782_v10 = vld [vmem:[#allocation14 + $0x340] sm:$0xff] }
 0x19f   :  { %1537 = vmatpush.msrb.mxu3 %v944_v12  ;;  %1482 = vmatpush.msrb.mxu0 %v1201_v13  ;;  %v1022_v11 = vld [vmem:[#allocation14 + $0xac0] sm:$0xff]  ;;  %v759_v12 = vld [vmem:[#allocation14 + $0x288] sm:$0xff]  ;;  %v680_v13 = vld [vmem:[#allocation14 + $0x10] sm:$0xff] }
 0x1a0   :  { %1495 = vmatpush.msrb.mxu1 %v764_v14  ;;  %1515 = vmatpush.msrb.mxu2 %v860_v15  ;;  %v776_v14 = vld [vmem:[#allocation14 + $0x310] sm:$0xff] }
 0x1a1   :  { %1538 = vmatpush.msrb.mxu3 %v938_v16  ;;  %1483 = vmatpush.msrb.mxu0 %v1195_v17  ;;  %v1016_v15 = vld [vmem:[#allocation14 + $0xa90] sm:$0xff]  ;;  %v1154_v16 = vld [vmem:[#allocation14 + $0xee0] sm:$0xff] }
 0x1a2   :  { %1496 = vmatpush.msrb.mxu1 %v758_v18  ;;  %1516 = vmatpush.msrb.mxu2 %v854_v21  ;;  %v1250_v17 = vld [vmem:[#allocation14 + $0x11e0] sm:$0xff]  ;;  %v753_v18 = vld [vmem:[#allocation14 + $0x258] sm:$0xff] }
 0x1a3   :  { %1539 = vmatpush.msrb.mxu3 %v932_v22  ;;  %1484 = vmatpush.msrb.mxu0 %v1189_v23  ;;  %v1010_v21 = vld [vmem:[#allocation14 + $0xa60] sm:$0xff]  ;;  %v1148_v22 = vld [vmem:[#allocation14 + $0xeb0] sm:$0xff] }
 0x1a4   :  { %1497 = vmatpush.msrb.mxu1 %v752_v24  ;;  %1517 = vmatpush.msrb.mxu2 %v848_v25  ;;  %v1244_v23 = vld [vmem:[#allocation14 + $0x11b0] sm:$0xff]  ;;  %v747_v24 = vld [vmem:[#allocation14 + $0x228] sm:$0xff] }
 0x1a5   :  { %1540 = vmatpush.msrb.mxu3 %v926_v26  ;;  %1485 = vmatpush.msrb.mxu0 %v1183_v27  ;;  %v1004_v25 = vld [vmem:[#allocation14 + $0xa30] sm:$0xff]  ;;  %v1142_v26 = vld [vmem:[#allocation14 + $0xe80] sm:$0xff] }
 0x1a6   :  { %1498 = vmatpush.msrb.mxu1 %v746_v28  ;;  %1518 = vmatpush.msrb.mxu2 %v842_v29  ;;  %v1238_v27 = vld [vmem:[#allocation14 + $0x1180] sm:$0xff]  ;;  %v741_v28 = vld [vmem:[#allocation14 + $0x1f8] sm:$0xff] }
 0x1a7   :  { %1541 = vmatpush.msrb.mxu3 %v920_v30  ;;  %1486 = vmatpush.msrb.mxu0 %v1177_v32  ;;  %v998_v29 = vld [vmem:[#allocation14 + $0xa00] sm:$0xff]  ;;  %v1136_v30 = vld [vmem:[#allocation14 + $0xe50] sm:$0xff] }
 0x1a8   :  { %1499 = vmatpush.msrb.mxu1 %v740_v33  ;;  %1519 = vmatpush.msrb.mxu2 %v836_v34  ;;  %v1232_v32 = vld [vmem:[#allocation14 + $0x1150] sm:$0xff]  ;;  %v735_v33 = vld [vmem:[#allocation14 + $0x1c8] sm:$0xff] }
 0x1a9   :  { %1542 = vmatpush.msrb.mxu3 %v914_v35  ;;  %1487 = vmatpush.msrb.mxu0 %v1171_v31  ;;  %v992_v34 = vld [vmem:[#allocation14 + $0x9d0] sm:$0xff]  ;;  %v1130_v35 = vld [vmem:[#allocation14 + $0xe20] sm:$0xff] }
 0x1aa   :  { %1500 = vmatpush.msrb.mxu1 %v734_v36  ;;  %1520 = vmatpush.msrb.mxu2 %v830_v37  ;;  %v1226_v31 = vld [vmem:[#allocation14 + $0x1120] sm:$0xff]  ;;  %v729_v36 = vld [vmem:[#allocation14 + $0x198] sm:$0xff] }
 0x1ab   :  { %1543 = vmatpush.msrb.mxu3 %v908_v39  ;;  %1488 = vmatpush.msrb.mxu0 %v1165_v40  ;;  %v986_v37 = vld [vmem:[#allocation14 + $0x9a0] sm:$0xff]  ;;  %v1124_v39 = vld [vmem:[#allocation14 + $0xdf0] sm:$0xff] }
 0x1ac   :  { %1501 = vmatpush.msrb.mxu1 %v728_v41  ;;  %1521 = vmatpush.msrb.mxu2 %v824_v42  ;;  %v1220_v40 = vld [vmem:[#allocation14 + $0x10f0] sm:$0xff]  ;;  %v723_v41 = vld [vmem:[#allocation14 + $0x168] sm:$0xff] }
 0x1ad   :  { %1544 = vmatpush.msrb.mxu3 %v902_v43  ;;  %1489 = vmatpush.msrb.mxu0 %v1159_v44  ;;  %v980_v42 = vld [vmem:[#allocation14 + $0x970] sm:$0xff]  ;;  %v1118_v43 = vld [vmem:[#allocation14 + $0xdc0] sm:$0xff] }
 0x1ae   :  { %1490 = vmatmul.f32.vlgmr.msrb.gmra.mxu0 %v8018_v20  ;;  %1502 = vmatpush.msrb.mxu1 %v722_v45  ;;  %v1214_v44 = vld [vmem:[#allocation14 + $0x10c0] sm:$0xff]  ;;  %v717_v45 = vld [vmem:[#allocation14 + $0x138] sm:$0xff] }
 0x1af   :  { %1522 = vmatpush.msrb.mxu2 %v818_v46  ;;  %1545 = vmatpush.msrb.mxu3 %v896_v47  ;;  %v974_v46 = vld [vmem:[#allocation14 + $0x940] sm:$0xff]  ;;  %v1112_v47 = vld [vmem:[#allocation14 + $0xd90] sm:$0xff] }
 0x1b0   :  { %1554 = vmatpush.msra.mxu0 %v1058_v48  ;;  %1503 = vmatpush.msrb.mxu1 %v716_v49  ;;  %v1208_v48 = vld [vmem:[#allocation14 + $0x1090] sm:$0xff]  ;;  %v711_v49 = vld [vmem:[#allocation14 + $0x108] sm:$0xff] }
 0x1b1   :  { %1523 = vmatpush.msrb.mxu2 %v812_v50  ;;  %1546 = vmatpush.msrb.mxu3 %v890_v52  ;;  %v968_v50 = vld [vmem:[#allocation14 + $0x910] sm:$0xff]  ;;  %v1106_v52 = vld [vmem:[#allocation14 + $0xd60] sm:$0xff] }
 0x1b2   :  { %1555 = vmatpush.msra.mxu0 %v1052_v53  ;;  %1504 = vmatpush.msrb.mxu1 %v710_v54  ;;  %v1202_v53 = vld [vmem:[#allocation14 + $0x1060] sm:$0xff]  ;;  %v705_v54 = vld [vmem:[#allocation14 + $0xd8] sm:$0xff] }
 0x1b3   :  { %1524 = vmatpush.msrb.mxu2 %v806_v55  ;;  %1547 = vmatpush.msrb.mxu3 %v884_v56  ;;  %v867_v55 = vld [vmem:[#allocation14 + $0x5e8] sm:$0xff]  ;;  %v1100_v56 = vld [vmem:[#allocation14 + $0xd30] sm:$0xff] }
 0x1b4   :  { %1556 = vmatpush.msra.mxu0 %v1046_v57  ;;  %1505 = vmatpush.msrb.mxu1 %v704_v58  ;;  %v1196_v57 = vld [vmem:[#allocation14 + $0x1030] sm:$0xff]  ;;  %v699_v58 = vld [vmem:[#allocation14 + $0xa8] sm:$0xff] }
 0x1b5   :  { %1525 = vmatpush.msrb.mxu2 %v800_v59  ;;  %1548 = vmatpush.msrb.mxu3 %v878_v62  ;;  %v861_v59 = vld [vmem:[#allocation14 + $0x5b8] sm:$0xff]  ;;  %v1094_v62 = vld [vmem:[#allocation14 + $0xd00] sm:$0xff] }
 0x1b6   :  { %1557 = vmatpush.msra.mxu0 %v1040_v63  ;;  %1506 = vmatpush.msrb.mxu1 %v698_v0  ;;  %v1190_v63 = vld [vmem:[#allocation14 + $0x1000] sm:$0xff]  ;;  %v693_v0 = vld [vmem:[#allocation14 + $0x78] sm:$0xff] }
 0x1b7   :  { %1526 = vmatpush.msrb.mxu2 %v794_v1  ;;  %1549 = vmatpush.msrb.mxu3 %v872_v2  ;;  %v855_v1 = vld [vmem:[#allocation14 + $0x588] sm:$0xff]  ;;  %v1088_v2 = vld [vmem:[#allocation14 + $0xcd0] sm:$0xff] }
 0x1b8   :  { %1558 = vmatpush.msra.mxu0 %v1034_v3  ;;  %1550 = vmatmul.f32.vlgmr.msrb.gmra.mxu3 %v8004_v51  ;;  %v1184_v3 = vld [vmem:[#allocation14 + $0xfd0] sm:$0xff] }
 0x1b9   :  { %1614 = vmatpush.msra.mxu3 %v771_v4  ;;  %1507 = vmatpush.msrb.mxu1 %v692_v5  ;;  %v687_v4 = vld [vmem:[#allocation14 + $0x48] sm:$0xff]  ;;  %v849_v5 = vld [vmem:[#allocation14 + $0x558] sm:$0xff] }
 0x1ba   :  { %1527 = vmatpush.msrb.mxu2 %v788_v6  ;;  %1559 = vmatpush.msra.mxu0 %v1028_v7  ;;  %v1082_v6 = vld [vmem:[#allocation14 + $0xca0] sm:$0xff] }
 0x1bb   :  { %1615 = vmatpush.msra.mxu3 %v765_v8  ;;  %1508 = vmatpush.msrb.mxu1 %v686_v9  ;;  %v1178_v7 = vld [vmem:[#allocation14 + $0xfa0] sm:$0xff]  ;;  %v681_v8 = vld [vmem:[#allocation14 + $0x18] sm:$0xff]  ;;  %v843_v9 = vld [vmem:[#allocation14 + $0x528] sm:$0xff] }
 0x1bc   :  { %1528 = vmatpush.msrb.mxu2 %v782_v10  ;;  %1560 = vmatpush.msra.mxu0 %v1022_v11  ;;  %v1155_v10 = vld [vmem:[#allocation14 + $0xee8] sm:$0xff]  ;;  %v1076_v11 = vld [vmem:[#allocation14 + $0xc70] sm:$0xff] }
 0x1bd   :  { %1616 = vmatpush.msra.mxu3 %v759_v12  ;;  %1509 = vmatpush.msrb.mxu1 %v680_v13  ;;  %v1172_v12 = vld [vmem:[#allocation14 + $0xf70] sm:$0xff]  ;;  %v837_v13 = vld [vmem:[#allocation14 + $0x4f8] sm:$0xff] }
 0x1be   :  { %1529 = vmatpush.msrb.mxu2 %v776_v14  ;;  %1561 = vmatpush.msra.mxu0 %v1016_v15  ;;  %v1149_v14 = vld [vmem:[#allocation14 + $0xeb8] sm:$0xff]  ;;  %v1070_v15 = vld [vmem:[#allocation14 + $0xc40] sm:$0xff] }
 0x1bf   :  { %1510 = vmatmul.f32.vlgmr.msrb.gmra.mxu1 %v8007_v60  ;;  %1530 = vmatmul.f32.vlgmr.msrb.gmra.mxu2 %v8009_v61 }
 0x1c0   :  { %1574 = vmatpush.msra.mxu1 %v1154_v16  ;;  %1594 = vmatpush.msra.mxu2 %v1250_v17  ;;  %v1166_v16 = vld [vmem:[#allocation14 + $0xf40] sm:$0xff]  ;;  %v831_v17 = vld [vmem:[#allocation14 + $0x4c8] sm:$0xff] }
 0x1c1   :  { %1617 = vmatpush.msra.mxu3 %v753_v18  ;;  %1562 = vmatpush.msra.mxu0 %v1010_v21  ;;  %v1143_v18 = vld [vmem:[#allocation14 + $0xe88] sm:$0xff]  ;;  %v1064_v21 = vld [vmem:[#allocation14 + $0xc10] sm:$0xff] }
 0x1c2   :  { %1575 = vmatpush.msra.mxu1 %v1148_v22  ;;  %1595 = vmatpush.msra.mxu2 %v1244_v23  ;;  %v1160_v22 = vld [vmem:[#allocation14 + $0xf10] sm:$0xff]  ;;  %v825_v23 = vld [vmem:[#allocation14 + $0x498] sm:$0xff] }
 0x1c3   :  { %1618 = vmatpush.msra.mxu3 %v747_v24  ;;  %1563 = vmatpush.msra.mxu0 %v1004_v25  ;;  %v963_v24 = vld [vmem:[#allocation14 + $0x8e8] sm:$0xff] }
 0x1c4   :  { %1576 = vmatpush.msra.mxu1 %v1142_v26  ;;  %1596 = vmatpush.msra.mxu2 %v1238_v27  ;;  %v1059_v25 = vld [vmem:[#allocation14 + $0xbe8] sm:$0xff]  ;;  %v1137_v26 = vld [vmem:[#allocation14 + $0xe58] sm:$0xff] }
 0x1c5   :  { %1619 = vmatpush.msra.mxu3 %v741_v28  ;;  %1564 = vmatpush.msra.mxu0 %v998_v29  ;;  %v819_v27 = vld [vmem:[#allocation14 + $0x468] sm:$0xff]  ;;  %v957_v28 = vld [vmem:[#allocation14 + $0x8b8] sm:$0xff] }
 0x1c6   :  { %1577 = vmatpush.msra.mxu1 %v1136_v30  ;;  %1597 = vmatpush.msra.mxu2 %v1232_v32  ;;  %v1053_v29 = vld [vmem:[#allocation14 + $0xbb8] sm:$0xff]  ;;  %v1131_v30 = vld [vmem:[#allocation14 + $0xe28] sm:$0xff] }
 0x1c7   :  { %1620 = vmatpush.msra.mxu3 %v735_v33  ;;  %1565 = vmatpush.msra.mxu0 %v992_v34  ;;  %v813_v32 = vld [vmem:[#allocation14 + $0x438] sm:$0xff]  ;;  %v951_v33 = vld [vmem:[#allocation14 + $0x888] sm:$0xff] }
 0x1c8   :  { %1578 = vmatpush.msra.mxu1 %v1130_v35  ;;  %1598 = vmatpush.msra.mxu2 %v1226_v31  ;;  %v1047_v34 = vld [vmem:[#allocation14 + $0xb88] sm:$0xff]  ;;  %v1125_v35 = vld [vmem:[#allocation14 + $0xdf8] sm:$0xff] }
 0x1c9   :  { %1621 = vmatpush.msra.mxu3 %v729_v36  ;;  %1566 = vmatpush.msra.mxu0 %v986_v37  ;;  %v807_v31 = vld [vmem:[#allocation14 + $0x408] sm:$0xff]  ;;  %v945_v36 = vld [vmem:[#allocation14 + $0x858] sm:$0xff] }
 0x1ca   :  { %1579 = vmatpush.msra.mxu1 %v1124_v39  ;;  %1599 = vmatpush.msra.mxu2 %v1220_v40  ;;  %v1041_v37 = vld [vmem:[#allocation14 + $0xb58] sm:$0xff]  ;;  %v1119_v39 = vld [vmem:[#allocation14 + $0xdc8] sm:$0xff] }
 0x1cb   :  { %1622 = vmatpush.msra.mxu3 %v723_v41  ;;  %1567 = vmatpush.msra.mxu0 %v980_v42  ;;  %v801_v40 = vld [vmem:[#allocation14 + $0x3d8] sm:$0xff]  ;;  %v939_v41 = vld [vmem:[#allocation14 + $0x828] sm:$0xff] }
 0x1cc   :  { %1580 = vmatpush.msra.mxu1 %v1118_v43  ;;  %1600 = vmatpush.msra.mxu2 %v1214_v44  ;;  %v1035_v42 = vld [vmem:[#allocation14 + $0xb28] sm:$0xff]  ;;  %v1113_v43 = vld [vmem:[#allocation14 + $0xd98] sm:$0xff] }
 0x1cd   :  { %1623 = vmatpush.msra.mxu3 %v717_v45  ;;  %1568 = vmatpush.msra.mxu0 %v974_v46  ;;  %v795_v44 = vld [vmem:[#allocation14 + $0x3a8] sm:$0xff]  ;;  %v933_v45 = vld [vmem:[#allocation14 + $0x7f8] sm:$0xff] }
 0x1ce   :  { %1581 = vmatpush.msra.mxu1 %v1112_v47  ;;  %1601 = vmatpush.msra.mxu2 %v1208_v48  ;;  %v1029_v46 = vld [vmem:[#allocation14 + $0xaf8] sm:$0xff]  ;;  %v1107_v47 = vld [vmem:[#allocation14 + $0xd68] sm:$0xff] }
 0x1cf   :  { %1624 = vmatpush.msra.mxu3 %v711_v49  ;;  %1569 = vmatpush.msra.mxu0 %v968_v50  ;;  %v789_v48 = vld [vmem:[#allocation14 + $0x378] sm:$0xff]  ;;  %v927_v49 = vld [vmem:[#allocation14 + $0x7c8] sm:$0xff] }
 0x1d0   :  { %1570 = vmatmul.f32.vlgmr.msra.gmra.mxu0 %v8024_v38  ;;  %1582 = vmatpush.msra.mxu1 %v1106_v52  ;;  %v1023_v50 = vld [vmem:[#allocation14 + $0xac8] sm:$0xff]  ;;  %v1101_v52 = vld [vmem:[#allocation14 + $0xd38] sm:$0xff] }
 0x1d1   :  { %1602 = vmatpush.msra.mxu2 %v1202_v53  ;;  %1625 = vmatpush.msra.mxu3 %v705_v54  ;;  %v783_v53 = vld [vmem:[#allocation14 + $0x348] sm:$0xff]  ;;  %v921_v54 = vld [vmem:[#allocation14 + $0x798] sm:$0xff] }
 0x1d2   :  { %1634 = vmatpush.msrb.mxu0 %v867_v55  ;;  %1583 = vmatpush.msra.mxu1 %v1100_v56  ;;  %v1017_v55 = vld [vmem:[#allocation14 + $0xa98] sm:$0xff]  ;;  %v1095_v56 = vld [vmem:[#allocation14 + $0xd08] sm:$0xff] }
 0x1d3   :  { %1603 = vmatpush.msra.mxu2 %v1196_v57  ;;  %1626 = vmatpush.msra.mxu3 %v699_v58  ;;  %v777_v57 = vld [vmem:[#allocation14 + $0x318] sm:$0xff]  ;;  %v915_v58 = vld [vmem:[#allocation14 + $0x768] sm:$0xff] }
 0x1d4   :  { %1635 = vmatpush.msrb.mxu0 %v861_v59  ;;  %1584 = vmatpush.msra.mxu1 %v1094_v62  ;;  %v1011_v59 = vld [vmem:[#allocation14 + $0xa68] sm:$0xff]  ;;  %v1089_v62 = vld [vmem:[#allocation14 + $0xcd8] sm:$0xff] }
 0x1d5   :  { %1604 = vmatpush.msra.mxu2 %v1190_v63  ;;  %1627 = vmatpush.msra.mxu3 %v693_v0  ;;  %v1251_v63 = vld [vmem:[#allocation14 + $0x11e8] sm:$0xff]  ;;  %v909_v0 = vld [vmem:[#allocation14 + $0x738] sm:$0xff] }
 0x1d6   :  { %1636 = vmatpush.msrb.mxu0 %v855_v1  ;;  %1585 = vmatpush.msra.mxu1 %v1088_v2  ;;  %v1005_v1 = vld [vmem:[#allocation14 + $0xa38] sm:$0xff]  ;;  %v1083_v2 = vld [vmem:[#allocation14 + $0xca8] sm:$0xff] }
 0x1d7   :  { %1605 = vmatpush.msra.mxu2 %v1184_v3  ;;  %1628 = vmatpush.msra.mxu3 %v687_v4  ;;  %v1245_v3 = vld [vmem:[#allocation14 + $0x11b8] sm:$0xff]  ;;  %v903_v4 = vld [vmem:[#allocation14 + $0x708] sm:$0xff] }
 0x1d8   :  { %1637 = vmatpush.msrb.mxu0 %v849_v5  ;;  %1586 = vmatpush.msra.mxu1 %v1082_v6  ;;  %v999_v5 = vld [vmem:[#allocation14 + $0xa08] sm:$0xff]  ;;  %v1077_v6 = vld [vmem:[#allocation14 + $0xc78] sm:$0xff] }
 0x1d9   :  { %1606 = vmatpush.msra.mxu2 %v1178_v7  ;;  %1629 = vmatpush.msra.mxu3 %v681_v8  ;;  %v1239_v7 = vld [vmem:[#allocation14 + $0x1188] sm:$0xff]  ;;  %v897_v8 = vld [vmem:[#allocation14 + $0x6d8] sm:$0xff] }
 0x1da   :  { %1638 = vmatpush.msrb.mxu0 %v843_v9  ;;  %1630 = vmatmul.f32.vlgmr.msra.gmra.mxu3 %v8007_v60  ;;  %v993_v9 = vld [vmem:[#allocation14 + $0x9d8] sm:$0xff] }
 0x1db   :  { %1694 = vmatpush.msrb.mxu3 %v1155_v10  ;;  %1587 = vmatpush.msra.mxu1 %v1076_v11  ;;  %v1071_v10 = vld [vmem:[#allocation14 + $0xc48] sm:$0xff]  ;;  %v1233_v11 = vld [vmem:[#allocation14 + $0x1158] sm:$0xff] }
 0x1dc   :  { %1607 = vmatpush.msra.mxu2 %v1172_v12  ;;  %1639 = vmatpush.msrb.mxu0 %v837_v13  ;;  %v891_v12 = vld [vmem:[#allocation14 + $0x6a8] sm:$0xff] }
 0x1dd   :  { %1695 = vmatpush.msrb.mxu3 %v1149_v14  ;;  %1588 = vmatpush.msra.mxu1 %v1070_v15  ;;  %v987_v13 = vld [vmem:[#allocation14 + $0x9a8] sm:$0xff]  ;;  %v1065_v14 = vld [vmem:[#allocation14 + $0xc18] sm:$0xff] }
 0x1de   :  { %1608 = vmatpush.msra.mxu2 %v1166_v16  ;;  %1640 = vmatpush.msrb.mxu0 %v831_v17  ;;  %v1227_v15 = vld [vmem:[#allocation14 + $0x1128] sm:$0xff]  ;;  %v964_v16 = vld [vmem:[#allocation14 + $0x8f0] sm:$0xff]  ;;  %v885_v17 = vld [vmem:[#allocation14 + $0x678] sm:$0xff] }
 0x1df   :  { %1696 = vmatpush.msrb.mxu3 %v1143_v18  ;;  %1589 = vmatpush.msra.mxu1 %v1064_v21  ;;  %v981_v18 = vld [vmem:[#allocation14 + $0x978] sm:$0xff] }
 0x1e0   :  { %1609 = vmatpush.msra.mxu2 %v1160_v22  ;;  %1641 = vmatpush.msrb.mxu0 %v825_v23  ;;  %v1221_v21 = vld [vmem:[#allocation14 + $0x10f8] sm:$0xff]  ;;  %v958_v22 = vld [vmem:[#allocation14 + $0x8c0] sm:$0xff]  ;;  %v879_v23 = vld [vmem:[#allocation14 + $0x648] sm:$0xff] }
 0x1e1   :  { %1590 = vmatmul.f32.vlgmr.msra.gmra.mxu1 %v8016_v19  ;;  %1610 = vmatmul.f32.vlgmr.msra.gmra.mxu2 %v8018_v20 }
 0x1e2   :  { %1654 = vmatpush.msrb.mxu1 %v963_v24  ;;  %1674 = vmatpush.msrb.mxu2 %v1059_v25  ;;  %v975_v24 = vld [vmem:[#allocation14 + $0x948] sm:$0xff] }
 0x1e3   :  { %1697 = vmatpush.msrb.mxu3 %v1137_v26  ;;  %1642 = vmatpush.msrb.mxu0 %v819_v27  ;;  %v1215_v25 = vld [vmem:[#allocation14 + $0x10c8] sm:$0xff]  ;;  %v952_v26 = vld [vmem:[#allocation14 + $0x890] sm:$0xff]  ;;  %v873_v27 = vld [vmem:[#allocation14 + $0x618] sm:$0xff] }
 0x1e4   :  { %1655 = vmatpush.msrb.mxu1 %v957_v28  ;;  %1675 = vmatpush.msrb.mxu2 %v1053_v29  ;;  %v969_v28 = vld [vmem:[#allocation14 + $0x918] sm:$0xff] }
 0x1e5   :  { %1698 = vmatpush.msrb.mxu3 %v1131_v30  ;;  %1643 = vmatpush.msrb.mxu0 %v813_v32  ;;  %v1209_v29 = vld [vmem:[#allocation14 + $0x1098] sm:$0xff]  ;;  %v772_v30 = vld [vmem:[#allocation14 + $0x2f0] sm:$0xff] }
 0x1e6   :  { %1656 = vmatpush.msrb.mxu1 %v951_v33  ;;  %1676 = vmatpush.msrb.mxu2 %v1047_v34  ;;  %v868_v32 = vld [vmem:[#allocation14 + $0x5f0] sm:$0xff]  ;;  %v946_v33 = vld [vmem:[#allocation14 + $0x860] sm:$0xff]  ;;  %v1203_v34 = vld [vmem:[#allocation14 + $0x1068] sm:$0xff] }
 0x1e7   :  { %1699 = vmatpush.msrb.mxu3 %v1125_v35  ;;  %1644 = vmatpush.msrb.mxu0 %v807_v31  ;;  %v766_v35 = vld [vmem:[#allocation14 + $0x2c0] sm:$0xff] }
 0x1e8   :  { %1657 = vmatpush.msrb.mxu1 %v945_v36  ;;  %1677 = vmatpush.msrb.mxu2 %v1041_v37  ;;  %v862_v31 = vld [vmem:[#allocation14 + $0x5c0] sm:$0xff]  ;;  %v940_v36 = vld [vmem:[#allocation14 + $0x830] sm:$0xff]  ;;  %v1197_v37 = vld [vmem:[#allocation14 + $0x1038] sm:$0xff] }
 0x1e9   :  { %1700 = vmatpush.msrb.mxu3 %v1119_v39  ;;  %1645 = vmatpush.msrb.mxu0 %v801_v40  ;;  %v760_v39 = vld [vmem:[#allocation14 + $0x290] sm:$0xff] }
 0x1ea   :  { %1658 = vmatpush.msrb.mxu1 %v939_v41  ;;  %1678 = vmatpush.msrb.mxu2 %v1035_v42  ;;  %v856_v40 = vld [vmem:[#allocation14 + $0x590] sm:$0xff]  ;;  %v934_v41 = vld [vmem:[#allocation14 + $0x800] sm:$0xff]  ;;  %v1191_v42 = vld [vmem:[#allocation14 + $0x1008] sm:$0xff] }
 0x1eb   :  { %1701 = vmatpush.msrb.mxu3 %v1113_v43  ;;  %1646 = vmatpush.msrb.mxu0 %v795_v44  ;;  %v754_v43 = vld [vmem:[#allocation14 + $0x260] sm:$0xff] }
 0x1ec   :  { %1659 = vmatpush.msrb.mxu1 %v933_v45  ;;  %1679 = vmatpush.msrb.mxu2 %v1029_v46  ;;  %v850_v44 = vld [vmem:[#allocation14 + $0x560] sm:$0xff]  ;;  %v928_v45 = vld [vmem:[#allocation14 + $0x7d0] sm:$0xff]  ;;  %v1185_v46 = vld [vmem:[#allocation14 + $0xfd8] sm:$0xff] }
 0x1ed   :  { %1702 = vmatpush.msrb.mxu3 %v1107_v47  ;;  %1647 = vmatpush.msrb.mxu0 %v789_v48  ;;  %v748_v47 = vld [vmem:[#allocation14 + $0x230] sm:$0xff] }
 0x1ee   :  { %1660 = vmatpush.msrb.mxu1 %v927_v49  ;;  %1680 = vmatpush.msrb.mxu2 %v1023_v50  ;;  %v844_v48 = vld [vmem:[#allocation14 + $0x530] sm:$0xff]  ;;  %v922_v49 = vld [vmem:[#allocation14 + $0x7a0] sm:$0xff]  ;;  %v1179_v50 = vld [vmem:[#allocation14 + $0xfa8] sm:$0xff] }
 0x1ef   :  { %1703 = vmatpush.msrb.mxu3 %v1101_v52  ;;  %1648 = vmatpush.msrb.mxu0 %v783_v53  ;;  %v742_v52 = vld [vmem:[#allocation14 + $0x200] sm:$0xff] }
 0x1f0   :  { %1661 = vmatpush.msrb.mxu1 %v921_v54  ;;  %1681 = vmatpush.msrb.mxu2 %v1017_v55  ;;  %v838_v53 = vld [vmem:[#allocation14 + $0x500] sm:$0xff]  ;;  %v916_v54 = vld [vmem:[#allocation14 + $0x770] sm:$0xff]  ;;  %v1173_v55 = vld [vmem:[#allocation14 + $0xf78] sm:$0xff] }
 0x1f1   :  { %1704 = vmatpush.msrb.mxu3 %v1095_v56  ;;  %1649 = vmatpush.msrb.mxu0 %v777_v57  ;;  %v736_v56 = vld [vmem:[#allocation14 + $0x1d0] sm:$0xff] }
 0x1f2   :  { %1650 = vmatmul.f32.vlgmr.msrb.gmra.mxu0 %v8009_v61  ;;  %1662 = vmatpush.msrb.mxu1 %v915_v58  ;;  %v832_v57 = vld [vmem:[#allocation14 + $0x4d0] sm:$0xff]  ;;  %v910_v58 = vld [vmem:[#allocation14 + $0x740] sm:$0xff] }
 0x1f3   :  { %1682 = vmatpush.msrb.mxu2 %v1011_v59  ;;  %1705 = vmatpush.msrb.mxu3 %v1089_v62  ;;  %v1167_v59 = vld [vmem:[#allocation14 + $0xf48] sm:$0xff]  ;;  %v730_v62 = vld [vmem:[#allocation14 + $0x1a0] sm:$0xff] }
 0x1f4   :  { %1714 = vmatpush.msra.mxu0 %v1251_v63  ;;  %1663 = vmatpush.msrb.mxu1 %v909_v0  ;;  %v826_v63 = vld [vmem:[#allocation14 + $0x4a0] sm:$0xff]  ;;  %v904_v0 = vld [vmem:[#allocation14 + $0x710] sm:$0xff] }
 0x1f5   :  { %1683 = vmatpush.msrb.mxu2 %v1005_v1  ;;  %1706 = vmatpush.msrb.mxu3 %v1083_v2  ;;  %v1161_v1 = vld [vmem:[#allocation14 + $0xf18] sm:$0xff]  ;;  %v724_v2 = vld [vmem:[#allocation14 + $0x170] sm:$0xff] }
 0x1f6   :  { %1715 = vmatpush.msra.mxu0 %v1245_v3  ;;  %1664 = vmatpush.msrb.mxu1 %v903_v4  ;;  %v820_v3 = vld [vmem:[#allocation14 + $0x470] sm:$0xff]  ;;  %v898_v4 = vld [vmem:[#allocation14 + $0x6e0] sm:$0xff] }
 0x1f7   :  { %1684 = vmatpush.msrb.mxu2 %v999_v5  ;;  %1707 = vmatpush.msrb.mxu3 %v1077_v6  ;;  %v1060_v5 = vld [vmem:[#allocation14 + $0xbf0] sm:$0xff]  ;;  %v718_v6 = vld [vmem:[#allocation14 + $0x140] sm:$0xff] }
 0x1f8   :  { %1716 = vmatpush.msra.mxu0 %v1239_v7  ;;  %1665 = vmatpush.msrb.mxu1 %v897_v8  ;;  %v814_v7 = vld [vmem:[#allocation14 + $0x440] sm:$0xff]  ;;  %v892_v8 = vld [vmem:[#allocation14 + $0x6b0] sm:$0xff] }
 0x1f9   :  { %1685 = vmatpush.msrb.mxu2 %v993_v9  ;;  %1708 = vmatpush.msrb.mxu3 %v1071_v10  ;;  %v1054_v9 = vld [vmem:[#allocation14 + $0xbc0] sm:$0xff]  ;;  %v712_v10 = vld [vmem:[#allocation14 + $0x110] sm:$0xff] }
 0x1fa   :  { %1717 = vmatpush.msra.mxu0 %v1233_v11  ;;  %1666 = vmatpush.msrb.mxu1 %v891_v12  ;;  %v808_v11 = vld [vmem:[#allocation14 + $0x410] sm:$0xff]  ;;  %v886_v12 = vld [vmem:[#allocation14 + $0x680] sm:$0xff] }
 0x1fb   :  { %1686 = vmatpush.msrb.mxu2 %v987_v13  ;;  %1709 = vmatpush.msrb.mxu3 %v1065_v14  ;;  %v1048_v13 = vld [vmem:[#allocation14 + $0xb90] sm:$0xff]  ;;  %v706_v14 = vld [vmem:[#allocation14 + $0xe0] sm:$0xff] }
 0x1fc   :  { %1718 = vmatpush.msra.mxu0 %v1227_v15  ;;  %1710 = vmatmul.f32.vlgmr.msrb.gmra.mxu3 %v8016_v19  ;;  %v802_v15 = vld [vmem:[#allocation14 + $0x3e0] sm:$0xff] }
 0x1fd   :  { %1774 = vmatpush.msra.mxu3 %v964_v16  ;;  %1667 = vmatpush.msrb.mxu1 %v885_v17  ;;  %v880_v16 = vld [vmem:[#allocation14 + $0x650] sm:$0xff]  ;;  %v1042_v17 = vld [vmem:[#allocation14 + $0xb60] sm:$0xff] }
 0x1fe   :  { %1687 = vmatpush.msrb.mxu2 %v981_v18  ;;  %1719 = vmatpush.msra.mxu0 %v1221_v21  ;;  %v700_v18 = vld [vmem:[#allocation14 + $0xb0] sm:$0xff] }
 0x1ff   :  { %1775 = vmatpush.msra.mxu3 %v958_v22  ;;  %1668 = vmatpush.msrb.mxu1 %v879_v23  ;;  %v796_v21 = vld [vmem:[#allocation14 + $0x3b0] sm:$0xff]  ;;  %v874_v22 = vld [vmem:[#allocation14 + $0x620] sm:$0xff] }
 0x200   :  { %1688 = vmatpush.msrb.mxu2 %v975_v24  ;;  %1720 = vmatpush.msra.mxu0 %v1215_v25  ;;  %v1036_v23 = vld [vmem:[#allocation14 + $0xb30] sm:$0xff]  ;;  %v773_v24 = vld [vmem:[#allocation14 + $0x2f8] sm:$0xff]  ;;  %v694_v25 = vld [vmem:[#allocation14 + $0x80] sm:$0xff] }
 0x201   :  { %1776 = vmatpush.msra.mxu3 %v952_v26  ;;  %1669 = vmatpush.msrb.mxu1 %v873_v27  ;;  %v790_v26 = vld [vmem:[#allocation14 + $0x380] sm:$0xff] }
 0x202   :  { %1689 = vmatpush.msrb.mxu2 %v969_v28  ;;  %1721 = vmatpush.msra.mxu0 %v1209_v29  ;;  %v1030_v27 = vld [vmem:[#allocation14 + $0xb00] sm:$0xff]  ;;  %v767_v28 = vld [vmem:[#allocation14 + $0x2c8] sm:$0xff]  ;;  %v688_v29 = vld [vmem:[#allocation14 + $0x50] sm:$0xff] }
 0x203   :  { %1670 = vmatmul.f32.vlgmr.msrb.gmra.mxu1 %v8004_v51  ;;  %1690 = vmatmul.f32.vlgmr.msrb.gmra.mxu2 %v8024_v38 }
 0x204   :  { %1734 = vmatpush.msra.mxu1 %v772_v30  ;;  %1754 = vmatpush.msra.mxu2 %v868_v32  ;;  %v784_v30 = vld [vmem:[#allocation14 + $0x350] sm:$0xff] }
 0x205   :  { %1777 = vmatpush.msra.mxu3 %v946_v33  ;;  %1722 = vmatpush.msra.mxu0 %v1203_v34  ;;  %v1024_v32 = vld [vmem:[#allocation14 + $0xad0] sm:$0xff]  ;;  %v761_v33 = vld [vmem:[#allocation14 + $0x298] sm:$0xff]  ;;  %v682_v34 = vld [vmem:[#allocation14 + $0x20] sm:$0xff] }
 0x206   :  { %1735 = vmatpush.msra.mxu1 %v766_v35  ;;  %1755 = vmatpush.msra.mxu2 %v862_v31  ;;  %v778_v35 = vld [vmem:[#allocation14 + $0x320] sm:$0xff] }
 0x207   :  { %1778 = vmatpush.msra.mxu3 %v940_v36  ;;  %1723 = vmatpush.msra.mxu0 %v1197_v37  ;;  %v1018_v31 = vld [vmem:[#allocation14 + $0xaa0] sm:$0xff]  ;;  %v1156_v36 = vld [vmem:[#allocation14 + $0xef0] sm:$0xff] }
 0x208   :  { %1736 = vmatpush.msra.mxu1 %v760_v39  ;;  %1756 = vmatpush.msra.mxu2 %v856_v40  ;;  %v1252_v37 = vld [vmem:[#allocation14 + $0x11f0] sm:$0xff]  ;;  %v755_v39 = vld [vmem:[#allocation14 + $0x268] sm:$0xff] }
 0x209   :  { %1779 = vmatpush.msra.mxu3 %v934_v41  ;;  %1724 = vmatpush.msra.mxu0 %v1191_v42  ;;  %v1012_v40 = vld [vmem:[#allocation14 + $0xa70] sm:$0xff]  ;;  %v1150_v41 = vld [vmem:[#allocation14 + $0xec0] sm:$0xff] }
 0x20a   :  { %1737 = vmatpush.msra.mxu1 %v754_v43  ;;  %1757 = vmatpush.msra.mxu2 %v850_v44  ;;  %v1246_v42 = vld [vmem:[#allocation14 + $0x11c0] sm:$0xff]  ;;  %v749_v43 = vld [vmem:[#allocation14 + $0x238] sm:$0xff] }
 0x20b   :  { %1780 = vmatpush.msra.mxu3 %v928_v45  ;;  %1725 = vmatpush.msra.mxu0 %v1185_v46  ;;  %v1006_v44 = vld [vmem:[#allocation14 + $0xa40] sm:$0xff]  ;;  %v1144_v45 = vld [vmem:[#allocation14 + $0xe90] sm:$0xff] }
 0x20c   :  { %1738 = vmatpush.msra.mxu1 %v748_v47  ;;  %1758 = vmatpush.msra.mxu2 %v844_v48  ;;  %v1240_v46 = vld [vmem:[#allocation14 + $0x1190] sm:$0xff]  ;;  %v743_v47 = vld [vmem:[#allocation14 + $0x208] sm:$0xff] }
 0x20d   :  { %1781 = vmatpush.msra.mxu3 %v922_v49  ;;  %1726 = vmatpush.msra.mxu0 %v1179_v50  ;;  %v1000_v48 = vld [vmem:[#allocation14 + $0xa10] sm:$0xff]  ;;  %v1138_v49 = vld [vmem:[#allocation14 + $0xe60] sm:$0xff] }
 0x20e   :  { %1739 = vmatpush.msra.mxu1 %v742_v52  ;;  %1759 = vmatpush.msra.mxu2 %v838_v53  ;;  %v1234_v50 = vld [vmem:[#allocation14 + $0x1160] sm:$0xff]  ;;  %v737_v52 = vld [vmem:[#allocation14 + $0x1d8] sm:$0xff] }
 0x20f   :  { %1782 = vmatpush.msra.mxu3 %v916_v54  ;;  %1727 = vmatpush.msra.mxu0 %v1173_v55  ;;  %v994_v53 = vld [vmem:[#allocation14 + $0x9e0] sm:$0xff]  ;;  %v1132_v54 = vld [vmem:[#allocation14 + $0xe30] sm:$0xff] }
 0x210   :  { %1740 = vmatpush.msra.mxu1 %v736_v56  ;;  %1760 = vmatpush.msra.mxu2 %v832_v57  ;;  %v1228_v55 = vld [vmem:[#allocation14 + $0x1130] sm:$0xff]  ;;  %v731_v56 = vld [vmem:[#allocation14 + $0x1a8] sm:$0xff] }
 0x211   :  { %1783 = vmatpush.msra.mxu3 %v910_v58  ;;  %1728 = vmatpush.msra.mxu0 %v1167_v59  ;;  %v988_v57 = vld [vmem:[#allocation14 + $0x9b0] sm:$0xff]  ;;  %v1126_v58 = vld [vmem:[#allocation14 + $0xe00] sm:$0xff] }
 0x212   :  { %1741 = vmatpush.msra.mxu1 %v730_v62  ;;  %1761 = vmatpush.msra.mxu2 %v826_v63  ;;  %v1222_v59 = vld [vmem:[#allocation14 + $0x1100] sm:$0xff]  ;;  %v725_v62 = vld [vmem:[#allocation14 + $0x178] sm:$0xff] }
 0x213   :  { %1784 = vmatpush.msra.mxu3 %v904_v0  ;;  %1729 = vmatpush.msra.mxu0 %v1161_v1  ;;  %v982_v63 = vld [vmem:[#allocation14 + $0x980] sm:$0xff]  ;;  %v1120_v0 = vld [vmem:[#allocation14 + $0xdd0] sm:$0xff] }
 0x214   :  { %1730 = vmatmul.f32.vlgmr.msra.gmra.mxu0 %v8018_v20  ;;  %1742 = vmatpush.msra.mxu1 %v724_v2  ;;  %v1216_v1 = vld [vmem:[#allocation14 + $0x10d0] sm:$0xff]  ;;  %v719_v2 = vld [vmem:[#allocation14 + $0x148] sm:$0xff] }
 0x215   :  { %1762 = vmatpush.msra.mxu2 %v820_v3  ;;  %1785 = vmatpush.msra.mxu3 %v898_v4  ;;  %v976_v3 = vld [vmem:[#allocation14 + $0x950] sm:$0xff]  ;;  %v1114_v4 = vld [vmem:[#allocation14 + $0xda0] sm:$0xff] }
 0x216   :  { %1794 = vmatpush.msrb.mxu0 %v1060_v5  ;;  %1743 = vmatpush.msra.mxu1 %v718_v6  ;;  %v1210_v5 = vld [vmem:[#allocation14 + $0x10a0] sm:$0xff]  ;;  %v713_v6 = vld [vmem:[#allocation14 + $0x118] sm:$0xff] }
 0x217   :  { %1763 = vmatpush.msra.mxu2 %v814_v7  ;;  %1786 = vmatpush.msra.mxu3 %v892_v8  ;;  %v970_v7 = vld [vmem:[#allocation14 + $0x920] sm:$0xff]  ;;  %v1108_v8 = vld [vmem:[#allocation14 + $0xd70] sm:$0xff] }
 0x218   :  { %1795 = vmatpush.msrb.mxu0 %v1054_v9  ;;  %1744 = vmatpush.msra.mxu1 %v712_v10  ;;  %v1204_v9 = vld [vmem:[#allocation14 + $0x1070] sm:$0xff]  ;;  %v707_v10 = vld [vmem:[#allocation14 + $0xe8] sm:$0xff] }
 0x219   :  { %1764 = vmatpush.msra.mxu2 %v808_v11  ;;  %1787 = vmatpush.msra.mxu3 %v886_v12  ;;  %v869_v11 = vld [vmem:[#allocation14 + $0x5f8] sm:$0xff]  ;;  %v1102_v12 = vld [vmem:[#allocation14 + $0xd40] sm:$0xff] }
 0x21a   :  { %1796 = vmatpush.msrb.mxu0 %v1048_v13  ;;  %1745 = vmatpush.msra.mxu1 %v706_v14  ;;  %v1198_v13 = vld [vmem:[#allocation14 + $0x1040] sm:$0xff]  ;;  %v701_v14 = vld [vmem:[#allocation14 + $0xb8] sm:$0xff] }
 0x21b   :  { %1765 = vmatpush.msra.mxu2 %v802_v15  ;;  %1788 = vmatpush.msra.mxu3 %v880_v16  ;;  %v863_v15 = vld [vmem:[#allocation14 + $0x5c8] sm:$0xff]  ;;  %v1096_v16 = vld [vmem:[#allocation14 + $0xd10] sm:$0xff] }
 0x21c   :  { %1797 = vmatpush.msrb.mxu0 %v1042_v17  ;;  %1746 = vmatpush.msra.mxu1 %v700_v18  ;;  %v1192_v17 = vld [vmem:[#allocation14 + $0x1010] sm:$0xff]  ;;  %v695_v18 = vld [vmem:[#allocation14 + $0x88] sm:$0xff] }
 0x21d   :  { %1766 = vmatpush.msra.mxu2 %v796_v21  ;;  %1789 = vmatpush.msra.mxu3 %v874_v22  ;;  %v857_v21 = vld [vmem:[#allocation14 + $0x598] sm:$0xff]  ;;  %v1090_v22 = vld [vmem:[#allocation14 + $0xce0] sm:$0xff] }
 0x21e   :  { %1798 = vmatpush.msrb.mxu0 %v1036_v23  ;;  %1790 = vmatmul.f32.vlgmr.msra.gmra.mxu3 %v8004_v51  ;;  %v1186_v23 = vld [vmem:[#allocation14 + $0xfe0] sm:$0xff] }
 0x21f   :  { %1854 = vmatpush.msrb.mxu3 %v773_v24  ;;  %1747 = vmatpush.msra.mxu1 %v694_v25  ;;  %v689_v24 = vld [vmem:[#allocation14 + $0x58] sm:$0xff]  ;;  %v851_v25 = vld [vmem:[#allocation14 + $0x568] sm:$0xff] }
 0x220   :  { %1767 = vmatpush.msra.mxu2 %v790_v26  ;;  %1799 = vmatpush.msrb.mxu0 %v1030_v27  ;;  %v1084_v26 = vld [vmem:[#allocation14 + $0xcb0] sm:$0xff] }
 0x221   :  { %1855 = vmatpush.msrb.mxu3 %v767_v28  ;;  %1748 = vmatpush.msra.mxu1 %v688_v29  ;;  %v1180_v27 = vld [vmem:[#allocation14 + $0xfb0] sm:$0xff]  ;;  %v683_v28 = vld [vmem:[#allocation14 + $0x28] sm:$0xff]  ;;  %v845_v29 = vld [vmem:[#allocation14 + $0x538] sm:$0xff] }
 0x222   :  { %1768 = vmatpush.msra.mxu2 %v784_v30  ;;  %1800 = vmatpush.msrb.mxu0 %v1024_v32  ;;  %v1157_v30 = vld [vmem:[#allocation14 + $0xef8] sm:$0xff]  ;;  %v1078_v32 = vld [vmem:[#allocation14 + $0xc80] sm:$0xff] }
 0x223   :  { %1856 = vmatpush.msrb.mxu3 %v761_v33  ;;  %1749 = vmatpush.msra.mxu1 %v682_v34  ;;  %v1174_v33 = vld [vmem:[#allocation14 + $0xf80] sm:$0xff]  ;;  %v839_v34 = vld [vmem:[#allocation14 + $0x508] sm:$0xff] }
 0x224   :  { %1769 = vmatpush.msra.mxu2 %v778_v35  ;;  %1801 = vmatpush.msrb.mxu0 %v1018_v31  ;;  %v8048_v35 = vpop.f32.mrf.mxu1  ;;  %v8050_v31 = vpop.f32.mrf.mxu2 }
 0x225   :  { %1750 = vmatmul.f32.vlgmr.msra.gmra.mxu1 %v8007_v60  ;;  %1770 = vmatmul.f32.vlgmr.msra.gmra.mxu2 %v8009_v61 }
 0x226   :  { %1814 = vmatpush.msrb.mxu1 %v1156_v36  ;;  %1834 = vmatpush.msrb.mxu2 %v1252_v37  ;;  %v1151_v36 = vld [vmem:[#allocation14 + $0xec8] sm:$0xff]  ;;  %v1072_v37 = vld [vmem:[#allocation14 + $0xc50] sm:$0xff] }
 0x227   :  { %1857 = vmatpush.msrb.mxu3 %v755_v39  ;;  %1802 = vmatpush.msrb.mxu0 %v1012_v40  ;;  %v1168_v39 = vld [vmem:[#allocation14 + $0xf50] sm:$0xff]  ;;  %v833_v40 = vld [vmem:[#allocation14 + $0x4d8] sm:$0xff] }
 0x228   :  { %1815 = vmatpush.msrb.mxu1 %v1150_v41  ;;  %1835 = vmatpush.msrb.mxu2 %v1246_v42  ;;  %v1145_v41 = vld [vmem:[#allocation14 + $0xe98] sm:$0xff]  ;;  %v1066_v42 = vld [vmem:[#allocation14 + $0xc20] sm:$0xff] }
 0x229   :  { %1858 = vmatpush.msrb.mxu3 %v749_v43  ;;  %1803 = vmatpush.msrb.mxu0 %v1006_v44  ;;  %v1162_v43 = vld [vmem:[#allocation14 + $0xf20] sm:$0xff]  ;;  %v827_v44 = vld [vmem:[#allocation14 + $0x4a8] sm:$0xff] }
 0x22a   :  { %1816 = vmatpush.msrb.mxu1 %v1144_v45  ;;  %1836 = vmatpush.msrb.mxu2 %v1240_v46  ;;  %v965_v45 = vld [vmem:[#allocation14 + $0x8f8] sm:$0xff]  ;;  %v8053_v46 = vpop.f32.mrf.mxu3 }
 0x22b   :  { %1859 = vmatpush.msrb.mxu3 %v743_v47  ;;  %1804 = vmatpush.msrb.mxu0 %v1000_v48  ;;  %v8055_v47 = vpop.f32.mrf.mxu0  ;;  %v1139_v48 = vld [vmem:[#allocation14 + $0xe68] sm:$0xff] }
 0x22c   :  { %1817 = vmatpush.msrb.mxu1 %v1138_v49  ;;  %1837 = vmatpush.msrb.mxu2 %v1234_v50  ;;  %v821_v49 = vld [vmem:[#allocation14 + $0x478] sm:$0xff]  ;;  %v959_v50 = vld [vmem:[#allocation14 + $0x8c8] sm:$0xff] }
 0x22d   :  { %1860 = vmatpush.msrb.mxu3 %v737_v52  ;;  %1805 = vmatpush.msrb.mxu0 %v994_v53  ;;  %v1055_v52 = vld [vmem:[#allocation14 + $0xbc8] sm:$0xff]  ;;  %v1133_v53 = vld [vmem:[#allocation14 + $0xe38] sm:$0xff] }
 0x22e   :  { %1818 = vmatpush.msrb.mxu1 %v1132_v54  ;;  %1838 = vmatpush.msrb.mxu2 %v1228_v55  ;;  %v815_v54 = vld [vmem:[#allocation14 + $0x448] sm:$0xff]  ;;  %v953_v55 = vld [vmem:[#allocation14 + $0x898] sm:$0xff] }
 0x22f   :  { %1861 = vmatpush.msrb.mxu3 %v731_v56  ;;  %1806 = vmatpush.msrb.mxu0 %v988_v57  ;;  %v1049_v56 = vld [vmem:[#allocation14 + $0xb98] sm:$0xff]  ;;  %v8059_v57 = vpop.f32.mrf.mxu1 }
 0x230   :  { %1819 = vmatpush.msrb.mxu1 %v1126_v58  ;;  %1839 = vmatpush.msrb.mxu2 %v1222_v59  ;;  %v8061_v58 = vpop.f32.mrf.mxu2  ;;  %v1127_v59 = vld [vmem:[#allocation14 + $0xe08] sm:$0xff] }
 0x231   :  { %1862 = vmatpush.msrb.mxu3 %v725_v62  ;;  %1807 = vmatpush.msrb.mxu0 %v982_v63  ;;  %v809_v62 = vld [vmem:[#allocation14 + $0x418] sm:$0xff]  ;;  %v947_v63 = vld [vmem:[#allocation14 + $0x868] sm:$0xff] }
 0x232   :  { %1820 = vmatpush.msrb.mxu1 %v1120_v0  ;;  %1840 = vmatpush.msrb.mxu2 %v1216_v1  ;;  %v1043_v0 = vld [vmem:[#allocation14 + $0xb68] sm:$0xff]  ;;  %v1121_v1 = vld [vmem:[#allocation14 + $0xdd8] sm:$0xff] }
 0x233   :  { %1863 = vmatpush.msrb.mxu3 %v719_v2  ;;  %1808 = vmatpush.msrb.mxu0 %v976_v3  ;;  %v803_v2 = vld [vmem:[#allocation14 + $0x3e8] sm:$0xff]  ;;  %v941_v3 = vld [vmem:[#allocation14 + $0x838] sm:$0xff] }
 0x234   :  { %1821 = vmatpush.msrb.mxu1 %v1114_v4  ;;  %1841 = vmatpush.msrb.mxu2 %v1210_v5  ;;  %v1037_v4 = vld [vmem:[#allocation14 + $0xb38] sm:$0xff]  ;;  %v1115_v5 = vld [vmem:[#allocation14 + $0xda8] sm:$0xff] }
 0x235   :  { %1864 = vmatpush.msrb.mxu3 %v713_v6  ;;  %1809 = vmatpush.msrb.mxu0 %v970_v7  ;;  %v797_v6 = vld [vmem:[#allocation14 + $0x3b8] sm:$0xff]  ;;  %v935_v7 = vld [vmem:[#allocation14 + $0x808] sm:$0xff] }
 0x236   :  { %1810 = vmatmul.f32.vlgmr.msrb.gmra.mxu0 %v8024_v38  ;;  %1822 = vmatpush.msrb.mxu1 %v1108_v8  ;;  %v1031_v8 = vld [vmem:[#allocation14 + $0xb08] sm:$0xff] }
 0x237   :  { %1842 = vmatpush.msrb.mxu2 %v1204_v9  ;;  %1865 = vmatpush.msrb.mxu3 %v707_v10  ;;  %v8063_v9 = vpop.f32.mrf.mxu3  ;;  %v8065_v10 = vpop.f32.mrf.mxu0 }
 0x238   :  { %1874 = vmatpush.msra.mxu0 %v869_v11  ;;  %1823 = vmatpush.msrb.mxu1 %v1102_v12  ;;  %v1109_v11 = vld [vmem:[#allocation14 + $0xd78] sm:$0xff]  ;;  %v791_v12 = vld [vmem:[#allocation14 + $0x388] sm:$0xff] }
 0x239   :  { %1843 = vmatpush.msrb.mxu2 %v1198_v13  ;;  %1866 = vmatpush.msrb.mxu3 %v701_v14  ;;  %v929_v13 = vld [vmem:[#allocation14 + $0x7d8] sm:$0xff] }
 0x23a   :  { %1875 = vmatpush.msra.mxu0 %v863_v15  ;;  %1824 = vmatpush.msrb.mxu1 %v1096_v16  ;;  %v1025_v14 = vld [vmem:[#allocation14 + $0xad8] sm:$0xff]  ;;  %v8067_v15 = vpop.f32.mrf.mxu1  ;;  %v8069_v16 = vpop.f32.mrf.mxu2 }
 0x23b   :  { %1844 = vmatpush.msrb.mxu2 %v1192_v17  ;;  %1867 = vmatpush.msrb.mxu3 %v695_v18  ;;  %v1103_v17 = vld [vmem:[#allocation14 + $0xd48] sm:$0xff]  ;;  %v785_v18 = vld [vmem:[#allocation14 + $0x358] sm:$0xff] }
 0x23c   :  { %1876 = vmatpush.msra.mxu0 %v857_v21  ;;  %1825 = vmatpush.msrb.mxu1 %v1090_v22  ;;  %v923_v21 = vld [vmem:[#allocation14 + $0x7a8] sm:$0xff] }
 0x23d   :  { %1845 = vmatpush.msrb.mxu2 %v1186_v23  ;;  %1868 = vmatpush.msrb.mxu3 %v689_v24  ;;  %v1019_v22 = vld [vmem:[#allocation14 + $0xaa8] sm:$0xff]  ;;  %v1097_v23 = vld [vmem:[#allocation14 + $0xd18] sm:$0xff] }
 0x23e   :  { %1877 = vmatpush.msra.mxu0 %v851_v25  ;;  %1826 = vmatpush.msrb.mxu1 %v1084_v26  ;;  %v779_v24 = vld [vmem:[#allocation14 + $0x328] sm:$0xff]  ;;  %v917_v25 = vld [vmem:[#allocation14 + $0x778] sm:$0xff] }
 0x23f   :  { %1846 = vmatpush.msrb.mxu2 %v1180_v27  ;;  %1869 = vmatpush.msrb.mxu3 %v683_v28  ;;  %v1013_v26 = vld [vmem:[#allocation14 + $0xa78] sm:$0xff]  ;;  %v1091_v27 = vld [vmem:[#allocation14 + $0xce8] sm:$0xff] }
 0x240   :  { %1878 = vmatpush.msra.mxu0 %v845_v29  ;;  %1870 = vmatmul.f32.vlgmr.msrb.gmra.mxu3 %v8007_v60  ;;  %v1061_v60 = vld [vmem:[#allocation14 + $0xbf8] sm:$0xff]  ;;  %v911_v29 = vld [vmem:[#allocation14 + $0x748] sm:$0xff] }
 0x241   :  { %1934 = vmatpush.msra.mxu3 %v1157_v30  ;;  %1827 = vmatpush.msrb.mxu1 %v1078_v32  ;;  %v1253_v28 = vld [vmem:[#allocation14 + $0x11f8] sm:$0xff]  ;;  %v8071_v30 = vpop.f32.mrf.mxu3  ;;  %v8073_v32 = vpop.f32.mrf.mxu0 }
 0x242   :  { %1847 = vmatpush.msrb.mxu2 %v1174_v33  ;;  %1879 = vmatpush.msra.mxu0 %v839_v34  ;;  %v1007_v33 = vld [vmem:[#allocation14 + $0xa48] sm:$0xff]  ;;  %v1085_v34 = vld [vmem:[#allocation14 + $0xcb8] sm:$0xff] }
 0x243   :  { %1935 = vmatpush.msra.mxu3 %v1151_v36  ;;  %1828 = vmatpush.msrb.mxu1 %v1072_v37  ;;  %v1247_v36 = vld [vmem:[#allocation14 + $0x11c8] sm:$0xff]  ;;  %v905_v37 = vld [vmem:[#allocation14 + $0x718] sm:$0xff] }
 0x244   :  { %1848 = vmatpush.msrb.mxu2 %v1168_v39  ;;  %1880 = vmatpush.msra.mxu0 %v833_v40  ;;  %v1511_v39 = vpop.f32.mrf.mxu1  ;;  %v1531_v40 = vpop.f32.mrf.mxu2 }
 0x245   :  { %1936 = vmatpush.msra.mxu3 %v1145_v41  ;;  %1829 = vmatpush.msrb.mxu1 %v1066_v42  ;;  %v1001_v41 = vld [vmem:[#allocation14 + $0xa18] sm:$0xff]  ;;  %v1079_v42 = vld [vmem:[#allocation14 + $0xc88] sm:$0xff] }
 0x246   :  { %1849 = vmatpush.msrb.mxu2 %v1162_v43  ;;  %1881 = vmatpush.msra.mxu0 %v827_v44  ;;  %v1241_v43 = vld [vmem:[#allocation14 + $0x1198] sm:$0xff]  ;;  %v899_v44 = vld [vmem:[#allocation14 + $0x6e8] sm:$0xff] }
 0x247   :  { %1830 = vmatmul.f32.vlgmr.msrb.gmra.mxu1 %v8016_v19  ;;  %1850 = vmatmul.f32.vlgmr.msrb.gmra.mxu2 %v8018_v20 }
 0x248   :  { %1894 = vmatpush.msra.mxu1 %v965_v45  ;;  %1914 = vmatpush.msra.mxu2 %v1061_v60  ;;  %v1073_v45 = vld [vmem:[#allocation14 + $0xc58] sm:$0xff]  ;;  %v1532_v60 = vadd.f32 %v1531_v40, %v1511_v39  ;;  %v1187_v39 = vld [vmem:[#allocation14 + $0xfe8] sm:$0xff] }
 0x249   :  { %1937 = vmatpush.msra.mxu3 %v1139_v48  ;;  %1882 = vmatpush.msra.mxu0 %v821_v49  ;;  %v1235_v48 = vld [vmem:[#allocation14 + $0x1168] sm:$0xff]  ;;  %v893_v49 = vld [vmem:[#allocation14 + $0x6b8] sm:$0xff] }
 0x24a   :  { %1895 = vmatpush.msra.mxu1 %v959_v50  ;;  %1915 = vmatpush.msra.mxu2 %v1055_v52  ;;  %v989_v50 = vld [vmem:[#allocation14 + $0x9b8] sm:$0xff]  ;;  %v1067_v52 = vld [vmem:[#allocation14 + $0xc28] sm:$0xff] }
 0x24b   :  { %1938 = vmatpush.msra.mxu3 %v1133_v53  ;;  %1883 = vmatpush.msra.mxu0 %v815_v54  ;;  %v1229_v53 = vld [vmem:[#allocation14 + $0x1138] sm:$0xff]  ;;  %v1292_v54 = vadd.f32 %v8050_v31, %v8048_v35 }
 0x24c   :  { %1896 = vmatpush.msra.mxu1 %v953_v55  ;;  %1916 = vmatpush.msra.mxu2 %v1049_v56  ;;  %v1551_v55 = vpop.f32.mrf.mxu3  ;;  %v977_v31 = vld [vmem:[#allocation14 + $0x958] sm:$0xff] }
 0x24d   :  { %1939 = vmatpush.msra.mxu3 %v1127_v59  ;;  %1884 = vmatpush.msra.mxu0 %v809_v62  ;;  %v1571_v56 = vpop.f32.mrf.mxu0  ;;  %v8078_v59 = vld [vmem:[#allocation16 + $0x178] sm:$0xff]  ;;  %v887_v62 = vld [vmem:[#allocation14 + $0x688] sm:$0xff] }
 0x24e   :  { %1897 = vmatpush.msra.mxu1 %v947_v63  ;;  %1917 = vmatpush.msra.mxu2 %v1043_v0  ;;  %v1552_v63 = vadd.f32 %v1551_v55, %v1532_v60  ;;  %v983_v0 = vld [vmem:[#allocation14 + $0x988] sm:$0xff]  ;;  %v8141_v40 = vld [vmem:[#allocation16 + $0x58] sm:$0xff] }
 0x24f   :  { %1940 = vmatpush.msra.mxu3 %v1121_v1  ;;  %1885 = vmatpush.msra.mxu0 %v803_v2  ;;  %v1223_v1 = vld [vmem:[#allocation14 + $0x1108] sm:$0xff]  ;;  %v8081_v2 = vld [vmem:[#allocation16 + $0x170] sm:$0xff]  ;;  %v8160_v60 = vld [vmem:[#allocation16 + $0x138] sm:$0xff] }
 0x250   :  { %1898 = vmatpush.msra.mxu1 %v941_v3  ;;  %1918 = vmatpush.msra.mxu2 %v1037_v4  ;;  %v881_v3 = vld [vmem:[#allocation14 + $0x658] sm:$0xff]  ;;  %v1572_v35 = vadd.f32 %v1571_v56, %v1552_v63  ;;  %9493 = vst [vmem:[#allocation42_spill] sm:$0xff] %v8160_v60  ;;  %v8172_v56 = vld [vmem:[#allocation16 + $0x40] sm:$0xff] }
 0x251   :  { %1941 = vmatpush.msra.mxu3 %v1115_v5  ;;  %1886 = vmatpush.msra.mxu0 %v797_v6  ;;  %v1217_v5 = vld [vmem:[#allocation14 + $0x10d8] sm:$0xff]  ;;  %v1312_v6 = vadd.f32 %v8053_v46, %v1292_v54 }
 0x252   :  { %1899 = vmatpush.msra.mxu1 %v935_v7  ;;  %1919 = vmatpush.msra.mxu2 %v1031_v8  ;;  %v1412_v7 = vadd.f32 %v8065_v10, %v8063_v9  ;;  %v8087_v8 = vld [vmem:[#allocation16 + $0x168] sm:$0xff]  ;;  %v8093_v46 = vld [vmem:[#allocation16 + $0x78] sm:$0xff] }
 0x253   :  { %1942 = vmatpush.msra.mxu3 %v1109_v11  ;;  %1887 = vmatpush.msra.mxu0 %v791_v12  ;;  %v971_v12 = vld [vmem:[#allocation14 + $0x928] sm:$0xff]  ;;  %v8095_v9 = vld [vmem:[#allocation16 + $0xf8] sm:$0xff] }
 0x254   :  { %1900 = vmatpush.msra.mxu1 %v929_v13  ;;  %1920 = vmatpush.msra.mxu2 %v1025_v14  ;;  %v1211_v13 = vld [vmem:[#allocation14 + $0x10a8] sm:$0xff] }
 0x255   :  { %1943 = vmatpush.msra.mxu3 %v1103_v17  ;;  %1888 = vmatpush.msra.mxu0 %v785_v18  ;;  %v1332_v17 = vadd.f32 %v8055_v47, %v1312_v6  ;;  %v1432_v18 = vadd.f32 %v8067_v15, %v1412_v7  ;;  %v1205_v47 = vld [vmem:[#allocation14 + $0x1078] sm:$0xff]  ;;  %v8104_v15 = vld [vmem:[#allocation16 + $0x70] sm:$0xff] }
 0x256   :  { %1901 = vmatpush.msra.mxu1 %v923_v21  ;;  %1921 = vmatpush.msra.mxu2 %v1019_v22  ;;  %v8100_v22 = vld [vmem:[#allocation16 + $0x160] sm:$0xff]  ;;  %v8190_v6 = vld [vmem:[#allocation16 + $0x1f8] sm:$0xff]  ;;  %v8192_v7 = vld [vmem:[#allocation16 + $0x30] sm:$0xff] }
 0x257   :  { %1944 = vmatpush.msra.mxu3 %v1097_v23  ;;  %1889 = vmatpush.msra.mxu0 %v779_v24  ;;  %v1452_v21 = vadd.f32 %v8069_v16, %v1432_v18  ;;  %v8106_v23 = vld [vmem:[#allocation16 + $0xf0] sm:$0xff]  ;;  %v1352_v24 = vadd.f32 %v8059_v57, %v1332_v17  ;;  %v8111_v16 = vld [vmem:[#allocation16 + $0x158] sm:$0xff]  ;;  %v8208_v17 = vld [vmem:[#allocation16 + $0xa8] sm:$0xff] }
 0x258   :  { %1890 = vmatmul.f32.vlgmr.msra.gmra.mxu0 %v8009_v61  ;;  %1902 = vmatpush.msra.mxu1 %v917_v25  ;;  %v995_v61 = vld [vmem:[#allocation14 + $0x9e8] sm:$0xff]  ;;  %v8123_v57 = vld [vmem:[#allocation16 + $0x150] sm:$0xff] }
 0x259   :  { %1922 = vmatpush.msra.mxu2 %v1013_v26  ;;  %1945 = vmatpush.msra.mxu3 %v1091_v27  ;;  %v1199_v25 = vld [vmem:[#allocation14 + $0x1048] sm:$0xff]  ;;  %v1472_v27 = vadd.f32 %v8071_v30, %v1452_v21 }
 0x25a   :  { %1954 = vmatpush.msrb.mxu0 %v1253_v28  ;;  %1903 = vmatpush.msra.mxu1 %v911_v29  ;;  %v8114_v26 = vld [vmem:[#allocation16 + $0x68] sm:$0xff]  ;;  %v1193_v28 = vld [vmem:[#allocation14 + $0x1018] sm:$0xff]  ;;  %v8126_v29 = vld [vmem:[#allocation16 + $0x60] sm:$0xff] }
 0x25b   :  { %1923 = vmatpush.msra.mxu2 %v1007_v33  ;;  %1946 = vmatpush.msra.mxu3 %v1085_v34  ;;  %v8128_v33 = vld [vmem:[#allocation16 + $0xe0] sm:$0xff]  ;;  %v8131_v34 = vadd.f32 %v8061_v58, %v1352_v24  ;;  %v8138_v30 = vld [vmem:[#allocation16 + $0x148] sm:$0xff] }
 0x25c   :  { %1955 = vmatpush.msrb.mxu0 %v1247_v36  ;;  %1904 = vmatpush.msra.mxu1 %v905_v37  ;;  %v8134_v36 = vadd.f32 %v8073_v32, %v1472_v27  ;;  %9491 = vst [vmem:[#allocation40_spill] sm:$0xff] %v8138_v30  ;;  %v8147_v58 = vld [vmem:[#allocation16 + $0x140] sm:$0xff]  ;;  %v1181_v32 = vld [vmem:[#allocation14 + $0xfb8] sm:$0xff]  ;;  %v8214_v21 = vld [vmem:[#allocation16 + $0x1e8] sm:$0xff] }
 0x25d   :  { %1924 = vmatpush.msra.mxu2 %v1001_v41  ;;  %1947 = vmatpush.msra.mxu3 %v1079_v42  ;;  %9490 = vst [vmem:[#allocation39_spill] sm:$0xff] %v8131_v34  ;;  %v8143_v41 = vld [vmem:[#allocation16 + $0xd8] sm:$0xff]  ;;  %v8150_v42 = vld [vmem:[#allocation16 + $0x50] sm:$0xff] }
 0x25e   :  { %1956 = vmatpush.msrb.mxu0 %v1241_v43  ;;  %1905 = vmatpush.msra.mxu1 %v899_v44  ;;  %v1591_v4 = vpop.f32.mrf.mxu1  ;;  %9492 = vst [vmem:[#allocation41_spill] sm:$0xff] %v8147_v58  ;;  %v8152_v43 = vld [vmem:[#allocation16 + $0xd0] sm:$0xff]  ;;  %v1974_v44 = vsel %vm341_vm0, %v8131_v34, 0.0 }
 0x25f   :  { %1925 = vmatpush.msra.mxu2 %v995_v61  ;;  %1948 = vmatpush.msra.mxu3 %v1073_v45  ;;  %v1592_v14 = vadd.f32 %v1591_v4, %v1572_v35  ;;  %v1981_v61 = vsel %vm341_vm0, %v8134_v36, 0.0  ;;  %v1975_v54 = vrot.slane %v1974_v44, 4  ;;  %v8185_v4 = vld [vmem:[#allocation16 + $0xb8] sm:$0xff]  ;;  %v8187_v35 = vld [vmem:[#allocation16 + $0x120] sm:$0xff] }
 0x260   :  { %1957 = vmatpush.msrb.mxu0 %v1235_v48  ;;  %1906 = vmatpush.msra.mxu1 %v893_v49  ;;  %v1175_v48 = vld [vmem:[#allocation14 + $0xf88] sm:$0xff]  ;;  %v1982_v55 = vrot.slane %v1981_v61, 4  ;;  %9496 = vst [vmem:[#allocation45_spill] sm:$0xff] %v8187_v35 }
 0x261   :  { %1926 = vmatpush.msra.mxu2 %v989_v50  ;;  %1949 = vmatpush.msra.mxu3 %v1067_v52  ;;  %v8163_v49 = vld [vmem:[#allocation16 + $0x48] sm:$0xff]  ;;  %v8169_v52 = vld [vmem:[#allocation16 + $0x130] sm:$0xff] }
 0x262   :  { %1958 = vmatpush.msrb.mxu0 %v1229_v53  ;;  %1950 = vmatmul.f32.vlgmr.msra.gmra.mxu3 %v8016_v19  ;;  %v875_v19 = vld [vmem:[#allocation14 + $0x628] sm:$0xff]  ;;  %9494 = vst [vmem:[#allocation43_spill] sm:$0xff] %v8169_v52  ;;  %v1169_v53 = vld [vmem:[#allocation14 + $0xf58] sm:$0xff] }
 0x263   :  { %2201 = vmatpush.msrb.mxu3 %v8078_v59  ;;  %1907 = vmatpush.msra.mxu1 %v887_v62  ;;  %v8165_v50 = vld [vmem:[#allocation16 + $0xc8] sm:$0xff]  ;;  %v8174_v62 = vld [vmem:[#allocation16 + $0xc0] sm:$0xff] }
 0x264   :  { %1927 = vmatpush.msra.mxu2 %v983_v0  ;;  %1959 = vmatpush.msrb.mxu0 %v1223_v1  ;;  %v1611_v11 = vpop.f32.mrf.mxu2  ;;  %v8178_v0 = vld [vmem:[#allocation16 + $0x128] sm:$0xff] }
 0x265   :  { %2202 = vmatpush.msrb.mxu3 %v8081_v2  ;;  %1908 = vmatpush.msra.mxu1 %v881_v3  ;;  %v8097_v10 = vadd.f32 %v1611_v11, %v1592_v14  ;;  %9495 = vst [vmem:[#allocation44_spill] sm:$0xff] %v8178_v0  ;;  %v1163_v1 = vld [vmem:[#allocation14 + $0xf28] sm:$0xff]  ;;  %v8181_v3 = vld [vmem:[#allocation16 + $0x38] sm:$0xff]  ;;  %v8196_v11 = vld [vmem:[#allocation16 + $0xb0] sm:$0xff] }
 0x266   :  { %1928 = vmatpush.msra.mxu2 %v977_v31  ;;  %1960 = vmatpush.msrb.mxu0 %v1217_v5  ;;  %v1976_v31 = vadd.f32 %v1975_v54, %v1974_v44  ;;  %v1983_v5 = vadd.f32 %v1982_v55, %v1981_v61  ;;  %v8204_v14 = vld [vmem:[#allocation16 + $0x28] sm:$0xff]  ;;  %v8238_v61 = vld [vmem:[#allocation16 + $0x1d8] sm:$0xff]  ;;  %v8246_v54 = vld [vmem:[#allocation16 + $0x90] sm:$0xff] }
 0x267   :  { %2203 = vmatpush.msrb.mxu3 %v8087_v8  ;;  %1909 = vmatpush.msra.mxu1 %v875_v19  ;;  %9489 = vst [vmem:[#allocation38_spill] sm:$0xff] %v8097_v10  ;;  %v8248_v55 = vld [vmem:[#allocation16 + $0x1d0] sm:$0xff] }
 0x268   :  { %1929 = vmatpush.msra.mxu2 %v971_v12  ;;  %1961 = vmatpush.msrb.mxu0 %v1211_v13  ;;  %v8198_v12 = vld [vmem:[#allocation16 + $0x118] sm:$0xff]  ;;  %v8202_v13 = vld [vmem:[#allocation16 + $0x1f0] sm:$0xff]  ;;  %v1984_v18 = vrot.slane %v1983_v5, 2  ;;  %v1977_v24 = vrot.slane %v1976_v31, 2 }
 0x269   :  { %1910 = vmatmul.f32.vlgmr.msra.gmra.mxu1 %v8004_v51  ;;  %1930 = vmatmul.f32.vlgmr.msra.gmra.mxu2 %v8024_v38  ;;  %v8116_v51 = vld [vmem:[#allocation16 + $0xe8] sm:$0xff]  ;;  %v1988_v38 = vsel %vm341_vm0, %v8097_v10, 0.0  ;;  %9497 = vst [vmem:[#allocation46_spill] sm:$0xff] %v8198_v12 }
 0x26a   :  { %2161 = vmatpush.msrb.mxu1 %v8093_v46  ;;  %2181 = vmatpush.msrb.mxu2 %v8095_v9  ;;  %v1989_v37 = vrot.slane %v1988_v38, 4  ;;  %v1985_v44 = vadd.f32 %v1984_v18, %v1983_v5  ;;  %v8257_v5 = vld [vmem:[#allocation16 + $0x1c8] sm:$0xff] }
 0x26b   :  { %2204 = vmatpush.msrb.mxu3 %v8100_v22  ;;  %1962 = vmatpush.msrb.mxu0 %v1205_v47  ;;  %v8216_v47 = vld [vmem:[#allocation16 + $0x20] sm:$0xff] }
 0x26c   :  { %2162 = vmatpush.msrb.mxu1 %v8104_v15  ;;  %2182 = vmatpush.msrb.mxu2 %v8106_v23  ;;  %v1990_v45 = vadd.f32 %v1989_v37, %v1988_v38  ;;  %v8222_v38 = vld [vmem:[#allocation16 + $0x108] sm:$0xff]  ;;  %v8228_v37 = vld [vmem:[#allocation16 + $0x18] sm:$0xff]  ;;  %v1986_v18 = vrot.slane %v1985_v44, 1 }
 0x26d   :  { %2205 = vmatpush.msrb.mxu3 %v8111_v16  ;;  %1963 = vmatpush.msrb.mxu0 %v1199_v25  ;;  %v8220_v25 = vld [vmem:[#allocation16 + $0xa0] sm:$0xff]  ;;  %9499 = vst [vmem:[#allocation48_spill] sm:$0xff] %v8222_v38 }
 0x26e   :  { %2163 = vmatpush.msrb.mxu1 %v8114_v26  ;;  %2183 = vmatpush.msrb.mxu2 %v8116_v51  ;;  %v1991_v63 = vrot.slane %v1990_v45, 2 }
 0x26f   :  { %2206 = vmatpush.msrb.mxu3 %v8123_v57  ;;  %1964 = vmatpush.msrb.mxu0 %v1193_v28  ;;  %v8226_v28 = vld [vmem:[#allocation16 + $0x1e0] sm:$0xff] }
 0x270   :  { %2164 = vmatpush.msrb.mxu1 %v8126_v29  ;;  %2184 = vmatpush.msrb.mxu2 %v8128_v33  ;;  %v1992_v19 = vadd.f32 %v1991_v63, %v1990_v45  ;;  %v1978_v45 = vadd.f32 %v1977_v24, %v1976_v31  ;;  %v8251_v63 = vld [vmem:[#allocation16 + $0x8] sm:$0xff]  ;;  %v8261_v24 = vld [vmem:[#allocation16] sm:$0xff] }
 0x271   :  { %2207 = vmatpush.msrb.mxu3 %v8138_v30  ;;  %1965 = vmatpush.msrb.mxu0 %v1187_v39  ;;  %v8232_v39 = vld [vmem:[#allocation16 + $0x98] sm:$0xff]  ;;  %v8255_v31 = vld [vmem:[#allocation16 + $0x88] sm:$0xff] }
 0x272   :  { %2165 = vmatpush.msrb.mxu1 %v8141_v40  ;;  %2185 = vmatpush.msrb.mxu2 %v8143_v41  ;;  %v1993_v27 = vrot.slane %v1992_v19, 1  ;;  %v2134_v30 = vld [vmem:[#allocation16 + $0x228] sm:$0xff] }
 0x273   :  { %2208 = vmatpush.msrb.mxu3 %v8147_v58  ;;  %1966 = vmatpush.msrb.mxu0 %v1181_v32  ;;  %v8234_v32 = vld [vmem:[#allocation16 + $0x100] sm:$0xff]  ;;  %v2018_v58 = vmul.f32 %v8134_v36, %v8134_v36 }
 0x274   :  { %2166 = vmatpush.msrb.mxu1 %v8150_v42  ;;  %2186 = vmatpush.msrb.mxu2 %v8152_v43  ;;  %9500 = vst [vmem:[#allocation49_spill] sm:$0xff] %v8234_v32 }
 0x275   :  { %2209 = vmatpush.msrb.mxu3 %v8160_v60  ;;  %1967 = vmatpush.msrb.mxu0 %v1175_v48  ;;  %v1994_v48 = vadd.f32 %v1993_v27, %v1992_v19  ;;  %v1979_v19 = vrot.slane %v1978_v45, 1  ;;  %v1631_v27 = vpop.f32.mrf.mxu3 }
 0x276   :  { %2167 = vmatpush.msrb.mxu1 %v8163_v49  ;;  %2187 = vmatpush.msrb.mxu2 %v8165_v50 }
 0x277   :  { %2210 = vmatpush.msrb.mxu3 %v8169_v52  ;;  %1968 = vmatpush.msrb.mxu0 %v1169_v53  ;;  %v8242_v53 = vld [vmem:[#allocation16 + $0x10] sm:$0xff]  ;;  %v8332_v52 = vld [vmem:[#allocation16 + $0x240] sm:$0xff] }
 0x278   :  { %2168 = vmatpush.msrb.mxu1 %v8172_v56  ;;  %2188 = vmatpush.msrb.mxu2 %v8174_v62 }
 0x279   :  { %2211 = vmatpush.msrb.mxu3 %v8178_v0  ;;  %1969 = vmatpush.msrb.mxu0 %v1163_v1  ;;  %v1651_v1 = vpop.f32.mrf.mxu0 }
 0x27a   :  { %1970 = vmatmul.f32.vlgmr.msrb.gmra.mxu0 %v8018_v20  ;;  %2169 = vmatpush.msrb.mxu1 %v8181_v3  ;;  %v8210_v20 = vld [vmem:[#allocation16 + $0x110] sm:$0xff] }
 0x27b   :  { %2189 = vmatpush.msrb.mxu2 %v8185_v4  ;;  %2212 = vmatpush.msrb.mxu3 %v8187_v35  ;;  %9498 = vst [vmem:[#allocation47_spill] sm:$0xff] %v8210_v20 }
 0x27c   :  { %2221 = vmatpush.msra.mxu0 %v8190_v6  ;;  %2170 = vmatpush.msrb.mxu1 %v8192_v7 }
 0x27d   :  { %2190 = vmatpush.msrb.mxu2 %v8196_v11  ;;  %2213 = vmatpush.msrb.mxu3 %v8198_v12  ;;  %v8275_v12 = vld [vmem:[#allocation16 + $0x1b8] sm:$0xff] }
 0x27e   :  { %2222 = vmatpush.msra.mxu0 %v8202_v13  ;;  %2171 = vmatpush.msrb.mxu1 %v8204_v14 }
 0x27f   :  { %2191 = vmatpush.msrb.mxu2 %v8208_v17  ;;  %2214 = vmatpush.msrb.mxu3 %v8210_v20  ;;  %v1987_v20 = vadd.f32 %v1986_v18, %v1985_v44 }
 0x280   :  { %2223 = vmatpush.msra.mxu0 %v8214_v21  ;;  %2172 = vmatpush.msrb.mxu1 %v8216_v47  ;;  %v1671_v10 = vpop.f32.mrf.mxu1 }
 0x281   :  { %2192 = vmatpush.msrb.mxu2 %v8220_v25  ;;  %2215 = vmatpush.msrb.mxu3 %v8222_v38  ;;  %v1652_v38 = vadd.f32 %v1651_v1, %v1631_v27  ;;  %v8281_v1 = vld [vmem:[#allocation16 + $0x1b0] sm:$0xff]  ;;  %v8309_v27 = vld [vmem:[#allocation16 + $0x258] sm:$0xff] }
 0x282   :  { %2224 = vmatpush.msra.mxu0 %v8226_v28  ;;  %2173 = vmatpush.msrb.mxu1 %v8228_v37 }
 0x283   :  { %2193 = vmatpush.msrb.mxu2 %v8232_v39  ;;  %2216 = vmatpush.msrb.mxu3 %v8234_v32  ;;  %v2017_v32 = vmul.f32 %v8131_v34, %v8131_v34  ;;  %v1672_v0 = vadd.f32 %v1671_v10, %v1652_v38  ;;  %v8279_v34 = vld [vmem:[#allocation16 + $0x278] sm:$0xff]  ;;  %v8293_v10 = vld [vmem:[#allocation16 + $0x268] sm:$0xff]  ;;  %v1711_v38 = vpop.f32.mrf.mxu3 }
 0x284   :  { %2225 = vmatpush.msra.mxu0 %v8238_v61  ;;  %2217 = vmatmul.f32.vlgmr.msrb.gmra.mxu3 %v1994_v48  ;;  %v8267_v48 = vld [vmem:[#allocation16 + $0x1c0] sm:$0xff] }
 0x285   :  { %2284 = vmatpush.msra.mxu3 %v8093_v46  ;;  %2174 = vmatpush.msrb.mxu1 %v8242_v53  ;;  %v8265_v46 = vld [vmem:[#allocation16 + $0x80] sm:$0xff] }
 0x286   :  { %2194 = vmatpush.msrb.mxu2 %v8246_v54  ;;  %2226 = vmatpush.msra.mxu0 %v8248_v55  ;;  %v1691_v35 = vpop.f32.mrf.mxu2 }
 0x287   :  { %2285 = vmatpush.msra.mxu3 %v8104_v15  ;;  %2175 = vmatpush.msrb.mxu1 %v8251_v63  ;;  %v1980_v15 = vadd.f32 %v1979_v19, %v1978_v45  ;;  %v1692_v44 = vadd.f32 %v1691_v35, %v1672_v0  ;;  %v8286_v45 = vld [vmem:[#allocation16 + $0x270] sm:$0xff]  ;;  %v8288_v19 = vld [vmem:[#allocation16 + $0x1a8] sm:$0xff]  ;;  %v8300_v0 = vld [vmem:[#allocation16 + $0x260] sm:$0xff] }
 0x288   :  { %2195 = vmatpush.msrb.mxu2 %v8255_v31  ;;  %2227 = vmatpush.msra.mxu0 %v8257_v5  ;;  %v8302_v35 = vld [vmem:[#allocation16 + $0x198] sm:$0xff] }
 0x289   :  { %2286 = vmatpush.msra.mxu3 %v8114_v26  ;;  %2176 = vmatpush.msrb.mxu1 %v8261_v24  ;;  %v2023_v26 = vsel %vm341_vm0, %v2017_v32, 0.0  ;;  %v8295_v32 = vld [vmem:[#allocation16 + $0x1a0] sm:$0xff] }
 0x28a   :  { %2196 = vmatpush.msrb.mxu2 %v8265_v46  ;;  %2228 = vmatpush.msra.mxu0 %v8267_v48 }
 0x28b   :  { %2177 = vmatmul.f32.vlgmr.msrb.gmra.mxu1 %v1980_v15  ;;  %2197 = vmatmul.f32.vlgmr.msrb.gmra.mxu2 %v1987_v20  ;;  %v2024_v20 = vrot.slane %v2023_v26, 4  ;;  %v8311_v15 = vld [vmem:[#allocation16 + $0x190] sm:$0xff] }
 0x28c   :  { %2287 = vmatpush.msra.mxu3 %v8126_v29  ;;  %2229 = vmatpush.msra.mxu0 %v8275_v12  ;;  %v1712_v29 = vadd.f32 %v1711_v38, %v1692_v44  ;;  %v8318_v38 = vld [vmem:[#allocation16 + $0x250] sm:$0xff] }
 0x28d   :  { %2241 = vmatpush.msra.mxu1 %v8279_v34 }
 0x28e   :  { %2288 = vmatpush.msra.mxu3 %v8141_v40  ;;  %2230 = vmatpush.msra.mxu0 %v8281_v1 }
 0x28f   :  { %2242 = vmatpush.msra.mxu1 %v8286_v45 }
 0x290   :  { %2289 = vmatpush.msra.mxu3 %v8150_v42  ;;  %2231 = vmatpush.msra.mxu0 %v8288_v19  ;;  %v2025_v42 = vadd.f32 %v2024_v20, %v2023_v26  ;;  %v8325_v26 = vld [vmem:[#allocation16 + $0x248] sm:$0xff]  ;;  %v8327_v20 = vld [vmem:[#allocation16 + $0x180] sm:$0xff] }
 0x291   :  { %v1731_v40 = vpop.f32.mrf.mxu0  ;;  %2243 = vmatpush.msra.mxu1 %v8293_v10 }
 0x292   :  { %2290 = vmatpush.msra.mxu3 %v8163_v49  ;;  %2232 = vmatpush.msra.mxu0 %v8295_v32  ;;  %v8307_v18 = vadd.f32 %v1731_v40, %v1712_v29  ;;  %v8320_v49 = vld [vmem:[#allocation16 + $0x188] sm:$0xff]  ;;  %v2026_v40 = vrot.slane %v2025_v42, 2 }
 0x293   :  { %2244 = vmatpush.msra.mxu1 %v8300_v0 }
 0x294   :  { %2291 = vmatpush.msra.mxu3 %v8172_v56  ;;  %2233 = vmatpush.msra.mxu0 %v8302_v35  ;;  %v1995_v44 = vsel %vm341_vm0, %v8307_v18, 0.0 }
 0x295   :  { %v1996_v29 = vrot.slane %v1995_v44, 4  ;;  %2245 = vmatpush.msra.mxu1 %v8309_v27 }
 0x296   :  { %2292 = vmatpush.msra.mxu3 %v8181_v3  ;;  %2234 = vmatpush.msra.mxu0 %v8311_v15  ;;  %v8337_v3 = vld [vmem:[#allocation16 + $0x238] sm:$0xff] }
 0x297   :  { %v1997_v56 = vadd.f32 %v1996_v29, %v1995_v44  ;;  %2246 = vmatpush.msra.mxu1 %v8318_v38  ;;  %v2027_v29 = vadd.f32 %v2026_v40, %v2025_v42  ;;  %v2030_v42 = vsel %vm341_vm0, %v2018_v58, 0.0 }
 0x298   :  { %2293 = vmatpush.msra.mxu3 %v8192_v7  ;;  %2235 = vmatpush.msra.mxu0 %v8320_v49  ;;  %v8342_v7 = vld [vmem:[#allocation16 + $0x230] sm:$0xff] }
 0x299   :  { %v1998_v60 = vrot.slane %v1997_v56, 2  ;;  %2247 = vmatpush.msra.mxu1 %v8325_v26 }
 0x29a   :  { %2294 = vmatpush.msra.mxu3 %v8204_v14  ;;  %2236 = vmatpush.msra.mxu0 %v8327_v20 }
 0x29b   :  { %v1999_v44 = vadd.f32 %v1998_v60, %v1997_v56  ;;  %2248 = vmatpush.msra.mxu1 %v8332_v52 }
 0x29c   :  { %2304 = vmatpush.msrb.mxu0 %v8095_v9  ;;  %2295 = vmatpush.msra.mxu3 %v8216_v47  ;;  %v2028_v9 = vrot.slane %v2027_v29, 1  ;;  %v2133_v47 = vld [vmem:[#allocation16 + $0x220] sm:$0xff] }
 0x29d   :  { %v2000_v14 = vrot.slane %v1999_v44, 1  ;;  %2249 = vmatpush.msra.mxu1 %v8337_v3 }
 0x29e   :  { %2305 = vmatpush.msrb.mxu0 %v8106_v23  ;;  %2296 = vmatpush.msra.mxu3 %v8228_v37  ;;  %v2029_v23 = vadd.f32 %v2028_v9, %v2027_v29  ;;  %v2031_v37 = vrot.slane %v2030_v42, 4 }
 0x29f   :  { %v2001_v60 = vadd.f32 %v2000_v14, %v1999_v44  ;;  %2250 = vmatpush.msra.mxu1 %v8342_v7 }
 0x2a0   :  { %2306 = vmatpush.msrb.mxu0 %v8116_v51  ;;  %2297 = vmatpush.msra.mxu3 %v8242_v53  ;;  %v2132_v51 = vld [vmem:[#allocation16 + $0x218] sm:$0xff]  ;;  %v2131_v53 = vld [vmem:[#allocation16 + $0x210] sm:$0xff]  ;;  %v2032_v58 = vadd.f32 %v2031_v37, %v2030_v42 }
 0x2a1   :  { %2251 = vmatpush.msra.mxu1 %v2134_v30  ;;  %2237 = vmatmul.f32.vlgmr.msra.gmra.mxu0 %v2001_v60  ;;  %v9502_v42 = vld [vmem:[#allocation41_spill] sm:$0xff] }
 0x2a2   :  { %2307 = vmatpush.msrb.mxu0 %v8128_v33  ;;  %2298 = vmatpush.msra.mxu3 %v8251_v63  ;;  %v2130_v33 = vld [vmem:[#allocation16 + $0x208] sm:$0xff]  ;;  %v9506_v37 = vld [vmem:[#allocation45_spill] sm:$0xff] }
 0x2a3   :  { %2252 = vmatpush.msra.mxu1 %v2133_v47 }
 0x2a4   :  { %2308 = vmatpush.msrb.mxu0 %v8143_v41  ;;  %2299 = vmatpush.msra.mxu3 %v8261_v24  ;;  %v2129_v41 = vld [vmem:[#allocation16 + $0x200] sm:$0xff] }
 0x2a5   :  { %2300 = vmatmul.f32.vlgmr.msra.gmra.mxu3 %v2029_v23  ;;  %2253 = vmatpush.msra.mxu1 %v2132_v51  ;;  %v9503_v23 = vld [vmem:[#allocation42_spill] sm:$0xff] }
 0x2a6   :  { %2309 = vmatpush.msrb.mxu0 %v8152_v43  ;;  %2364 = vmatpush.msrb.mxu3 %v8279_v34  ;;  %v2033_v43 = vrot.slane %v2032_v58, 2 }
 0x2a7   :  { %2254 = vmatpush.msra.mxu1 %v2131_v53 }
 0x2a8   :  { %2310 = vmatpush.msrb.mxu0 %v8165_v50  ;;  %2365 = vmatpush.msrb.mxu3 %v8286_v45  ;;  %v2034_v34 = vadd.f32 %v2033_v43, %v2032_v58 }
 0x2a9   :  { %2255 = vmatpush.msra.mxu1 %v2130_v33 }
 0x2aa   :  { %2311 = vmatpush.msrb.mxu0 %v8174_v62  ;;  %2366 = vmatpush.msrb.mxu3 %v8293_v10  ;;  %v2035_v50 = vrot.slane %v2034_v34, 1  ;;  %v2156_v62 = vld [vmem:[#allocation16 + $0x2d8] sm:$0xff] }
 0x2ab   :  { %2256 = vmatpush.msra.mxu1 %v2129_v41  ;;  %2265 = vmatpush.msra.mxu2 %v2156_v62 }
 0x2ac   :  { %2312 = vmatpush.msrb.mxu0 %v8185_v4  ;;  %2367 = vmatpush.msrb.mxu3 %v8300_v0  ;;  %v2036_v4 = vadd.f32 %v2035_v50, %v2034_v34  ;;  %v2146_v0 = vld [vmem:[#allocation16 + $0x288] sm:$0xff]  ;;  %v9510_v50 = vld [vmem:[#allocation49_spill] sm:$0xff] }
 0x2ad   :  { %2344 = vmatpush.msrb.mxu1 %v8190_v6  ;;  %v2155_v6 = vld [vmem:[#allocation16 + $0x2d0] sm:$0xff] }
 0x2ae   :  { %2313 = vmatpush.msrb.mxu0 %v8196_v11  ;;  %2368 = vmatpush.msrb.mxu3 %v8309_v27  ;;  %v2153_v11 = vld [vmem:[#allocation16 + $0x2c0] sm:$0xff] }
 0x2af   :  { %2345 = vmatpush.msrb.mxu1 %v8202_v13  ;;  %2266 = vmatpush.msra.mxu2 %v2155_v6  ;;  %v1751_v13 = vpop.f32.mrf.mxu1 }
 0x2b0   :  { %2314 = vmatpush.msrb.mxu0 %v8208_v17  ;;  %2369 = vmatpush.msrb.mxu3 %v8318_v38  ;;  %v1771_v17 = vpop.f32.mrf.mxu2 }
 0x2b1   :  { %2346 = vmatpush.msrb.mxu1 %v8214_v21  ;;  %v2152_v21 = vld [vmem:[#allocation16 + $0x2b8] sm:$0xff] }
 0x2b2   :  { %2315 = vmatpush.msrb.mxu0 %v8220_v25  ;;  %2370 = vmatpush.msrb.mxu3 %v8325_v26  ;;  %v1772_v25 = vadd.f32 %v1771_v17, %v1751_v13 }
 0x2b3   :  { %2347 = vmatpush.msrb.mxu1 %v8226_v28  ;;  %v2150_v28 = vld [vmem:[#allocation16 + $0x2a8] sm:$0xff] }
 0x2b4   :  { %2316 = vmatpush.msrb.mxu0 %v8232_v39  ;;  %2371 = vmatpush.msrb.mxu3 %v8332_v52  ;;  %v2154_v52 = vld [vmem:[#allocation16 + $0x2c8] sm:$0xff]  ;;  %v1811_v39 = vpop.f32.mrf.mxu0 }
 0x2b5   :  { %2348 = vmatpush.msrb.mxu1 %v8238_v61  ;;  %2267 = vmatpush.msra.mxu2 %v2154_v52  ;;  %v2020_v61 = vmul.f32 %v8307_v18, %v8307_v18 }
 0x2b6   :  { %2317 = vmatpush.msrb.mxu0 %v8246_v54  ;;  %2372 = vmatpush.msrb.mxu3 %v8337_v3 }
 0x2b7   :  { %2349 = vmatpush.msrb.mxu1 %v8248_v55  ;;  %2268 = vmatpush.msra.mxu2 %v2153_v11  ;;  %v2044_v24 = vsel %vm341_vm0, %v2020_v61, 0.0 }
 0x2b8   :  { %2318 = vmatpush.msrb.mxu0 %v8255_v31  ;;  %2373 = vmatpush.msrb.mxu3 %v8342_v7  ;;  %v2149_v31 = vld [vmem:[#allocation16 + $0x2a0] sm:$0xff] }
 0x2b9   :  { %2350 = vmatpush.msrb.mxu1 %v8257_v5  ;;  %2269 = vmatpush.msra.mxu2 %v2152_v21  ;;  %v2148_v5 = vld [vmem:[#allocation16 + $0x298] sm:$0xff] }
 0x2ba   :  { %2319 = vmatpush.msrb.mxu0 %v8265_v46  ;;  %2374 = vmatpush.msrb.mxu3 %v2134_v30  ;;  %v2151_v30 = vld [vmem:[#allocation16 + $0x2b0] sm:$0xff] }
 0x2bb   :  { %2320 = vmatmul.f32.vlgmr.msrb.gmra.mxu0 %v2036_v4  ;;  %2351 = vmatpush.msrb.mxu1 %v8267_v48  ;;  %v2147_v48 = vld [vmem:[#allocation16 + $0x290] sm:$0xff]  ;;  %v9511_v4 = vld [vmem:[#allocation38_spill] sm:$0xff] }
 0x2bc   :  { %2375 = vmatpush.msrb.mxu3 %v2133_v47  ;;  %2388 = vmatpush.msra.mxu0 %v2156_v62  ;;  %v9501_v47 = vld [vmem:[#allocation40_spill] sm:$0xff] }
 0x2bd   :  { %2352 = vmatpush.msrb.mxu1 %v8275_v12  ;;  %2270 = vmatpush.msra.mxu2 %v2151_v30  ;;  %v1791_v12 = vpop.f32.mrf.mxu3 }
 0x2be   :  { %2376 = vmatpush.msrb.mxu3 %v2132_v51  ;;  %2389 = vmatpush.msra.mxu0 %v2155_v6  ;;  %v1792_v54 = vadd.f32 %v1791_v12, %v1772_v25  ;;  %v9505_v51 = vld [vmem:[#allocation44_spill] sm:$0xff]  ;;  %v2019_v6 = vmul.f32 %v9511_v4, %v9511_v4 }
 0x2bf   :  { %2353 = vmatpush.msrb.mxu1 %v8281_v1  ;;  %2271 = vmatpush.msra.mxu2 %v2150_v28 }
 0x2c0   :  { %2377 = vmatpush.msrb.mxu3 %v2131_v53  ;;  %2390 = vmatpush.msra.mxu0 %v2154_v52  ;;  %v1812_v63 = vadd.f32 %v1811_v39, %v1792_v54  ;;  %v2037_v13 = vsel %vm341_vm0, %v2019_v6, 0.0  ;;  %v2426_v6 = vld [vmem:[#allocation17 + $0x10] sm:$0xff] }
 0x2c1   :  { %2354 = vmatpush.msrb.mxu1 %v8288_v19  ;;  %2272 = vmatpush.msra.mxu2 %v2149_v31  ;;  %v2045_v19 = vrot.slane %v2044_v24, 4  ;;  %v2038_v25 = vrot.slane %v2037_v13, 4 }
 0x2c2   :  { %2378 = vmatpush.msrb.mxu3 %v2130_v33  ;;  %2391 = vmatpush.msra.mxu0 %v2153_v11 }
 0x2c3   :  { %2355 = vmatpush.msrb.mxu1 %v8295_v32  ;;  %2273 = vmatpush.msra.mxu2 %v2148_v5  ;;  %v2046_v38 = vadd.f32 %v2045_v19, %v2044_v24  ;;  %v2039_v54 = vadd.f32 %v2038_v25, %v2037_v13  ;;  %v2445_v13 = vld [vmem:[#allocation17 + $0xa8] sm:$0xff] }
 0x2c4   :  { %2379 = vmatpush.msrb.mxu3 %v2129_v41  ;;  %2392 = vmatpush.msra.mxu0 %v2152_v21  ;;  %v1831_v55 = vpop.f32.mrf.mxu1  ;;  %v9509_v41 = vld [vmem:[#allocation48_spill] sm:$0xff] }
 0x2c5   :  { %2356 = vmatpush.msrb.mxu1 %v8302_v35  ;;  %v1832_v46 = vadd.f32 %v1831_v55, %v1812_v63  ;;  %2274 = vmatpush.msra.mxu2 %v2147_v48  ;;  %v2145_v35 = vld [vmem:[#allocation16 + $0x280] sm:$0xff]  ;;  %v2047_v40 = vrot.slane %v2046_v38, 2  ;;  %v1871_v33 = vpop.f32.mrf.mxu3  ;;  %v2040_v24 = vrot.slane %v2039_v54, 2 }
 0x2c6   :  { %2393 = vmatpush.msra.mxu0 %v2151_v30 }
 0x2c7   :  { %2357 = vmatpush.msrb.mxu1 %v8311_v15  ;;  %2275 = vmatpush.msra.mxu2 %v2146_v0  ;;  %v2048_v60 = vadd.f32 %v2047_v40, %v2046_v38 }
 0x2c8   :  { %2394 = vmatpush.msra.mxu0 %v2150_v28 }
 0x2c9   :  { %2358 = vmatpush.msrb.mxu1 %v8320_v49  ;;  %2276 = vmatpush.msra.mxu2 %v2145_v35 }
 0x2ca   :  { %v1851_v1 = vpop.f32.mrf.mxu2  ;;  %2395 = vmatpush.msra.mxu0 %v2149_v31 }
 0x2cb   :  { %v8396_v45 = vadd.f32 %v1851_v1, %v1832_v46  ;;  %2359 = vmatpush.msrb.mxu1 %v8327_v20  ;;  %2324 = vmatpush.msrb.mxu2 %v8078_v59 }
 0x2cc   :  { %2396 = vmatpush.msra.mxu0 %v2148_v5 }
 0x2cd   :  { %v2002_v10 = vsel %vm341_vm0, %v8396_v45, 0.0  ;;  %v2021_v32 = vmul.f32 %v8396_v45, %v8396_v45  ;;  %2325 = vmatpush.msrb.mxu2 %v8081_v2  ;;  %v2049_v2 = vrot.slane %v2048_v60, 1 }
 0x2ce   :  { %v2003_v27 = vrot.slane %v2002_v10, 4  ;;  %2397 = vmatpush.msra.mxu0 %v2147_v48 }
 0x2cf   :  { %v2051_v15 = vsel %vm341_vm0, %v2021_v32, 0.0  ;;  %2326 = vmatpush.msrb.mxu2 %v8087_v8  ;;  %v2050_v8 = vadd.f32 %v2049_v2, %v2048_v60  ;;  %v8430_v60 = vld [vmem:[#allocation17 + $0x98] sm:$0xff] }
 0x2d0   :  { %v2004_v49 = vadd.f32 %v2003_v27, %v2002_v10  ;;  %v2052_v26 = vrot.slane %v2051_v15, 4  ;;  %2398 = vmatpush.msra.mxu0 %v2146_v0  ;;  %v2041_v0 = vadd.f32 %v2040_v24, %v2039_v54  ;;  %v2433_v54 = vld [vmem:[#allocation17 + $0x48] sm:$0xff] }
 0x2d1   :  { %2327 = vmatpush.msrb.mxu2 %v8100_v22  ;;  %v9504_v22 = vld [vmem:[#allocation43_spill] sm:$0xff]  ;;  %v8462_v24 = vld [vmem:[#allocation17 + $0x28] sm:$0xff] }
 0x2d2   :  { %v2005_v20 = vrot.slane %v2004_v49, 2  ;;  %v2053_v56 = vadd.f32 %v2052_v26, %v2051_v15  ;;  %2399 = vmatpush.msra.mxu0 %v2145_v35  ;;  %v2042_v27 = vrot.slane %v2041_v0, 1 }
 0x2d3   :  { %2328 = vmatpush.msrb.mxu2 %v8111_v16  ;;  %v9507_v16 = vld [vmem:[#allocation46_spill] sm:$0xff] }
 0x2d4   :  { %v2006_v3 = vadd.f32 %v2005_v20, %v2004_v49  ;;  %v2054_v44 = vrot.slane %v2053_v56, 2  ;;  %v2043_v15 = vadd.f32 %v2042_v27, %v2041_v0  ;;  %2484 = vmatpush.msrb.mxu0 %v8430_v60 }
 0x2d5   :  { %2329 = vmatpush.msrb.mxu2 %v8123_v57  ;;  %v1891_v53 = vpop.f32.mrf.mxu0  ;;  %v9508_v57 = vld [vmem:[#allocation47_spill] sm:$0xff] }
 0x2d6   :  { %v2007_v29 = vrot.slane %v2006_v3, 1  ;;  %v2055_v7 = vadd.f32 %v2054_v44, %v2053_v56  ;;  %v1892_v43 = vadd.f32 %v1891_v53, %v1871_v33  ;;  %v8439_v53 = vld [vmem:[#allocation17 + $0x80] sm:$0xff]  ;;  %v8441_v33 = vld [vmem:[#allocation17 + $0x38] sm:$0xff] }
 0x2d7   :  { %2330 = vmatpush.msrb.mxu2 %v9501_v47 }
 0x2d8   :  { %v2008_v14 = vadd.f32 %v2007_v29, %v2006_v3  ;;  %v2056_v9 = vrot.slane %v2055_v7, 1 }
 0x2d9   :  { %2331 = vmatpush.msrb.mxu2 %v9502_v42  ;;  %v8433_v42 = vld [vmem:[#allocation17 + $0xb0] sm:$0xff] }
 0x2da   :  { %2257 = vmatmul.f32.vlgmr.msra.gmra.mxu1 %v2008_v14  ;;  %v2057_v59 = vadd.f32 %v2056_v9, %v2055_v7  ;;  %v2442_v9 = vld [vmem:[#allocation17 + $0x90] sm:$0xff]  ;;  %2544 = vmatpush.msra.mxu3 %v8433_v42 }
 0x2db   :  { %2332 = vmatpush.msrb.mxu2 %v9503_v23  ;;  %v2436_v23 = vld [vmem:[#allocation17 + $0x60] sm:$0xff] }
 0x2dc   :  { %2380 = vmatmul.f32.vlgmr.msrb.gmra.mxu3 %v2057_v59  ;;  %v2444_v59 = vld [vmem:[#allocation17 + $0xa0] sm:$0xff] }
 0x2dd   :  { %2333 = vmatpush.msrb.mxu2 %v9504_v22  ;;  %2504 = vmatpush.msra.mxu1 %v2444_v59  ;;  %v8436_v22 = vld [vmem:[#allocation17 + $0x68] sm:$0xff] }
 0x2de   :  { %2485 = vmatpush.msrb.mxu0 %v8436_v22  ;;  %2545 = vmatpush.msra.mxu3 %v8439_v53 }
 0x2df   :  { %2334 = vmatpush.msrb.mxu2 %v9505_v51  ;;  %v2438_v51 = vld [vmem:[#allocation17 + $0x70] sm:$0xff] }
 0x2e0   :  { %2505 = vmatpush.msra.mxu1 %v2438_v51  ;;  %2486 = vmatpush.msrb.mxu0 %v8441_v33 }
 0x2e1   :  { %2335 = vmatpush.msrb.mxu2 %v9506_v37 }
 0x2e2   :  { %2360 = vmatmul.f32.vlgmr.msrb.gmra.mxu1 %v2050_v8 }
 0x2e3   :  { %2336 = vmatpush.msrb.mxu2 %v9507_v16 }
 0x2e5   :  { %2337 = vmatpush.msrb.mxu2 %v9508_v57  ;;  %v1951_v11 = vpop.f32.mrf.mxu3  ;;  %v2430_v57 = vld [vmem:[#allocation17 + $0x30] sm:$0xff] }
 0x2e6   :  { %v1911_v58 = vpop.f32.mrf.mxu1 }
 0x2e7   :  { %2338 = vmatpush.msrb.mxu2 %v9509_v41  ;;  %v1912_v62 = vadd.f32 %v1911_v58, %v1892_v43  ;;  %v2432_v41 = vld [vmem:[#allocation17 + $0x40] sm:$0xff]  ;;  %v8444_v43 = vld [vmem:[#allocation17 + $0x50] sm:$0xff] }
 0x2e8   :  { %2506 = vmatpush.msra.mxu1 %v2432_v41  ;;  %2546 = vmatpush.msra.mxu3 %v8444_v43 }
 0x2e9   :  { %2339 = vmatpush.msrb.mxu2 %v9510_v50 }
 0x2ea   :  { %2507 = vmatpush.msra.mxu1 %v2426_v6 }
 0x2ec   :  { %v1931_v34 = vpop.f32.mrf.mxu2  ;;  %2587 = vmatpush.msrb.mxu1 %v2442_v9 }
 0x2ed   :  { %v1932_v52 = vadd.f32 %v1931_v34, %v1912_v62  ;;  %v2424_v34 = vld [vmem:[#allocation17] sm:$0xff]  ;;  %v8447_v62 = vld [vmem:[#allocation17 + $0x8] sm:$0xff] }
 0x2ee   :  { %2487 = vmatpush.msrb.mxu0 %v8447_v62  ;;  %2588 = vmatpush.msrb.mxu1 %v2436_v23 }
 0x2ef   :  { %v1952_v17 = vadd.f32 %v1951_v11, %v1932_v52  ;;  %v8449_v52 = vld [vmem:[#allocation17 + $0x20] sm:$0xff] }
 0x2f0   :  { %2547 = vmatpush.msra.mxu3 %v8449_v52  ;;  %2589 = vmatpush.msrb.mxu1 %v2430_v57 }
 0x2f2   :  { %2627 = vmatpush.msrb.mxu3 %v2444_v59  ;;  %2590 = vmatpush.msrb.mxu1 %v2424_v34  ;;  %v3115_v59 = vld [vmem:[#allocation19 + $0xbd0] sm:$0xff] }
 0x2f4   :  { %2628 = vmatpush.msrb.mxu3 %v2438_v51  ;;  %v2905_v51 = vld [vmem:[#allocation19 + $0x540] sm:$0xff] }
 0x2f6   :  { %2629 = vmatpush.msrb.mxu3 %v2432_v41  ;;  %v2989_v41 = vld [vmem:[#allocation19 + $0x7e0] sm:$0xff] }
 0x2f7   :  { %v1971_v21 = vpop.f32.mrf.mxu0 }
 0x2f8   :  { %v8423_v30 = vadd.f32 %v1971_v21, %v1952_v17  ;;  %v8452_v17 = vld [vmem:[#allocation17 + $0xb8] sm:$0xff]  ;;  %2630 = vmatpush.msrb.mxu3 %v2426_v6  ;;  %v2767_v6 = vld [vmem:[#allocation19 + $0xf0] sm:$0xff] }
 0x2fa   :  { %v2010_v28 = vsel %vm2009_vm10, %v8423_v30, 0.0  ;;  %v2022_v12 = vmul.f32 %v8423_v30, %v8423_v30 }
 0x2fb   :  { %v2011_v39 = vrot.slane %v2010_v28, 4 }
 0x2fc   :  { %v2058_v61 = vsel %vm2009_vm10, %v2022_v12, 0.0  ;;  %v2439_v12 = vld [vmem:[#allocation17 + $0x78] sm:$0xff] }
 0x2fd   :  { %v2012_v55 = vadd.f32 %v2011_v39, %v2010_v28  ;;  %v2059_v63 = vrot.slane %v2058_v61, 4  ;;  %v8456_v39 = vld [vmem:[#allocation17 + $0x88] sm:$0xff] }
 0x2ff   :  { %v2013_v31 = vrot.slane %v2012_v55, 2  ;;  %v2060_v5 = vadd.f32 %v2059_v63, %v2058_v61 }
 0x301   :  { %v2014_v46 = vadd.f32 %v2013_v31, %v2012_v55  ;;  %v2061_v48 = vrot.slane %v2060_v5, 2  ;;  %v8459_v55 = vld [vmem:[#allocation17 + $0x58] sm:$0xff] }
 0x303   :  { %v2015_v1 = vrot.slane %v2014_v46, 1  ;;  %v2062_v19 = vadd.f32 %v2061_v48, %v2060_v5  ;;  %v2427_v5 = vld [vmem:[#allocation17 + $0x18] sm:$0xff] }
 0x305   :  { %v2016_v10 = vadd.f32 %v2015_v1, %v2014_v46  ;;  %v2063_v32 = vrot.slane %v2062_v19, 1 }
 0x307   :  { %7228 = vmatmul.msk.f32.vlgmr.msra.gmra.mxu2 %vm2157_vm11, %v2016_v10  ;;  %v2064_v35 = vadd.f32 %v2063_v32, %v2062_v19  ;;  %v2218_v26 = vpop.f32.mrf.mxu3 }
 0x308   :  { %v2178_v38 = vpop.f32.mrf.mxu1  ;;  %2464 = vmatpush.msra.mxu2 %v2442_v9  ;;  %v3013_v9 = vld [vmem:[#allocation19 + $0x8a0] sm:$0xff] }
 0x309   :  { %7229 = vmatmul.msk.f32.vlgmr.msra.gmra.mxu0 %vm2157_vm11, %v2064_v35  ;;  %v2408_v35 = vld [vmem:[%s9409_s10] sm:$0x1] }
 0x30a   :  { %2465 = vmatpush.msra.mxu2 %v2436_v23  ;;  %2564 = vmatpush.msra.mxu0 %v8452_v17  ;;  %v2791_v23 = vld [vmem:[#allocation19 + $0x1b0] sm:$0xff] }
 0x30c   :  { %2466 = vmatpush.msra.mxu2 %v2430_v57  ;;  %2565 = vmatpush.msra.mxu0 %v8456_v39  ;;  %v2899_v57 = vld [vmem:[#allocation19 + $0x510] sm:$0xff] }
 0x30e   :  { %v2198_v49 = vpop.f32.mrf.mxu2  ;;  %2467 = vmatpush.msra.mxu2 %v2424_v34  ;;  %2566 = vmatpush.msra.mxu0 %v8459_v55  ;;  %v2893_v34 = vld [vmem:[#allocation19 + $0x4e0] sm:$0xff] }
 0x30f   :  { %2340 = vmatmul.f32.vlgmr.msrb.gmra.mxu2 %v2043_v15  ;;  %v2199_v56 = vadd.f32 %v2198_v49, %v2178_v38  ;;  %v2827_v49 = vld [vmem:[#allocation19 + $0x2d0] sm:$0xff] }
 0x310   :  { %2524 = vmatpush.msrb.mxu2 %v2445_v13  ;;  %2567 = vmatpush.msra.mxu0 %v8462_v24 }
 0x311   :  { %v2219_v44 = vadd.f32 %v2218_v26, %v2199_v56  ;;  %v2821_v26 = vld [vmem:[#allocation19 + $0x2a0] sm:$0xff]  ;;  %v2421_v56 = vld [vmem:[%s9410_s11] sm:$0x1] }
 0x312   :  { %2525 = vmatpush.msrb.mxu2 %v2439_v12 }
 0x314   :  { %2526 = vmatpush.msrb.mxu2 %v2433_v54 }
 0x316   :  { %2527 = vmatpush.msrb.mxu2 %v2427_v5 }
 0x31e   :  { %v2238_v20 = vpop.f32.mrf.mxu0 }
 0x31f   :  { %v2239_v14 = vadd.f32 %v2238_v20, %v2219_v44  ;;  %v2809_v44 = vld [vmem:[#allocation19 + $0x240] sm:$0xff] }
 0x328   :  { %v2301_v29 = vpop.f32.mrf.mxu3 }
 0x338   :  { %v2321_v7 = vpop.f32.mrf.mxu0 }
 0x339   :  { %v2322_v2 = vadd.f32 %v2321_v7, %v2301_v29  ;;  %v3019_v29 = vld [vmem:[#allocation19 + $0x8d0] sm:$0xff] }
 0x33a   :  { %v2923_v7 = vld [vmem:[#allocation19 + $0x5d0] sm:$0xff] }
 0x357   :  { %v2258_v40 = vpop.f32.mrf.mxu1 }
 0x358   :  { %v2259_v47 = vadd.f32 %v2258_v40, %v2239_v14  ;;  %v2815_v40 = vld [vmem:[#allocation19 + $0x270] sm:$0xff] }
 0x359   :  { %v2803_v14 = vld [vmem:[#allocation19 + $0x210] sm:$0xff] }
 0x35f   :  { %v2361_v58 = vpop.f32.mrf.mxu1  ;;  %v2381_v11 = vpop.f32.mrf.mxu3 }
 0x386   :  { %v2401_v28 = vpop.f32.mrf.mxu0 }
 0x38a   :  { %v2278_v3 = vpop.f32.mrf.mxu2 }
 0x38b   :  { %v2279_v37 = vadd.f32 %v2278_v3, %v2259_v47  ;;  %v3007_v47 = vld [vmem:[#allocation19 + $0x870] sm:$0xff] }
 0x38d   :  { %v2404_v21 = vmul.f32 0.02173913, %v2279_v37  ;;  %v3103_v37 = vld [vmem:[#allocation19 + $0xb70] sm:$0xff] }
 0x38f   :  { %v2406_v63 = vmul.f32 %v2404_v21, %v2404_v21 }
 0x392   :  { %v2341_v8 = vpop.f32.mrf.mxu2 }
 0x393   :  { %v2342_v16 = vadd.f32 %v2341_v8, %v2322_v2  ;;  %v2797_v2 = vld [vmem:[#allocation19 + $0x1e0] sm:$0xff] }
 0x394   :  { %v3109_v8 = vld [vmem:[#allocation19 + $0xba0] sm:$0xff] }
 0x395   :  { %v2362_v50 = vadd.f32 %v2361_v58, %v2342_v16  ;;  %v2785_v16 = vld [vmem:[#allocation19 + $0x180] sm:$0xff] }
 0x396   :  { %v3097_v58 = vld [vmem:[#allocation19 + $0xb40] sm:$0xff] }
 0x397   :  { %v2382_v25 = vadd.f32 %v2381_v11, %v2362_v50  ;;  %v3091_v50 = vld [vmem:[#allocation19 + $0xb10] sm:$0xff]  ;;  %v3085_v11 = vld [vmem:[#allocation19 + $0xae0] sm:$0xff] }
 0x399   :  { %v2402_v61 = vadd.f32 %v2401_v28, %v2382_v25  ;;  %v3079_v25 = vld [vmem:[#allocation19 + $0xab0] sm:$0xff] }
 0x39a   :  { %v2971_v28 = vld [vmem:[#allocation19 + $0x750] sm:$0xff] }
 0x39b   :  { %v2405_v31 = vmul.f32 0.02173913, %v2402_v61  ;;  %v3073_v61 = vld [vmem:[#allocation19 + $0xa80] sm:$0xff] }
 0x39d   :  { %v2407_v46 = vsub.f32 %v2405_v31, %v2406_v63  ;;  %v2869_v63 = vld [vmem:[#allocation19 + $0x420] sm:$0xff]  ;;  %v3067_v31 = vld [vmem:[#allocation19 + $0xa50] sm:$0xff] }
 0x39f   :  { %v2409_v48 = vadd.f32 1e-05, %v2407_v46  ;;  %v2863_v46 = vld [vmem:[#allocation19 + $0x3f0] sm:$0xff] }
 0x3a1   :  { %7311 = vrsqrt.f32 %v2409_v48  ;;  %vm2416_vm13 = vweird.f32 %v2409_v48 }
 0x3a7   :  { %v7312_v1 = vpop.eup %7311 }
 0x3a8   :  { %v2411_v19 = vmul.f32 %v7312_v1, %v2409_v48  ;;  %vm2417_vm12 = vweird.f32 %v7312_v1  ;;  %v3061_v48 = vld [vmem:[#allocation19 + $0xa20] sm:$0xff] }
 0x3a9   :  { %vm2418_vm14 = vmor %vm2416_vm13, %vm2417_vm12 }
 0x3aa   :  { %v2412_v10 = vmul.f32 %v7312_v1, %v2411_v19  ;;  %v2737_v19 = vld [vmem:[#allocation19] sm:$0xff] }
 0x3ac   :  { %v2413_v32 = vmul.f32 0.5, %v2412_v10  ;;  %v2857_v10 = vld [vmem:[#allocation19 + $0x3c0] sm:$0xff] }
 0x3ae   :  { %v2414_v0 = vsub.f32 1.5, %v2413_v32  ;;  %v3055_v32 = vld [vmem:[#allocation19 + $0x9f0] sm:$0xff] }
 0x3b0   :  { %v2415_v27 = vmul.f32 %v7312_v1, %v2414_v0  ;;  %v2947_v0 = vld [vmem:[#allocation19 + $0x690] sm:$0xff] }
 0x3b2   :  { %v2419_v15 = vsel %vm2418_vm14, %v7312_v1, %v2415_v27  ;;  %v2953_v1 = vld [vmem:[#allocation19 + $0x6c0] sm:$0xff] }
 0x3b3   :  { %v2420_v38 = vmul.f32 %v2419_v15, %v2408_v35  ;;  %v3211_v35 = vld [vmem:[#allocation19 + $0xed0] sm:$0xff]  ;;  %v3049_v27 = vld [vmem:[#allocation19 + $0x9c0] sm:$0xff] }
 0x3b4   :  { %v2941_v15 = vld [vmem:[#allocation19 + $0x660] sm:$0xff] }
 0x3b5   :  { %7230 = vmatmul.msk.f32.vlgmr.msra.gmra.mxu2 %vm2448_vm15, %v2420_v38  ;;  %7231 = vmatmul.msk.f32.vlgmr.msrb.gmra.mxu0 %vm2448_vm15, %v2420_v38  ;;  %v2422_v20 = vmul.f32 %v2420_v38, %v2404_v21  ;;  %v2881_v21 = vld [vmem:[#allocation19 + $0x480] sm:$0xff] }
 0x3b6   :  { %7232 = vmatmul.msk.f32.vlgmr.msra.gmra.mxu1 %vm2448_vm15, %v2420_v38  ;;  %7234 = vmatmul.msk.f32.vlgmr.msra.gmra.mxu3 %vm2448_vm15, %v2420_v38 }
 0x3b7   :  { %2607 = vmatpush.msra.mxu2 %v8430_v60  ;;  %2647 = vmatpush.msrb.mxu0 %v2445_v13  ;;  %v2423_v3 = vsub.f32 %v2421_v56, %v2422_v20  ;;  %v2917_v60 = vld [vmem:[#allocation19 + $0x5a0] sm:$0xff]  ;;  %v3199_v20 = vld [vmem:[#allocation19 + $0xe70] sm:$0xff] }
 0x3b8   :  { %2667 = vmatpush.msra.mxu1 %v8433_v42  ;;  %3292 = vmatpush.msra.mxu3 %v2827_v49  ;;  %v2911_v42 = vld [vmem:[#allocation19 + $0x570] sm:$0xff]  ;;  %v2977_v13 = vld [vmem:[#allocation19 + $0x780] sm:$0xff] }
 0x3b9   :  { %2608 = vmatpush.msra.mxu2 %v8436_v22  ;;  %2648 = vmatpush.msrb.mxu0 %v2439_v12  ;;  %v3001_v22 = vld [vmem:[#allocation19 + $0x840] sm:$0xff]  ;;  %v2755_v12 = vld [vmem:[#allocation19 + $0x90] sm:$0xff] }
 0x3ba   :  { %2668 = vmatpush.msra.mxu1 %v8439_v53  ;;  %3293 = vmatpush.msra.mxu3 %v2821_v26  ;;  %v2995_v53 = vld [vmem:[#allocation19 + $0x810] sm:$0xff]  ;;  %v3037_v56 = vld [vmem:[#allocation19 + $0x960] sm:$0xff] }
 0x3bb   :  { %2609 = vmatpush.msra.mxu2 %v8441_v33  ;;  %2649 = vmatpush.msrb.mxu0 %v2433_v54  ;;  %v2779_v33 = vld [vmem:[#allocation19 + $0x150] sm:$0xff]  ;;  %v2965_v54 = vld [vmem:[#allocation19 + $0x720] sm:$0xff] }
 0x3bc   :  { %2669 = vmatpush.msra.mxu1 %v8444_v43  ;;  %3294 = vmatpush.msra.mxu3 %v2815_v40  ;;  %v2773_v43 = vld [vmem:[#allocation19 + $0x120] sm:$0xff]  ;;  %v3043_v49 = vld [vmem:[#allocation19 + $0x990] sm:$0xff] }
 0x3bd   :  { %7233 = vmatmul.msk.f32.vlgmr.msrb.gmra.mxu2 %vm2448_vm15, %v2420_v38  ;;  %7235 = vmatmul.msk.f32.vlgmr.msra.gmra.mxu0 %vm2448_vm15, %v2420_v38  ;;  %v3205_v38 = vld [vmem:[#allocation19 + $0xea0] sm:$0xff]  ;;  %v2935_v26 = vld [vmem:[#allocation19 + $0x630] sm:$0xff] }
 0x3be   :  { %7236 = vmatmul.msk.f32.vlgmr.msrb.gmra.mxu1 %vm2448_vm15, %v2423_v3  ;;  %7238 = vmatmul.msk.f32.vlgmr.msrb.gmra.mxu3 %vm2448_vm15, %v2423_v3  ;;  %v2929_v40 = vld [vmem:[#allocation19 + $0x600] sm:$0xff] }
 0x3bf   :  { %2610 = vmatpush.msra.mxu2 %v8447_v62  ;;  %2650 = vmatpush.msrb.mxu0 %v2427_v5  ;;  %v2983_v62 = vld [vmem:[#allocation19 + $0x7b0] sm:$0xff] }
 0x3c0   :  { %2670 = vmatpush.msra.mxu1 %v8449_v52  ;;  %3295 = vmatpush.msra.mxu3 %v2809_v44  ;;  %v2887_v52 = vld [vmem:[#allocation19 + $0x4b0] sm:$0xff]  ;;  %v2828_v44 = vld [vmem:[#allocation19 + $0x2d8] sm:$0xff] }
 0x3c1   :  { %2687 = vmatpush.msrb.mxu2 %v8452_v17  ;;  %3312 = vmatpush.msra.mxu0 %v2923_v7  ;;  %v2761_v17 = vld [vmem:[#allocation19 + $0xc0] sm:$0xff]  ;;  %v2959_v5 = vld [vmem:[#allocation19 + $0x6f0] sm:$0xff] }
 0x3c2   :  { %3332 = vmatpush.msrb.mxu1 %v3019_v29  ;;  %3296 = vmatpush.msra.mxu3 %v2803_v14  ;;  %v3031_v29 = vld [vmem:[#allocation19 + $0x930] sm:$0xff]  ;;  %v2822_v14 = vld [vmem:[#allocation19 + $0x2a8] sm:$0xff] }
 0x3c3   :  { %2688 = vmatpush.msrb.mxu2 %v8456_v39  ;;  %3313 = vmatpush.msra.mxu0 %v2917_v60  ;;  %v2875_v39 = vld [vmem:[#allocation19 + $0x450] sm:$0xff]  ;;  %v2924_v60 = vld [vmem:[#allocation19 + $0x5d8] sm:$0xff] }
 0x3c4   :  { %3333 = vmatpush.msrb.mxu1 %v3013_v9  ;;  %3297 = vmatpush.msra.mxu3 %v2797_v2  ;;  %v3187_v7 = vld [vmem:[#allocation19 + $0xe10] sm:$0xff]  ;;  %v3025_v9 = vld [vmem:[#allocation19 + $0x900] sm:$0xff]  ;;  %v2816_v2 = vld [vmem:[#allocation19 + $0x278] sm:$0xff] }
 0x3c5   :  { %2689 = vmatpush.msrb.mxu2 %v8459_v55  ;;  %7239 = vmatmul.msk.f32.vlgmr.msrb.gmra.mxu0 %vm2448_vm15, %v2423_v3  ;;  %v2749_v55 = vld [vmem:[#allocation19 + $0x60] sm:$0xff] }
 0x3c6   :  { %7237 = vmatmul.msk.f32.vlgmr.msra.gmra.mxu2 %vm2448_vm15, %v2423_v3  ;;  %7240 = vmatmul.msk.f32.vlgmr.msra.gmra.mxu1 %vm2448_vm15, %v2423_v3 }
 0x3c7   :  { %2690 = vmatpush.msrb.mxu2 %v8462_v24  ;;  %3334 = vmatpush.msrb.mxu1 %v3007_v47  ;;  %v2743_v24 = vld [vmem:[#allocation19 + $0x30] sm:$0xff]  ;;  %v2918_v47 = vld [vmem:[#allocation19 + $0x5a8] sm:$0xff] }
 0x3c8   :  { %3314 = vmatpush.msra.mxu0 %v2911_v42  ;;  %3298 = vmatpush.msra.mxu3 %v2791_v23  ;;  %v3175_v42 = vld [vmem:[#allocation19 + $0xdb0] sm:$0xff]  ;;  %v2912_v23 = vld [vmem:[#allocation19 + $0x578] sm:$0xff] }
 0x3c9   :  { %3352 = vmatpush.msra.mxu2 %v3115_v59  ;;  %3335 = vmatpush.msrb.mxu1 %v3001_v22  ;;  %v3181_v59 = vld [vmem:[#allocation19 + $0xde0] sm:$0xff] }
 0x3ca   :  { %3315 = vmatpush.msra.mxu0 %v2905_v51  ;;  %3299 = vmatpush.msra.mxu3 %v2785_v16  ;;  %v3169_v22 = vld [vmem:[#allocation19 + $0xd80] sm:$0xff]  ;;  %v2804_v51 = vld [vmem:[#allocation19 + $0x218] sm:$0xff]  ;;  %v2851_v16 = vld [vmem:[#allocation19 + $0x390] sm:$0xff] }
 0x3cb   :  { %3353 = vmatpush.msra.mxu2 %v3109_v8  ;;  %3336 = vmatpush.msrb.mxu1 %v2995_v53  ;;  %v2810_v8 = vld [vmem:[#allocation19 + $0x248] sm:$0xff]  ;;  %v3163_v53 = vld [vmem:[#allocation19 + $0xd50] sm:$0xff] }
 0x3cc   :  { %3316 = vmatpush.msra.mxu0 %v2899_v57  ;;  %3300 = vmatpush.msra.mxu3 %v2779_v33  ;;  %v2798_v57 = vld [vmem:[#allocation19 + $0x1e8] sm:$0xff]  ;;  %v2900_v33 = vld [vmem:[#allocation19 + $0x518] sm:$0xff] }
 0x3cd   :  { %3354 = vmatpush.msra.mxu2 %v3103_v37  ;;  %3337 = vmatpush.msrb.mxu1 %v2989_v41  ;;  %v2906_v37 = vld [vmem:[#allocation19 + $0x548] sm:$0xff]  ;;  %v3157_v41 = vld [vmem:[#allocation19 + $0xd20] sm:$0xff] }
 0x3ce   :  { %7241 = vmatmul.msk.f32.vlgmr.msrb.gmra.mxu2 %vm2448_vm15, %v2423_v3  ;;  %3301 = vmatpush.msra.mxu3 %v2773_v43  ;;  %v3193_v3 = vld [vmem:[#allocation19 + $0xe40] sm:$0xff]  ;;  %v2792_v43 = vld [vmem:[#allocation19 + $0x1b8] sm:$0xff] }
 0x3cf   :  { %3355 = vmatpush.msra.mxu2 %v3097_v58  ;;  %3317 = vmatpush.msra.mxu0 %v2893_v34  ;;  %v2845_v58 = vld [vmem:[#allocation19 + $0x360] sm:$0xff]  ;;  %v2894_v34 = vld [vmem:[#allocation19 + $0x4e8] sm:$0xff] }
 0x3d0   :  { %3338 = vmatpush.msrb.mxu1 %v2983_v62  ;;  %3302 = vmatpush.msra.mxu3 %v2767_v6  ;;  %v3151_v62 = vld [vmem:[#allocation19 + $0xcf0] sm:$0xff]  ;;  %v2786_v6 = vld [vmem:[#allocation19 + $0x188] sm:$0xff] }
 0x3d1   :  { %3356 = vmatpush.msra.mxu2 %v3091_v50  ;;  %3318 = vmatpush.msra.mxu0 %v2887_v52  ;;  %v2839_v50 = vld [vmem:[#allocation19 + $0x330] sm:$0xff]  ;;  %v2888_v52 = vld [vmem:[#allocation19 + $0x4b8] sm:$0xff] }
 0x3d2   :  { %3339 = vmatpush.msrb.mxu1 %v2977_v13  ;;  %3303 = vmatpush.msra.mxu3 %v2761_v17  ;;  %v3145_v13 = vld [vmem:[#allocation19 + $0xcc0] sm:$0xff]  ;;  %v3283_v17 = vld [vmem:[#allocation19 + $0x1110] sm:$0xff] }
 0x3d3   :  { %3357 = vmatpush.msra.mxu2 %v3085_v11  ;;  %3319 = vmatpush.msra.mxu0 %v2881_v21  ;;  %v2833_v11 = vld [vmem:[#allocation19 + $0x300] sm:$0xff]  ;;  %v2780_v21 = vld [vmem:[#allocation19 + $0x158] sm:$0xff] }
 0x3d4   :  { %3340 = vmatpush.msrb.mxu1 %v2971_v28  ;;  %3304 = vmatpush.msra.mxu3 %v2755_v12  ;;  %v3139_v28 = vld [vmem:[#allocation19 + $0xc90] sm:$0xff]  ;;  %v3277_v12 = vld [vmem:[#allocation19 + $0x10e0] sm:$0xff] }
 0x3d5   :  { %3358 = vmatpush.msra.mxu2 %v3079_v25  ;;  %3320 = vmatpush.msra.mxu0 %v2875_v39  ;;  %v2882_v25 = vld [vmem:[#allocation19 + $0x488] sm:$0xff] }
 0x3d6   :  { %3341 = vmatpush.msrb.mxu1 %v2965_v54  ;;  %3305 = vmatpush.msra.mxu3 %v2749_v55  ;;  %v2774_v39 = vld [vmem:[#allocation19 + $0x128] sm:$0xff]  ;;  %v3133_v54 = vld [vmem:[#allocation19 + $0xc60] sm:$0xff]  ;;  %v3271_v55 = vld [vmem:[#allocation19 + $0x10b0] sm:$0xff] }
 0x3d7   :  { %3359 = vmatpush.msra.mxu2 %v3073_v61  ;;  %3321 = vmatpush.msra.mxu0 %v2869_v63  ;;  %v2876_v61 = vld [vmem:[#allocation19 + $0x458] sm:$0xff] }
 0x3d8   :  { %3342 = vmatpush.msrb.mxu1 %v2959_v5  ;;  %3306 = vmatpush.msra.mxu3 %v2743_v24  ;;  %v2768_v63 = vld [vmem:[#allocation19 + $0xf8] sm:$0xff]  ;;  %v3127_v5 = vld [vmem:[#allocation19 + $0xc30] sm:$0xff]  ;;  %v3265_v24 = vld [vmem:[#allocation19 + $0x1080] sm:$0xff] }
 0x3d9   :  { %3360 = vmatpush.msra.mxu2 %v3067_v31  ;;  %3322 = vmatpush.msra.mxu0 %v2863_v46  ;;  %v2870_v31 = vld [vmem:[#allocation19 + $0x428] sm:$0xff] }
 0x3da   :  { %3343 = vmatpush.msrb.mxu1 %v2953_v1  ;;  %3307 = vmatpush.msra.mxu3 %v2737_v19  ;;  %v2762_v46 = vld [vmem:[#allocation19 + $0xc8] sm:$0xff]  ;;  %v3121_v1 = vld [vmem:[#allocation19 + $0xc00] sm:$0xff]  ;;  %v3259_v19 = vld [vmem:[#allocation19 + $0x1050] sm:$0xff] }
 0x3db   :  { %3361 = vmatpush.msra.mxu2 %v3061_v48  ;;  %3323 = vmatpush.msra.mxu0 %v2857_v10  ;;  %v2864_v48 = vld [vmem:[#allocation19 + $0x3f8] sm:$0xff] }
 0x3dc   :  { %3344 = vmatpush.msrb.mxu1 %v2947_v0  ;;  %3372 = vmatpush.msrb.mxu3 %v3211_v35  ;;  %v2756_v10 = vld [vmem:[#allocation19 + $0x98] sm:$0xff]  ;;  %v3253_v0 = vld [vmem:[#allocation19 + $0x1020] sm:$0xff]  ;;  %v2750_v35 = vld [vmem:[#allocation19 + $0x68] sm:$0xff] }
 0x3dd   :  { %3362 = vmatpush.msra.mxu2 %v3055_v32  ;;  %3324 = vmatpush.msra.mxu0 %v2851_v16  ;;  %v2858_v32 = vld [vmem:[#allocation19 + $0x3c8] sm:$0xff] }
 0x3de   :  { %3345 = vmatpush.msrb.mxu1 %v2941_v15  ;;  %3373 = vmatpush.msrb.mxu3 %v3205_v38  ;;  %v3247_v15 = vld [vmem:[#allocation19 + $0xff0] sm:$0xff]  ;;  %v2744_v38 = vld [vmem:[#allocation19 + $0x38] sm:$0xff] }
 0x3df   :  { %3363 = vmatpush.msra.mxu2 %v3049_v27  ;;  %3325 = vmatpush.msra.mxu0 %v2845_v58  ;;  %v2852_v27 = vld [vmem:[#allocation19 + $0x398] sm:$0xff] }
 0x3e0   :  { %3346 = vmatpush.msrb.mxu1 %v2935_v26  ;;  %3374 = vmatpush.msrb.mxu3 %v3199_v20  ;;  %v3241_v26 = vld [vmem:[#allocation19 + $0xfc0] sm:$0xff]  ;;  %v2738_v20 = vld [vmem:[#allocation19 + $0x8] sm:$0xff] }
 0x3e1   :  { %3364 = vmatpush.msra.mxu2 %v3043_v49  ;;  %3326 = vmatpush.msra.mxu0 %v2839_v50  ;;  %v2846_v49 = vld [vmem:[#allocation19 + $0x368] sm:$0xff] }
 0x3e2   :  { %3347 = vmatpush.msrb.mxu1 %v2929_v40  ;;  %3375 = vmatpush.msrb.mxu3 %v3193_v3  ;;  %v3235_v40 = vld [vmem:[#allocation19 + $0xf90] sm:$0xff]  ;;  %v2834_v3 = vld [vmem:[#allocation19 + $0x308] sm:$0xff] }
 0x3e3   :  { %3365 = vmatpush.msra.mxu2 %v3037_v56  ;;  %3327 = vmatpush.msra.mxu0 %v2833_v11  ;;  %v2840_v56 = vld [vmem:[#allocation19 + $0x338] sm:$0xff] }
 0x3e4   :  { %3412 = vmatpush.msra.mxu1 %v2828_v44  ;;  %3376 = vmatpush.msrb.mxu3 %v3187_v7  ;;  %v3229_v44 = vld [vmem:[#allocation19 + $0xf60] sm:$0xff] }
 0x3e5   :  { %3366 = vmatpush.msra.mxu2 %v3031_v29  ;;  %3396 = vmatpush.msrb.mxu0 %v3283_v17  ;;  %v3223_v29 = vld [vmem:[#allocation19 + $0xf30] sm:$0xff]  ;;  %v3217_v7 = vld [vmem:[#allocation19 + $0xf00] sm:$0xff] }
 0x3e6   :  { %3413 = vmatpush.msra.mxu1 %v2822_v14  ;;  %3377 = vmatpush.msrb.mxu3 %v3181_v59 }
 0x3e7   :  { %3367 = vmatpush.msra.mxu2 %v3025_v9  ;;  %3397 = vmatpush.msrb.mxu0 %v3277_v12 }
 0x3e8   :  { %3414 = vmatpush.msra.mxu1 %v2816_v2  ;;  %3378 = vmatpush.msrb.mxu3 %v3175_v42  ;;  %v9512_v42 = vld [vmem:[#allocation39_spill] sm:$0xff] }
 0x3e9   :  { %3432 = vmatpush.msrb.mxu2 %v2924_v60  ;;  %3398 = vmatpush.msrb.mxu0 %v3271_v55  ;;  %v3212_v55 = vld [vmem:[#allocation19 + $0xed8] sm:$0xff] }
 0x3ea   :  { %3415 = vmatpush.msra.mxu1 %v2810_v8  ;;  %3379 = vmatpush.msrb.mxu3 %v3169_v22 }
 0x3eb   :  { %3433 = vmatpush.msrb.mxu2 %v2918_v47  ;;  %3399 = vmatpush.msrb.mxu0 %v3265_v24 }
 0x3ec   :  { %3416 = vmatpush.msra.mxu1 %v2804_v51  ;;  %3380 = vmatpush.msrb.mxu3 %v3163_v53 }
 0x3ed   :  { %3434 = vmatpush.msrb.mxu2 %v2912_v23  ;;  %3400 = vmatpush.msrb.mxu0 %v3259_v19 }
 0x3ee   :  { %3417 = vmatpush.msra.mxu1 %v2798_v57  ;;  %3381 = vmatpush.msrb.mxu3 %v3157_v41  ;;  %v3116_v41 = vld [vmem:[#allocation19 + $0xbd8] sm:$0xff] }
 0x3ef   :  { %3435 = vmatpush.msrb.mxu2 %v2906_v37  ;;  %3401 = vmatpush.msrb.mxu0 %v3253_v0  ;;  %v3086_v0 = vld [vmem:[#allocation19 + $0xae8] sm:$0xff] }
 0x3f0   :  { %3418 = vmatpush.msra.mxu1 %v2792_v43  ;;  %3382 = vmatpush.msrb.mxu3 %v3151_v62 }
 0x3f1   :  { %3436 = vmatpush.msrb.mxu2 %v2900_v33  ;;  %3402 = vmatpush.msrb.mxu0 %v3247_v15 }
 0x3f2   :  { %3419 = vmatpush.msra.mxu1 %v2786_v6  ;;  %3383 = vmatpush.msrb.mxu3 %v3145_v13  ;;  %v3110_v13 = vld [vmem:[#allocation19 + $0xba8] sm:$0xff] }
 0x3f3   :  { %3437 = vmatpush.msrb.mxu2 %v2894_v34  ;;  %3403 = vmatpush.msrb.mxu0 %v3241_v26  ;;  %v3272_v26 = vld [vmem:[#allocation19 + $0x10b8] sm:$0xff] }
 0x3f4   :  { %3420 = vmatpush.msra.mxu1 %v2780_v21  ;;  %3384 = vmatpush.msrb.mxu3 %v3139_v28 }
 0x3f5   :  { %3438 = vmatpush.msrb.mxu2 %v2888_v52  ;;  %3404 = vmatpush.msrb.mxu0 %v3235_v40 }
 0x3f6   :  { %3421 = vmatpush.msra.mxu1 %v2774_v39  ;;  %3385 = vmatpush.msrb.mxu3 %v3133_v54  ;;  %v3104_v39 = vld [vmem:[#allocation19 + $0xb78] sm:$0xff] }
 0x3f7   :  { %3439 = vmatpush.msrb.mxu2 %v2882_v25  ;;  %3405 = vmatpush.msrb.mxu0 %v3229_v44  ;;  %v3188_v44 = vld [vmem:[#allocation19 + $0xe18] sm:$0xff] }
 0x3f8   :  { %3422 = vmatpush.msra.mxu1 %v2768_v63  ;;  %3386 = vmatpush.msrb.mxu3 %v3127_v5 }
 0x3f9   :  { %3440 = vmatpush.msrb.mxu2 %v2876_v61  ;;  %3406 = vmatpush.msrb.mxu0 %v3223_v29 }
 0x3fa   :  { %3423 = vmatpush.msra.mxu1 %v2762_v46  ;;  %3387 = vmatpush.msrb.mxu3 %v3121_v1  ;;  %v3206_v1 = vld [vmem:[#allocation19 + $0xea8] sm:$0xff] }
 0x3fb   :  { %3441 = vmatpush.msrb.mxu2 %v2870_v31  ;;  %3407 = vmatpush.msrb.mxu0 %v3217_v7 }
 0x3fc   :  { %3424 = vmatpush.msra.mxu1 %v2756_v10  ;;  %v3284_v10 = vld [vmem:[#allocation19 + $0x1118] sm:$0xff] }
 0x3fd   :  { %3442 = vmatpush.msrb.mxu2 %v2864_v48  ;;  %v3092_v48 = vld [vmem:[#allocation19 + $0xb18] sm:$0xff] }
 0x3fe   :  { %3425 = vmatpush.msra.mxu1 %v2750_v35  ;;  %v3200_v35 = vld [vmem:[#allocation19 + $0xe78] sm:$0xff] }
 0x3ff   :  { %3443 = vmatpush.msrb.mxu2 %v2858_v32 }
 0x400   :  { %3426 = vmatpush.msra.mxu1 %v2744_v38  ;;  %v3080_v38 = vld [vmem:[#allocation19 + $0xab8] sm:$0xff] }
 0x401   :  { %3444 = vmatpush.msrb.mxu2 %v2852_v27 }
 0x402   :  { %3427 = vmatpush.msra.mxu1 %v2738_v20 }
 0x403   :  { %3445 = vmatpush.msrb.mxu2 %v2846_v49  ;;  %v3194_v49 = vld [vmem:[#allocation19 + $0xe48] sm:$0xff] }
 0x405   :  { %3446 = vmatpush.msrb.mxu2 %v2840_v56  ;;  %v3020_v56 = vld [vmem:[#allocation19 + $0x8d8] sm:$0xff] }
 0x407   :  { %3447 = vmatpush.msrb.mxu2 %v2834_v3  ;;  %v3074_v3 = vld [vmem:[#allocation19 + $0xa88] sm:$0xff] }
 0x432   :  { %v2489_v14 = vpop.f32.mrf.mxu0 }
 0x433   :  { %v2509_v9 = vpop.f32.mrf.mxu1  ;;  %v2696_v28 = vperm.slane %v2489_v14, 0  ;;  %v3266_v14 = vld [vmem:[#allocation19 + $0x1088] sm:$0xff] }
 0x434   :  { %v2697_v51 = vperm.slane %v2509_v9, 0  ;;  %v3014_v9 = vld [vmem:[#allocation19 + $0x8a8] sm:$0xff] }
 0x435   :  { %v2702_v5 = vmul.f32 %v2696_v28, %v8134_v36  ;;  %v3278_v36 = vld [vmem:[#allocation19 + $0x10e8] sm:$0xff] }
 0x436   :  { %v2703_v43 = vmul.f32 %v2697_v51, %v9511_v4  ;;  %v3002_v51 = vld [vmem:[#allocation19 + $0x848] sm:$0xff] }
 0x437   :  { %v2978_v28 = vld [vmem:[#allocation19 + $0x788] sm:$0xff] }
 0x438   :  { %v2469_v60 = vpop.f32.mrf.mxu2 }
 0x439   :  { %v2695_v59 = vperm.slane %v2469_v60, 0  ;;  %v2549_v2 = vpop.f32.mrf.mxu3  ;;  %v3068_v60 = vld [vmem:[#allocation19 + $0xa58] sm:$0xff] }
 0x43a   :  { %v8496_v47 = vpop.f32.mrf.mxu0  ;;  %v2699_v16 = vperm.slane %v2549_v2, 0  ;;  %v3182_v2 = vld [vmem:[#allocation19 + $0xde8] sm:$0xff] }
 0x43b   :  { %v2701_v8 = vmul.f32 %v2695_v59, %v9512_v42  ;;  %v2592_v23 = vpop.f32.mrf.mxu1  ;;  %v2700_v27 = vperm.slane %v8496_v47, 0  ;;  %v3260_v47 = vld [vmem:[#allocation19 + $0x1058] sm:$0xff] }
 0x43c   :  { %v2707_v22 = vperm.slane %v2592_v23, 0  ;;  %v2705_v17 = vmul.f32 %v2699_v16, %v8396_v45  ;;  %v3008_v42 = vld [vmem:[#allocation19 + $0x878] sm:$0xff]  ;;  %v3170_v16 = vld [vmem:[#allocation19 + $0xd88] sm:$0xff] }
 0x43d   :  { %v2706_v29 = vmul.f32 %v2700_v27, %v8423_v30  ;;  %v3176_v23 = vld [vmem:[#allocation19 + $0xdb8] sm:$0xff]  ;;  %v3003_v27 = vld [vmem:[#allocation19 + $0x850] sm:$0xff] }
 0x43e   :  { %v2713_v37 = vadd.f32 %v2707_v22, %v2701_v8  ;;  %v3062_v8 = vld [vmem:[#allocation19 + $0xa28] sm:$0xff] }
 0x43f   :  { %v3254_v22 = vld [vmem:[#allocation19 + $0x1028] sm:$0xff] }
 0x440   :  { %vm2719_vm1 = vcmp.gt.f32.partialorder %v2713_v37, 0.0  ;;  %v2725_v53 = vmul.f32 0.2, %v2713_v37  ;;  %v2529_v57 = vpop.f32.mrf.mxu2 }
 0x441   :  { %v2698_v33 = vperm.slane %v2529_v57, 0  ;;  %v2632_v58 = vpop.f32.mrf.mxu3 }
 0x442   :  { %v8500_v34 = vsel %vm2719_vm1, %v2713_v37, %v2725_v53  ;;  %v2709_v50 = vperm.slane %v2632_v58, 0  ;;  %v2652_v62 = vpop.f32.mrf.mxu0  ;;  %v3056_v37 = vld [vmem:[#allocation19 + $0x9f8] sm:$0xff] }
 0x443   :  { %v2704_v6 = vmul.f32 %v2698_v33, %v8307_v18  ;;  %v2710_v52 = vperm.slane %v2652_v62, 0  ;;  %v2672_v11 = vpop.f32.mrf.mxu1  ;;  %3308 = vmatmul.f32.vlgmr.msra.gmra.mxu3 %v8500_v34  ;;  %v3098_v18 = vld [vmem:[#allocation19 + $0xb48] sm:$0xff]  ;;  %v3248_v53 = vld [vmem:[#allocation19 + $0xff8] sm:$0xff] }
 0x444   :  { %v2715_v21 = vadd.f32 %v2709_v50, %v2703_v43  ;;  %v2711_v25 = vperm.slane %v2672_v11, 0  ;;  %3472 = vmatpush.msra.mxu3 %v3116_v41  ;;  %v3050_v33 = vld [vmem:[#allocation19 + $0x9c8] sm:$0xff]  ;;  %v2996_v58 = vld [vmem:[#allocation19 + $0x818] sm:$0xff] }
 0x445   :  { %v2716_v12 = vadd.f32 %v2710_v52, %v2704_v6  ;;  %v3164_v41 = vld [vmem:[#allocation19 + $0xd58] sm:$0xff]  ;;  %v3242_v43 = vld [vmem:[#allocation19 + $0xfc8] sm:$0xff] }
 0x446   :  { %vm2721_vm2 = vcmp.gt.f32.partialorder %v2715_v21, 0.0  ;;  %v2727_v4 = vmul.f32 0.2, %v2715_v21  ;;  %v2717_v61 = vadd.f32 %v2711_v25, %v2705_v17  ;;  %3473 = vmatpush.msra.mxu3 %v3110_v13  ;;  %v3044_v50 = vld [vmem:[#allocation19 + $0x998] sm:$0xff]  ;;  %v2990_v62 = vld [vmem:[#allocation19 + $0x7e8] sm:$0xff] }
 0x447   :  { %vm2722_vm4 = vcmp.gt.f32.partialorder %v2716_v12, 0.0  ;;  %v2728_v54 = vmul.f32 0.2, %v2716_v12  ;;  %v3158_v6 = vld [vmem:[#allocation19 + $0xd28] sm:$0xff]  ;;  %v3236_v52 = vld [vmem:[#allocation19 + $0xf98] sm:$0xff] }
 0x448   :  { %v8505_v63 = vsel %vm2721_vm2, %v2715_v21, %v2727_v4  ;;  %vm2723_vm5 = vcmp.gt.f32.partialorder %v2717_v61, 0.0  ;;  %v2729_v31 = vmul.f32 0.2, %v2717_v61  ;;  %3474 = vmatpush.msra.mxu3 %v3104_v39  ;;  %v3038_v11 = vld [vmem:[#allocation19 + $0x968] sm:$0xff]  ;;  %v2984_v13 = vld [vmem:[#allocation19 + $0x7b8] sm:$0xff] }
 0x449   :  { %v2612_v45 = vpop.f32.mrf.mxu2  ;;  %v8508_v24 = vsel %vm2722_vm4, %v2716_v12, %v2728_v54  ;;  %3348 = vmatmul.f32.vlgmr.msrb.gmra.mxu1 %v8505_v63  ;;  %v3152_v17 = vld [vmem:[#allocation19 + $0xcf8] sm:$0xff]  ;;  %v3230_v21 = vld [vmem:[#allocation19 + $0xf68] sm:$0xff]  ;;  %vm6058_vm4 = vcmask 582656  }
 0x44a   :  { %v2708_v46 = vperm.slane %v2612_v45, 0  ;;  %v8511_v19 = vsel %vm2723_vm5, %v2717_v61, %v2729_v31  ;;  %3475 = vmatpush.msra.mxu3 %v3098_v18  ;;  %3492 = vmatpush.msrb.mxu1 %v3212_v55  ;;  %v3032_v25 = vld [vmem:[#allocation19 + $0x938] sm:$0xff]  ;;  %v3146_v12 = vld [vmem:[#allocation19 + $0xcc8] sm:$0xff]  ;;  %v3021_v55 = vld [vmem:[#allocation19 + $0x8e0] sm:$0xff]  ;;  %vm6203_vm5 = vcmask 588800  }
 0x44b   :  { %3368 = vmatmul.f32.vlgmr.msra.gmra.mxu2 %v8508_v24  ;;  %3388 = vmatmul.f32.vlgmr.msrb.gmra.mxu3 %v8511_v19  ;;  %v3224_v39 = vld [vmem:[#allocation19 + $0xf38] sm:$0xff]  ;;  %v3026_v4 = vld [vmem:[#allocation19 + $0x908] sm:$0xff]  ;;  %v2925_v31 = vld [vmem:[#allocation19 + $0x5e0] sm:$0xff] }
 0x44c   :  { %v2714_v32 = vadd.f32 %v2708_v46, %v2702_v5  ;;  %3476 = vmatpush.msra.mxu3 %v3092_v48  ;;  %3493 = vmatpush.msrb.mxu1 %v3206_v1  ;;  %v2972_v61 = vld [vmem:[#allocation19 + $0x758] sm:$0xff]  ;;  %v3218_v18 = vld [vmem:[#allocation19 + $0xf08] sm:$0xff]  ;;  %v3015_v46 = vld [vmem:[#allocation19 + $0x8b0] sm:$0xff] }
 0x44d   :  { %3516 = vmatpush.msra.mxu2 %v3284_v10  ;;  %v3140_v54 = vld [vmem:[#allocation19 + $0xc98] sm:$0xff]  ;;  %v2966_v45 = vld [vmem:[#allocation19 + $0x728] sm:$0xff]  ;;  %v2919_v48 = vld [vmem:[#allocation19 + $0x5b0] sm:$0xff] }
 0x44e   :  { %vm2720_vm6 = vcmp.gt.f32.partialorder %v2714_v32, 0.0  ;;  %v2726_v15 = vmul.f32 0.2, %v2714_v32  ;;  %3477 = vmatpush.msra.mxu3 %v3086_v0  ;;  %3494 = vmatpush.msrb.mxu1 %v3200_v35  ;;  %v3134_v5 = vld [vmem:[#allocation19 + $0xc68] sm:$0xff]  ;;  %v2960_v1 = vld [vmem:[#allocation19 + $0x6f8] sm:$0xff]  ;;  %v2913_v0 = vld [vmem:[#allocation19 + $0x580] sm:$0xff] }
 0x44f   :  { %3517 = vmatpush.msra.mxu2 %v3278_v36  ;;  %v3128_v10 = vld [vmem:[#allocation19 + $0xc38] sm:$0xff]  ;;  %v2954_v35 = vld [vmem:[#allocation19 + $0x6c8] sm:$0xff] }
 0x450   :  { %v8516_v20 = vsel %vm2720_vm6, %v2714_v32, %v2726_v15  ;;  %3478 = vmatpush.msra.mxu3 %v3080_v38  ;;  %3495 = vmatpush.msrb.mxu1 %v3194_v49  ;;  %v3009_v32 = vld [vmem:[#allocation19 + $0x880] sm:$0xff]  ;;  %v3122_v36 = vld [vmem:[#allocation19 + $0xc08] sm:$0xff]  ;;  %v2907_v15 = vld [vmem:[#allocation19 + $0x550] sm:$0xff] }
 0x451   :  { %v2692_v40 = vpop.f32.mrf.mxu2  ;;  %3518 = vmatpush.msra.mxu2 %v3272_v26  ;;  %3328 = vmatmul.f32.vlgmr.msra.gmra.mxu0 %v8516_v20  ;;  %v3117_v38 = vld [vmem:[#allocation19 + $0xbe0] sm:$0xff]  ;;  %v2948_v49 = vld [vmem:[#allocation19 + $0x698] sm:$0xff] }
 0x452   :  { %v2712_v7 = vperm.slane %v2692_v40, 0  ;;  %3428 = vmatmul.f32.vlgmr.msra.gmra.mxu1 %v8500_v34  ;;  %3452 = vmatpush.msra.mxu0 %v3020_v56  ;;  %v2901_v26 = vld [vmem:[#allocation19 + $0x520] sm:$0xff]  ;;  %v3111_v40 = vld [vmem:[#allocation19 + $0xbb0] sm:$0xff] }
 0x453   :  { %3479 = vmatpush.msra.mxu3 %v3074_v3  ;;  %3496 = vmatpush.msrb.mxu1 %v3188_v44  ;;  %v2997_v56 = vld [vmem:[#allocation19 + $0x820] sm:$0xff]  ;;  %v2942_v3 = vld [vmem:[#allocation19 + $0x668] sm:$0xff]  ;;  %v2895_v44 = vld [vmem:[#allocation19 + $0x4f0] sm:$0xff] }
 0x454   :  { %v2718_v59 = vadd.f32 %v2712_v7, %v2706_v29  ;;  %3519 = vmatpush.msra.mxu2 %v3266_v14  ;;  %3453 = vmatpush.msra.mxu0 %v3014_v9  ;;  %v2991_v29 = vld [vmem:[#allocation19 + $0x7f0] sm:$0xff]  ;;  %v3105_v7 = vld [vmem:[#allocation19 + $0xb80] sm:$0xff]  ;;  %v2936_v14 = vld [vmem:[#allocation19 + $0x638] sm:$0xff] }
 0x455   :  { %3448 = vmatmul.f32.vlgmr.msrb.gmra.mxu2 %v8516_v20  ;;  %3480 = vmatpush.msra.mxu3 %v3068_v60  ;;  %v2889_v9 = vld [vmem:[#allocation19 + $0x4c0] sm:$0xff] }
 0x456   :  { %vm2724_vm7 = vcmp.gt.f32.partialorder %v2718_v59, 0.0  ;;  %v2730_v30 = vmul.f32 0.2, %v2718_v59  ;;  %3497 = vmatpush.msrb.mxu1 %v3182_v2  ;;  %3520 = vmatpush.msra.mxu2 %v3260_v47  ;;  %v2985_v60 = vld [vmem:[#allocation19 + $0x7c0] sm:$0xff]  ;;  %v2930_v2 = vld [vmem:[#allocation19 + $0x608] sm:$0xff]  ;;  %v2883_v47 = vld [vmem:[#allocation19 + $0x490] sm:$0xff] }
 0x457   :  { %3454 = vmatpush.msra.mxu0 %v3008_v42  ;;  %3481 = vmatpush.msra.mxu3 %v3062_v8  ;;  %v2829_v42 = vld [vmem:[#allocation19 + $0x2e0] sm:$0xff]  ;;  %v2979_v8 = vld [vmem:[#allocation19 + $0x790] sm:$0xff] }
 0x458   :  { %v8522_v57 = vsel %vm2724_vm7, %v2718_v59, %v2730_v30  ;;  %3498 = vmatpush.msrb.mxu1 %v3176_v23  ;;  %3521 = vmatpush.msra.mxu2 %v3254_v22  ;;  %v3099_v59 = vld [vmem:[#allocation19 + $0xb50] sm:$0xff]  ;;  %v3093_v30 = vld [vmem:[#allocation19 + $0xb20] sm:$0xff] }
 0x459   :  { %3455 = vmatpush.msra.mxu0 %v3002_v51  ;;  %3482 = vmatpush.msra.mxu3 %v3056_v37  ;;  %v2877_v23 = vld [vmem:[#allocation19 + $0x460] sm:$0xff]  ;;  %v2823_v22 = vld [vmem:[#allocation19 + $0x2b0] sm:$0xff] }
 0x45a   :  { %3499 = vmatpush.msrb.mxu1 %v3170_v16  ;;  %3522 = vmatpush.msra.mxu2 %v3248_v53  ;;  %v2973_v51 = vld [vmem:[#allocation19 + $0x760] sm:$0xff]  ;;  %v3087_v37 = vld [vmem:[#allocation19 + $0xaf0] sm:$0xff] }
 0x45b   :  { %7242 = vmatmul.msk.f32.vlgmr.msrb.gmra.mxu0 %vm2157_vm11, %v8522_v57  ;;  %3483 = vmatpush.msra.mxu3 %v3050_v33  ;;  %v2871_v16 = vld [vmem:[#allocation19 + $0x430] sm:$0xff]  ;;  %v2817_v53 = vld [vmem:[#allocation19 + $0x280] sm:$0xff] }
 0x45c   :  { %3456 = vmatpush.msra.mxu0 %v2996_v58  ;;  %3500 = vmatpush.msrb.mxu1 %v3164_v41  ;;  %v2967_v33 = vld [vmem:[#allocation19 + $0x730] sm:$0xff]  ;;  %v3081_v58 = vld [vmem:[#allocation19 + $0xac0] sm:$0xff] }
 0x45d   :  { %3523 = vmatpush.msra.mxu2 %v3242_v43  ;;  %3484 = vmatpush.msra.mxu3 %v3044_v50  ;;  %v2865_v41 = vld [vmem:[#allocation19 + $0x400] sm:$0xff]  ;;  %v2811_v43 = vld [vmem:[#allocation19 + $0x250] sm:$0xff] }
 0x45e   :  { %3457 = vmatpush.msra.mxu0 %v2990_v62  ;;  %3501 = vmatpush.msrb.mxu1 %v3158_v6  ;;  %v2961_v50 = vld [vmem:[#allocation19 + $0x700] sm:$0xff]  ;;  %v3075_v62 = vld [vmem:[#allocation19 + $0xa90] sm:$0xff] }
 0x45f   :  { %3524 = vmatpush.msra.mxu2 %v3236_v52  ;;  %3485 = vmatpush.msra.mxu3 %v3038_v11  ;;  %v2859_v6 = vld [vmem:[#allocation19 + $0x3d0] sm:$0xff]  ;;  %v2805_v52 = vld [vmem:[#allocation19 + $0x220] sm:$0xff] }
 0x460   :  { %3458 = vmatpush.msra.mxu0 %v2984_v13  ;;  %3502 = vmatpush.msrb.mxu1 %v3152_v17  ;;  %v2955_v11 = vld [vmem:[#allocation19 + $0x6d0] sm:$0xff]  ;;  %v3069_v13 = vld [vmem:[#allocation19 + $0xa60] sm:$0xff] }
 0x461   :  { %3525 = vmatpush.msra.mxu2 %v3230_v21  ;;  %3486 = vmatpush.msra.mxu3 %v3032_v25  ;;  %v2853_v17 = vld [vmem:[#allocation19 + $0x3a0] sm:$0xff]  ;;  %v2799_v21 = vld [vmem:[#allocation19 + $0x1f0] sm:$0xff] }
 0x462   :  { %3459 = vmatpush.msra.mxu0 %v2978_v28  ;;  %3503 = vmatpush.msrb.mxu1 %v3146_v12  ;;  %v2949_v25 = vld [vmem:[#allocation19 + $0x6a0] sm:$0xff]  ;;  %v3063_v28 = vld [vmem:[#allocation19 + $0xa30] sm:$0xff] }
 0x463   :  { %3526 = vmatpush.msra.mxu2 %v3224_v39  ;;  %3487 = vmatpush.msra.mxu3 %v3026_v4  ;;  %v2847_v12 = vld [vmem:[#allocation19 + $0x370] sm:$0xff]  ;;  %v2793_v39 = vld [vmem:[#allocation19 + $0x1c0] sm:$0xff] }
 0x464   :  { %3460 = vmatpush.msra.mxu0 %v2972_v61  ;;  %3504 = vmatpush.msrb.mxu1 %v3140_v54  ;;  %v2943_v4 = vld [vmem:[#allocation19 + $0x670] sm:$0xff]  ;;  %v3057_v61 = vld [vmem:[#allocation19 + $0xa00] sm:$0xff] }
 0x465   :  { %3527 = vmatpush.msra.mxu2 %v3218_v18  ;;  %3488 = vmatmul.f32.vlgmr.msra.gmra.mxu3 %v8508_v24  ;;  %v2841_v54 = vld [vmem:[#allocation19 + $0x340] sm:$0xff]  ;;  %v2787_v18 = vld [vmem:[#allocation19 + $0x190] sm:$0xff] }
 0x466   :  { %7243 = vmatmul.msk.f32.vlgmr.msra.gmra.mxu2 %vm2157_vm11, %v8522_v57  ;;  %3572 = vmatpush.msrb.mxu3 %v3021_v55  ;;  %v2937_v55 = vld [vmem:[#allocation19 + $0x640] sm:$0xff] }
 0x467   :  { %3552 = vmatpush.msrb.mxu2 %v2925_v31  ;;  %3461 = vmatpush.msra.mxu0 %v2966_v45  ;;  %v3051_v31 = vld [vmem:[#allocation19 + $0x9d0] sm:$0xff] }
 0x468   :  { %3505 = vmatpush.msrb.mxu1 %v3134_v5  ;;  %3573 = vmatpush.msrb.mxu3 %v3015_v46  ;;  %v2835_v45 = vld [vmem:[#allocation19 + $0x310] sm:$0xff]  ;;  %v2781_v5 = vld [vmem:[#allocation19 + $0x160] sm:$0xff] }
 0x469   :  { %3553 = vmatpush.msrb.mxu2 %v2919_v48  ;;  %3462 = vmatpush.msra.mxu0 %v2960_v1  ;;  %v2931_v46 = vld [vmem:[#allocation19 + $0x610] sm:$0xff]  ;;  %v3045_v48 = vld [vmem:[#allocation19 + $0x9a0] sm:$0xff] }
 0x46a   :  { %3506 = vmatpush.msrb.mxu1 %v3128_v10  ;;  %3574 = vmatpush.msrb.mxu3 %v3009_v32  ;;  %v3285_v1 = vld [vmem:[#allocation19 + $0x1120] sm:$0xff]  ;;  %v2830_v10 = vld [vmem:[#allocation19 + $0x2e8] sm:$0xff]  ;;  %v2775_v32 = vld [vmem:[#allocation19 + $0x130] sm:$0xff] }
 0x46b   :  { %3554 = vmatpush.msrb.mxu2 %v2913_v0  ;;  %3463 = vmatpush.msra.mxu0 %v2954_v35  ;;  %v3039_v0 = vld [vmem:[#allocation19 + $0x970] sm:$0xff] }
 0x46c   :  { %3507 = vmatpush.msrb.mxu1 %v3122_v36  ;;  %3575 = vmatpush.msrb.mxu3 %v3003_v27  ;;  %v3279_v35 = vld [vmem:[#allocation19 + $0x10f0] sm:$0xff]  ;;  %v2824_v36 = vld [vmem:[#allocation19 + $0x2b8] sm:$0xff]  ;;  %v2769_v27 = vld [vmem:[#allocation19 + $0x100] sm:$0xff] }
 0x46d   :  { %3508 = vmatmul.f32.vlgmr.msrb.gmra.mxu1 %v8511_v19  ;;  %3555 = vmatpush.msrb.mxu2 %v2907_v15  ;;  %v3033_v15 = vld [vmem:[#allocation19 + $0x940] sm:$0xff] }
 0x46e   :  { %3592 = vmatpush.msra.mxu1 %v3117_v38  ;;  %3464 = vmatpush.msra.mxu0 %v2948_v49  ;;  %v3273_v38 = vld [vmem:[#allocation19 + $0x10c0] sm:$0xff]  ;;  %v2818_v49 = vld [vmem:[#allocation19 + $0x288] sm:$0xff] }
 0x46f   :  { %3556 = vmatpush.msrb.mxu2 %v2901_v26  ;;  %3576 = vmatpush.msrb.mxu3 %v2997_v56  ;;  %v2763_v26 = vld [vmem:[#allocation19 + $0xd0] sm:$0xff] }
 0x470   :  { %3593 = vmatpush.msra.mxu1 %v3111_v40  ;;  %3465 = vmatpush.msra.mxu0 %v2942_v3  ;;  %v3027_v56 = vld [vmem:[#allocation19 + $0x910] sm:$0xff]  ;;  %v2812_v3 = vld [vmem:[#allocation19 + $0x258] sm:$0xff] }
 0x471   :  { %3557 = vmatpush.msrb.mxu2 %v2895_v44  ;;  %3577 = vmatpush.msrb.mxu3 %v2991_v29  ;;  %v3267_v40 = vld [vmem:[#allocation19 + $0x1090] sm:$0xff]  ;;  %v2926_v44 = vld [vmem:[#allocation19 + $0x5e8] sm:$0xff]  ;;  %v2757_v29 = vld [vmem:[#allocation19 + $0xa0] sm:$0xff] }
 0x472   :  { %3594 = vmatpush.msra.mxu1 %v3105_v7  ;;  %3466 = vmatpush.msra.mxu0 %v2936_v14  ;;  %v3261_v7 = vld [vmem:[#allocation19 + $0x1060] sm:$0xff]  ;;  %v2806_v14 = vld [vmem:[#allocation19 + $0x228] sm:$0xff] }
 0x473   :  { %3558 = vmatpush.msrb.mxu2 %v2889_v9  ;;  %3578 = vmatpush.msrb.mxu3 %v2985_v60  ;;  %v2920_v9 = vld [vmem:[#allocation19 + $0x5b8] sm:$0xff]  ;;  %v2751_v60 = vld [vmem:[#allocation19 + $0x70] sm:$0xff] }
 0x474   :  { %3595 = vmatpush.msra.mxu1 %v3099_v59  ;;  %3467 = vmatpush.msra.mxu0 %v2930_v2  ;;  %v3255_v59 = vld [vmem:[#allocation19 + $0x1030] sm:$0xff]  ;;  %v2800_v2 = vld [vmem:[#allocation19 + $0x1f8] sm:$0xff] }
 0x475   :  { %3468 = vmatmul.f32.vlgmr.msra.gmra.mxu0 %v8505_v63  ;;  %3559 = vmatpush.msrb.mxu2 %v2883_v47  ;;  %v2914_v47 = vld [vmem:[#allocation19 + $0x588] sm:$0xff] }
 0x476   :  { %3532 = vmatpush.msrb.mxu0 %v2829_v42  ;;  %3579 = vmatpush.msrb.mxu3 %v2979_v8  ;;  %v2745_v42 = vld [vmem:[#allocation19 + $0x40] sm:$0xff] }
 0x477   :  { %3596 = vmatpush.msra.mxu1 %v3093_v30  ;;  %3560 = vmatpush.msrb.mxu2 %v2877_v23  ;;  %v3249_v8 = vld [vmem:[#allocation19 + $0x1000] sm:$0xff]  ;;  %v2794_v30 = vld [vmem:[#allocation19 + $0x1c8] sm:$0xff]  ;;  %v2908_v23 = vld [vmem:[#allocation19 + $0x558] sm:$0xff] }
 0x478   :  { %3533 = vmatpush.msrb.mxu0 %v2823_v22  ;;  %3580 = vmatpush.msrb.mxu3 %v2973_v51  ;;  %v2739_v22 = vld [vmem:[#allocation19 + $0x10] sm:$0xff] }
 0x479   :  { %3597 = vmatpush.msra.mxu1 %v3087_v37  ;;  %3561 = vmatpush.msrb.mxu2 %v2871_v16  ;;  %v3243_v51 = vld [vmem:[#allocation19 + $0xfd0] sm:$0xff]  ;;  %v3213_v37 = vld [vmem:[#allocation19 + $0xee0] sm:$0xff]  ;;  %v2788_v16 = vld [vmem:[#allocation19 + $0x198] sm:$0xff] }
 0x47a   :  { %3534 = vmatpush.msrb.mxu0 %v2817_v53  ;;  %3581 = vmatpush.msrb.mxu3 %v2967_v33  ;;  %v2902_v53 = vld [vmem:[#allocation19 + $0x528] sm:$0xff]  ;;  %v3237_v33 = vld [vmem:[#allocation19 + $0xfa0] sm:$0xff] }
 0x47b   :  { %3598 = vmatpush.msra.mxu1 %v3081_v58  ;;  %3562 = vmatpush.msrb.mxu2 %v2865_v41  ;;  %v3207_v58 = vld [vmem:[#allocation19 + $0xeb0] sm:$0xff]  ;;  %v2782_v41 = vld [vmem:[#allocation19 + $0x168] sm:$0xff] }
 0x47c   :  { %3535 = vmatpush.msrb.mxu0 %v2811_v43  ;;  %3582 = vmatpush.msrb.mxu3 %v2961_v50  ;;  %v2896_v43 = vld [vmem:[#allocation19 + $0x4f8] sm:$0xff]  ;;  %v3231_v50 = vld [vmem:[#allocation19 + $0xf70] sm:$0xff] }
 0x47d   :  { %3599 = vmatpush.msra.mxu1 %v3075_v62  ;;  %3563 = vmatpush.msrb.mxu2 %v2859_v6  ;;  %v3201_v62 = vld [vmem:[#allocation19 + $0xe80] sm:$0xff]  ;;  %v2776_v6 = vld [vmem:[#allocation19 + $0x138] sm:$0xff] }
 0x47e   :  { %3536 = vmatpush.msrb.mxu0 %v2805_v52  ;;  %3583 = vmatpush.msrb.mxu3 %v2955_v11  ;;  %v2890_v52 = vld [vmem:[#allocation19 + $0x4c8] sm:$0xff]  ;;  %v3225_v11 = vld [vmem:[#allocation19 + $0xf40] sm:$0xff] }
 0x47f   :  { %3600 = vmatpush.msra.mxu1 %v3069_v13  ;;  %3564 = vmatpush.msrb.mxu2 %v2853_v17  ;;  %v3195_v13 = vld [vmem:[#allocation19 + $0xe50] sm:$0xff]  ;;  %v2770_v17 = vld [vmem:[#allocation19 + $0x108] sm:$0xff] }
 0x480   :  { %3537 = vmatpush.msrb.mxu0 %v2799_v21  ;;  %3584 = vmatpush.msrb.mxu3 %v2949_v25  ;;  %v2884_v21 = vld [vmem:[#allocation19 + $0x498] sm:$0xff]  ;;  %v3219_v25 = vld [vmem:[#allocation19 + $0xf10] sm:$0xff] }
 0x481   :  { %3601 = vmatpush.msra.mxu1 %v3063_v28  ;;  %3565 = vmatpush.msrb.mxu2 %v2847_v12  ;;  %v3189_v28 = vld [vmem:[#allocation19 + $0xe20] sm:$0xff]  ;;  %v2764_v12 = vld [vmem:[#allocation19 + $0xd8] sm:$0xff] }
 0x482   :  { %3538 = vmatpush.msrb.mxu0 %v2793_v39  ;;  %3585 = vmatpush.msrb.mxu3 %v2943_v4  ;;  %v2878_v39 = vld [vmem:[#allocation19 + $0x468] sm:$0xff] }
 0x483   :  { %3602 = vmatpush.msra.mxu1 %v3057_v61  ;;  %3566 = vmatpush.msrb.mxu2 %v2841_v54  ;;  %v3022_v4 = vld [vmem:[#allocation19 + $0x8e8] sm:$0xff]  ;;  %v3183_v61 = vld [vmem:[#allocation19 + $0xdf0] sm:$0xff] }
 0x484   :  { %3539 = vmatpush.msrb.mxu0 %v2787_v18  ;;  %3586 = vmatpush.msrb.mxu3 %v2937_v55  ;;  %v2758_v54 = vld [vmem:[#allocation19 + $0xa8] sm:$0xff]  ;;  %v2872_v18 = vld [vmem:[#allocation19 + $0x438] sm:$0xff] }
 0x485   :  { %3603 = vmatpush.msra.mxu1 %v3051_v31  ;;  %3567 = vmatpush.msrb.mxu2 %v2835_v45  ;;  %v3016_v55 = vld [vmem:[#allocation19 + $0x8b8] sm:$0xff]  ;;  %v3177_v31 = vld [vmem:[#allocation19 + $0xdc0] sm:$0xff] }
 0x486   :  { %3540 = vmatpush.msrb.mxu0 %v2781_v5  ;;  %3587 = vmatpush.msrb.mxu3 %v2931_v46  ;;  %v2752_v45 = vld [vmem:[#allocation19 + $0x78] sm:$0xff]  ;;  %v2866_v5 = vld [vmem:[#allocation19 + $0x408] sm:$0xff] }
 0x487   :  { %3604 = vmatpush.msra.mxu1 %v3045_v48  ;;  %3568 = vmatmul.f32.vlgmr.msrb.gmra.mxu2 %v8516_v20  ;;  %v3010_v46 = vld [vmem:[#allocation19 + $0x888] sm:$0xff]  ;;  %v3171_v48 = vld [vmem:[#allocation19 + $0xd90] sm:$0xff] }
 0x488   :  { %3588 = vmatmul.f32.vlgmr.msrb.gmra.mxu3 %v8505_v63  ;;  %3636 = vmatpush.msra.mxu2 %v3285_v1  ;;  %v2746_v1 = vld [vmem:[#allocation19 + $0x48] sm:$0xff] }
 0x489   :  { %3652 = vmatpush.msra.mxu3 %v2830_v10  ;;  %3541 = vmatpush.msrb.mxu0 %v2775_v32  ;;  %v2860_v10 = vld [vmem:[#allocation19 + $0x3d8] sm:$0xff] }
 0x48a   :  { %3605 = vmatpush.msra.mxu1 %v3039_v0  ;;  %3637 = vmatpush.msra.mxu2 %v3279_v35  ;;  %v3004_v32 = vld [vmem:[#allocation19 + $0x858] sm:$0xff]  ;;  %v3165_v0 = vld [vmem:[#allocation19 + $0xd60] sm:$0xff] }
 0x48b   :  { %3653 = vmatpush.msra.mxu3 %v2824_v36  ;;  %3542 = vmatpush.msrb.mxu0 %v2769_v27  ;;  %v2740_v35 = vld [vmem:[#allocation19 + $0x18] sm:$0xff]  ;;  %v2854_v36 = vld [vmem:[#allocation19 + $0x3a8] sm:$0xff] }
 0x48c   :  { %3606 = vmatpush.msra.mxu1 %v3033_v15  ;;  %3638 = vmatpush.msra.mxu2 %v3273_v38  ;;  %v2998_v27 = vld [vmem:[#allocation19 + $0x828] sm:$0xff]  ;;  %v3159_v38 = vld [vmem:[#allocation19 + $0xd30] sm:$0xff] }
 0x48d   :  { %3654 = vmatpush.msra.mxu3 %v2818_v49  ;;  %3543 = vmatpush.msrb.mxu0 %v2763_v26  ;;  %v3214_v15 = vld [vmem:[#allocation19 + $0xee8] sm:$0xff]  ;;  %v2848_v49 = vld [vmem:[#allocation19 + $0x378] sm:$0xff] }
 0x48e   :  { %3607 = vmatpush.msra.mxu1 %v3027_v56  ;;  %3639 = vmatpush.msra.mxu2 %v3267_v40  ;;  %v2992_v26 = vld [vmem:[#allocation19 + $0x7f8] sm:$0xff]  ;;  %v3153_v40 = vld [vmem:[#allocation19 + $0xd00] sm:$0xff] }
 0x48f   :  { %3608 = vmatmul.f32.vlgmr.msra.gmra.mxu1 %v8508_v24  ;;  %3655 = vmatpush.msra.mxu3 %v2812_v3  ;;  %v3208_v56 = vld [vmem:[#allocation19 + $0xeb8] sm:$0xff]  ;;  %v2842_v3 = vld [vmem:[#allocation19 + $0x348] sm:$0xff] }
 0x490   :  { %3672 = vmatpush.msrb.mxu1 %v2926_v44  ;;  %3544 = vmatpush.msrb.mxu0 %v2757_v29  ;;  %v2986_v44 = vld [vmem:[#allocation19 + $0x7c8] sm:$0xff] }
 0x491   :  { %3640 = vmatpush.msra.mxu2 %v3261_v7  ;;  %3656 = vmatpush.msra.mxu3 %v2806_v14  ;;  %v3202_v29 = vld [vmem:[#allocation19 + $0xe88] sm:$0xff]  ;;  %v3147_v7 = vld [vmem:[#allocation19 + $0xcd0] sm:$0xff]  ;;  %v2836_v14 = vld [vmem:[#allocation19 + $0x318] sm:$0xff] }
 0x492   :  { %3673 = vmatpush.msrb.mxu1 %v2920_v9  ;;  %3545 = vmatpush.msrb.mxu0 %v2751_v60  ;;  %v2980_v9 = vld [vmem:[#allocation19 + $0x798] sm:$0xff] }
 0x493   :  { %3641 = vmatpush.msra.mxu2 %v3255_v59  ;;  %3657 = vmatpush.msra.mxu3 %v2800_v2  ;;  %v3196_v60 = vld [vmem:[#allocation19 + $0xe58] sm:$0xff]  ;;  %v3286_v59 = vld [vmem:[#allocation19 + $0x1128] sm:$0xff]  ;;  %v3141_v2 = vld [vmem:[#allocation19 + $0xca0] sm:$0xff] }
 0x494   :  { %3674 = vmatpush.msrb.mxu1 %v2914_v47  ;;  %3546 = vmatpush.msrb.mxu0 %v2745_v42  ;;  %v2974_v47 = vld [vmem:[#allocation19 + $0x768] sm:$0xff] }
 0x495   :  { %3642 = vmatpush.msra.mxu2 %v3249_v8  ;;  %3658 = vmatpush.msra.mxu3 %v2794_v30  ;;  %v3190_v42 = vld [vmem:[#allocation19 + $0xe28] sm:$0xff]  ;;  %v3280_v8 = vld [vmem:[#allocation19 + $0x10f8] sm:$0xff]  ;;  %v3135_v30 = vld [vmem:[#allocation19 + $0xc70] sm:$0xff] }
 0x496   :  { %3675 = vmatpush.msrb.mxu1 %v2908_v23  ;;  %3547 = vmatpush.msrb.mxu0 %v2739_v22  ;;  %v2968_v23 = vld [vmem:[#allocation19 + $0x738] sm:$0xff] }
 0x497   :  { %3548 = vmatmul.f32.vlgmr.msrb.gmra.mxu0 %v8500_v34  ;;  %3643 = vmatpush.msra.mxu2 %v3243_v51  ;;  %v3184_v22 = vld [vmem:[#allocation19 + $0xdf8] sm:$0xff]  ;;  %v3274_v51 = vld [vmem:[#allocation19 + $0x10c8] sm:$0xff] }
 0x498   :  { %3612 = vmatpush.msra.mxu0 %v3213_v37  ;;  %3659 = vmatpush.msra.mxu3 %v2788_v16  ;;  %v3129_v37 = vld [vmem:[#allocation19 + $0xc40] sm:$0xff]  ;;  %v2962_v16 = vld [vmem:[#allocation19 + $0x708] sm:$0xff] }
 0x499   :  { %3676 = vmatpush.msrb.mxu1 %v2902_v53  ;;  %3644 = vmatpush.msra.mxu2 %v3237_v33  ;;  %v3178_v53 = vld [vmem:[#allocation19 + $0xdc8] sm:$0xff]  ;;  %v3268_v33 = vld [vmem:[#allocation19 + $0x1098] sm:$0xff] }
 0x49a   :  { %3613 = vmatpush.msra.mxu0 %v3207_v58  ;;  %3660 = vmatpush.msra.mxu3 %v2782_v41  ;;  %v3123_v58 = vld [vmem:[#allocation19 + $0xc10] sm:$0xff]  ;;  %v2956_v41 = vld [vmem:[#allocation19 + $0x6d8] sm:$0xff] }
 0x49b   :  { %3677 = vmatpush.msrb.mxu1 %v2896_v43  ;;  %3645 = vmatpush.msra.mxu2 %v3231_v50  ;;  %v3118_v43 = vld [vmem:[#allocation19 + $0xbe8] sm:$0xff]  ;;  %v3172_v50 = vld [vmem:[#allocation19 + $0xd98] sm:$0xff] }
 0x49c   :  { %3614 = vmatpush.msra.mxu0 %v3201_v62  ;;  %3661 = vmatpush.msra.mxu3 %v2776_v6  ;;  %v3262_v62 = vld [vmem:[#allocation19 + $0x1068] sm:$0xff] }
 0x49d   :  { %3678 = vmatpush.msrb.mxu1 %v2890_v52  ;;  %3646 = vmatpush.msra.mxu2 %v3225_v11  ;;  %v2950_v6 = vld [vmem:[#allocation19 + $0x6a8] sm:$0xff]  ;;  %v3112_v52 = vld [vmem:[#allocation19 + $0xbb8] sm:$0xff] }
 0x49e   :  { %3615 = vmatpush.msra.mxu0 %v3195_v13  ;;  %3662 = vmatpush.msra.mxu3 %v2770_v17  ;;  %v3166_v11 = vld [vmem:[#allocation19 + $0xd68] sm:$0xff]  ;;  %v3256_v13 = vld [vmem:[#allocation19 + $0x1038] sm:$0xff] }
 0x49f   :  { %3679 = vmatpush.msrb.mxu1 %v2884_v21  ;;  %3647 = vmatpush.msra.mxu2 %v3219_v25  ;;  %v2944_v17 = vld [vmem:[#allocation19 + $0x678] sm:$0xff]  ;;  %v3106_v21 = vld [vmem:[#allocation19 + $0xb88] sm:$0xff] }
 0x4a0   :  { %3616 = vmatpush.msra.mxu0 %v3189_v28  ;;  %3663 = vmatpush.msra.mxu3 %v2764_v12  ;;  %v3160_v25 = vld [vmem:[#allocation19 + $0xd38] sm:$0xff]  ;;  %v3250_v28 = vld [vmem:[#allocation19 + $0x1008] sm:$0xff] }
 0x4a1   :  { %3680 = vmatpush.msrb.mxu1 %v2878_v39  ;;  %7244 = vmatmul.msk.f32.vlgmr.msra.gmra.mxu2 %vm2157_vm11, %v8522_v57  ;;  %v2938_v12 = vld [vmem:[#allocation19 + $0x648] sm:$0xff]  ;;  %v3100_v39 = vld [vmem:[#allocation19 + $0xb58] sm:$0xff] }
 0x4a2   :  { %3692 = vmatpush.msrb.mxu2 %v3022_v4  ;;  %3617 = vmatpush.msra.mxu0 %v3183_v61  ;;  %v3154_v4 = vld [vmem:[#allocation19 + $0xd08] sm:$0xff]  ;;  %v3244_v61 = vld [vmem:[#allocation19 + $0xfd8] sm:$0xff] }
 0x4a3   :  { %3664 = vmatpush.msra.mxu3 %v2758_v54  ;;  %3681 = vmatpush.msrb.mxu1 %v2872_v18  ;;  %v2932_v54 = vld [vmem:[#allocation19 + $0x618] sm:$0xff]  ;;  %v3094_v18 = vld [vmem:[#allocation19 + $0xb28] sm:$0xff] }
 0x4a4   :  { %3693 = vmatpush.msrb.mxu2 %v3016_v55  ;;  %3618 = vmatpush.msra.mxu0 %v3177_v31  ;;  %v3148_v55 = vld [vmem:[#allocation19 + $0xcd8] sm:$0xff]  ;;  %v3238_v31 = vld [vmem:[#allocation19 + $0xfa8] sm:$0xff] }
 0x4a5   :  { %3665 = vmatpush.msra.mxu3 %v2752_v45  ;;  %3682 = vmatpush.msrb.mxu1 %v2866_v5  ;;  %v2831_v45 = vld [vmem:[#allocation19 + $0x2f0] sm:$0xff]  ;;  %v3088_v5 = vld [vmem:[#allocation19 + $0xaf8] sm:$0xff] }
 0x4a6   :  { %3694 = vmatpush.msrb.mxu2 %v3010_v46  ;;  %3619 = vmatpush.msra.mxu0 %v3171_v48  ;;  %v3142_v46 = vld [vmem:[#allocation19 + $0xca8] sm:$0xff]  ;;  %v3232_v48 = vld [vmem:[#allocation19 + $0xf78] sm:$0xff] }
 0x4a7   :  { %3666 = vmatpush.msra.mxu3 %v2746_v1  ;;  %3683 = vmatpush.msrb.mxu1 %v2860_v10  ;;  %v2825_v1 = vld [vmem:[#allocation19 + $0x2c0] sm:$0xff]  ;;  %v3082_v10 = vld [vmem:[#allocation19 + $0xac8] sm:$0xff] }
 0x4a8   :  { %3695 = vmatpush.msrb.mxu2 %v3004_v32  ;;  %3620 = vmatpush.msra.mxu0 %v3165_v0  ;;  %v3136_v32 = vld [vmem:[#allocation19 + $0xc78] sm:$0xff]  ;;  %v3226_v0 = vld [vmem:[#allocation19 + $0xf48] sm:$0xff] }
 0x4a9   :  { %3667 = vmatpush.msra.mxu3 %v2740_v35  ;;  %3684 = vmatpush.msrb.mxu1 %v2854_v36  ;;  %v2819_v35 = vld [vmem:[#allocation19 + $0x290] sm:$0xff]  ;;  %v3076_v36 = vld [vmem:[#allocation19 + $0xa98] sm:$0xff] }
 0x4aa   :  { %3668 = vmatmul.f32.vlgmr.msra.gmra.mxu3 %v8500_v34  ;;  %3696 = vmatpush.msrb.mxu2 %v2998_v27  ;;  %v3130_v27 = vld [vmem:[#allocation19 + $0xc48] sm:$0xff] }
 0x4ab   :  { %3732 = vmatpush.msrb.mxu3 %v3214_v15  ;;  %3621 = vmatpush.msra.mxu0 %v3159_v38  ;;  %v3220_v15 = vld [vmem:[#allocation19 + $0xf18] sm:$0xff]  ;;  %v2813_v38 = vld [vmem:[#allocation19 + $0x260] sm:$0xff] }
 0x4ac   :  { %3685 = vmatpush.msrb.mxu1 %v2848_v49  ;;  %3697 = vmatpush.msrb.mxu2 %v2992_v26  ;;  %v3023_v49 = vld [vmem:[#allocation19 + $0x8f0] sm:$0xff]  ;;  %v3070_v26 = vld [vmem:[#allocation19 + $0xa68] sm:$0xff] }
 0x4ad   :  { %3733 = vmatpush.msrb.mxu3 %v3208_v56  ;;  %3622 = vmatpush.msra.mxu0 %v3153_v40  ;;  %v3124_v56 = vld [vmem:[#allocation19 + $0xc18] sm:$0xff]  ;;  %v2807_v40 = vld [vmem:[#allocation19 + $0x230] sm:$0xff] }
 0x4ae   :  { %3686 = vmatpush.msrb.mxu1 %v2842_v3  ;;  %3698 = vmatpush.msrb.mxu2 %v2986_v44  ;;  %v3017_v3 = vld [vmem:[#allocation19 + $0x8c0] sm:$0xff]  ;;  %v3119_v44 = vld [vmem:[#allocation19 + $0xbf0] sm:$0xff] }
 0x4af   :  { %3734 = vmatpush.msrb.mxu3 %v3202_v29  ;;  %3623 = vmatpush.msra.mxu0 %v3147_v7  ;;  %v3064_v29 = vld [vmem:[#allocation19 + $0xa38] sm:$0xff]  ;;  %v2801_v7 = vld [vmem:[#allocation19 + $0x200] sm:$0xff] }
 0x4b0   :  { %3687 = vmatpush.msrb.mxu1 %v2836_v14  ;;  %3699 = vmatpush.msrb.mxu2 %v2980_v9  ;;  %v3011_v14 = vld [vmem:[#allocation19 + $0x890] sm:$0xff]  ;;  %v3113_v9 = vld [vmem:[#allocation19 + $0xbc0] sm:$0xff] }
 0x4b1   :  { %3688 = vmatmul.f32.vlgmr.msrb.gmra.mxu1 %v8516_v20  ;;  %3735 = vmatpush.msrb.mxu3 %v3196_v60  ;;  %v3058_v60 = vld [vmem:[#allocation19 + $0xa08] sm:$0xff] }
 0x4b2   :  { %3756 = vmatpush.msra.mxu1 %v3286_v59  ;;  %3624 = vmatpush.msra.mxu0 %v3141_v2  ;;  %v2795_v59 = vld [vmem:[#allocation19 + $0x1d0] sm:$0xff]  ;;  %v3005_v2 = vld [vmem:[#allocation19 + $0x860] sm:$0xff] }
 0x4b3   :  { %3700 = vmatpush.msrb.mxu2 %v2974_v47  ;;  %3736 = vmatpush.msrb.mxu3 %v3190_v42  ;;  %v3107_v47 = vld [vmem:[#allocation19 + $0xb90] sm:$0xff]  ;;  %v3052_v42 = vld [vmem:[#allocation19 + $0x9d8] sm:$0xff] }
 0x4b4   :  { %3757 = vmatpush.msra.mxu1 %v3280_v8  ;;  %3625 = vmatpush.msra.mxu0 %v3135_v30  ;;  %v2789_v8 = vld [vmem:[#allocation19 + $0x1a0] sm:$0xff]  ;;  %v2999_v30 = vld [vmem:[#allocation19 + $0x830] sm:$0xff] }
 0x4b5   :  { %3701 = vmatpush.msrb.mxu2 %v2968_v23  ;;  %3737 = vmatpush.msrb.mxu3 %v3184_v22  ;;  %v3101_v23 = vld [vmem:[#allocation19 + $0xb60] sm:$0xff]  ;;  %v3046_v22 = vld [vmem:[#allocation19 + $0x9a8] sm:$0xff] }
 0x4b6   :  { %3758 = vmatpush.msra.mxu1 %v3274_v51  ;;  %3626 = vmatpush.msra.mxu0 %v3129_v37  ;;  %v2783_v51 = vld [vmem:[#allocation19 + $0x170] sm:$0xff]  ;;  %v2993_v37 = vld [vmem:[#allocation19 + $0x800] sm:$0xff] }
 0x4b7   :  { %3702 = vmatpush.msrb.mxu2 %v2962_v16  ;;  %3738 = vmatpush.msrb.mxu3 %v3178_v53  ;;  %v3095_v16 = vld [vmem:[#allocation19 + $0xb30] sm:$0xff]  ;;  %v3040_v53 = vld [vmem:[#allocation19 + $0x978] sm:$0xff] }
 0x4b8   :  { %3759 = vmatpush.msra.mxu1 %v3268_v33  ;;  %3627 = vmatpush.msra.mxu0 %v3123_v58  ;;  %v2777_v33 = vld [vmem:[#allocation19 + $0x140] sm:$0xff]  ;;  %v2987_v58 = vld [vmem:[#allocation19 + $0x7d0] sm:$0xff] }
 0x4b9   :  { %3628 = vmatmul.f32.vlgmr.msra.gmra.mxu0 %v8511_v19  ;;  %3703 = vmatpush.msrb.mxu2 %v2956_v41  ;;  %v3089_v41 = vld [vmem:[#allocation19 + $0xb00] sm:$0xff] }
 0x4ba   :  { %3712 = vmatpush.msrb.mxu0 %v3118_v43  ;;  %3739 = vmatpush.msrb.mxu3 %v3172_v50  ;;  %v3034_v43 = vld [vmem:[#allocation19 + $0x948] sm:$0xff]  ;;  %v2771_v50 = vld [vmem:[#allocation19 + $0x110] sm:$0xff] }
 0x4bb   :  { %3760 = vmatpush.msra.mxu1 %v3262_v62  ;;  %3704 = vmatpush.msrb.mxu2 %v2950_v6  ;;  %v2981_v62 = vld [vmem:[#allocation19 + $0x7a0] sm:$0xff]  ;;  %v3083_v6 = vld [vmem:[#allocation19 + $0xad0] sm:$0xff] }
 0x4bc   :  { %3713 = vmatpush.msrb.mxu0 %v3112_v52  ;;  %3740 = vmatpush.msrb.mxu3 %v3166_v11  ;;  %v3028_v52 = vld [vmem:[#allocation19 + $0x918] sm:$0xff]  ;;  %v2765_v11 = vld [vmem:[#allocation19 + $0xe0] sm:$0xff] }
 0x4bd   :  { %3761 = vmatpush.msra.mxu1 %v3256_v13  ;;  %3705 = vmatpush.msrb.mxu2 %v2944_v17  ;;  %v2927_v13 = vld [vmem:[#allocation19 + $0x5f0] sm:$0xff] }
 0x4be   :  { %3714 = vmatpush.msrb.mxu0 %v3106_v21  ;;  %3741 = vmatpush.msrb.mxu3 %v3160_v25  ;;  %v2975_v17 = vld [vmem:[#allocation19 + $0x770] sm:$0xff]  ;;  %v3077_v21 = vld [vmem:[#allocation19 + $0xaa0] sm:$0xff] }
 0x4bf   :  { %3762 = vmatpush.msra.mxu1 %v3250_v28  ;;  %3706 = vmatpush.msrb.mxu2 %v2938_v12  ;;  %v2759_v25 = vld [vmem:[#allocation19 + $0xb0] sm:$0xff]  ;;  %v2921_v28 = vld [vmem:[#allocation19 + $0x5c0] sm:$0xff] }
 0x4c0   :  { %3715 = vmatpush.msrb.mxu0 %v3100_v39  ;;  %3742 = vmatpush.msrb.mxu3 %v3154_v4  ;;  %v2969_v12 = vld [vmem:[#allocation19 + $0x740] sm:$0xff]  ;;  %v3071_v39 = vld [vmem:[#allocation19 + $0xa70] sm:$0xff] }
 0x4c1   :  { %3763 = vmatpush.msra.mxu1 %v3244_v61  ;;  %3707 = vmatpush.msrb.mxu2 %v2932_v54  ;;  %v2753_v4 = vld [vmem:[#allocation19 + $0x80] sm:$0xff]  ;;  %v2915_v61 = vld [vmem:[#allocation19 + $0x590] sm:$0xff] }
 0x4c2   :  { %3716 = vmatpush.msrb.mxu0 %v3094_v18  ;;  %3743 = vmatpush.msrb.mxu3 %v3148_v55  ;;  %v2963_v54 = vld [vmem:[#allocation19 + $0x710] sm:$0xff]  ;;  %v3065_v18 = vld [vmem:[#allocation19 + $0xa40] sm:$0xff] }
 0x4c3   :  { %3764 = vmatpush.msra.mxu1 %v3238_v31  ;;  %3708 = vmatmul.f32.vlgmr.msrb.gmra.mxu2 %v8505_v63  ;;  %v2747_v55 = vld [vmem:[#allocation19 + $0x50] sm:$0xff]  ;;  %v2909_v31 = vld [vmem:[#allocation19 + $0x560] sm:$0xff] }
 0x4c4   :  { %3772 = vmatpush.msra.mxu2 %v2831_v45  ;;  %3717 = vmatpush.msrb.mxu0 %v3088_v5  ;;  %v2957_v45 = vld [vmem:[#allocation19 + $0x6e0] sm:$0xff]  ;;  %v3059_v5 = vld [vmem:[#allocation19 + $0xa10] sm:$0xff] }
 0x4c5   :  { %3744 = vmatpush.msrb.mxu3 %v3142_v46  ;;  %3765 = vmatpush.msra.mxu1 %v3232_v48  ;;  %v2741_v46 = vld [vmem:[#allocation19 + $0x20] sm:$0xff]  ;;  %v2903_v48 = vld [vmem:[#allocation19 + $0x530] sm:$0xff] }
 0x4c6   :  { %3773 = vmatpush.msra.mxu2 %v2825_v1  ;;  %3718 = vmatpush.msrb.mxu0 %v3082_v10  ;;  %v2951_v1 = vld [vmem:[#allocation19 + $0x6b0] sm:$0xff]  ;;  %v3053_v10 = vld [vmem:[#allocation19 + $0x9e0] sm:$0xff] }
 0x4c7   :  { %3745 = vmatpush.msrb.mxu3 %v3136_v32  ;;  %3766 = vmatpush.msra.mxu1 %v3226_v0  ;;  %v3215_v32 = vld [vmem:[#allocation19 + $0xef0] sm:$0xff]  ;;  %v2897_v0 = vld [vmem:[#allocation19 + $0x500] sm:$0xff] }
 0x4c8   :  { %3774 = vmatpush.msra.mxu2 %v2819_v35  ;;  %3719 = vmatpush.msrb.mxu0 %v3076_v36  ;;  %v2945_v35 = vld [vmem:[#allocation19 + $0x680] sm:$0xff]  ;;  %v3047_v36 = vld [vmem:[#allocation19 + $0x9b0] sm:$0xff] }
 0x4c9   :  { %3746 = vmatpush.msrb.mxu3 %v3130_v27  ;;  %3767 = vmatpush.msra.mxu1 %v3220_v15  ;;  %v3209_v27 = vld [vmem:[#allocation19 + $0xec0] sm:$0xff]  ;;  %v2891_v15 = vld [vmem:[#allocation19 + $0x4d0] sm:$0xff] }
 0x4ca   :  { %7245 = vmatmul.msk.f32.vlgmr.msra.gmra.mxu1 %vm2157_vm11, %v8522_v57  ;;  %3775 = vmatpush.msra.mxu2 %v2813_v38  ;;  %v2939_v38 = vld [vmem:[#allocation19 + $0x650] sm:$0xff] }
 0x4cb   :  { %3812 = vmatpush.msrb.mxu1 %v3023_v49  ;;  %3720 = vmatpush.msrb.mxu0 %v3070_v26  ;;  %v3041_v49 = vld [vmem:[#allocation19 + $0x980] sm:$0xff]  ;;  %v3203_v26 = vld [vmem:[#allocation19 + $0xe90] sm:$0xff] }
 0x4cc   :  { %3747 = vmatpush.msrb.mxu3 %v3124_v56  ;;  %3776 = vmatpush.msra.mxu2 %v2807_v40  ;;  %v2885_v56 = vld [vmem:[#allocation19 + $0x4a0] sm:$0xff] }
 0x4cd   :  { %3748 = vmatmul.f32.vlgmr.msrb.gmra.mxu3 %v8511_v19  ;;  %3813 = vmatpush.msrb.mxu1 %v3017_v3  ;;  %v2933_v40 = vld [vmem:[#allocation19 + $0x620] sm:$0xff]  ;;  %v3035_v3 = vld [vmem:[#allocation19 + $0x950] sm:$0xff] }
 0x4ce   :  { %3832 = vmatpush.msra.mxu3 %v3119_v44  ;;  %3721 = vmatpush.msrb.mxu0 %v3064_v29  ;;  %v3197_v44 = vld [vmem:[#allocation19 + $0xe60] sm:$0xff]  ;;  %v2832_v29 = vld [vmem:[#allocation19 + $0x2f8] sm:$0xff] }
 0x4cf   :  { %3777 = vmatpush.msra.mxu2 %v2801_v7  ;;  %3814 = vmatpush.msrb.mxu1 %v3011_v14  ;;  %v2879_v7 = vld [vmem:[#allocation19 + $0x470] sm:$0xff]  ;;  %v3029_v14 = vld [vmem:[#allocation19 + $0x920] sm:$0xff] }
 0x4d0   :  { %3833 = vmatpush.msra.mxu3 %v3113_v9  ;;  %3722 = vmatpush.msrb.mxu0 %v3058_v60  ;;  %v3191_v9 = vld [vmem:[#allocation19 + $0xe30] sm:$0xff]  ;;  %v2826_v60 = vld [vmem:[#allocation19 + $0x2c8] sm:$0xff] }
 0x4d1   :  { %3778 = vmatpush.msra.mxu2 %v2795_v59  ;;  %3815 = vmatpush.msrb.mxu1 %v3005_v2  ;;  %v2928_v59 = vld [vmem:[#allocation19 + $0x5f8] sm:$0xff]  ;;  %v2873_v2 = vld [vmem:[#allocation19 + $0x440] sm:$0xff] }
 0x4d2   :  { %3834 = vmatpush.msra.mxu3 %v3107_v47  ;;  %3723 = vmatpush.msrb.mxu0 %v3052_v42  ;;  %v3185_v47 = vld [vmem:[#allocation19 + $0xe00] sm:$0xff]  ;;  %v2820_v42 = vld [vmem:[#allocation19 + $0x298] sm:$0xff] }
 0x4d3   :  { %3779 = vmatpush.msra.mxu2 %v2789_v8  ;;  %3816 = vmatpush.msrb.mxu1 %v2999_v30  ;;  %v2922_v8 = vld [vmem:[#allocation19 + $0x5c8] sm:$0xff]  ;;  %v2867_v30 = vld [vmem:[#allocation19 + $0x410] sm:$0xff] }
 0x4d4   :  { %3835 = vmatpush.msra.mxu3 %v3101_v23  ;;  %3724 = vmatpush.msrb.mxu0 %v3046_v22  ;;  %v3179_v23 = vld [vmem:[#allocation19 + $0xdd0] sm:$0xff]  ;;  %v2814_v22 = vld [vmem:[#allocation19 + $0x268] sm:$0xff] }
 0x4d5   :  { %3780 = vmatpush.msra.mxu2 %v2783_v51  ;;  %3817 = vmatpush.msrb.mxu1 %v2993_v37  ;;  %v2916_v51 = vld [vmem:[#allocation19 + $0x598] sm:$0xff]  ;;  %v2861_v37 = vld [vmem:[#allocation19 + $0x3e0] sm:$0xff] }
 0x4d6   :  { %3836 = vmatpush.msra.mxu3 %v3095_v16  ;;  %3725 = vmatpush.msrb.mxu0 %v3040_v53  ;;  %v3173_v16 = vld [vmem:[#allocation19 + $0xda0] sm:$0xff]  ;;  %v2808_v53 = vld [vmem:[#allocation19 + $0x238] sm:$0xff] }
 0x4d7   :  { %3781 = vmatpush.msra.mxu2 %v2777_v33  ;;  %3818 = vmatpush.msrb.mxu1 %v2987_v58  ;;  %v2910_v33 = vld [vmem:[#allocation19 + $0x568] sm:$0xff]  ;;  %v2855_v58 = vld [vmem:[#allocation19 + $0x3b0] sm:$0xff] }
 0x4d8   :  { %3837 = vmatpush.msra.mxu3 %v3089_v41  ;;  %3726 = vmatpush.msrb.mxu0 %v3034_v43  ;;  %v3167_v41 = vld [vmem:[#allocation19 + $0xd70] sm:$0xff]  ;;  %v2802_v43 = vld [vmem:[#allocation19 + $0x208] sm:$0xff] }
 0x4d9   :  { %3782 = vmatpush.msra.mxu2 %v2771_v50  ;;  %3819 = vmatpush.msrb.mxu1 %v2981_v62  ;;  %v2904_v50 = vld [vmem:[#allocation19 + $0x538] sm:$0xff]  ;;  %v2849_v62 = vld [vmem:[#allocation19 + $0x380] sm:$0xff] }
 0x4da   :  { %3838 = vmatpush.msra.mxu3 %v3083_v6  ;;  %3727 = vmatpush.msrb.mxu0 %v3028_v52  ;;  %v3161_v6 = vld [vmem:[#allocation19 + $0xd40] sm:$0xff]  ;;  %v2796_v52 = vld [vmem:[#allocation19 + $0x1d8] sm:$0xff] }
 0x4db   :  { %3728 = vmatmul.f32.vlgmr.msrb.gmra.mxu0 %v8508_v24  ;;  %3783 = vmatpush.msra.mxu2 %v2765_v11  ;;  %v2898_v11 = vld [vmem:[#allocation19 + $0x508] sm:$0xff] }
 0x4dc   :  { %3792 = vmatpush.msra.mxu0 %v2927_v13  ;;  %3820 = vmatpush.msrb.mxu1 %v2975_v17  ;;  %v2843_v13 = vld [vmem:[#allocation19 + $0x350] sm:$0xff] }
 0x4dd   :  { %3839 = vmatpush.msra.mxu3 %v3077_v21  ;;  %3784 = vmatpush.msra.mxu2 %v2759_v25  ;;  %v3155_v17 = vld [vmem:[#allocation19 + $0xd10] sm:$0xff]  ;;  %v2790_v21 = vld [vmem:[#allocation19 + $0x1a8] sm:$0xff]  ;;  %v2892_v25 = vld [vmem:[#allocation19 + $0x4d8] sm:$0xff] }
 0x4de   :  { %3793 = vmatpush.msra.mxu0 %v2921_v28  ;;  %3821 = vmatpush.msrb.mxu1 %v2969_v12  ;;  %v2837_v28 = vld [vmem:[#allocation19 + $0x320] sm:$0xff] }
 0x4df   :  { %3840 = vmatpush.msra.mxu3 %v3071_v39  ;;  %3785 = vmatpush.msra.mxu2 %v2753_v4  ;;  %v3149_v12 = vld [vmem:[#allocation19 + $0xce0] sm:$0xff]  ;;  %v3287_v39 = vld [vmem:[#allocation19 + $0x1130] sm:$0xff]  ;;  %v2784_v4 = vld [vmem:[#allocation19 + $0x178] sm:$0xff] }
 0x4e0   :  { %3794 = vmatpush.msra.mxu0 %v2915_v61  ;;  %3822 = vmatpush.msrb.mxu1 %v2963_v54  ;;  %v2886_v61 = vld [vmem:[#allocation19 + $0x4a8] sm:$0xff]  ;;  %v3143_v54 = vld [vmem:[#allocation19 + $0xcb0] sm:$0xff] }
 0x4e1   :  { %3841 = vmatpush.msra.mxu3 %v3065_v18  ;;  %3786 = vmatpush.msra.mxu2 %v2747_v55  ;;  %v3281_v18 = vld [vmem:[#allocation19 + $0x1100] sm:$0xff]  ;;  %v2778_v55 = vld [vmem:[#allocation19 + $0x148] sm:$0xff] }
 0x4e2   :  { %3795 = vmatpush.msra.mxu0 %v2909_v31  ;;  %3823 = vmatpush.msrb.mxu1 %v2957_v45  ;;  %v2880_v31 = vld [vmem:[#allocation19 + $0x478] sm:$0xff]  ;;  %v3137_v45 = vld [vmem:[#allocation19 + $0xc80] sm:$0xff] }
 0x4e3   :  { %3842 = vmatpush.msra.mxu3 %v3059_v5  ;;  %3787 = vmatpush.msra.mxu2 %v2741_v46  ;;  %v3275_v5 = vld [vmem:[#allocation19 + $0x10d0] sm:$0xff]  ;;  %v2772_v46 = vld [vmem:[#allocation19 + $0x118] sm:$0xff] }
 0x4e4   :  { %3796 = vmatpush.msra.mxu0 %v2903_v48  ;;  %3824 = vmatpush.msrb.mxu1 %v2951_v1  ;;  %v2874_v48 = vld [vmem:[#allocation19 + $0x448] sm:$0xff]  ;;  %v3131_v1 = vld [vmem:[#allocation19 + $0xc50] sm:$0xff] }
 0x4e5   :  { %3843 = vmatpush.msra.mxu3 %v3053_v10  ;;  %3788 = vmatmul.f32.vlgmr.msra.gmra.mxu2 %v8500_v34  ;;  %v3269_v10 = vld [vmem:[#allocation19 + $0x10a0] sm:$0xff] }
 0x4e6   :  { %3852 = vmatpush.msrb.mxu2 %v3215_v32  ;;  %3797 = vmatpush.msra.mxu0 %v2897_v0  ;;  %v2766_v32 = vld [vmem:[#allocation19 + $0xe8] sm:$0xff]  ;;  %v2868_v0 = vld [vmem:[#allocation19 + $0x418] sm:$0xff] }
 0x4e7   :  { %3825 = vmatpush.msrb.mxu1 %v2945_v35  ;;  %3844 = vmatpush.msra.mxu3 %v3047_v36  ;;  %v3125_v35 = vld [vmem:[#allocation19 + $0xc20] sm:$0xff]  ;;  %v3263_v36 = vld [vmem:[#allocation19 + $0x1070] sm:$0xff] }
 0x4e8   :  { %3853 = vmatpush.msrb.mxu2 %v3209_v27  ;;  %3798 = vmatpush.msra.mxu0 %v2891_v15  ;;  %v2760_v27 = vld [vmem:[#allocation19 + $0xb8] sm:$0xff]  ;;  %v2862_v15 = vld [vmem:[#allocation19 + $0x3e8] sm:$0xff] }
 0x4e9   :  { %3826 = vmatpush.msrb.mxu1 %v2939_v38  ;;  %3845 = vmatpush.msra.mxu3 %v3041_v49  ;;  %v3120_v38 = vld [vmem:[#allocation19 + $0xbf8] sm:$0xff]  ;;  %v3257_v49 = vld [vmem:[#allocation19 + $0x1040] sm:$0xff] }
 0x4ea   :  { %3854 = vmatpush.msrb.mxu2 %v3203_v26  ;;  %3799 = vmatpush.msra.mxu0 %v2885_v56  ;;  %v2754_v26 = vld [vmem:[#allocation19 + $0x88] sm:$0xff]  ;;  %v2856_v56 = vld [vmem:[#allocation19 + $0x3b8] sm:$0xff] }
 0x4eb   :  { %3827 = vmatpush.msrb.mxu1 %v2933_v40  ;;  %3846 = vmatpush.msra.mxu3 %v3035_v3  ;;  %v3114_v40 = vld [vmem:[#allocation19 + $0xbc8] sm:$0xff]  ;;  %v3251_v3 = vld [vmem:[#allocation19 + $0x1010] sm:$0xff] }
 0x4ec   :  { %3828 = vmatmul.f32.vlgmr.msrb.gmra.mxu1 %v8505_v63  ;;  %3855 = vmatpush.msrb.mxu2 %v3197_v44  ;;  %v2748_v44 = vld [vmem:[#allocation19 + $0x58] sm:$0xff] }
 0x4ed   :  { %3892 = vmatpush.msra.mxu1 %v2832_v29  ;;  %3800 = vmatpush.msra.mxu0 %v2879_v7  ;;  %v2850_v29 = vld [vmem:[#allocation19 + $0x388] sm:$0xff]  ;;  %v3108_v7 = vld [vmem:[#allocation19 + $0xb98] sm:$0xff] }
 0x4ee   :  { %3847 = vmatpush.msra.mxu3 %v3029_v14  ;;  %3856 = vmatpush.msrb.mxu2 %v3191_v9  ;;  %v3245_v14 = vld [vmem:[#allocation19 + $0xfe0] sm:$0xff]  ;;  %v2742_v9 = vld [vmem:[#allocation19 + $0x28] sm:$0xff] }
 0x4ef   :  { %3848 = vmatmul.f32.vlgmr.msra.gmra.mxu3 %v8508_v24  ;;  %3893 = vmatpush.msra.mxu1 %v2826_v60  ;;  %v2844_v60 = vld [vmem:[#allocation19 + $0x358] sm:$0xff] }
 0x4f0   :  { %3912 = vmatpush.msrb.mxu3 %v2928_v59  ;;  %3801 = vmatpush.msra.mxu0 %v2873_v2  ;;  %v8550_v59 = vpop.f32.mrf.mxu0  ;;  %v3102_v2 = vld [vmem:[#allocation19 + $0xb68] sm:$0xff] }
 0x4f1   :  { %3857 = vmatpush.msrb.mxu2 %v3185_v47  ;;  %3894 = vmatpush.msra.mxu1 %v2820_v42  ;;  %v3216_v47 = vld [vmem:[#allocation19 + $0xef8] sm:$0xff]  ;;  %v3239_v42 = vld [vmem:[#allocation19 + $0xfb0] sm:$0xff] }
 0x4f2   :  { %3913 = vmatpush.msrb.mxu3 %v2922_v8  ;;  %3802 = vmatpush.msra.mxu0 %v2867_v30  ;;  %v2838_v8 = vld [vmem:[#allocation19 + $0x328] sm:$0xff]  ;;  %v3096_v30 = vld [vmem:[#allocation19 + $0xb38] sm:$0xff] }
 0x4f3   :  { %3858 = vmatpush.msrb.mxu2 %v3179_v23  ;;  %3895 = vmatpush.msra.mxu1 %v2814_v22  ;;  %v3210_v23 = vld [vmem:[#allocation19 + $0xec8] sm:$0xff]  ;;  %v3288_v22 = vld [vmem:[#allocation19 + $0x1138] sm:$0xff] }
 0x4f4   :  { %3914 = vmatpush.msrb.mxu3 %v2916_v51  ;;  %3803 = vmatpush.msra.mxu0 %v2861_v37  ;;  %v3233_v51 = vld [vmem:[#allocation19 + $0xf80] sm:$0xff]  ;;  %v3090_v37 = vld [vmem:[#allocation19 + $0xb08] sm:$0xff] }
 0x4f5   :  { %3859 = vmatpush.msrb.mxu2 %v3173_v16  ;;  %3896 = vmatpush.msra.mxu1 %v2808_v53  ;;  %v3204_v16 = vld [vmem:[#allocation19 + $0xe98] sm:$0xff]  ;;  %v8553_v53 = vpop.f32.mrf.mxu3 }
 0x4f6   :  { %3915 = vmatpush.msrb.mxu3 %v2910_v33  ;;  %3804 = vmatpush.msra.mxu0 %v2855_v58  ;;  %v8555_v33 = vpop.f32.mrf.mxu2  ;;  %v3282_v58 = vld [vmem:[#allocation19 + $0x1108] sm:$0xff] }
 0x4f7   :  { %3860 = vmatpush.msrb.mxu2 %v3167_v41  ;;  %3897 = vmatpush.msra.mxu1 %v2802_v43  ;;  %v3227_v41 = vld [vmem:[#allocation19 + $0xf50] sm:$0xff]  ;;  %v3198_v43 = vld [vmem:[#allocation19 + $0xe68] sm:$0xff] }
 0x4f8   :  { %3916 = vmatpush.msrb.mxu3 %v2904_v50  ;;  %3805 = vmatpush.msra.mxu0 %v2849_v62  ;;  %v8558_v50 = vpop.f32.mrf.mxu1  ;;  %v3276_v62 = vld [vmem:[#allocation19 + $0x10d8] sm:$0xff] }
 0x4f9   :  { %3861 = vmatpush.msrb.mxu2 %v3161_v6  ;;  %3898 = vmatpush.msra.mxu1 %v2796_v52  ;;  %v3221_v6 = vld [vmem:[#allocation19 + $0xf20] sm:$0xff]  ;;  %v3078_v52 = vld [vmem:[#allocation19 + $0xaa8] sm:$0xff] }
 0x4fa   :  { %3917 = vmatpush.msrb.mxu3 %v2898_v11  ;;  %3806 = vmatpush.msra.mxu0 %v2843_v13  ;;  %v8560_v11 = vpop.f32.mrf.mxu0  ;;  %v3192_v13 = vld [vmem:[#allocation19 + $0xe38] sm:$0xff] }
 0x4fb   :  { %3862 = vmatpush.msrb.mxu2 %v3155_v17  ;;  %3899 = vmatpush.msra.mxu1 %v2790_v21  ;;  %v3270_v17 = vld [vmem:[#allocation19 + $0x10a8] sm:$0xff]  ;;  %v3072_v21 = vld [vmem:[#allocation19 + $0xa78] sm:$0xff] }
 0x4fc   :  { %3918 = vmatpush.msrb.mxu3 %v2892_v25  ;;  %3807 = vmatpush.msra.mxu0 %v2837_v28  ;;  %v3018_v25 = vld [vmem:[#allocation19 + $0x8c8] sm:$0xff] }
 0x4fd   :  { %3808 = vmatmul.f32.vlgmr.msra.gmra.mxu0 %v8516_v20  ;;  %3863 = vmatpush.msrb.mxu2 %v3149_v12  ;;  %v3186_v28 = vld [vmem:[#allocation19 + $0xe08] sm:$0xff]  ;;  %v3264_v12 = vld [vmem:[#allocation19 + $0x1078] sm:$0xff] }
 0x4fe   :  { %3876 = vmatpush.msrb.mxu0 %v3287_v39  ;;  %3900 = vmatpush.msra.mxu1 %v2784_v4  ;;  %v3066_v39 = vld [vmem:[#allocation19 + $0xa48] sm:$0xff]  ;;  %v3012_v4 = vld [vmem:[#allocation19 + $0x898] sm:$0xff] }
 0x4ff   :  { %3919 = vmatpush.msrb.mxu3 %v2886_v61  ;;  %3864 = vmatpush.msrb.mxu2 %v3143_v54  ;;  %v3180_v61 = vld [vmem:[#allocation19 + $0xdd8] sm:$0xff]  ;;  %v3258_v54 = vld [vmem:[#allocation19 + $0x1048] sm:$0xff] }
 0x500   :  { %3877 = vmatpush.msrb.mxu0 %v3281_v18  ;;  %3901 = vmatpush.msra.mxu1 %v2778_v55  ;;  %v3060_v18 = vld [vmem:[#allocation19 + $0xa18] sm:$0xff]  ;;  %v8564_v55 = vpop.f32.mrf.mxu3 }
 0x501   :  { %3920 = vmatpush.msrb.mxu3 %v2880_v31  ;;  %3865 = vmatpush.msrb.mxu2 %v3137_v45  ;;  %v3449_v31 = vpop.f32.mrf.mxu2  ;;  %v3006_v45 = vld [vmem:[#allocation19 + $0x868] sm:$0xff] }
 0x502   :  { %3878 = vmatpush.msrb.mxu0 %v3275_v5  ;;  %3902 = vmatpush.msra.mxu1 %v2772_v46  ;;  %v3174_v5 = vld [vmem:[#allocation19 + $0xda8] sm:$0xff]  ;;  %v3252_v46 = vld [vmem:[#allocation19 + $0x1018] sm:$0xff] }
 0x503   :  { %3921 = vmatpush.msrb.mxu3 %v2874_v48  ;;  %3866 = vmatpush.msrb.mxu2 %v3131_v1  ;;  %v3054_v48 = vld [vmem:[#allocation19 + $0x9e8] sm:$0xff]  ;;  %v3429_v1 = vpop.f32.mrf.mxu1 }
 0x504   :  { %3879 = vmatpush.msrb.mxu0 %v3269_v10  ;;  %3903 = vmatpush.msra.mxu1 %v2766_v32  ;;  %v3469_v10 = vpop.f32.mrf.mxu0  ;;  %v3000_v32 = vld [vmem:[#allocation19 + $0x838] sm:$0xff] }
 0x505   :  { %3922 = vmatpush.msrb.mxu3 %v2868_v0  ;;  %3867 = vmatpush.msrb.mxu2 %v3125_v35  ;;  %v3168_v0 = vld [vmem:[#allocation19 + $0xd78] sm:$0xff]  ;;  %v3450_v35 = vadd.f32 %v3449_v31, %v3429_v1 }
 0x506   :  { %3880 = vmatpush.msrb.mxu0 %v3263_v36  ;;  %3904 = vmatpush.msra.mxu1 %v2760_v27  ;;  %v3246_v36 = vld [vmem:[#allocation19 + $0xfe8] sm:$0xff]  ;;  %v3048_v27 = vld [vmem:[#allocation19 + $0x9b8] sm:$0xff] }
 0x507   :  { %3923 = vmatpush.msrb.mxu3 %v2862_v15  ;;  %3868 = vmatmul.f32.vlgmr.msrb.gmra.mxu2 %v8511_v19  ;;  %v2994_v15 = vld [vmem:[#allocation19 + $0x808] sm:$0xff]  ;;  %v8603_v31 = vld [vmem:[#allocation20 + $0x1f8] sm:$0xff] }
 0x508   :  { %3952 = vmatpush.msra.mxu2 %v3120_v38  ;;  %3881 = vmatpush.msrb.mxu0 %v3257_v49  ;;  %v3162_v38 = vld [vmem:[#allocation19 + $0xd48] sm:$0xff]  ;;  %v3470_v49 = vadd.f32 %v3469_v10, %v3450_v35  ;;  %v2940_v10 = vld [vmem:[#allocation19 + $0x658] sm:$0xff] }
 0x509   :  { %3905 = vmatpush.msra.mxu1 %v2754_v26  ;;  %3924 = vmatpush.msrb.mxu3 %v2856_v56  ;;  %v3240_v26 = vld [vmem:[#allocation19 + $0xfb8] sm:$0xff]  ;;  %v3042_v56 = vld [vmem:[#allocation19 + $0x988] sm:$0xff] }
 0x50a   :  { %3953 = vmatpush.msra.mxu2 %v3114_v40  ;;  %3882 = vmatpush.msrb.mxu0 %v3251_v3  ;;  %v2988_v40 = vld [vmem:[#allocation19 + $0x7d8] sm:$0xff]  ;;  %v8620_v35 = vld [vmem:[#allocation20 + $0x148] sm:$0xff] }
 0x50b   :  { %3906 = vmatpush.msra.mxu1 %v2748_v44  ;;  %3925 = vmatpush.msrb.mxu3 %v2850_v29  ;;  %v3156_v3 = vld [vmem:[#allocation19 + $0xd18] sm:$0xff]  ;;  %v3234_v44 = vld [vmem:[#allocation19 + $0xf88] sm:$0xff]  ;;  %9513 = vst [vmem:[#allocation40_spill] sm:$0xff] %v8620_v35 }
 0x50c   :  { %3954 = vmatpush.msra.mxu2 %v3108_v7  ;;  %3883 = vmatpush.msrb.mxu0 %v3245_v14  ;;  %v3036_v29 = vld [vmem:[#allocation19 + $0x958] sm:$0xff]  ;;  %v3489_v7 = vpop.f32.mrf.mxu3  ;;  %v2982_v14 = vld [vmem:[#allocation19 + $0x7a8] sm:$0xff] }
 0x50d   :  { %3907 = vmatpush.msra.mxu1 %v2742_v9  ;;  %3926 = vmatpush.msrb.mxu3 %v2844_v60  ;;  %v3150_v9 = vld [vmem:[#allocation19 + $0xce8] sm:$0xff]  ;;  %v3529_v60 = vpop.f32.mrf.mxu2 }
 0x50e   :  { %3908 = vmatmul.f32.vlgmr.msra.gmra.mxu1 %v8500_v34  ;;  %3955 = vmatpush.msra.mxu2 %v3102_v2  ;;  %v3084_v34 = vld [vmem:[#allocation19 + $0xad8] sm:$0xff]  ;;  %v3490_v2 = vadd.f32 %v3489_v7, %v3470_v49 }
 0x50f   :  { %3972 = vmatpush.msrb.mxu1 %v3216_v47  ;;  %3884 = vmatpush.msrb.mxu0 %v3239_v42  ;;  %v3228_v47 = vld [vmem:[#allocation19 + $0xf58] sm:$0xff]  ;;  %v3030_v42 = vld [vmem:[#allocation19 + $0x928] sm:$0xff] }
 0x510   :  { %3927 = vmatpush.msrb.mxu3 %v2838_v8  ;;  %3956 = vmatpush.msra.mxu2 %v3096_v30  ;;  %v2976_v8 = vld [vmem:[#allocation19 + $0x778] sm:$0xff] }
 0x511   :  { %3928 = vmatmul.f32.vlgmr.msrb.gmra.mxu3 %v8516_v20  ;;  %3973 = vmatpush.msrb.mxu1 %v3210_v23  ;;  %v3024_v20 = vld [vmem:[#allocation19 + $0x8f8] sm:$0xff]  ;;  %v3222_v23 = vld [vmem:[#allocation19 + $0xf28] sm:$0xff] }
 0x512   :  { %3996 = vmatpush.msra.mxu3 %v3288_v22  ;;  %3885 = vmatpush.msrb.mxu0 %v3233_v51  ;;  %v3144_v30 = vld [vmem:[#allocation19 + $0xcb8] sm:$0xff]  ;;  %v3509_v22 = vpop.f32.mrf.mxu1 }
 0x513   :  { %3957 = vmatpush.msra.mxu2 %v3090_v37  ;;  %3974 = vmatpush.msrb.mxu1 %v3204_v16  ;;  %v8566_v51 = vld [vmem:[#allocation20 + $0xf8] sm:$0xff]  ;;  %v3510_v37 = vadd.f32 %v3509_v22, %v3490_v2  ;;  %v8670_v22 = vld [vmem:[#allocation20 + $0x128] sm:$0xff] }
 0x514   :  { %3997 = vmatpush.msra.mxu3 %v3282_v58  ;;  %3886 = vmatpush.msrb.mxu0 %v3227_v41  ;;  %v8568_v16 = vld [vmem:[#allocation20 + $0x178] sm:$0xff]  ;;  %v2970_v58 = vld [vmem:[#allocation19 + $0x748] sm:$0xff]  ;;  %9519 = vst [vmem:[#allocation46_spill] sm:$0xff] %v8670_v22 }
 0x515   :  { %3958 = vmatpush.msra.mxu2 %v3084_v34  ;;  %3975 = vmatpush.msrb.mxu1 %v3198_v43  ;;  %v3138_v41 = vld [vmem:[#allocation19 + $0xc88] sm:$0xff]  ;;  %v8571_v34 = vld [vmem:[#allocation20 + $0xf0] sm:$0xff]  ;;  %v3549_v43 = vpop.f32.mrf.mxu0  ;;  %v8639_v7 = vld [vmem:[#allocation20 + $0x138] sm:$0xff] }
 0x516   :  { %3998 = vmatpush.msra.mxu3 %v3276_v62  ;;  %3887 = vmatpush.msrb.mxu0 %v3221_v6  ;;  %v8576_v62 = vld [vmem:[#allocation20 + $0x170] sm:$0xff]  ;;  %v2964_v6 = vld [vmem:[#allocation19 + $0x718] sm:$0xff]  ;;  %9515 = vst [vmem:[#allocation42_spill] sm:$0xff] %v8639_v7 }
 0x517   :  { %7246 = vmatmul.msk.f32.vlgmr.msrb.gmra.mxu0 %vm2157_vm11, %v8522_v57  ;;  %3959 = vmatpush.msra.mxu2 %v3078_v52  ;;  %v3132_v52 = vld [vmem:[#allocation19 + $0xc58] sm:$0xff] }
 0x518   :  { %3932 = vmatpush.msra.mxu0 %v3024_v20  ;;  %3976 = vmatpush.msrb.mxu1 %v3192_v13  ;;  %v8579_v20 = vld [vmem:[#allocation20 + $0xe8] sm:$0xff]  ;;  %v8583_v13 = vadd.f32 %v3529_v60, %v3510_v37  ;;  %v8647_v60 = vld [vmem:[#allocation20 + $0xb0] sm:$0xff] }
 0x519   :  { %3999 = vmatpush.msra.mxu3 %v3270_v17  ;;  %3960 = vmatpush.msra.mxu2 %v3072_v21  ;;  %v3569_v17 = vpop.f32.mrf.mxu2  ;;  %v2958_v21 = vld [vmem:[#allocation19 + $0x6e8] sm:$0xff] }
 0x51a   :  { %3933 = vmatpush.msra.mxu0 %v3018_v25  ;;  %3977 = vmatpush.msrb.mxu1 %v3186_v28  ;;  %v3570_v25 = vadd.f32 %v3569_v17, %v3549_v43  ;;  %v3126_v28 = vld [vmem:[#allocation19 + $0xc28] sm:$0xff]  ;;  %v8677_v43 = vld [vmem:[#allocation20 + $0xa0] sm:$0xff]  ;;  %v8689_v17 = vld [vmem:[#allocation20 + $0x98] sm:$0xff] }
 0x51b   :  { %4000 = vmatpush.msra.mxu3 %v3264_v12  ;;  %3961 = vmatpush.msra.mxu2 %v3066_v39  ;;  %v8589_v12 = vld [vmem:[#allocation20 + $0xe0] sm:$0xff]  ;;  %v8595_v39 = vld [vmem:[#allocation20 + $0xd8] sm:$0xff] }
 0x51c   :  { %3934 = vmatpush.msra.mxu0 %v3012_v4  ;;  %3978 = vmatpush.msrb.mxu1 %v3180_v61  ;;  %v4019_v61 = vsel %vm341_vm0, %v8583_v13, 0.0 }
 0x51d   :  { %4001 = vmatpush.msra.mxu3 %v3258_v54  ;;  %3962 = vmatpush.msra.mxu2 %v3060_v18  ;;  %v3589_v54 = vpop.f32.mrf.mxu3  ;;  %v8601_v18 = vld [vmem:[#allocation20 + $0x158] sm:$0xff]  ;;  %v4020_v1 = vrot.slane %v4019_v61, 4 }
 0x51e   :  { %3935 = vmatpush.msra.mxu0 %v3006_v45  ;;  %3979 = vmatpush.msrb.mxu1 %v3174_v5  ;;  %v3590_v45 = vadd.f32 %v3589_v54, %v3570_v25  ;;  %v2946_v5 = vld [vmem:[#allocation19 + $0x688] sm:$0xff]  ;;  %v8703_v54 = vld [vmem:[#allocation20 + $0x90] sm:$0xff] }
 0x51f   :  { %4002 = vmatpush.msra.mxu3 %v3252_v46  ;;  %3963 = vmatpush.msra.mxu2 %v3054_v48  ;;  %v8607_v46 = vld [vmem:[#allocation20 + $0xd0] sm:$0xff] }
 0x520   :  { %3936 = vmatpush.msra.mxu0 %v3000_v32  ;;  %3980 = vmatpush.msrb.mxu1 %v3168_v0  ;;  %v8612_v48 = vld [vmem:[#allocation20 + $0x1f0] sm:$0xff]  ;;  %v8615_v32 = vld [vmem:[#allocation20 + $0xc8] sm:$0xff]  ;;  %v3609_v0 = vpop.f32.mrf.mxu1 }
 0x521   :  { %4003 = vmatpush.msra.mxu3 %v3246_v36  ;;  %3964 = vmatpush.msra.mxu2 %v3048_v27  ;;  %v8622_v36 = vld [vmem:[#allocation20 + $0x1e8] sm:$0xff] }
 0x522   :  { %3937 = vmatpush.msra.mxu0 %v2994_v15  ;;  %3981 = vmatpush.msrb.mxu1 %v3162_v38  ;;  %v2934_v27 = vld [vmem:[#allocation19 + $0x628] sm:$0xff]  ;;  %v8625_v15 = vld [vmem:[#allocation20 + $0xc0] sm:$0xff]  ;;  %v3610_v38 = vadd.f32 %v3609_v0, %v3590_v45 }
 0x523   :  { %4004 = vmatpush.msra.mxu3 %v3240_v26  ;;  %3965 = vmatpush.msra.mxu2 %v3042_v56  ;;  %v4021_v26 = vadd.f32 %v4020_v1, %v4019_v61  ;;  %v8632_v56 = vld [vmem:[#allocation20 + $0x78] sm:$0xff]  ;;  %v8701_v61 = vld [vmem:[#allocation20 + $0x50] sm:$0xff]  ;;  %v8715_v0 = vld [vmem:[#allocation20 + $0x88] sm:$0xff] }
 0x524   :  { %3938 = vmatpush.msra.mxu0 %v2988_v40  ;;  %3982 = vmatpush.msrb.mxu1 %v3156_v3  ;;  %v8634_v40 = vld [vmem:[#allocation20 + $0xb8] sm:$0xff] }
 0x525   :  { %4005 = vmatpush.msra.mxu3 %v3234_v44  ;;  %3966 = vmatpush.msra.mxu2 %v3036_v29  ;;  %v3649_v29 = vpop.f32.mrf.mxu2  ;;  %v8710_v1 = vld [vmem:[#allocation20 + $0x1b8] sm:$0xff] }
 0x526   :  { %3939 = vmatpush.msra.mxu0 %v2982_v14  ;;  %3983 = vmatpush.msrb.mxu1 %v3150_v9  ;;  %v8641_v14 = vld [vmem:[#allocation20 + $0x1e0] sm:$0xff]  ;;  %v8645_v9 = vld [vmem:[#allocation20 + $0x70] sm:$0xff] }
 0x527   :  { %4006 = vmatpush.msra.mxu3 %v3228_v47  ;;  %3967 = vmatpush.msra.mxu2 %v3030_v42  ;;  %v8655_v47 = vld [vmem:[#allocation20 + $0x1d8] sm:$0xff]  ;;  %v4022_v42 = vrot.slane %v4021_v26, 2 }
 0x528   :  { %3940 = vmatpush.msra.mxu0 %v2976_v8  ;;  %3984 = vmatpush.msrb.mxu1 %v3144_v30  ;;  %v8660_v8 = vld [vmem:[#allocation20 + $0xa8] sm:$0xff] }
 0x529   :  { %4007 = vmatpush.msra.mxu3 %v3222_v23  ;;  %3968 = vmatmul.f32.vlgmr.msra.gmra.mxu2 %v8508_v24  ;;  %v3330_v24 = vadd.f32 %v8550_v59, %v8553_v53  ;;  %v8592_v59 = vld [vmem:[#allocation20 + $0x160] sm:$0xff]  ;;  %v2952_v53 = vld [vmem:[#allocation19 + $0x6b8] sm:$0xff] }
 0x52a   :  { %7247 = vmatmul.msk.f32.vlgmr.msra.gmra.mxu3 %vm2157_vm11, %v8522_v57  ;;  %4217 = vmatpush.msrb.mxu2 %v8566_v51  ;;  %v8586_v57 = vld [vmem:[#allocation20 + $0x168] sm:$0xff] }
 0x52b   :  { %4237 = vmatpush.msrb.mxu3 %v8568_v16  ;;  %3941 = vmatpush.msra.mxu0 %v2970_v58  ;;  %v3350_v4 = vadd.f32 %v8558_v50, %v3330_v24  ;;  %v8610_v50 = vld [vmem:[#allocation20 + $0x150] sm:$0xff]  ;;  %v8687_v24 = vld [vmem:[#allocation20 + $0x58] sm:$0xff] }
 0x52c   :  { %3985 = vmatpush.msrb.mxu1 %v3138_v41  ;;  %4218 = vmatpush.msrb.mxu2 %v8571_v34  ;;  %v8672_v58 = vld [vmem:[#allocation20 + $0x1d0] sm:$0xff]  ;;  %v8675_v41 = vld [vmem:[#allocation20 + $0x60] sm:$0xff] }
 0x52d   :  { %4238 = vmatpush.msrb.mxu3 %v8576_v62  ;;  %3942 = vmatpush.msra.mxu0 %v2964_v6 }
 0x52e   :  { %3986 = vmatpush.msrb.mxu1 %v3132_v52  ;;  %4219 = vmatpush.msrb.mxu2 %v8579_v20  ;;  %v8684_v52 = vld [vmem:[#allocation20 + $0x1c8] sm:$0xff] }
 0x52f   :  { %4239 = vmatpush.msrb.mxu3 %v8586_v57  ;;  %3943 = vmatpush.msra.mxu0 %v2958_v21  ;;  %v4023_v21 = vadd.f32 %v4022_v42, %v4021_v26  ;;  %v8722_v26 = vld [vmem:[#allocation20 + $0x1b0] sm:$0xff] }
 0x530   :  { %3987 = vmatpush.msrb.mxu1 %v3126_v28  ;;  %4220 = vmatpush.msrb.mxu2 %v8589_v12 }
 0x531   :  { %3988 = vmatmul.f32.vlgmr.msrb.gmra.mxu1 %v8511_v19  ;;  %4240 = vmatpush.msrb.mxu3 %v8592_v59  ;;  %v3370_v19 = vadd.f32 %v8555_v33, %v3350_v4  ;;  %v8629_v33 = vld [vmem:[#allocation20 + $0x140] sm:$0xff] }
 0x532   :  { %3944 = vmatpush.msra.mxu0 %v2952_v53  ;;  %4221 = vmatpush.msrb.mxu2 %v8595_v39  ;;  %9514 = vst [vmem:[#allocation41_spill] sm:$0xff] %v8629_v33  ;;  %v8696_v53 = vld [vmem:[#allocation20 + $0x118] sm:$0xff]  ;;  %v8698_v4 = vld [vmem:[#allocation20 + $0x1c0] sm:$0xff] }
 0x533   :  { %4241 = vmatpush.msrb.mxu3 %v8601_v18  ;;  %4257 = vmatpush.msra.mxu1 %v8603_v31  ;;  %v3390_v44 = vadd.f32 %v8564_v55, %v3370_v19  ;;  %v8653_v55 = vld [vmem:[#allocation20 + $0x130] sm:$0xff]  ;;  %9521 = vst [vmem:[#allocation48_spill] sm:$0xff] %v8696_v53  ;;  %v8713_v19 = vld [vmem:[#allocation20 + $0x48] sm:$0xff] }
 0x534   :  { %3945 = vmatpush.msra.mxu0 %v2946_v5  ;;  %4222 = vmatpush.msrb.mxu2 %v8607_v46  ;;  %9517 = vst [vmem:[#allocation44_spill] sm:$0xff] %v8653_v55  ;;  %v8708_v5 = vld [vmem:[#allocation20 + $0x110] sm:$0xff] }
 0x535   :  { %4242 = vmatpush.msrb.mxu3 %v8610_v50  ;;  %4258 = vmatpush.msra.mxu1 %v8612_v48  ;;  %v8666_v23 = vadd.f32 %v8560_v11, %v3390_v44  ;;  %v8682_v11 = vld [vmem:[#allocation20 + $0x120] sm:$0xff]  ;;  %9522 = vst [vmem:[#allocation49_spill] sm:$0xff] %v8708_v5 }
 0x536   :  { %3946 = vmatpush.msra.mxu0 %v2940_v10  ;;  %4223 = vmatpush.msrb.mxu2 %v8615_v32  ;;  %v3629_v49 = vpop.f32.mrf.mxu0  ;;  %9520 = vst [vmem:[#allocation47_spill] sm:$0xff] %v8682_v11  ;;  %v8727_v44 = vld [vmem:[#allocation20 + $0x80] sm:$0xff] }
 0x537   :  { %4243 = vmatpush.msrb.mxu3 %v8620_v35  ;;  %v3630_v3 = vadd.f32 %v3629_v49, %v3610_v38  ;;  %4259 = vmatpush.msra.mxu1 %v8622_v36  ;;  %9518 = vst [vmem:[#allocation45_spill] sm:$0xff] %v8666_v23  ;;  %v4012_v25 = vsel %vm341_vm0, %v8666_v23, 0.0  ;;  %v8720_v49 = vld [vmem:[#allocation20 + $0x108] sm:$0xff] }
 0x538   :  { %3947 = vmatpush.msra.mxu0 %v2934_v27  ;;  %4224 = vmatpush.msrb.mxu2 %v8625_v15  ;;  %v4013_v10 = vrot.slane %v4012_v25, 4  ;;  %v4024_v27 = vrot.slane %v4023_v21, 1  ;;  %9523 = vst [vmem:[#allocation38_spill] sm:$0xff] %v8720_v49 }
 0x539   :  { %3948 = vmatmul.f32.vlgmr.msra.gmra.mxu0 %v8505_v63  ;;  %4244 = vmatpush.msrb.mxu3 %v8629_v33  ;;  %v8649_v2 = vadd.f32 %v3649_v29, %v3630_v3  ;;  %v8658_v63 = vld [vmem:[#allocation20 + $0x68] sm:$0xff]  ;;  %v8725_v3 = vld [vmem:[#allocation20 + $0x40] sm:$0xff] }
 0x53a   :  { %4197 = vmatpush.msrb.mxu0 %v8632_v56  ;;  %4225 = vmatpush.msrb.mxu2 %v8634_v40  ;;  %v8732_v29 = vld [vmem:[#allocation20 + $0x100] sm:$0xff]  ;;  %v4014_v42 = vadd.f32 %v4013_v10, %v4012_v25  ;;  %v8749_v10 = vld [vmem:[#allocation20 + $0x28] sm:$0xff] }
 0x53b   :  { %9516 = vst [vmem:[#allocation43_spill] sm:$0xff] %v8649_v2  ;;  %4245 = vmatpush.msrb.mxu3 %v8639_v7  ;;  %v4026_v30 = vsel %vm341_vm0, %v8649_v2, 0.0  ;;  %4260 = vmatpush.msra.mxu1 %v8641_v14  ;;  %v8743_v2 = vld [vmem:[#allocation20 + $0x30] sm:$0xff]  ;;  %v8747_v25 = vld [vmem:[#allocation20 + $0x1a0] sm:$0xff]  ;;  %v4182_v7 = vld [vmem:[#allocation20 + $0x278] sm:$0xff] }
 0x53c   :  { %4198 = vmatpush.msrb.mxu0 %v8645_v9  ;;  %4226 = vmatpush.msrb.mxu2 %v8647_v60  ;;  %v4027_v37 = vrot.slane %v4026_v30, 4  ;;  %9524 = vst [vmem:[#allocation39_spill] sm:$0xff] %v8732_v29 }
 0x53d   :  { %4246 = vmatpush.msrb.mxu3 %v8653_v55  ;;  %4261 = vmatpush.msra.mxu1 %v8655_v47 }
 0x53e   :  { %4199 = vmatpush.msrb.mxu0 %v8658_v63  ;;  %4227 = vmatpush.msrb.mxu2 %v8660_v8  ;;  %v4028_v6 = vadd.f32 %v4027_v37, %v4026_v30  ;;  %v8735_v30 = vld [vmem:[#allocation20 + $0x38] sm:$0xff]  ;;  %v4025_v37 = vadd.f32 %v4024_v27, %v4023_v21  ;;  %v4015_v21 = vrot.slane %v4014_v42, 2 }
 0x53f   :  { %4247 = vmatpush.msrb.mxu3 %v8670_v22  ;;  %4262 = vmatpush.msra.mxu1 %v8672_v58  ;;  %v8756_v27 = vld [vmem:[#allocation20 + $0x198] sm:$0xff] }
 0x540   :  { %4200 = vmatpush.msrb.mxu0 %v8675_v41  ;;  %4228 = vmatpush.msrb.mxu2 %v8677_v43  ;;  %v4029_v28 = vrot.slane %v4028_v6, 2 }
 0x541   :  { %4248 = vmatpush.msrb.mxu3 %v8682_v11  ;;  %4263 = vmatpush.msra.mxu1 %v8684_v52  ;;  %v4103_v11 = vld [vmem:[#allocation20] sm:$0xff] }
 0x542   :  { %4201 = vmatpush.msrb.mxu0 %v8687_v24  ;;  %v4030_v45 = vadd.f32 %v4029_v28, %v4028_v6  ;;  %4229 = vmatpush.msrb.mxu2 %v8689_v17  ;;  %v8740_v28 = vld [vmem:[#allocation20 + $0x1a8] sm:$0xff] }
 0x543   :  { %4249 = vmatpush.msrb.mxu3 %v8696_v53  ;;  %4264 = vmatpush.msra.mxu1 %v8698_v4 }
 0x544   :  { %v4031_v38 = vrot.slane %v4030_v45, 1  ;;  %4202 = vmatpush.msrb.mxu0 %v8701_v61  ;;  %4230 = vmatpush.msrb.mxu2 %v8703_v54 }
 0x545   :  { %4250 = vmatpush.msrb.mxu3 %v8708_v5  ;;  %4265 = vmatpush.msra.mxu1 %v8710_v1  ;;  %v4104_v5 = vld [vmem:[#allocation20 + $0x8] sm:$0xff] }
 0x546   :  { %4203 = vmatpush.msrb.mxu0 %v8713_v19  ;;  %4231 = vmatpush.msrb.mxu2 %v8715_v0  ;;  %v4032_v6 = vadd.f32 %v4031_v38, %v4030_v45  ;;  %v4055_v45 = vmul.f32 %v8666_v23, %v8666_v23  ;;  %v8758_v38 = vld [vmem:[#allocation20 + $0x20] sm:$0xff] }
 0x547   :  { %4251 = vmatpush.msrb.mxu3 %v8720_v49  ;;  %4266 = vmatpush.msra.mxu1 %v8722_v26  ;;  %v3689_v49 = vpop.f32.mrf.mxu1 }
 0x548   :  { %4204 = vmatpush.msrb.mxu0 %v8725_v3  ;;  %4232 = vmatpush.msrb.mxu2 %v8727_v44  ;;  %v4061_v23 = vsel %vm341_vm0, %v4055_v45, 0.0 }
 0x549   :  { %4252 = vmatpush.msrb.mxu3 %v8732_v29  ;;  %4233 = vmatmul.f32.vlgmr.msrb.gmra.mxu2 %v4025_v37  ;;  %v4016_v37 = vadd.f32 %v4015_v21, %v4014_v42  ;;  %v8773_v29 = vld [vmem:[#allocation20 + $0x10] sm:$0xff]  ;;  %v8778_v42 = vld [vmem:[#allocation20 + $0x180] sm:$0xff]  ;;  %v4062_v45 = vrot.slane %v4061_v23, 4 }
 0x54a   :  { %4205 = vmatpush.msrb.mxu0 %v8735_v30  ;;  %4267 = vmatpush.msra.mxu1 %v8740_v28 }
 0x54b   :  { %4320 = vmatpush.msra.mxu3 %v8632_v56  ;;  %v8763_v56 = vld [vmem:[#allocation20 + $0x190] sm:$0xff]  ;;  %v4017_v21 = vrot.slane %v4016_v37, 1  ;;  %v4063_v22 = vadd.f32 %v4062_v45, %v4061_v23 }
 0x54c   :  { %4253 = vmatmul.f32.vlgmr.msrb.gmra.mxu3 %v4032_v6  ;;  %4206 = vmatpush.msrb.mxu0 %v8743_v2  ;;  %v8765_v6 = vld [vmem:[#allocation20 + $0x18] sm:$0xff] }
 0x54d   :  { %4321 = vmatpush.msra.mxu3 %v8645_v9  ;;  %4268 = vmatpush.msra.mxu1 %v8747_v25  ;;  %v8771_v9 = vld [vmem:[#allocation20 + $0x188] sm:$0xff]  ;;  %v4064_v23 = vrot.slane %v4063_v22, 2 }
 0x54e   :  { %4207 = vmatpush.msrb.mxu0 %v8749_v10 }
 0x54f   :  { %4322 = vmatpush.msra.mxu3 %v8658_v63  ;;  %4269 = vmatpush.msra.mxu1 %v8756_v27  ;;  %v3669_v63 = vpop.f32.mrf.mxu3 }
 0x550   :  { %4208 = vmatpush.msrb.mxu0 %v8758_v38  ;;  %v3690_v53 = vadd.f32 %v3689_v49, %v3669_v63  ;;  %v4181_v63 = vld [vmem:[#allocation20 + $0x270] sm:$0xff] }
 0x551   :  { %4323 = vmatpush.msra.mxu3 %v8675_v41  ;;  %4270 = vmatpush.msra.mxu1 %v8763_v56  ;;  %v3709_v41 = vpop.f32.mrf.mxu2 }
 0x552   :  { %4209 = vmatpush.msrb.mxu0 %v8765_v6  ;;  %v3710_v55 = vadd.f32 %v3709_v41, %v3690_v53 }
 0x553   :  { %4324 = vmatpush.msra.mxu3 %v8687_v24  ;;  %4271 = vmatpush.msra.mxu1 %v8771_v9  ;;  %v4018_v24 = vadd.f32 %v4017_v21, %v4016_v37 }
 0x554   :  { %4210 = vmatpush.msrb.mxu0 %v8773_v29 }
 0x555   :  { %4325 = vmatpush.msra.mxu3 %v8701_v61  ;;  %4272 = vmatpush.msra.mxu1 %v8778_v42  ;;  %v4056_v61 = vmul.f32 %v8583_v13, %v8583_v13 }
 0x556   :  { %4211 = vmatpush.msrb.mxu0 %v4104_v5 }
 0x557   :  { %4326 = vmatpush.msra.mxu3 %v8713_v19  ;;  %4340 = vmatpush.msrb.mxu1 %v8566_v51  ;;  %v3749_v35 = vpop.f32.mrf.mxu3  ;;  %v4180_v51 = vld [vmem:[#allocation20 + $0x268] sm:$0xff]  ;;  %v3769_v19 = vpop.f32.mrf.mxu1 }
 0x558   :  { %4212 = vmatpush.msrb.mxu0 %v4103_v11  ;;  %v3729_v33 = vpop.f32.mrf.mxu0 }
 0x559   :  { %4327 = vmatpush.msra.mxu3 %v8725_v3  ;;  %4213 = vmatmul.f32.vlgmr.msrb.gmra.mxu0 %v4018_v24  ;;  %v3730_v49 = vadd.f32 %v3729_v33, %v3710_v55  ;;  %v4068_v3 = vsel %vm341_vm0, %v4056_v61, 0.0  ;;  %v4065_v33 = vadd.f32 %v4064_v23, %v4063_v22  ;;  %v4176_v22 = vld [vmem:[#allocation20 + $0x248] sm:$0xff] }
 0x55a   :  { %4341 = vmatpush.msrb.mxu1 %v8571_v34  ;;  %4277 = vmatpush.msra.mxu0 %v4182_v7  ;;  %v4179_v34 = vld [vmem:[#allocation20 + $0x260] sm:$0xff]  ;;  %v4069_v55 = vrot.slane %v4068_v3, 4 }
 0x55b   :  { %4328 = vmatpush.msra.mxu3 %v8735_v30  ;;  %v3750_v53 = vadd.f32 %v3749_v35, %v3730_v49  ;;  %v4177_v30 = vld [vmem:[#allocation20 + $0x250] sm:$0xff] }
 0x55c   :  { %4342 = vmatpush.msrb.mxu1 %v8579_v20  ;;  %4278 = vmatpush.msra.mxu0 %v4181_v63  ;;  %v4178_v20 = vld [vmem:[#allocation20 + $0x258] sm:$0xff]  ;;  %v4070_v21 = vadd.f32 %v4069_v55, %v4068_v3  ;;  %v4185_v49 = vld [vmem:[#allocation20 + $0x290] sm:$0xff] }
 0x55d   :  { %4329 = vmatpush.msra.mxu3 %v8743_v2  ;;  %v8794_v37 = vadd.f32 %v3769_v19, %v3750_v53  ;;  %v4184_v53 = vld [vmem:[#allocation20 + $0x288] sm:$0xff] }
 0x55e   :  { %4343 = vmatpush.msrb.mxu1 %v8589_v12  ;;  %4279 = vmatpush.msra.mxu0 %v4180_v51  ;;  %v4071_v24 = vrot.slane %v4070_v21, 2 }
 0x55f   :  { %4330 = vmatpush.msra.mxu3 %v8749_v10  ;;  %v4033_v35 = vsel %vm341_vm0, %v8794_v37, 0.0  ;;  %v4066_v10 = vrot.slane %v4065_v33, 1 }
 0x560   :  { %4344 = vmatpush.msrb.mxu1 %v8595_v39  ;;  %v4034_v2 = vrot.slane %v4033_v35, 4  ;;  %4280 = vmatpush.msra.mxu0 %v4179_v34  ;;  %v4175_v39 = vld [vmem:[#allocation20 + $0x240] sm:$0xff] }
 0x561   :  { %4331 = vmatpush.msra.mxu3 %v8758_v38 }
 0x562   :  { %4345 = vmatpush.msrb.mxu1 %v8607_v46  ;;  %v4035_v12 = vadd.f32 %v4034_v2, %v4033_v35  ;;  %4281 = vmatpush.msra.mxu0 %v4178_v20  ;;  %v4067_v46 = vadd.f32 %v4066_v10, %v4065_v33 }
 0x563   :  { %4332 = vmatpush.msra.mxu3 %v8765_v6  ;;  %v4174_v6 = vld [vmem:[#allocation20 + $0x238] sm:$0xff] }
 0x564   :  { %4346 = vmatpush.msrb.mxu1 %v8615_v32  ;;  %v4036_v45 = vrot.slane %v4035_v12, 2  ;;  %4282 = vmatpush.msra.mxu0 %v4177_v30  ;;  %v4173_v32 = vld [vmem:[#allocation20 + $0x230] sm:$0xff] }
 0x565   :  { %4333 = vmatpush.msra.mxu3 %v8773_v29 }
 0x566   :  { %4347 = vmatpush.msrb.mxu1 %v8625_v15  ;;  %v4037_v38 = vadd.f32 %v4036_v45, %v4035_v12  ;;  %4283 = vmatpush.msra.mxu0 %v4176_v22  ;;  %v4172_v15 = vld [vmem:[#allocation20 + $0x228] sm:$0xff] }
 0x567   :  { %4334 = vmatpush.msra.mxu3 %v4104_v5  ;;  %v4072_v5 = vadd.f32 %v4071_v24, %v4070_v21  ;;  %v9531_v24 = vld [vmem:[#allocation48_spill] sm:$0xff] }
 0x568   :  { %4348 = vmatpush.msrb.mxu1 %v8634_v40  ;;  %v4038_v41 = vrot.slane %v4037_v38, 1  ;;  %4284 = vmatpush.msra.mxu0 %v4175_v39  ;;  %v4171_v40 = vld [vmem:[#allocation20 + $0x220] sm:$0xff] }
 0x569   :  { %4335 = vmatpush.msra.mxu3 %v4103_v11  ;;  %v4170_v11 = vld [vmem:[#allocation20 + $0x218] sm:$0xff] }
 0x56a   :  { %4336 = vmatmul.f32.vlgmr.msra.gmra.mxu3 %v4067_v46  ;;  %4349 = vmatpush.msrb.mxu1 %v8647_v60  ;;  %v4039_v29 = vadd.f32 %v4038_v41, %v4037_v38  ;;  %v4073_v60 = vrot.slane %v4072_v5, 1  ;;  %v9526_v38 = vld [vmem:[#allocation41_spill] sm:$0xff]  ;;  %v9527_v46 = vld [vmem:[#allocation42_spill] sm:$0xff] }
 0x56b   :  { %4285 = vmatpush.msra.mxu0 %v4174_v6  ;;  %4400 = vmatpush.msrb.mxu3 %v4182_v7  ;;  %v4169_v7 = vld [vmem:[#allocation20 + $0x210] sm:$0xff]  ;;  %v9529_v41 = vld [vmem:[#allocation46_spill] sm:$0xff] }
 0x56c   :  { %4350 = vmatpush.msrb.mxu1 %v8660_v8  ;;  %v4168_v8 = vld [vmem:[#allocation20 + $0x208] sm:$0xff]  ;;  %v4074_v61 = vadd.f32 %v4073_v60, %v4072_v5  ;;  %v9533_v5 = vld [vmem:[#allocation38_spill] sm:$0xff] }
 0x56d   :  { %4273 = vmatmul.f32.vlgmr.msra.gmra.mxu1 %v4039_v29  ;;  %4286 = vmatpush.msra.mxu0 %v4173_v32 }
 0x56e   :  { %4351 = vmatpush.msrb.mxu1 %v8677_v43  ;;  %4401 = vmatpush.msrb.mxu3 %v4181_v63  ;;  %v4167_v43 = vld [vmem:[#allocation20 + $0x200] sm:$0xff]  ;;  %v4058_v63 = vmul.f32 %v8794_v37, %v8794_v37 }
 0x56f   :  { %4287 = vmatpush.msra.mxu0 %v4172_v15 }
 0x570   :  { %4352 = vmatpush.msrb.mxu1 %v8689_v17  ;;  %4402 = vmatpush.msrb.mxu3 %v4180_v51  ;;  %v4192_v17 = vld [vmem:[#allocation20 + $0x2c8] sm:$0xff]  ;;  %v4183_v51 = vld [vmem:[#allocation20 + $0x280] sm:$0xff] }
 0x571   :  { %4288 = vmatpush.msra.mxu0 %v4171_v40  ;;  %4303 = vmatpush.msra.mxu2 %v4192_v17 }
 0x572   :  { %4353 = vmatpush.msrb.mxu1 %v8703_v54  ;;  %4403 = vmatpush.msrb.mxu3 %v4179_v34  ;;  %v4191_v54 = vld [vmem:[#allocation20 + $0x2c0] sm:$0xff] }
 0x573   :  { %4289 = vmatpush.msra.mxu0 %v4170_v11  ;;  %4304 = vmatpush.msra.mxu2 %v4191_v54 }
 0x574   :  { %4354 = vmatpush.msrb.mxu1 %v8715_v0  ;;  %4404 = vmatpush.msrb.mxu3 %v4178_v20 }
 0x575   :  { %4290 = vmatpush.msra.mxu0 %v4169_v7 }
 0x576   :  { %4355 = vmatpush.msrb.mxu1 %v8727_v44  ;;  %4405 = vmatpush.msrb.mxu3 %v4177_v30 }
 0x577   :  { %4356 = vmatmul.f32.vlgmr.msrb.gmra.mxu1 %v4074_v61  ;;  %4291 = vmatpush.msra.mxu0 %v4168_v8 }
 0x578   :  { %4406 = vmatpush.msrb.mxu3 %v4176_v22  ;;  %4426 = vmatpush.msra.mxu1 %v4192_v17 }
 0x579   :  { %4292 = vmatpush.msra.mxu0 %v4167_v43 }
 0x57a   :  { %4407 = vmatpush.msrb.mxu3 %v4175_v39  ;;  %4427 = vmatpush.msra.mxu1 %v4191_v54  ;;  %v9525_v39 = vld [vmem:[#allocation40_spill] sm:$0xff] }
 0x57b   :  { %4380 = vmatpush.msrb.mxu0 %v8603_v31  ;;  %v4190_v31 = vld [vmem:[#allocation20 + $0x2b8] sm:$0xff] }
 0x57c   :  { %4408 = vmatpush.msrb.mxu3 %v4174_v6  ;;  %4305 = vmatpush.msra.mxu2 %v4190_v31  ;;  %v9528_v6 = vld [vmem:[#allocation44_spill] sm:$0xff] }
 0x57d   :  { %4381 = vmatpush.msrb.mxu0 %v8612_v48  ;;  %v3809_v48 = vpop.f32.mrf.mxu0  ;;  %4428 = vmatpush.msra.mxu1 %v4190_v31 }
 0x57e   :  { %4409 = vmatpush.msrb.mxu3 %v4173_v32  ;;  %v9532_v32 = vld [vmem:[#allocation49_spill] sm:$0xff] }
 0x57f   :  { %4382 = vmatpush.msrb.mxu0 %v8622_v36  ;;  %v4189_v36 = vld [vmem:[#allocation20 + $0x2b0] sm:$0xff] }
 0x580   :  { %4410 = vmatpush.msrb.mxu3 %v4172_v15  ;;  %4306 = vmatpush.msra.mxu2 %v4189_v36 }
 0x581   :  { %4383 = vmatpush.msrb.mxu0 %v8641_v14  ;;  %v3789_v14 = vpop.f32.mrf.mxu2  ;;  %4429 = vmatpush.msra.mxu1 %v4189_v36 }
 0x582   :  { %4411 = vmatpush.msrb.mxu3 %v4171_v40  ;;  %v3810_v0 = vadd.f32 %v3809_v48, %v3789_v14  ;;  %v9534_v40 = vld [vmem:[#allocation39_spill] sm:$0xff] }
 0x583   :  { %4384 = vmatpush.msrb.mxu0 %v8655_v47  ;;  %v4188_v47 = vld [vmem:[#allocation20 + $0x2a8] sm:$0xff] }
 0x584   :  { %4412 = vmatpush.msrb.mxu3 %v4170_v11  ;;  %4307 = vmatpush.msra.mxu2 %v4188_v47 }
 0x585   :  { %4385 = vmatpush.msrb.mxu0 %v8672_v58  ;;  %v4187_v58 = vld [vmem:[#allocation20 + $0x2a0] sm:$0xff]  ;;  %4430 = vmatpush.msra.mxu1 %v4188_v47 }
 0x586   :  { %4413 = vmatpush.msrb.mxu3 %v4169_v7  ;;  %4308 = vmatpush.msra.mxu2 %v4187_v58  ;;  %v9535_v7 = vld [vmem:[#allocation43_spill] sm:$0xff] }
 0x587   :  { %4386 = vmatpush.msrb.mxu0 %v8684_v52  ;;  %v3829_v52 = vpop.f32.mrf.mxu1  ;;  %4431 = vmatpush.msra.mxu1 %v4187_v58 }
 0x588   :  { %4414 = vmatpush.msrb.mxu3 %v4168_v8  ;;  %v3830_v44 = vadd.f32 %v3829_v52, %v3810_v0  ;;  %v4057_v8 = vmul.f32 %v9535_v7, %v9535_v7 }
 0x589   :  { %4387 = vmatpush.msrb.mxu0 %v8698_v4  ;;  %v4186_v4 = vld [vmem:[#allocation20 + $0x298] sm:$0xff] }
 0x58a   :  { %4415 = vmatpush.msrb.mxu3 %v4167_v43  ;;  %4309 = vmatpush.msra.mxu2 %v4186_v4  ;;  %v3869_v23 = vpop.f32.mrf.mxu2  ;;  %v4075_v31 = vsel %vm341_vm0, %v4057_v8, 0.0 }
 0x58b   :  { %4388 = vmatpush.msrb.mxu0 %v8710_v1  ;;  %v3849_v1 = vpop.f32.mrf.mxu3  ;;  %4432 = vmatpush.msra.mxu1 %v4186_v4  ;;  %v4076_v47 = vrot.slane %v4075_v31, 4 }
 0x58c   :  { %4310 = vmatpush.msra.mxu2 %v4185_v49 }
 0x58d   :  { %4389 = vmatpush.msrb.mxu0 %v8722_v26  ;;  %v3850_v26 = vadd.f32 %v3849_v1, %v3830_v44  ;;  %4433 = vmatpush.msra.mxu1 %v4185_v49  ;;  %v4077_v4 = vadd.f32 %v4076_v47, %v4075_v31 }
 0x58e   :  { %4311 = vmatpush.msra.mxu2 %v4184_v53 }
 0x58f   :  { %4390 = vmatpush.msrb.mxu0 %v8740_v28  ;;  %v4082_v28 = vsel %vm341_vm0, %v4058_v63, 0.0  ;;  %v3870_v19 = vadd.f32 %v3869_v23, %v3850_v26  ;;  %4434 = vmatpush.msra.mxu1 %v4184_v53  ;;  %v3909_v29 = vpop.f32.mrf.mxu1  ;;  %v4078_v53 = vrot.slane %v4077_v4, 2 }
 0x590   :  { %4312 = vmatpush.msra.mxu2 %v4183_v51  ;;  %v4083_v34 = vrot.slane %v4082_v28, 4 }
 0x591   :  { %4391 = vmatpush.msrb.mxu0 %v8747_v25  ;;  %4435 = vmatpush.msra.mxu1 %v4183_v51 }
 0x592   :  { %4360 = vmatpush.msrb.mxu2 %v8568_v16  ;;  %v4084_v20 = vadd.f32 %v4083_v34, %v4082_v28 }
 0x593   :  { %4392 = vmatpush.msrb.mxu0 %v8756_v27 }
 0x594   :  { %v3889_v3 = vpop.f32.mrf.mxu0  ;;  %4361 = vmatpush.msrb.mxu2 %v8576_v62  ;;  %v4085_v30 = vrot.slane %v4084_v20, 2  ;;  %v3929_v15 = vpop.f32.mrf.mxu3 }
 0x595   :  { %4393 = vmatpush.msrb.mxu0 %v8763_v56  ;;  %v8832_v25 = vadd.f32 %v3889_v3, %v3870_v19  ;;  %v3930_v11 = vadd.f32 %v3929_v15, %v3909_v29  ;;  %v4079_v3 = vadd.f32 %v4078_v53, %v4077_v4  ;;  %v8870_v29 = vld [vmem:[#allocation22 + $0x20] sm:$0xff]  ;;  %v4850_v53 = vld [vmem:[#allocation23 + $0x2d0] sm:$0xff] }
 0x596   :  { %4362 = vmatpush.msrb.mxu2 %v8586_v57  ;;  %v4086_v45 = vadd.f32 %v4085_v30, %v4084_v20 }
 0x597   :  { %4394 = vmatpush.msrb.mxu0 %v8771_v9  ;;  %v4040_v27 = vsel %vm341_vm0, %v8832_v25, 0.0  ;;  %v4059_v33 = vmul.f32 %v8832_v25, %v8832_v25 }
 0x598   :  { %v4041_v56 = vrot.slane %v4040_v27, 4  ;;  %4363 = vmatpush.msrb.mxu2 %v8592_v59  ;;  %v4087_v59 = vrot.slane %v4086_v45, 1 }
 0x599   :  { %4395 = vmatpush.msrb.mxu0 %v8778_v42  ;;  %v4089_v35 = vsel %vm341_vm0, %v4059_v33, 0.0 }
 0x59a   :  { %v4042_v9 = vadd.f32 %v4041_v56, %v4040_v27  ;;  %v4090_v55 = vrot.slane %v4089_v35, 4  ;;  %4364 = vmatpush.msrb.mxu2 %v8601_v18  ;;  %v4088_v18 = vadd.f32 %v4087_v59, %v4086_v45  ;;  %v4080_v56 = vrot.slane %v4079_v3, 1  ;;  %v4469_v59 = vld [vmem:[#allocation22 + $0x48] sm:$0xff] }
 0x59c   :  { %v4043_v16 = vrot.slane %v4042_v9, 2  ;;  %v4091_v2 = vadd.f32 %v4090_v55, %v4089_v35  ;;  %4365 = vmatpush.msrb.mxu2 %v8610_v50  ;;  %v9530_v50 = vld [vmem:[#allocation47_spill] sm:$0xff]  ;;  %v4081_v35 = vadd.f32 %v4080_v56, %v4079_v3  ;;  %v5132_v56 = vld [vmem:[#allocation23 + $0xba0] sm:$0xff] }
 0x59e   :  { %v4044_v12 = vadd.f32 %v4043_v16, %v4042_v9  ;;  %v4092_v10 = vrot.slane %v4091_v2, 2  ;;  %4366 = vmatpush.msrb.mxu2 %v9525_v39 }
 0x5a0   :  { %v4045_v42 = vrot.slane %v4044_v12, 1  ;;  %v4093_v22 = vadd.f32 %v4092_v10, %v4091_v2  ;;  %4367 = vmatpush.msrb.mxu2 %v9526_v38  ;;  %v4467_v38 = vld [vmem:[#allocation22 + $0x38] sm:$0xff] }
 0x5a1   :  { %4509 = vmatpush.msrb.mxu1 %v4467_v38 }
 0x5a2   :  { %v4046_v62 = vadd.f32 %v4045_v42, %v4044_v12  ;;  %v4094_v21 = vrot.slane %v4093_v22, 1  ;;  %4368 = vmatpush.msrb.mxu2 %v9527_v46 }
 0x5a4   :  { %4293 = vmatmul.f32.vlgmr.msra.gmra.mxu0 %v4046_v62  ;;  %v4095_v57 = vadd.f32 %v4094_v21, %v4093_v22  ;;  %4369 = vmatpush.msrb.mxu2 %v9528_v6 }
 0x5a5   :  { %4549 = vmatpush.msra.mxu0 %v4469_v59 }
 0x5a6   :  { %4416 = vmatmul.f32.vlgmr.msrb.gmra.mxu3 %v4095_v57  ;;  %4370 = vmatpush.msrb.mxu2 %v9529_v41  ;;  %v4466_v57 = vld [vmem:[#allocation22 + $0x30] sm:$0xff]  ;;  %v4460_v41 = vld [vmem:[#allocation22] sm:$0xff] }
 0x5a8   :  { %4371 = vmatpush.msrb.mxu2 %v9530_v50  ;;  %v4461_v50 = vld [vmem:[#allocation22 + $0x8] sm:$0xff] }
 0x5a9   :  { %4510 = vmatpush.msrb.mxu1 %v4461_v50 }
 0x5aa   :  { %4372 = vmatpush.msrb.mxu2 %v9531_v24 }
 0x5ac   :  { %4396 = vmatmul.f32.vlgmr.msrb.gmra.mxu0 %v4088_v18  ;;  %4373 = vmatpush.msrb.mxu2 %v9532_v32  ;;  %v3969_v43 = vpop.f32.mrf.mxu2  ;;  %v8867_v18 = vld [vmem:[#allocation22 + $0x50] sm:$0xff]  ;;  %v4463_v32 = vld [vmem:[#allocation22 + $0x18] sm:$0xff] }
 0x5ad   :  { %v4009_v36 = vpop.f32.mrf.mxu3  ;;  %4569 = vmatpush.msra.mxu3 %v8867_v18  ;;  %4550 = vmatpush.msra.mxu0 %v4463_v32 }
 0x5ae   :  { %4374 = vmatpush.msrb.mxu2 %v9533_v5  ;;  %v3989_v54 = vpop.f32.mrf.mxu1 }
 0x5af   :  { %4570 = vmatpush.msra.mxu3 %v8870_v29  ;;  %4632 = vmatpush.msrb.mxu0 %v4467_v38  ;;  %v5024_v38 = vld [vmem:[#allocation23 + $0x840] sm:$0xff] }
 0x5b0   :  { %4375 = vmatpush.msrb.mxu2 %v9534_v40  ;;  %v4468_v40 = vld [vmem:[#allocation22 + $0x40] sm:$0xff] }
 0x5b1   :  { %4652 = vmatpush.msrb.mxu3 %v4468_v40  ;;  %4633 = vmatpush.msrb.mxu0 %v4461_v50  ;;  %v4796_v50 = vld [vmem:[#allocation23 + $0x120] sm:$0xff] }
 0x5b6   :  { %v3949_v60 = vpop.f32.mrf.mxu0 }
 0x5b7   :  { %v3950_v61 = vadd.f32 %v3949_v60, %v3930_v11  ;;  %v4471_v11 = vld [vmem:[#allocation22 + $0x58] sm:$0xff]  ;;  %v4462_v60 = vld [vmem:[#allocation22 + $0x10] sm:$0xff] }
 0x5b8   :  { %4653 = vmatpush.msrb.mxu3 %v4462_v60 }
 0x5b9   :  { %v3970_v17 = vadd.f32 %v3969_v43, %v3950_v61  ;;  %v4465_v43 = vld [vmem:[#allocation22 + $0x28] sm:$0xff] }
 0x5bb   :  { %v3990_v48 = vadd.f32 %v3989_v54, %v3970_v17 }
 0x5bd   :  { %v8860_v14 = vadd.f32 %v4009_v36, %v3990_v48 }
 0x5bf   :  { %v4048_v0 = vsel %vm4047_vm8, %v8860_v14, 0.0  ;;  %v4060_v58 = vmul.f32 %v8860_v14, %v8860_v14 }
 0x5c0   :  { %v4049_v52 = vrot.slane %v4048_v0, 4 }
 0x5c1   :  { %v4096_v44 = vsel %vm4047_vm8, %v4060_v58, 0.0 }
 0x5c2   :  { %v4050_v49 = vadd.f32 %v4049_v52, %v4048_v0  ;;  %v4097_v63 = vrot.slane %v4096_v44, 4 }
 0x5c4   :  { %v4051_v1 = vrot.slane %v4050_v49, 2  ;;  %v4098_v23 = vadd.f32 %v4097_v63, %v4096_v44 }
 0x5c6   :  { %v4052_v26 = vadd.f32 %v4051_v1, %v4050_v49  ;;  %v4099_v51 = vrot.slane %v4098_v23, 2  ;;  %v4444_v49 = vld [vmem:[%s9414_s15] sm:$0x1] }
 0x5c8   :  { %v4053_v28 = vrot.slane %v4052_v26, 1  ;;  %v4100_v19 = vadd.f32 %v4099_v51, %v4098_v23 }
 0x5ca   :  { %v4054_v34 = vadd.f32 %v4053_v28, %v4052_v26  ;;  %v4101_v27 = vrot.slane %v4100_v19, 1  ;;  %v4844_v26 = vld [vmem:[#allocation23 + $0x2a0] sm:$0xff] }
 0x5cb   :  { %v4457_v28 = vld [vmem:[%s9415_s16] sm:$0x1] }
 0x5cc   :  { %7248 = vmatmul.msk.f32.vlgmr.msra.gmra.mxu2 %vm4193_vm9, %v4054_v34  ;;  %v4102_v33 = vadd.f32 %v4101_v27, %v4100_v19  ;;  %v4234_v20 = vpop.f32.mrf.mxu2  ;;  %v4838_v19 = vld [vmem:[#allocation23 + $0x270] sm:$0xff] }
 0x5cd   :  { %4489 = vmatpush.msra.mxu2 %v4466_v57  ;;  %v5138_v34 = vld [vmem:[#allocation23 + $0xbd0] sm:$0xff] }
 0x5ce   :  { %7249 = vmatmul.msk.f32.vlgmr.msra.gmra.mxu1 %vm4193_vm9, %v4102_v33  ;;  %v4946_v27 = vld [vmem:[#allocation23 + $0x5d0] sm:$0xff]  ;;  %v4832_v33 = vld [vmem:[#allocation23 + $0x240] sm:$0xff] }
 0x5cf   :  { %v4254_v16 = vpop.f32.mrf.mxu3  ;;  %4490 = vmatpush.msra.mxu2 %v4460_v41  ;;  %4589 = vmatpush.msra.mxu1 %v4471_v11 }
 0x5d1   :  { %4590 = vmatpush.msra.mxu1 %v4465_v43 }
 0x5d4   :  { %4376 = vmatmul.f32.vlgmr.msrb.gmra.mxu2 %v4081_v35  ;;  %v4940_v35 = vld [vmem:[#allocation23 + $0x5a0] sm:$0xff] }
 0x5d5   :  { %4529 = vmatpush.msrb.mxu2 %v4468_v40  ;;  %v4898_v40 = vld [vmem:[#allocation23 + $0x450] sm:$0xff] }
 0x5d6   :  { %v4214_v9 = vpop.f32.mrf.mxu0 }
 0x5d7   :  { %v4235_v2 = vadd.f32 %v4234_v20, %v4214_v9  ;;  %4530 = vmatpush.msrb.mxu2 %v4462_v60  ;;  %v4826_v20 = vld [vmem:[#allocation23 + $0x210] sm:$0xff]  ;;  %v4784_v60 = vld [vmem:[#allocation23 + $0xc0] sm:$0xff] }
 0x5d8   :  { %v5126_v9 = vld [vmem:[#allocation23 + $0xb70] sm:$0xff] }
 0x5d9   :  { %v4255_v10 = vadd.f32 %v4254_v16, %v4235_v2  ;;  %v4820_v16 = vld [vmem:[#allocation23 + $0x1e0] sm:$0xff]  ;;  %v5042_v2 = vld [vmem:[#allocation23 + $0x8d0] sm:$0xff] }
 0x5ea   :  { %v4274_v55 = vpop.f32.mrf.mxu1 }
 0x5eb   :  { %v4275_v62 = vadd.f32 %v4274_v55, %v4255_v10  ;;  %v4934_v55 = vld [vmem:[#allocation23 + $0x570] sm:$0xff]  ;;  %v5036_v10 = vld [vmem:[#allocation23 + $0x8a0] sm:$0xff] }
 0x5ed   :  { %v4337_v42 = vpop.f32.mrf.mxu3 }
 0x5f4   :  { %v4357_v22 = vpop.f32.mrf.mxu1 }
 0x5f5   :  { %v4358_v21 = vadd.f32 %v4357_v22, %v4337_v42  ;;  %v4814_v42 = vld [vmem:[#allocation23 + $0x1b0] sm:$0xff] }
 0x5f6   :  { %v5114_v22 = vld [vmem:[#allocation23 + $0xb10] sm:$0xff] }
 0x621   :  { %v4294_v30 = vpop.f32.mrf.mxu0 }
 0x622   :  { %v4295_v45 = vadd.f32 %v4294_v30, %v4275_v62  ;;  %v5120_v30 = vld [vmem:[#allocation23 + $0xb40] sm:$0xff]  ;;  %v4922_v62 = vld [vmem:[#allocation23 + $0x510] sm:$0xff] }
 0x629   :  { %v4397_v24 = vpop.f32.mrf.mxu0  ;;  %v4417_v5 = vpop.f32.mrf.mxu3 }
 0x64b   :  { %v4437_v17 = vpop.f32.mrf.mxu1 }
 0x64f   :  { %v4314_v12 = vpop.f32.mrf.mxu2 }
 0x650   :  { %v4315_v46 = vadd.f32 %v4314_v12, %v4295_v45  ;;  %v4928_v12 = vld [vmem:[#allocation23 + $0x540] sm:$0xff] }
 0x651   :  { %v4808_v45 = vld [vmem:[#allocation23 + $0x180] sm:$0xff] }
 0x652   :  { %v4440_v8 = vmul.f32 0.011111111, %v4315_v46  ;;  %v5102_v46 = vld [vmem:[#allocation23 + $0xab0] sm:$0xff] }
 0x654   :  { %v4442_v31 = vmul.f32 %v4440_v8, %v4440_v8 }
 0x657   :  { %v4377_v39 = vpop.f32.mrf.mxu2 }
 0x658   :  { %v4378_v6 = vadd.f32 %v4377_v39, %v4358_v21  ;;  %v5030_v21 = vld [vmem:[#allocation23 + $0x870] sm:$0xff]  ;;  %v5108_v39 = vld [vmem:[#allocation23 + $0xae0] sm:$0xff] }
 0x65a   :  { %v4398_v15 = vadd.f32 %v4397_v24, %v4378_v6  ;;  %v5018_v6 = vld [vmem:[#allocation23 + $0x810] sm:$0xff]  ;;  %v5012_v24 = vld [vmem:[#allocation23 + $0x7e0] sm:$0xff] }
 0x65c   :  { %v4418_v61 = vadd.f32 %v4417_v5, %v4398_v15  ;;  %v4790_v15 = vld [vmem:[#allocation23 + $0xf0] sm:$0xff] }
 0x65d   :  { %v5006_v5 = vld [vmem:[#allocation23 + $0x7b0] sm:$0xff] }
 0x65e   :  { %v4438_v54 = vadd.f32 %v4437_v17, %v4418_v61  ;;  %v4892_v61 = vld [vmem:[#allocation23 + $0x420] sm:$0xff]  ;;  %v4778_v17 = vld [vmem:[#allocation23 + $0x90] sm:$0xff] }
 0x660   :  { %v4441_v48 = vmul.f32 0.011111111, %v4438_v54  ;;  %v4994_v54 = vld [vmem:[#allocation23 + $0x750] sm:$0xff] }
 0x662   :  { %v4443_v36 = vsub.f32 %v4441_v48, %v4442_v31  ;;  %v4886_v31 = vld [vmem:[#allocation23 + $0x3f0] sm:$0xff]  ;;  %v5072_v48 = vld [vmem:[#allocation23 + $0x9c0] sm:$0xff] }
 0x664   :  { %v4445_v47 = vadd.f32 1e-05, %v4443_v36  ;;  %v4772_v36 = vld [vmem:[#allocation23 + $0x60] sm:$0xff] }
 0x666   :  { %7313 = vrsqrt.f32 %v4445_v47  ;;  %vm4452_vm11 = vweird.f32 %v4445_v47 }
 0x66c   :  { %v7314_v0 = vpop.eup %7313 }
 0x66d   :  { %v4447_v58 = vmul.f32 %v7314_v0, %v4445_v47  ;;  %vm4453_vm10 = vweird.f32 %v7314_v0  ;;  %v4988_v47 = vld [vmem:[#allocation23 + $0x720] sm:$0xff] }
 0x66e   :  { %vm4454_vm12 = vmor %vm4452_vm11, %vm4453_vm10 }
 0x66f   :  { %v4448_v52 = vmul.f32 %v7314_v0, %v4447_v58  ;;  %v5066_v58 = vld [vmem:[#allocation23 + $0x990] sm:$0xff] }
 0x671   :  { %v4449_v44 = vmul.f32 0.5, %v4448_v52  ;;  %v4766_v52 = vld [vmem:[#allocation23 + $0x30] sm:$0xff] }
 0x673   :  { %v4450_v4 = vsub.f32 1.5, %v4449_v44  ;;  %v4982_v44 = vld [vmem:[#allocation23 + $0x6f0] sm:$0xff] }
 0x675   :  { %v4451_v63 = vmul.f32 %v7314_v0, %v4450_v4  ;;  %v4874_v4 = vld [vmem:[#allocation23 + $0x390] sm:$0xff] }
 0x677   :  { %v4455_v1 = vsel %vm4454_vm12, %v7314_v0, %v4451_v63  ;;  %v4880_v0 = vld [vmem:[#allocation23 + $0x3c0] sm:$0xff] }
 0x678   :  { %v4456_v23 = vmul.f32 %v4455_v1, %v4444_v49  ;;  %v5060_v49 = vld [vmem:[#allocation23 + $0x960] sm:$0xff] }
 0x679   :  { %v4760_v63 = vld [vmem:[#allocation23] sm:$0xff] }
 0x67a   :  { %7250 = vmatmul.msk.f32.vlgmr.msra.gmra.mxu2 %vm393_vm3, %v4456_v23  ;;  %7251 = vmatmul.msk.f32.vlgmr.msrb.gmra.mxu1 %vm393_vm3, %v4456_v23  ;;  %v4458_v51 = vmul.f32 %v4456_v23, %v4440_v8  ;;  %v5000_v8 = vld [vmem:[#allocation23 + $0x780] sm:$0xff] }
 0x67b   :  { %7253 = vmatmul.msk.f32.vlgmr.msra.gmra.mxu0 %vm393_vm3, %v4456_v23  ;;  %7254 = vmatmul.msk.f32.vlgmr.msra.gmra.mxu3 %vm393_vm3, %v4456_v23  ;;  %v4976_v1 = vld [vmem:[#allocation23 + $0x6c0] sm:$0xff] }
 0x67c   :  { %4612 = vmatpush.msra.mxu2 %v4466_v57  ;;  %4672 = vmatpush.msrb.mxu1 %v4469_v59  ;;  %v4459_v3 = vsub.f32 %v4457_v28, %v4458_v51  ;;  %v4916_v57 = vld [vmem:[#allocation23 + $0x4e0] sm:$0xff]  ;;  %v4802_v59 = vld [vmem:[#allocation23 + $0x150] sm:$0xff] }
 0x67d   :  { %4712 = vmatpush.msra.mxu0 %v4471_v11  ;;  %5303 = vmatpush.msra.mxu3 %v4850_v53  ;;  %v5084_v11 = vld [vmem:[#allocation23 + $0xa20] sm:$0xff]  ;;  %v5054_v53 = vld [vmem:[#allocation23 + $0x930] sm:$0xff] }
 0x67e   :  { %4613 = vmatpush.msra.mxu2 %v4460_v41  ;;  %4673 = vmatpush.msrb.mxu1 %v4463_v32  ;;  %v5096_v41 = vld [vmem:[#allocation23 + $0xa80] sm:$0xff]  ;;  %v4970_v51 = vld [vmem:[#allocation23 + $0x690] sm:$0xff] }
 0x67f   :  { %4713 = vmatpush.msra.mxu0 %v4465_v43  ;;  %5304 = vmatpush.msra.mxu3 %v4844_v26  ;;  %v4904_v32 = vld [vmem:[#allocation23 + $0x480] sm:$0xff]  ;;  %v5078_v43 = vld [vmem:[#allocation23 + $0x9f0] sm:$0xff] }
 0x680   :  { %v5234_v26 = vld [vmem:[#allocation23 + $0xed0] sm:$0xff] }
 0x681   :  { %5305 = vmatpush.msra.mxu3 %v4838_v19  ;;  %v4862_v28 = vld [vmem:[#allocation23 + $0x330] sm:$0xff]  ;;  %v5048_v19 = vld [vmem:[#allocation23 + $0x900] sm:$0xff] }
 0x682   :  { %7252 = vmatmul.msk.f32.vlgmr.msrb.gmra.mxu2 %vm393_vm3, %v4456_v23  ;;  %7255 = vmatmul.msk.f32.vlgmr.msra.gmra.mxu1 %vm393_vm3, %v4456_v23  ;;  %v4868_v23 = vld [vmem:[#allocation23 + $0x360] sm:$0xff] }
 0x683   :  { %7257 = vmatmul.msk.f32.vlgmr.msrb.gmra.mxu0 %vm393_vm3, %v4459_v3  ;;  %7258 = vmatmul.msk.f32.vlgmr.msrb.gmra.mxu3 %vm393_vm3, %v4459_v3 }
 0x684   :  { %4692 = vmatpush.msrb.mxu2 %v8867_v18  ;;  %5363 = vmatpush.msrb.mxu0 %v5138_v34  ;;  %v4910_v18 = vld [vmem:[#allocation23 + $0x4b0] sm:$0xff]  ;;  %v4947_v34 = vld [vmem:[#allocation23 + $0x5d8] sm:$0xff] }
 0x685   :  { %5323 = vmatpush.msra.mxu1 %v4946_v27  ;;  %5306 = vmatpush.msra.mxu3 %v4832_v33  ;;  %v4856_v27 = vld [vmem:[#allocation23 + $0x300] sm:$0xff]  ;;  %v4958_v33 = vld [vmem:[#allocation23 + $0x630] sm:$0xff] }
 0x686   :  { %4693 = vmatpush.msrb.mxu2 %v8870_v29  ;;  %5364 = vmatpush.msrb.mxu0 %v5132_v56  ;;  %v5090_v29 = vld [vmem:[#allocation23 + $0xa50] sm:$0xff]  ;;  %v4941_v56 = vld [vmem:[#allocation23 + $0x5a8] sm:$0xff] }
 0x687   :  { %5324 = vmatpush.msra.mxu1 %v4940_v35  ;;  %5307 = vmatpush.msra.mxu3 %v4826_v20  ;;  %v5294_v35 = vld [vmem:[#allocation23 + $0x10b0] sm:$0xff]  ;;  %v4952_v20 = vld [vmem:[#allocation23 + $0x600] sm:$0xff] }
 0x688   :  { %5365 = vmatpush.msrb.mxu0 %v5126_v9  ;;  %v4935_v9 = vld [vmem:[#allocation23 + $0x578] sm:$0xff] }
 0x689   :  { %5325 = vmatpush.msra.mxu1 %v4934_v55  ;;  %5308 = vmatpush.msra.mxu3 %v4820_v16  ;;  %v4851_v55 = vld [vmem:[#allocation23 + $0x2d8] sm:$0xff]  ;;  %v5288_v16 = vld [vmem:[#allocation23 + $0x1080] sm:$0xff] }
 0x68a   :  { %7256 = vmatmul.msk.f32.vlgmr.msra.gmra.mxu2 %vm393_vm3, %v4459_v3  ;;  %7259 = vmatmul.msk.f32.vlgmr.msrb.gmra.mxu1 %vm393_vm3, %v4459_v3 }
 0x68b   :  { %7261 = vmatmul.msk.f32.vlgmr.msra.gmra.mxu0 %vm393_vm3, %v4459_v3  ;;  %5343 = vmatpush.msra.mxu2 %v5042_v2  ;;  %v4929_v2 = vld [vmem:[#allocation23 + $0x548] sm:$0xff] }
 0x68c   :  { %5366 = vmatpush.msrb.mxu0 %v5120_v30  ;;  %5326 = vmatpush.msra.mxu1 %v4928_v12  ;;  %v4845_v30 = vld [vmem:[#allocation23 + $0x2a8] sm:$0xff]  ;;  %v4839_v12 = vld [vmem:[#allocation23 + $0x278] sm:$0xff] }
 0x68d   :  { %5344 = vmatpush.msra.mxu2 %v5036_v10  ;;  %5309 = vmatpush.msra.mxu3 %v4814_v42  ;;  %v4833_v10 = vld [vmem:[#allocation23 + $0x248] sm:$0xff]  ;;  %v5228_v42 = vld [vmem:[#allocation23 + $0xea0] sm:$0xff] }
 0x68e   :  { %5367 = vmatpush.msrb.mxu0 %v5114_v22  ;;  %5327 = vmatpush.msra.mxu1 %v4922_v62  ;;  %v5282_v22 = vld [vmem:[#allocation23 + $0x1050] sm:$0xff]  ;;  %v4827_v62 = vld [vmem:[#allocation23 + $0x218] sm:$0xff] }
 0x68f   :  { %5345 = vmatpush.msra.mxu2 %v5030_v21  ;;  %5310 = vmatpush.msra.mxu3 %v4808_v45  ;;  %v4923_v21 = vld [vmem:[#allocation23 + $0x518] sm:$0xff]  ;;  %v5222_v45 = vld [vmem:[#allocation23 + $0xe70] sm:$0xff] }
 0x690   :  { %5368 = vmatpush.msrb.mxu0 %v5108_v39  ;;  %5328 = vmatpush.msra.mxu1 %v4916_v57  ;;  %v5276_v39 = vld [vmem:[#allocation23 + $0x1020] sm:$0xff]  ;;  %v4821_v57 = vld [vmem:[#allocation23 + $0x1e8] sm:$0xff] }
 0x691   :  { %5346 = vmatpush.msra.mxu2 %v5024_v38  ;;  %5311 = vmatpush.msra.mxu3 %v4802_v59  ;;  %v4917_v38 = vld [vmem:[#allocation23 + $0x4e8] sm:$0xff]  ;;  %v5216_v59 = vld [vmem:[#allocation23 + $0xe40] sm:$0xff] }
 0x692   :  { %7260 = vmatmul.msk.f32.vlgmr.msrb.gmra.mxu2 %vm393_vm3, %v4459_v3  ;;  %5369 = vmatpush.msrb.mxu0 %v5102_v46  ;;  %v4964_v3 = vld [vmem:[#allocation23 + $0x660] sm:$0xff]  ;;  %v5270_v46 = vld [vmem:[#allocation23 + $0xff0] sm:$0xff] }
 0x693   :  { %5347 = vmatpush.msra.mxu2 %v5018_v6  ;;  %5329 = vmatpush.msra.mxu1 %v4910_v18  ;;  %v4815_v6 = vld [vmem:[#allocation23 + $0x1b8] sm:$0xff] }
 0x694   :  { %5370 = vmatpush.msrb.mxu0 %v5096_v41  ;;  %5312 = vmatpush.msra.mxu3 %v4796_v50  ;;  %v4911_v18 = vld [vmem:[#allocation23 + $0x4b8] sm:$0xff]  ;;  %v5210_v41 = vld [vmem:[#allocation23 + $0xe10] sm:$0xff]  ;;  %v5264_v50 = vld [vmem:[#allocation23 + $0xfc0] sm:$0xff] }
 0x695   :  { %5348 = vmatpush.msra.mxu2 %v5012_v24  ;;  %5330 = vmatpush.msra.mxu1 %v4904_v32  ;;  %v4809_v24 = vld [vmem:[#allocation23 + $0x188] sm:$0xff] }
 0x696   :  { %5371 = vmatpush.msrb.mxu0 %v5090_v29  ;;  %5313 = vmatpush.msra.mxu3 %v4790_v15  ;;  %v4905_v32 = vld [vmem:[#allocation23 + $0x488] sm:$0xff]  ;;  %v5204_v29 = vld [vmem:[#allocation23 + $0xde0] sm:$0xff]  ;;  %v5258_v15 = vld [vmem:[#allocation23 + $0xf90] sm:$0xff] }
 0x697   :  { %5349 = vmatpush.msra.mxu2 %v5006_v5  ;;  %5331 = vmatpush.msra.mxu1 %v4898_v40  ;;  %v4803_v5 = vld [vmem:[#allocation23 + $0x158] sm:$0xff] }
 0x698   :  { %5372 = vmatpush.msrb.mxu0 %v5084_v11  ;;  %5314 = vmatpush.msra.mxu3 %v4784_v60  ;;  %v4899_v40 = vld [vmem:[#allocation23 + $0x458] sm:$0xff]  ;;  %v5198_v11 = vld [vmem:[#allocation23 + $0xdb0] sm:$0xff]  ;;  %v5252_v60 = vld [vmem:[#allocation23 + $0xf60] sm:$0xff] }
 0x699   :  { %5350 = vmatpush.msra.mxu2 %v5000_v8  ;;  %5332 = vmatpush.msra.mxu1 %v4892_v61  ;;  %v4797_v8 = vld [vmem:[#allocation23 + $0x128] sm:$0xff] }
 0x69a   :  { %5373 = vmatpush.msrb.mxu0 %v5078_v43  ;;  %5315 = vmatpush.msra.mxu3 %v4778_v17  ;;  %v4893_v61 = vld [vmem:[#allocation23 + $0x428] sm:$0xff]  ;;  %v5192_v43 = vld [vmem:[#allocation23 + $0xd80] sm:$0xff]  ;;  %v5246_v17 = vld [vmem:[#allocation23 + $0xf30] sm:$0xff] }
 0x69b   :  { %5351 = vmatpush.msra.mxu2 %v4994_v54  ;;  %5333 = vmatpush.msra.mxu1 %v4886_v31  ;;  %v4791_v54 = vld [vmem:[#allocation23 + $0xf8] sm:$0xff] }
 0x69c   :  { %5374 = vmatpush.msrb.mxu0 %v5072_v48  ;;  %5316 = vmatpush.msra.mxu3 %v4772_v36  ;;  %v4887_v31 = vld [vmem:[#allocation23 + $0x3f8] sm:$0xff]  ;;  %v5186_v48 = vld [vmem:[#allocation23 + $0xd50] sm:$0xff]  ;;  %v5240_v36 = vld [vmem:[#allocation23 + $0xf00] sm:$0xff] }
 0x69d   :  { %5352 = vmatpush.msra.mxu2 %v4988_v47  ;;  %5334 = vmatpush.msra.mxu1 %v4880_v0  ;;  %v4785_v47 = vld [vmem:[#allocation23 + $0xc8] sm:$0xff] }
 0x69e   :  { %5375 = vmatpush.msrb.mxu0 %v5066_v58  ;;  %5317 = vmatpush.msra.mxu3 %v4766_v52  ;;  %v4881_v0 = vld [vmem:[#allocation23 + $0x3c8] sm:$0xff]  ;;  %v5180_v58 = vld [vmem:[#allocation23 + $0xd20] sm:$0xff]  ;;  %v4779_v52 = vld [vmem:[#allocation23 + $0x98] sm:$0xff] }
 0x69f   :  { %5353 = vmatpush.msra.mxu2 %v4982_v44  ;;  %5335 = vmatpush.msra.mxu1 %v4874_v4  ;;  %v4875_v44 = vld [vmem:[#allocation23 + $0x398] sm:$0xff]  ;;  %v5174_v4 = vld [vmem:[#allocation23 + $0xcf0] sm:$0xff] }
 0x6a0   :  { %5376 = vmatpush.msrb.mxu0 %v5060_v49  ;;  %5318 = vmatpush.msra.mxu3 %v4760_v63  ;;  %v4773_v49 = vld [vmem:[#allocation23 + $0x68] sm:$0xff] }
 0x6a1   :  { %5354 = vmatpush.msra.mxu2 %v4976_v1  ;;  %5336 = vmatpush.msra.mxu1 %v4868_v23  ;;  %v4869_v63 = vld [vmem:[#allocation23 + $0x368] sm:$0xff]  ;;  %v5168_v1 = vld [vmem:[#allocation23 + $0xcc0] sm:$0xff]  ;;  %v4767_v23 = vld [vmem:[#allocation23 + $0x38] sm:$0xff] }
 0x6a2   :  { %5377 = vmatpush.msrb.mxu0 %v5054_v53  ;;  %5383 = vmatpush.msrb.mxu3 %v5234_v26  ;;  %v4863_v53 = vld [vmem:[#allocation23 + $0x338] sm:$0xff]  ;;  %v5162_v26 = vld [vmem:[#allocation23 + $0xc90] sm:$0xff] }
 0x6a3   :  { %5355 = vmatpush.msra.mxu2 %v4970_v51  ;;  %5337 = vmatpush.msra.mxu1 %v4862_v28  ;;  %v4761_v51 = vld [vmem:[#allocation23 + $0x8] sm:$0xff] }
 0x6a4   :  { %5378 = vmatpush.msrb.mxu0 %v5048_v19  ;;  %5384 = vmatpush.msrb.mxu3 %v5228_v42  ;;  %v4857_v28 = vld [vmem:[#allocation23 + $0x308] sm:$0xff]  ;;  %v5156_v19 = vld [vmem:[#allocation23 + $0xc60] sm:$0xff] }
 0x6a5   :  { %5356 = vmatpush.msra.mxu2 %v4964_v3  ;;  %5338 = vmatpush.msra.mxu1 %v4856_v27  ;;  %v5150_v3 = vld [vmem:[#allocation23 + $0xc30] sm:$0xff] }
 0x6a6   :  { %5443 = vmatpush.msra.mxu0 %v4947_v34  ;;  %5385 = vmatpush.msrb.mxu3 %v5222_v45  ;;  %v5144_v34 = vld [vmem:[#allocation23 + $0xc00] sm:$0xff]  ;;  %v5043_v45 = vld [vmem:[#allocation23 + $0x8d8] sm:$0xff] }
 0x6a7   :  { %5357 = vmatpush.msra.mxu2 %v4958_v33  ;;  %5409 = vmatpush.msrb.mxu1 %v5294_v35 }
 0x6a8   :  { %5444 = vmatpush.msra.mxu0 %v4941_v56  ;;  %5386 = vmatpush.msrb.mxu3 %v5216_v59 }
 0x6a9   :  { %5358 = vmatpush.msra.mxu2 %v4952_v20  ;;  %5410 = vmatpush.msrb.mxu1 %v5288_v16 }
 0x6aa   :  { %5445 = vmatpush.msra.mxu0 %v4935_v9  ;;  %5387 = vmatpush.msrb.mxu3 %v5210_v41 }
 0x6ab   :  { %5423 = vmatpush.msrb.mxu2 %v4851_v55  ;;  %5411 = vmatpush.msrb.mxu1 %v5282_v22 }
 0x6ac   :  { %5446 = vmatpush.msra.mxu0 %v4929_v2  ;;  %5388 = vmatpush.msrb.mxu3 %v5204_v29 }
 0x6ad   :  { %5424 = vmatpush.msrb.mxu2 %v4845_v30  ;;  %5412 = vmatpush.msrb.mxu1 %v5276_v39 }
 0x6ae   :  { %5447 = vmatpush.msra.mxu0 %v4923_v21  ;;  %5389 = vmatpush.msrb.mxu3 %v5198_v11 }
 0x6af   :  { %5425 = vmatpush.msrb.mxu2 %v4839_v12  ;;  %5413 = vmatpush.msrb.mxu1 %v5270_v46 }
 0x6b0   :  { %5448 = vmatpush.msra.mxu0 %v4917_v38  ;;  %5390 = vmatpush.msrb.mxu3 %v5192_v43 }
 0x6b1   :  { %5426 = vmatpush.msrb.mxu2 %v4833_v10  ;;  %5414 = vmatpush.msrb.mxu1 %v5264_v50 }
 0x6b2   :  { %5449 = vmatpush.msra.mxu0 %v4911_v18  ;;  %5391 = vmatpush.msrb.mxu3 %v5186_v48  ;;  %v5037_v18 = vld [vmem:[#allocation23 + $0x8a8] sm:$0xff] }
 0x6b3   :  { %5427 = vmatpush.msrb.mxu2 %v4827_v62  ;;  %5415 = vmatpush.msrb.mxu1 %v5258_v15  ;;  %v5031_v15 = vld [vmem:[#allocation23 + $0x878] sm:$0xff] }
 0x6b4   :  { %5450 = vmatpush.msra.mxu0 %v4905_v32  ;;  %5392 = vmatpush.msrb.mxu3 %v5180_v58  ;;  %v5229_v58 = vld [vmem:[#allocation23 + $0xea8] sm:$0xff] }
 0x6b5   :  { %5428 = vmatpush.msrb.mxu2 %v4821_v57  ;;  %5416 = vmatpush.msrb.mxu1 %v5252_v60 }
 0x6b6   :  { %5451 = vmatpush.msra.mxu0 %v4899_v40  ;;  %5393 = vmatpush.msrb.mxu3 %v5174_v4  ;;  %v5025_v40 = vld [vmem:[#allocation23 + $0x848] sm:$0xff] }
 0x6b7   :  { %5429 = vmatpush.msrb.mxu2 %v4815_v6  ;;  %5417 = vmatpush.msrb.mxu1 %v5246_v17 }
 0x6b8   :  { %5452 = vmatpush.msra.mxu0 %v4893_v61  ;;  %5394 = vmatpush.msrb.mxu3 %v5168_v1  ;;  %v5283_v1 = vld [vmem:[#allocation23 + $0x1058] sm:$0xff] }
 0x6b9   :  { %5430 = vmatpush.msrb.mxu2 %v4809_v24  ;;  %5418 = vmatpush.msrb.mxu1 %v5240_v36  ;;  %v5295_v36 = vld [vmem:[#allocation23 + $0x10b8] sm:$0xff] }
 0x6ba   :  { %5453 = vmatpush.msra.mxu0 %v4887_v31  ;;  %5395 = vmatpush.msrb.mxu3 %v5162_v26  ;;  %v5235_v31 = vld [vmem:[#allocation23 + $0xed8] sm:$0xff] }
 0x6bb   :  { %5431 = vmatpush.msrb.mxu2 %v4803_v5  ;;  %v5139_v26 = vld [vmem:[#allocation23 + $0xbd8] sm:$0xff] }
 0x6bc   :  { %5454 = vmatpush.msra.mxu0 %v4881_v0  ;;  %5396 = vmatpush.msrb.mxu3 %v5156_v19  ;;  %v5013_v0 = vld [vmem:[#allocation23 + $0x7e8] sm:$0xff] }
 0x6bd   :  { %5432 = vmatpush.msrb.mxu2 %v4797_v8  ;;  %v9536_v8 = vld [vmem:[#allocation45_spill] sm:$0xff]  ;;  %v5277_v19 = vld [vmem:[#allocation23 + $0x1028] sm:$0xff] }
 0x6be   :  { %5455 = vmatpush.msra.mxu0 %v4875_v44  ;;  %5397 = vmatpush.msrb.mxu3 %v5150_v3 }
 0x6bf   :  { %5433 = vmatpush.msrb.mxu2 %v4791_v54  ;;  %v5019_v54 = vld [vmem:[#allocation23 + $0x818] sm:$0xff] }
 0x6c0   :  { %5456 = vmatpush.msra.mxu0 %v4869_v63  ;;  %5398 = vmatpush.msrb.mxu3 %v5144_v34  ;;  %v5223_v63 = vld [vmem:[#allocation23 + $0xe78] sm:$0xff] }
 0x6c1   :  { %5434 = vmatpush.msrb.mxu2 %v4785_v47 }
 0x6c2   :  { %5457 = vmatpush.msra.mxu0 %v4863_v53  ;;  %v5001_v53 = vld [vmem:[#allocation23 + $0x788] sm:$0xff] }
 0x6c3   :  { %5435 = vmatpush.msrb.mxu2 %v4779_v52  ;;  %v5289_v52 = vld [vmem:[#allocation23 + $0x1088] sm:$0xff] }
 0x6c4   :  { %5458 = vmatpush.msra.mxu0 %v4857_v28  ;;  %v5217_v28 = vld [vmem:[#allocation23 + $0xe48] sm:$0xff] }
 0x6c5   :  { %5436 = vmatpush.msrb.mxu2 %v4773_v49  ;;  %v5007_v49 = vld [vmem:[#allocation23 + $0x7b8] sm:$0xff] }
 0x6c7   :  { %5437 = vmatpush.msrb.mxu2 %v4767_v23 }
 0x6c9   :  { %5438 = vmatpush.msrb.mxu2 %v4761_v51 }
 0x6f7   :  { %v4512_v27 = vpop.f32.mrf.mxu1 }
 0x6f8   :  { %v4552_v33 = vpop.f32.mrf.mxu0  ;;  %v4719_v56 = vperm.slane %v4512_v27, 0  ;;  %v4995_v27 = vld [vmem:[#allocation23 + $0x758] sm:$0xff] }
 0x6f9   :  { %v4721_v12 = vperm.slane %v4552_v33, 0  ;;  %v5133_v33 = vld [vmem:[#allocation23 + $0xba8] sm:$0xff] }
 0x6fa   :  { %v4725_v16 = vmul.f32 %v4719_v56, %v8583_v13 }
 0x6fb   :  { %v4727_v38 = vmul.f32 %v4721_v12, %v8794_v37  ;;  %v5121_v12 = vld [vmem:[#allocation23 + $0xb48] sm:$0xff] }
 0x6fd   :  { %v4492_v35 = vpop.f32.mrf.mxu2 }
 0x6fe   :  { %v8893_v20 = vpop.f32.mrf.mxu3  ;;  %v4718_v24 = vperm.slane %v4492_v35, 0  ;;  %v5211_v35 = vld [vmem:[#allocation23 + $0xe18] sm:$0xff] }
 0x6ff   :  { %v4592_v9 = vpop.f32.mrf.mxu1  ;;  %v4722_v44 = vperm.slane %v8893_v20, 0  ;;  %v5271_v20 = vld [vmem:[#allocation23 + $0xff8] sm:$0xff] }
 0x700   :  { %v4635_v55 = vpop.f32.mrf.mxu0  ;;  %v4723_v10 = vperm.slane %v4592_v9, 0  ;;  %v4724_v61 = vmul.f32 %v4718_v24, %v9536_v8  ;;  %v4989_v9 = vld [vmem:[#allocation23 + $0x728] sm:$0xff]  ;;  %v4959_v24 = vld [vmem:[#allocation23 + $0x638] sm:$0xff]  ;;  %v4936_v8 = vld [vmem:[#allocation23 + $0x580] sm:$0xff] }
 0x701   :  { %v4731_v2 = vperm.slane %v4635_v55, 0  ;;  %v4728_v3 = vmul.f32 %v4722_v44, %v8832_v25  ;;  %v5127_v55 = vld [vmem:[#allocation23 + $0xb78] sm:$0xff] }
 0x702   :  { %v4729_v41 = vmul.f32 %v4723_v10, %v8860_v14  ;;  %v5199_v10 = vld [vmem:[#allocation23 + $0xdb8] sm:$0xff] }
 0x703   :  { %v4737_v30 = vadd.f32 %v4731_v2, %v4725_v16  ;;  %v5205_v16 = vld [vmem:[#allocation23 + $0xde8] sm:$0xff]  ;;  %v5067_v44 = vld [vmem:[#allocation23 + $0x998] sm:$0xff] }
 0x704   :  { %v5265_v2 = vld [vmem:[#allocation23 + $0xfc8] sm:$0xff] }
 0x705   :  { %vm4743_vm3 = vcmp.gt.f32.partialorder %v4737_v30, 0.0  ;;  %v4749_v42 = vmul.f32 0.2, %v4737_v30  ;;  %v4532_v22 = vpop.f32.mrf.mxu2 }
 0x706   :  { %v4720_v62 = vperm.slane %v4532_v22, 0  ;;  %v4655_v21 = vpop.f32.mrf.mxu3 }
 0x707   :  { %v8896_v39 = vsel %vm4743_vm3, %v4737_v30, %v4749_v42  ;;  %v4675_v57 = vpop.f32.mrf.mxu1  ;;  %v4732_v46 = vperm.slane %v4655_v21, 0  ;;  %v4983_v30 = vld [vmem:[#allocation23 + $0x6f8] sm:$0xff] }
 0x708   :  { %v4726_v59 = vmul.f32 %v4720_v62, %v9535_v7  ;;  %v4733_v6 = vperm.slane %v4675_v57, 0  ;;  %v4715_v13 = vpop.f32.mrf.mxu0  ;;  %5339 = vmatmul.f32.vlgmr.msra.gmra.mxu1 %v8896_v39  ;;  %v5259_v42 = vld [vmem:[#allocation23 + $0xf98] sm:$0xff]  ;;  %v4977_v62 = vld [vmem:[#allocation23 + $0x6c8] sm:$0xff] }
 0x709   :  { %v4735_v50 = vperm.slane %v4715_v13, 0  ;;  %5463 = vmatpush.msra.mxu1 %v5043_v45  ;;  %v5115_v21 = vld [vmem:[#allocation23 + $0xb18] sm:$0xff]  ;;  %v5193_v45 = vld [vmem:[#allocation23 + $0xd88] sm:$0xff] }
 0x70a   :  { %v4738_v32 = vadd.f32 %v4732_v46, %v4726_v59  ;;  %v4739_v29 = vadd.f32 %v4733_v6, %v4727_v38  ;;  %v5253_v57 = vld [vmem:[#allocation23 + $0xf68] sm:$0xff]  ;;  %v4971_v38 = vld [vmem:[#allocation23 + $0x698] sm:$0xff] }
 0x70b   :  { %v4741_v5 = vadd.f32 %v4735_v50, %v4729_v41  ;;  %5464 = vmatpush.msra.mxu1 %v5037_v18  ;;  %v5109_v59 = vld [vmem:[#allocation23 + $0xae8] sm:$0xff]  ;;  %v5187_v46 = vld [vmem:[#allocation23 + $0xd58] sm:$0xff] }
 0x70c   :  { %vm4744_vm13 = vcmp.gt.f32.partialorder %v4738_v32, 0.0  ;;  %v4750_v37 = vmul.f32 0.2, %v4738_v32  ;;  %vm4745_vm14 = vcmp.gt.f32.partialorder %v4739_v29, 0.0  ;;  %v4751_v7 = vmul.f32 0.2, %v4739_v29 }
 0x70d   :  { %vm4747_vm15 = vcmp.gt.f32.partialorder %v4741_v5, 0.0  ;;  %v4753_v11 = vmul.f32 0.2, %v4741_v5  ;;  %5465 = vmatpush.msra.mxu1 %v5031_v15  ;;  %v4615_v60 = vpop.f32.mrf.mxu2  ;;  %v5247_v6 = vld [vmem:[#allocation23 + $0xf38] sm:$0xff]  ;;  %v4965_v13 = vld [vmem:[#allocation23 + $0x668] sm:$0xff] }
 0x70e   :  { %v8903_v14 = vsel %vm4744_vm13, %v4738_v32, %v4750_v37  ;;  %v8905_v43 = vsel %vm4745_vm14, %v4739_v29, %v4751_v7  ;;  %v4730_v17 = vperm.slane %v4615_v60, 0  ;;  %v5103_v18 = vld [vmem:[#allocation23 + $0xab8] sm:$0xff]  ;;  %v5181_v41 = vld [vmem:[#allocation23 + $0xd28] sm:$0xff]  ;;  %v4948_v29 = vld [vmem:[#allocation23 + $0x5e0] sm:$0xff] }
 0x70f   :  { %v8907_v48 = vsel %vm4747_vm15, %v4741_v5, %v4753_v11  ;;  %5466 = vmatpush.msra.mxu1 %v5025_v40  ;;  %5359 = vmatmul.f32.vlgmr.msra.gmra.mxu2 %v8903_v14  ;;  %v5241_v50 = vld [vmem:[#allocation23 + $0xf08] sm:$0xff]  ;;  %v5175_v15 = vld [vmem:[#allocation23 + $0xcf8] sm:$0xff]  ;;  %v4942_v37 = vld [vmem:[#allocation23 + $0x5b0] sm:$0xff]  ;;  %vm7198_vm15 = vcmask 584706  }
 0x710   :  { %v4736_v47 = vadd.f32 %v4730_v17, %v4724_v61  ;;  %5379 = vmatmul.f32.vlgmr.msrb.gmra.mxu0 %v8905_v43  ;;  %7262 = vmatmul.msk.f32.vlgmr.msrb.gmra.mxu1 %vm4193_vm9, %v8907_v48  ;;  %v5097_v32 = vld [vmem:[#allocation23 + $0xa88] sm:$0xff]  ;;  %v5091_v40 = vld [vmem:[#allocation23 + $0xa58] sm:$0xff]  ;;  %v4852_v60 = vld [vmem:[#allocation23 + $0x2e0] sm:$0xff] }
 0x711   :  { %5467 = vmatpush.msra.mxu1 %v5019_v54  ;;  %5503 = vmatpush.msra.mxu2 %v5235_v31  ;;  %v4953_v5 = vld [vmem:[#allocation23 + $0x608] sm:$0xff]  ;;  %v5163_v61 = vld [vmem:[#allocation23 + $0xc98] sm:$0xff]  ;;  %v4846_v54 = vld [vmem:[#allocation23 + $0x2b0] sm:$0xff] }
 0x712   :  { %vm4742_vm1 = vcmp.gt.f32.partialorder %v4736_v47, 0.0  ;;  %v4748_v4 = vmul.f32 0.2, %v4736_v47  ;;  %5529 = vmatpush.msrb.mxu0 %v5295_v36  ;;  %v5169_v7 = vld [vmem:[#allocation23 + $0xcc8] sm:$0xff]  ;;  %v5079_v17 = vld [vmem:[#allocation23 + $0x9f8] sm:$0xff]  ;;  %v4930_v31 = vld [vmem:[#allocation23 + $0x550] sm:$0xff] }
 0x713   :  { %5468 = vmatpush.msra.mxu1 %v5013_v0  ;;  %5504 = vmatpush.msra.mxu2 %v5229_v58  ;;  %v5085_v11 = vld [vmem:[#allocation23 + $0xa28] sm:$0xff]  ;;  %v4840_v0 = vld [vmem:[#allocation23 + $0x280] sm:$0xff] }
 0x714   :  { %v8914_v23 = vsel %vm4742_vm1, %v4736_v47, %v4748_v4  ;;  %5530 = vmatpush.msrb.mxu0 %v5289_v52  ;;  %v5157_v36 = vld [vmem:[#allocation23 + $0xc68] sm:$0xff]  ;;  %v4924_v58 = vld [vmem:[#allocation23 + $0x520] sm:$0xff]  ;;  %v5151_v52 = vld [vmem:[#allocation23 + $0xc38] sm:$0xff] }
 0x715   :  { %5469 = vmatpush.msra.mxu1 %v5007_v49  ;;  %5505 = vmatpush.msra.mxu2 %v5223_v63  ;;  %v4695_v51 = vpop.f32.mrf.mxu2  ;;  %v5073_v47 = vld [vmem:[#allocation23 + $0x9c8] sm:$0xff]  ;;  %v4834_v4 = vld [vmem:[#allocation23 + $0x250] sm:$0xff]  ;;  %vm7199_vm1 = vmor %vm7198_vm15, %vm341_vm0 }
 0x716   :  { %5531 = vmatpush.msrb.mxu0 %v5283_v1  ;;  %v4734_v34 = vperm.slane %v4695_v51, 0  ;;  %5319 = vmatmul.f32.vlgmr.msra.gmra.mxu3 %v8914_v23  ;;  %v4918_v49 = vld [vmem:[#allocation23 + $0x4f0] sm:$0xff]  ;;  %v5145_v63 = vld [vmem:[#allocation23 + $0xc08] sm:$0xff]  ;;  %v5140_v51 = vld [vmem:[#allocation23 + $0xbe0] sm:$0xff] }
 0x717   :  { %5470 = vmatpush.msra.mxu1 %v5001_v53  ;;  %5483 = vmatpush.msra.mxu3 %v5139_v26  ;;  %v5061_v1 = vld [vmem:[#allocation23 + $0x968] sm:$0xff]  ;;  %v4828_v53 = vld [vmem:[#allocation23 + $0x220] sm:$0xff] }
 0x718   :  { %v4740_v56 = vadd.f32 %v4734_v34, %v4728_v3  ;;  %5506 = vmatpush.msra.mxu2 %v5217_v28  ;;  %5532 = vmatpush.msrb.mxu0 %v5277_v19  ;;  %v4912_v26 = vld [vmem:[#allocation23 + $0x4c0] sm:$0xff]  ;;  %v4822_v28 = vld [vmem:[#allocation23 + $0x1f0] sm:$0xff]  ;;  %v5055_v19 = vld [vmem:[#allocation23 + $0x938] sm:$0xff] }
 0x719   :  { %5439 = vmatmul.f32.vlgmr.msrb.gmra.mxu2 %v8914_v23  ;;  %5459 = vmatmul.f32.vlgmr.msra.gmra.mxu0 %v8896_v39  ;;  %v4906_v3 = vld [vmem:[#allocation23 + $0x490] sm:$0xff] }
 0x71a   :  { %vm4746_vm2 = vcmp.gt.f32.partialorder %v4740_v56, 0.0  ;;  %v4752_v25 = vmul.f32 0.2, %v4740_v56  ;;  %5471 = vmatpush.msra.mxu1 %v4995_v27  ;;  %5484 = vmatpush.msra.mxu3 %v5133_v33  ;;  %v5134_v34 = vld [vmem:[#allocation23 + $0xbb0] sm:$0xff]  ;;  %v4816_v27 = vld [vmem:[#allocation23 + $0x1c0] sm:$0xff]  ;;  %v5049_v33 = vld [vmem:[#allocation23 + $0x908] sm:$0xff] }
 0x71b   :  { %5507 = vmatpush.msra.mxu2 %v5211_v35  ;;  %5533 = vmatpush.msrb.mxu0 %v5271_v20  ;;  %v5128_v35 = vld [vmem:[#allocation23 + $0xb80] sm:$0xff]  ;;  %v4810_v20 = vld [vmem:[#allocation23 + $0x190] sm:$0xff] }
 0x71c   :  { %5472 = vmatpush.msra.mxu1 %v4989_v9  ;;  %5485 = vmatpush.msra.mxu3 %v5127_v55  ;;  %v8920_v22 = vsel %vm4746_vm2, %v4740_v56, %v4752_v25  ;;  %v4900_v56 = vld [vmem:[#allocation23 + $0x460] sm:$0xff]  ;;  %v4894_v9 = vld [vmem:[#allocation23 + $0x430] sm:$0xff] }
 0x71d   :  { %5508 = vmatpush.msra.mxu2 %v5205_v16  ;;  %5534 = vmatpush.msrb.mxu0 %v5265_v2  ;;  %v5044_v55 = vld [vmem:[#allocation23 + $0x8e0] sm:$0xff]  ;;  %v5122_v25 = vld [vmem:[#allocation23 + $0xb50] sm:$0xff] }
 0x71e   :  { %5473 = vmatpush.msra.mxu1 %v4983_v30  ;;  %5486 = vmatpush.msra.mxu3 %v5121_v12  ;;  %v4804_v16 = vld [vmem:[#allocation23 + $0x160] sm:$0xff]  ;;  %v5038_v30 = vld [vmem:[#allocation23 + $0x8b0] sm:$0xff] }
 0x71f   :  { %5509 = vmatpush.msra.mxu2 %v5199_v10  ;;  %5535 = vmatpush.msrb.mxu0 %v5259_v42  ;;  %v4888_v2 = vld [vmem:[#allocation23 + $0x400] sm:$0xff]  ;;  %v4798_v10 = vld [vmem:[#allocation23 + $0x130] sm:$0xff] }
 0x720   :  { %5399 = vmatmul.f32.vlgmr.msrb.gmra.mxu3 %v8920_v22  ;;  %5474 = vmatpush.msra.mxu1 %v4977_v62  ;;  %v5116_v12 = vld [vmem:[#allocation23 + $0xb20] sm:$0xff]  ;;  %v4882_v42 = vld [vmem:[#allocation23 + $0x3d0] sm:$0xff] }
 0x721   :  { %5487 = vmatpush.msra.mxu3 %v5115_v21  ;;  %5510 = vmatpush.msra.mxu2 %v5193_v45  ;;  %v5032_v62 = vld [vmem:[#allocation23 + $0x880] sm:$0xff]  ;;  %v5110_v21 = vld [vmem:[#allocation23 + $0xaf0] sm:$0xff] }
 0x722   :  { %5536 = vmatpush.msrb.mxu0 %v5253_v57  ;;  %5475 = vmatpush.msra.mxu1 %v4971_v38  ;;  %v4792_v45 = vld [vmem:[#allocation23 + $0x100] sm:$0xff]  ;;  %v5026_v38 = vld [vmem:[#allocation23 + $0x850] sm:$0xff] }
 0x723   :  { %5488 = vmatpush.msra.mxu3 %v5109_v59  ;;  %5511 = vmatpush.msra.mxu2 %v5187_v46  ;;  %v4876_v57 = vld [vmem:[#allocation23 + $0x3a0] sm:$0xff]  ;;  %v4786_v46 = vld [vmem:[#allocation23 + $0xd0] sm:$0xff] }
 0x724   :  { %5537 = vmatpush.msrb.mxu0 %v5247_v6  ;;  %5476 = vmatpush.msra.mxu1 %v4965_v13  ;;  %v5104_v59 = vld [vmem:[#allocation23 + $0xac0] sm:$0xff]  ;;  %v4870_v6 = vld [vmem:[#allocation23 + $0x370] sm:$0xff] }
 0x725   :  { %5489 = vmatpush.msra.mxu3 %v5103_v18  ;;  %5512 = vmatpush.msra.mxu2 %v5181_v41  ;;  %v5020_v13 = vld [vmem:[#allocation23 + $0x820] sm:$0xff]  ;;  %v5098_v18 = vld [vmem:[#allocation23 + $0xa90] sm:$0xff] }
 0x726   :  { %5538 = vmatpush.msrb.mxu0 %v5241_v50  ;;  %5477 = vmatpush.msra.mxu1 %v4959_v24  ;;  %v4780_v41 = vld [vmem:[#allocation23 + $0xa0] sm:$0xff]  ;;  %v5014_v24 = vld [vmem:[#allocation23 + $0x7f0] sm:$0xff] }
 0x727   :  { %7263 = vmatmul.msk.f32.vlgmr.msrb.gmra.mxu0 %vm4193_vm9, %v8907_v48  ;;  %5490 = vmatpush.msra.mxu3 %v5097_v32  ;;  %v4864_v50 = vld [vmem:[#allocation23 + $0x340] sm:$0xff] }
 0x728   :  { %5563 = vmatpush.msra.mxu0 %v4948_v29  ;;  %5513 = vmatpush.msra.mxu2 %v5175_v15  ;;  %v5092_v32 = vld [vmem:[#allocation23 + $0xa60] sm:$0xff]  ;;  %v4774_v29 = vld [vmem:[#allocation23 + $0x70] sm:$0xff] }
 0x729   :  { %5478 = vmatpush.msra.mxu1 %v4953_v5  ;;  %5491 = vmatpush.msra.mxu3 %v5091_v40  ;;  %v4858_v15 = vld [vmem:[#allocation23 + $0x310] sm:$0xff]  ;;  %v5008_v5 = vld [vmem:[#allocation23 + $0x7c0] sm:$0xff] }
 0x72a   :  { %5564 = vmatpush.msra.mxu0 %v4942_v37  ;;  %5514 = vmatpush.msra.mxu2 %v5169_v7  ;;  %v5086_v40 = vld [vmem:[#allocation23 + $0xa30] sm:$0xff]  ;;  %v5296_v37 = vld [vmem:[#allocation23 + $0x10c0] sm:$0xff] }
 0x72b   :  { %5479 = vmatmul.f32.vlgmr.msra.gmra.mxu1 %v8903_v14  ;;  %5492 = vmatpush.msra.mxu3 %v5085_v11  ;;  %v4768_v7 = vld [vmem:[#allocation23 + $0x40] sm:$0xff]  ;;  %v5002_v11 = vld [vmem:[#allocation23 + $0x790] sm:$0xff] }
 0x72c   :  { %5543 = vmatpush.msrb.mxu1 %v4852_v60  ;;  %5565 = vmatpush.msra.mxu0 %v4936_v8  ;;  %v5080_v60 = vld [vmem:[#allocation23 + $0xa00] sm:$0xff]  ;;  %v5290_v8 = vld [vmem:[#allocation23 + $0x1090] sm:$0xff] }
 0x72d   :  { %5515 = vmatpush.msra.mxu2 %v5163_v61  ;;  %5493 = vmatpush.msra.mxu3 %v5079_v17  ;;  %v4762_v61 = vld [vmem:[#allocation23 + $0x10] sm:$0xff]  ;;  %v4996_v17 = vld [vmem:[#allocation23 + $0x760] sm:$0xff] }
 0x72e   :  { %5544 = vmatpush.msrb.mxu1 %v4846_v54  ;;  %5566 = vmatpush.msra.mxu0 %v4930_v31  ;;  %v5074_v54 = vld [vmem:[#allocation23 + $0x9d0] sm:$0xff]  ;;  %v5284_v31 = vld [vmem:[#allocation23 + $0x1060] sm:$0xff] }
 0x72f   :  { %5516 = vmatpush.msra.mxu2 %v5157_v36  ;;  %5494 = vmatpush.msra.mxu3 %v5073_v47  ;;  %v5236_v36 = vld [vmem:[#allocation23 + $0xee0] sm:$0xff]  ;;  %v4990_v47 = vld [vmem:[#allocation23 + $0x730] sm:$0xff] }
 0x730   :  { %5545 = vmatpush.msrb.mxu1 %v4840_v0  ;;  %5567 = vmatpush.msra.mxu0 %v4924_v58  ;;  %v5068_v0 = vld [vmem:[#allocation23 + $0x9a0] sm:$0xff]  ;;  %v5278_v58 = vld [vmem:[#allocation23 + $0x1030] sm:$0xff] }
 0x731   :  { %5517 = vmatpush.msra.mxu2 %v5151_v52  ;;  %5495 = vmatpush.msra.mxu3 %v5067_v44  ;;  %v5230_v52 = vld [vmem:[#allocation23 + $0xeb0] sm:$0xff]  ;;  %v4984_v44 = vld [vmem:[#allocation23 + $0x700] sm:$0xff] }
 0x732   :  { %5546 = vmatpush.msrb.mxu1 %v4834_v4  ;;  %5568 = vmatpush.msra.mxu0 %v4918_v49  ;;  %v5062_v4 = vld [vmem:[#allocation23 + $0x970] sm:$0xff]  ;;  %v5272_v49 = vld [vmem:[#allocation23 + $0x1000] sm:$0xff] }
 0x733   :  { %5518 = vmatpush.msra.mxu2 %v5145_v63  ;;  %5496 = vmatpush.msra.mxu3 %v5061_v1  ;;  %v5224_v63 = vld [vmem:[#allocation23 + $0xe80] sm:$0xff]  ;;  %v4978_v1 = vld [vmem:[#allocation23 + $0x6d0] sm:$0xff] }
 0x734   :  { %5519 = vmatmul.f32.vlgmr.msra.gmra.mxu2 %v8920_v22  ;;  %5547 = vmatpush.msrb.mxu1 %v4828_v53  ;;  %v5056_v53 = vld [vmem:[#allocation23 + $0x940] sm:$0xff] }
 0x735   :  { %5569 = vmatpush.msra.mxu0 %v4912_v26  ;;  %5603 = vmatpush.msrb.mxu2 %v5140_v51  ;;  %v5266_v26 = vld [vmem:[#allocation23 + $0xfd0] sm:$0xff] }
 0x736   :  { %5548 = vmatpush.msrb.mxu1 %v4822_v28  ;;  %5497 = vmatpush.msra.mxu3 %v5055_v19  ;;  %v5218_v51 = vld [vmem:[#allocation23 + $0xe50] sm:$0xff]  ;;  %v4972_v28 = vld [vmem:[#allocation23 + $0x6a0] sm:$0xff] }
 0x737   :  { %5570 = vmatpush.msra.mxu0 %v4906_v3  ;;  %5604 = vmatpush.msrb.mxu2 %v5134_v34  ;;  %v5050_v19 = vld [vmem:[#allocation23 + $0x910] sm:$0xff]  ;;  %v5260_v3 = vld [vmem:[#allocation23 + $0xfa0] sm:$0xff] }
 0x738   :  { %5549 = vmatpush.msrb.mxu1 %v4816_v27  ;;  %5498 = vmatpush.msra.mxu3 %v5049_v33  ;;  %v5212_v34 = vld [vmem:[#allocation23 + $0xe20] sm:$0xff]  ;;  %v4949_v27 = vld [vmem:[#allocation23 + $0x5e8] sm:$0xff]  ;;  %v4966_v33 = vld [vmem:[#allocation23 + $0x670] sm:$0xff] }
 0x739   :  { %5571 = vmatpush.msra.mxu0 %v4900_v56  ;;  %5605 = vmatpush.msrb.mxu2 %v5128_v35  ;;  %v5206_v56 = vld [vmem:[#allocation23 + $0xdf0] sm:$0xff] }
 0x73a   :  { %5499 = vmatmul.f32.vlgmr.msra.gmra.mxu3 %v8905_v43  ;;  %5550 = vmatpush.msrb.mxu1 %v4810_v20  ;;  %v5254_v35 = vld [vmem:[#allocation23 + $0xf70] sm:$0xff]  ;;  %v4943_v20 = vld [vmem:[#allocation23 + $0x5b8] sm:$0xff] }
 0x73b   :  { %5572 = vmatpush.msra.mxu0 %v4894_v9  ;;  %5583 = vmatpush.msrb.mxu3 %v5044_v55  ;;  %v4960_v9 = vld [vmem:[#allocation23 + $0x640] sm:$0xff] }
 0x73c   :  { %5606 = vmatpush.msrb.mxu2 %v5122_v25  ;;  %5551 = vmatpush.msrb.mxu1 %v4804_v16  ;;  %v5200_v55 = vld [vmem:[#allocation23 + $0xdc0] sm:$0xff]  ;;  %v4937_v16 = vld [vmem:[#allocation23 + $0x588] sm:$0xff] }
 0x73d   :  { %5573 = vmatpush.msra.mxu0 %v4888_v2  ;;  %5584 = vmatpush.msrb.mxu3 %v5038_v30  ;;  %v5248_v25 = vld [vmem:[#allocation23 + $0xf40] sm:$0xff]  ;;  %v4954_v2 = vld [vmem:[#allocation23 + $0x610] sm:$0xff] }
 0x73e   :  { %5607 = vmatpush.msrb.mxu2 %v5116_v12  ;;  %5552 = vmatpush.msrb.mxu1 %v4798_v10  ;;  %v5194_v30 = vld [vmem:[#allocation23 + $0xd90] sm:$0xff]  ;;  %v4853_v10 = vld [vmem:[#allocation23 + $0x2e8] sm:$0xff] }
 0x73f   :  { %5574 = vmatpush.msra.mxu0 %v4882_v42  ;;  %5585 = vmatpush.msrb.mxu3 %v5032_v62  ;;  %v5242_v12 = vld [vmem:[#allocation23 + $0xf10] sm:$0xff]  ;;  %v4931_v42 = vld [vmem:[#allocation23 + $0x558] sm:$0xff]  ;;  %v5045_v62 = vld [vmem:[#allocation23 + $0x8e8] sm:$0xff] }
 0x740   :  { %5608 = vmatpush.msrb.mxu2 %v5110_v21  ;;  %5553 = vmatpush.msrb.mxu1 %v4792_v45  ;;  %v5188_v21 = vld [vmem:[#allocation23 + $0xd60] sm:$0xff]  ;;  %v4847_v45 = vld [vmem:[#allocation23 + $0x2b8] sm:$0xff] }
 0x741   :  { %5575 = vmatpush.msra.mxu0 %v4876_v57  ;;  %5586 = vmatpush.msrb.mxu3 %v5026_v38  ;;  %v4925_v57 = vld [vmem:[#allocation23 + $0x528] sm:$0xff]  ;;  %v5039_v38 = vld [vmem:[#allocation23 + $0x8b8] sm:$0xff] }
 0x742   :  { %5609 = vmatpush.msrb.mxu2 %v5104_v59  ;;  %5554 = vmatpush.msrb.mxu1 %v4786_v46  ;;  %v5182_v59 = vld [vmem:[#allocation23 + $0xd30] sm:$0xff]  ;;  %v4841_v46 = vld [vmem:[#allocation23 + $0x288] sm:$0xff] }
 0x743   :  { %5576 = vmatpush.msra.mxu0 %v4870_v6  ;;  %5587 = vmatpush.msrb.mxu3 %v5020_v13  ;;  %v4919_v6 = vld [vmem:[#allocation23 + $0x4f8] sm:$0xff]  ;;  %v5033_v13 = vld [vmem:[#allocation23 + $0x888] sm:$0xff] }
 0x744   :  { %5610 = vmatpush.msrb.mxu2 %v5098_v18  ;;  %5555 = vmatpush.msrb.mxu1 %v4780_v41  ;;  %v5176_v18 = vld [vmem:[#allocation23 + $0xd00] sm:$0xff]  ;;  %v4835_v41 = vld [vmem:[#allocation23 + $0x258] sm:$0xff] }
 0x745   :  { %5577 = vmatpush.msra.mxu0 %v4864_v50  ;;  %5588 = vmatpush.msrb.mxu3 %v5014_v24  ;;  %v4913_v50 = vld [vmem:[#allocation23 + $0x4c8] sm:$0xff]  ;;  %v5027_v24 = vld [vmem:[#allocation23 + $0x858] sm:$0xff] }
 0x746   :  { %5611 = vmatpush.msrb.mxu2 %v5092_v32  ;;  %5556 = vmatpush.msrb.mxu1 %v4774_v29  ;;  %v5170_v32 = vld [vmem:[#allocation23 + $0xcd0] sm:$0xff]  ;;  %v4829_v29 = vld [vmem:[#allocation23 + $0x228] sm:$0xff] }
 0x747   :  { %5578 = vmatpush.msra.mxu0 %v4858_v15  ;;  %5589 = vmatpush.msrb.mxu3 %v5008_v5  ;;  %v4907_v15 = vld [vmem:[#allocation23 + $0x498] sm:$0xff]  ;;  %v5021_v5 = vld [vmem:[#allocation23 + $0x828] sm:$0xff] }
 0x748   :  { %5612 = vmatpush.msrb.mxu2 %v5086_v40  ;;  %5579 = vmatmul.f32.vlgmr.msra.gmra.mxu0 %v8896_v39  ;;  %v5164_v40 = vld [vmem:[#allocation23 + $0xca0] sm:$0xff] }
 0x749   :  { %5649 = vmatpush.msrb.mxu0 %v5296_v37  ;;  %5557 = vmatpush.msrb.mxu1 %v4768_v7  ;;  %v4823_v37 = vld [vmem:[#allocation23 + $0x1f8] sm:$0xff]  ;;  %v4901_v7 = vld [vmem:[#allocation23 + $0x468] sm:$0xff] }
 0x74a   :  { %5590 = vmatpush.msrb.mxu3 %v5002_v11  ;;  %5613 = vmatpush.msrb.mxu2 %v5080_v60  ;;  %v5015_v11 = vld [vmem:[#allocation23 + $0x7f8] sm:$0xff]  ;;  %v5158_v60 = vld [vmem:[#allocation23 + $0xc70] sm:$0xff] }
 0x74b   :  { %5650 = vmatpush.msrb.mxu0 %v5290_v8  ;;  %5558 = vmatpush.msrb.mxu1 %v4762_v61  ;;  %v4817_v8 = vld [vmem:[#allocation23 + $0x1c8] sm:$0xff]  ;;  %v4895_v61 = vld [vmem:[#allocation23 + $0x438] sm:$0xff] }
 0x74c   :  { %5591 = vmatpush.msrb.mxu3 %v4996_v17  ;;  %5614 = vmatpush.msrb.mxu2 %v5074_v54  ;;  %v5009_v17 = vld [vmem:[#allocation23 + $0x7c8] sm:$0xff]  ;;  %v5152_v54 = vld [vmem:[#allocation23 + $0xc40] sm:$0xff] }
 0x74d   :  { %5559 = vmatmul.f32.vlgmr.msrb.gmra.mxu1 %v8914_v23  ;;  %5651 = vmatpush.msrb.mxu0 %v5284_v31  ;;  %v4811_v31 = vld [vmem:[#allocation23 + $0x198] sm:$0xff] }
 0x74e   :  { %5623 = vmatpush.msra.mxu1 %v5236_v36  ;;  %5592 = vmatpush.msrb.mxu3 %v4990_v47  ;;  %v4889_v36 = vld [vmem:[#allocation23 + $0x408] sm:$0xff]  ;;  %v5003_v47 = vld [vmem:[#allocation23 + $0x798] sm:$0xff] }
 0x74f   :  { %5615 = vmatpush.msrb.mxu2 %v5068_v0  ;;  %5652 = vmatpush.msrb.mxu0 %v5278_v58  ;;  %v5146_v0 = vld [vmem:[#allocation23 + $0xc10] sm:$0xff]  ;;  %v4805_v58 = vld [vmem:[#allocation23 + $0x168] sm:$0xff] }
 0x750   :  { %5624 = vmatpush.msra.mxu1 %v5230_v52  ;;  %5593 = vmatpush.msrb.mxu3 %v4984_v44  ;;  %v4883_v52 = vld [vmem:[#allocation23 + $0x3d8] sm:$0xff]  ;;  %v4997_v44 = vld [vmem:[#allocation23 + $0x768] sm:$0xff] }
 0x751   :  { %5616 = vmatpush.msrb.mxu2 %v5062_v4  ;;  %5653 = vmatpush.msrb.mxu0 %v5272_v49  ;;  %v5141_v4 = vld [vmem:[#allocation23 + $0xbe8] sm:$0xff]  ;;  %v4799_v49 = vld [vmem:[#allocation23 + $0x138] sm:$0xff] }
 0x752   :  { %5625 = vmatpush.msra.mxu1 %v5224_v63  ;;  %5594 = vmatpush.msrb.mxu3 %v4978_v1  ;;  %v4877_v63 = vld [vmem:[#allocation23 + $0x3a8] sm:$0xff]  ;;  %v4991_v1 = vld [vmem:[#allocation23 + $0x738] sm:$0xff] }
 0x753   :  { %5617 = vmatpush.msrb.mxu2 %v5056_v53  ;;  %5654 = vmatpush.msrb.mxu0 %v5266_v26  ;;  %v5135_v53 = vld [vmem:[#allocation23 + $0xbb8] sm:$0xff]  ;;  %v4793_v26 = vld [vmem:[#allocation23 + $0x108] sm:$0xff] }
 0x754   :  { %5626 = vmatpush.msra.mxu1 %v5218_v51  ;;  %5595 = vmatpush.msrb.mxu3 %v4972_v28  ;;  %v4871_v51 = vld [vmem:[#allocation23 + $0x378] sm:$0xff]  ;;  %v4985_v28 = vld [vmem:[#allocation23 + $0x708] sm:$0xff] }
 0x755   :  { %5618 = vmatpush.msrb.mxu2 %v5050_v19  ;;  %5655 = vmatpush.msrb.mxu0 %v5260_v3  ;;  %v5129_v19 = vld [vmem:[#allocation23 + $0xb88] sm:$0xff]  ;;  %v4787_v3 = vld [vmem:[#allocation23 + $0xd8] sm:$0xff] }
 0x756   :  { %5619 = vmatmul.f32.vlgmr.msrb.gmra.mxu2 %v8905_v43  ;;  %5627 = vmatpush.msra.mxu1 %v5212_v34  ;;  %v4865_v34 = vld [vmem:[#allocation23 + $0x348] sm:$0xff] }
 0x757   :  { %5683 = vmatpush.msra.mxu2 %v4949_v27  ;;  %5596 = vmatpush.msrb.mxu3 %v4966_v33  ;;  %v4979_v27 = vld [vmem:[#allocation23 + $0x6d8] sm:$0xff] }
 0x758   :  { %5628 = vmatpush.msra.mxu1 %v5206_v56  ;;  %5656 = vmatpush.msrb.mxu0 %v5254_v35  ;;  %v5123_v33 = vld [vmem:[#allocation23 + $0xb58] sm:$0xff]  ;;  %v4781_v56 = vld [vmem:[#allocation23 + $0xa8] sm:$0xff] }
 0x759   :  { %5684 = vmatpush.msra.mxu2 %v4943_v20  ;;  %5597 = vmatpush.msrb.mxu3 %v4960_v9  ;;  %v4859_v35 = vld [vmem:[#allocation23 + $0x318] sm:$0xff]  ;;  %v4973_v20 = vld [vmem:[#allocation23 + $0x6a8] sm:$0xff] }
 0x75a   :  { %5629 = vmatpush.msra.mxu1 %v5200_v55  ;;  %5657 = vmatpush.msrb.mxu0 %v5248_v25  ;;  %v5117_v9 = vld [vmem:[#allocation23 + $0xb28] sm:$0xff]  ;;  %v4775_v25 = vld [vmem:[#allocation23 + $0x78] sm:$0xff] }
 0x75b   :  { %5685 = vmatpush.msra.mxu2 %v4937_v16  ;;  %5598 = vmatpush.msrb.mxu3 %v4954_v2  ;;  %v5297_v55 = vld [vmem:[#allocation23 + $0x10c8] sm:$0xff]  ;;  %v4967_v16 = vld [vmem:[#allocation23 + $0x678] sm:$0xff] }
 0x75c   :  { %5599 = vmatmul.f32.vlgmr.msrb.gmra.mxu3 %v8903_v14  ;;  %5630 = vmatpush.msra.mxu1 %v5194_v30  ;;  %v5111_v2 = vld [vmem:[#allocation23 + $0xaf8] sm:$0xff] }
 0x75d   :  { %5658 = vmatpush.msrb.mxu0 %v5242_v12  ;;  %5663 = vmatpush.msra.mxu3 %v4853_v10  ;;  %v5291_v30 = vld [vmem:[#allocation23 + $0x1098] sm:$0xff]  ;;  %v4769_v12 = vld [vmem:[#allocation23 + $0x48] sm:$0xff] }
 0x75e   :  { %5686 = vmatpush.msra.mxu2 %v4931_v42  ;;  %7264 = vmatmul.msk.f32.vlgmr.msrb.gmra.mxu0 %vm4193_vm9, %v8907_v48  ;;  %v4961_v10 = vld [vmem:[#allocation23 + $0x648] sm:$0xff] }
 0x75f   :  { %5703 = vmatpush.msra.mxu0 %v5045_v62  ;;  %5631 = vmatpush.msra.mxu1 %v5188_v21  ;;  %v5105_v42 = vld [vmem:[#allocation23 + $0xac8] sm:$0xff]  ;;  %v4763_v21 = vld [vmem:[#allocation23 + $0x18] sm:$0xff] }
 0x760   :  { %5664 = vmatpush.msra.mxu3 %v4847_v45  ;;  %5687 = vmatpush.msra.mxu2 %v4925_v57  ;;  %v5285_v62 = vld [vmem:[#allocation23 + $0x1068] sm:$0xff]  ;;  %v4955_v45 = vld [vmem:[#allocation23 + $0x618] sm:$0xff] }
 0x761   :  { %5704 = vmatpush.msra.mxu0 %v5039_v38  ;;  %5632 = vmatpush.msra.mxu1 %v5182_v59  ;;  %v5099_v57 = vld [vmem:[#allocation23 + $0xa98] sm:$0xff]  ;;  %v5237_v38 = vld [vmem:[#allocation23 + $0xee8] sm:$0xff] }
 0x762   :  { %5665 = vmatpush.msra.mxu3 %v4841_v46  ;;  %5688 = vmatpush.msra.mxu2 %v4919_v6  ;;  %v5279_v59 = vld [vmem:[#allocation23 + $0x1038] sm:$0xff]  ;;  %v4854_v46 = vld [vmem:[#allocation23 + $0x2f0] sm:$0xff]  ;;  %v5093_v6 = vld [vmem:[#allocation23 + $0xa68] sm:$0xff] }
 0x763   :  { %5705 = vmatpush.msra.mxu0 %v5033_v13  ;;  %5633 = vmatpush.msra.mxu1 %v5176_v18  ;;  %v5231_v13 = vld [vmem:[#allocation23 + $0xeb8] sm:$0xff]  ;;  %v5273_v18 = vld [vmem:[#allocation23 + $0x1008] sm:$0xff] }
 0x764   :  { %5666 = vmatpush.msra.mxu3 %v4835_v41  ;;  %5689 = vmatpush.msra.mxu2 %v4913_v50  ;;  %v4848_v41 = vld [vmem:[#allocation23 + $0x2c0] sm:$0xff]  ;;  %v5087_v50 = vld [vmem:[#allocation23 + $0xa38] sm:$0xff] }
 0x765   :  { %5706 = vmatpush.msra.mxu0 %v5027_v24  ;;  %5634 = vmatpush.msra.mxu1 %v5170_v32  ;;  %v5225_v24 = vld [vmem:[#allocation23 + $0xe88] sm:$0xff]  ;;  %v5267_v32 = vld [vmem:[#allocation23 + $0xfd8] sm:$0xff] }
 0x766   :  { %5667 = vmatpush.msra.mxu3 %v4829_v29  ;;  %5690 = vmatpush.msra.mxu2 %v4907_v15  ;;  %v4842_v29 = vld [vmem:[#allocation23 + $0x290] sm:$0xff]  ;;  %v5081_v15 = vld [vmem:[#allocation23 + $0xa08] sm:$0xff] }
 0x767   :  { %5707 = vmatpush.msra.mxu0 %v5021_v5  ;;  %5635 = vmatpush.msra.mxu1 %v5164_v40  ;;  %v5219_v5 = vld [vmem:[#allocation23 + $0xe58] sm:$0xff]  ;;  %v5261_v40 = vld [vmem:[#allocation23 + $0xfa8] sm:$0xff] }
 0x768   :  { %5668 = vmatpush.msra.mxu3 %v4823_v37  ;;  %5691 = vmatpush.msra.mxu2 %v4901_v7  ;;  %v4836_v37 = vld [vmem:[#allocation23 + $0x260] sm:$0xff]  ;;  %v5075_v7 = vld [vmem:[#allocation23 + $0x9d8] sm:$0xff] }
 0x769   :  { %5708 = vmatpush.msra.mxu0 %v5015_v11  ;;  %5636 = vmatpush.msra.mxu1 %v5158_v60  ;;  %v5213_v11 = vld [vmem:[#allocation23 + $0xe28] sm:$0xff]  ;;  %v5255_v60 = vld [vmem:[#allocation23 + $0xf78] sm:$0xff] }
 0x76a   :  { %5669 = vmatpush.msra.mxu3 %v4817_v8  ;;  %5692 = vmatpush.msra.mxu2 %v4895_v61  ;;  %v4830_v8 = vld [vmem:[#allocation23 + $0x230] sm:$0xff]  ;;  %v5069_v61 = vld [vmem:[#allocation23 + $0x9a8] sm:$0xff] }
 0x76b   :  { %5709 = vmatpush.msra.mxu0 %v5009_v17  ;;  %5637 = vmatpush.msra.mxu1 %v5152_v54  ;;  %v5207_v17 = vld [vmem:[#allocation23 + $0xdf8] sm:$0xff]  ;;  %v5249_v54 = vld [vmem:[#allocation23 + $0xf48] sm:$0xff] }
 0x76c   :  { %5670 = vmatpush.msra.mxu3 %v4811_v31  ;;  %5693 = vmatpush.msra.mxu2 %v4889_v36  ;;  %v4824_v31 = vld [vmem:[#allocation23 + $0x200] sm:$0xff]  ;;  %v5063_v36 = vld [vmem:[#allocation23 + $0x978] sm:$0xff] }
 0x76d   :  { %5710 = vmatpush.msra.mxu0 %v5003_v47  ;;  %5638 = vmatpush.msra.mxu1 %v5146_v0  ;;  %v5201_v47 = vld [vmem:[#allocation23 + $0xdc8] sm:$0xff]  ;;  %v5243_v0 = vld [vmem:[#allocation23 + $0xf18] sm:$0xff] }
 0x76e   :  { %5671 = vmatpush.msra.mxu3 %v4805_v58  ;;  %5694 = vmatpush.msra.mxu2 %v4883_v52  ;;  %v4818_v58 = vld [vmem:[#allocation23 + $0x1d0] sm:$0xff] }
 0x76f   :  { %5639 = vmatmul.f32.vlgmr.msra.gmra.mxu1 %v8920_v22  ;;  %5711 = vmatpush.msra.mxu0 %v4997_v44  ;;  %v5046_v52 = vld [vmem:[#allocation23 + $0x8f0] sm:$0xff]  ;;  %v5057_v44 = vld [vmem:[#allocation23 + $0x948] sm:$0xff] }
 0x770   :  { %5723 = vmatpush.msrb.mxu1 %v5141_v4  ;;  %5672 = vmatpush.msra.mxu3 %v4799_v49  ;;  %v5195_v4 = vld [vmem:[#allocation23 + $0xd98] sm:$0xff]  ;;  %v4812_v49 = vld [vmem:[#allocation23 + $0x1a0] sm:$0xff] }
 0x771   :  { %5695 = vmatpush.msra.mxu2 %v4877_v63  ;;  %5712 = vmatpush.msra.mxu0 %v4991_v1  ;;  %v5040_v63 = vld [vmem:[#allocation23 + $0x8c0] sm:$0xff]  ;;  %v5051_v1 = vld [vmem:[#allocation23 + $0x918] sm:$0xff] }
 0x772   :  { %5724 = vmatpush.msrb.mxu1 %v5135_v53  ;;  %5673 = vmatpush.msra.mxu3 %v4793_v26  ;;  %v5189_v53 = vld [vmem:[#allocation23 + $0xd68] sm:$0xff]  ;;  %v4806_v26 = vld [vmem:[#allocation23 + $0x170] sm:$0xff] }
 0x773   :  { %5696 = vmatpush.msra.mxu2 %v4871_v51  ;;  %5713 = vmatpush.msra.mxu0 %v4985_v28  ;;  %v4950_v51 = vld [vmem:[#allocation23 + $0x5f0] sm:$0xff] }
 0x774   :  { %5725 = vmatpush.msrb.mxu1 %v5129_v19  ;;  %5674 = vmatpush.msra.mxu3 %v4787_v3  ;;  %v5034_v28 = vld [vmem:[#allocation23 + $0x890] sm:$0xff]  ;;  %v5183_v19 = vld [vmem:[#allocation23 + $0xd38] sm:$0xff]  ;;  %v4800_v3 = vld [vmem:[#allocation23 + $0x140] sm:$0xff] }
 0x775   :  { %5697 = vmatpush.msra.mxu2 %v4865_v34  ;;  %5714 = vmatpush.msra.mxu0 %v4979_v27  ;;  %v4944_v34 = vld [vmem:[#allocation23 + $0x5c0] sm:$0xff] }
 0x776   :  { %5726 = vmatpush.msrb.mxu1 %v5123_v33  ;;  %5675 = vmatpush.msra.mxu3 %v4781_v56  ;;  %v5028_v27 = vld [vmem:[#allocation23 + $0x860] sm:$0xff]  ;;  %v5177_v33 = vld [vmem:[#allocation23 + $0xd08] sm:$0xff]  ;;  %v4794_v56 = vld [vmem:[#allocation23 + $0x110] sm:$0xff] }
 0x777   :  { %5698 = vmatpush.msra.mxu2 %v4859_v35  ;;  %5715 = vmatpush.msra.mxu0 %v4973_v20  ;;  %v4938_v35 = vld [vmem:[#allocation23 + $0x590] sm:$0xff] }
 0x778   :  { %5699 = vmatmul.f32.vlgmr.msra.gmra.mxu2 %v8896_v39  ;;  %5727 = vmatpush.msrb.mxu1 %v5117_v9  ;;  %v5022_v20 = vld [vmem:[#allocation23 + $0x830] sm:$0xff]  ;;  %v5171_v9 = vld [vmem:[#allocation23 + $0xcd8] sm:$0xff] }
 0x779   :  { %5769 = vmatpush.msrb.mxu2 %v5297_v55  ;;  %5676 = vmatpush.msra.mxu3 %v4775_v25  ;;  %v4788_v55 = vld [vmem:[#allocation23 + $0xe0] sm:$0xff] }
 0x77a   :  { %5716 = vmatpush.msra.mxu0 %v4967_v16  ;;  %5728 = vmatpush.msrb.mxu1 %v5111_v2  ;;  %v4932_v25 = vld [vmem:[#allocation23 + $0x560] sm:$0xff]  ;;  %v5165_v2 = vld [vmem:[#allocation23 + $0xca8] sm:$0xff] }
 0x77b   :  { %5770 = vmatpush.msrb.mxu2 %v5291_v30  ;;  %5677 = vmatpush.msra.mxu3 %v4769_v12  ;;  %v5016_v16 = vld [vmem:[#allocation23 + $0x800] sm:$0xff]  ;;  %v4782_v30 = vld [vmem:[#allocation23 + $0xb0] sm:$0xff] }
 0x77c   :  { %5717 = vmatpush.msra.mxu0 %v4961_v10  ;;  %5729 = vmatpush.msrb.mxu1 %v5105_v42  ;;  %v4926_v12 = vld [vmem:[#allocation23 + $0x530] sm:$0xff]  ;;  %v5159_v42 = vld [vmem:[#allocation23 + $0xc78] sm:$0xff] }
 0x77d   :  { %5771 = vmatpush.msrb.mxu2 %v5285_v62  ;;  %5678 = vmatpush.msra.mxu3 %v4763_v21  ;;  %v5010_v10 = vld [vmem:[#allocation23 + $0x7d0] sm:$0xff]  ;;  %v4776_v62 = vld [vmem:[#allocation23 + $0x80] sm:$0xff] }
 0x77e   :  { %5679 = vmatmul.f32.vlgmr.msra.gmra.mxu3 %v8914_v23  ;;  %5718 = vmatpush.msra.mxu0 %v4955_v45  ;;  %v4920_v21 = vld [vmem:[#allocation23 + $0x500] sm:$0xff] }
 0x77f   :  { %5730 = vmatpush.msrb.mxu1 %v5099_v57  ;;  %5743 = vmatpush.msrb.mxu3 %v5237_v38  ;;  %v5004_v45 = vld [vmem:[#allocation23 + $0x7a0] sm:$0xff]  ;;  %v5153_v57 = vld [vmem:[#allocation23 + $0xc48] sm:$0xff]  ;;  %v4770_v38 = vld [vmem:[#allocation23 + $0x50] sm:$0xff] }
 0x780   :  { %5772 = vmatpush.msrb.mxu2 %v5279_v59  ;;  %5719 = vmatmul.f32.vlgmr.msra.gmra.mxu0 %v8903_v14  ;;  %v4914_v59 = vld [vmem:[#allocation23 + $0x4d0] sm:$0xff] }
 0x781   :  { %5783 = vmatpush.msrb.mxu0 %v4854_v46  ;;  %5731 = vmatpush.msrb.mxu1 %v5093_v6  ;;  %v4998_v46 = vld [vmem:[#allocation23 + $0x770] sm:$0xff]  ;;  %v5147_v6 = vld [vmem:[#allocation23 + $0xc18] sm:$0xff] }
 0x782   :  { %5744 = vmatpush.msrb.mxu3 %v5231_v13  ;;  %5773 = vmatpush.msrb.mxu2 %v5273_v18  ;;  %v4764_v13 = vld [vmem:[#allocation23 + $0x20] sm:$0xff] }
 0x783   :  { %5784 = vmatpush.msrb.mxu0 %v4848_v41  ;;  %5732 = vmatpush.msrb.mxu1 %v5087_v50  ;;  %v4908_v18 = vld [vmem:[#allocation23 + $0x4a0] sm:$0xff]  ;;  %v5142_v50 = vld [vmem:[#allocation23 + $0xbf0] sm:$0xff] }
 0x784   :  { %5745 = vmatpush.msrb.mxu3 %v5225_v24  ;;  %5774 = vmatpush.msrb.mxu2 %v5267_v32  ;;  %v4992_v41 = vld [vmem:[#allocation23 + $0x740] sm:$0xff]  ;;  %v5238_v24 = vld [vmem:[#allocation23 + $0xef0] sm:$0xff] }
 0x785   :  { %5785 = vmatpush.msrb.mxu0 %v4842_v29  ;;  %5733 = vmatpush.msrb.mxu1 %v5081_v15  ;;  %v4902_v32 = vld [vmem:[#allocation23 + $0x470] sm:$0xff]  ;;  %v5136_v15 = vld [vmem:[#allocation23 + $0xbc0] sm:$0xff] }
 0x786   :  { %5746 = vmatpush.msrb.mxu3 %v5219_v5  ;;  %5775 = vmatpush.msrb.mxu2 %v5261_v40  ;;  %v4986_v29 = vld [vmem:[#allocation23 + $0x710] sm:$0xff]  ;;  %v5232_v5 = vld [vmem:[#allocation23 + $0xec0] sm:$0xff] }
 0x787   :  { %5786 = vmatpush.msrb.mxu0 %v4836_v37  ;;  %5734 = vmatpush.msrb.mxu1 %v5075_v7  ;;  %v4896_v40 = vld [vmem:[#allocation23 + $0x440] sm:$0xff]  ;;  %v5130_v7 = vld [vmem:[#allocation23 + $0xb90] sm:$0xff] }
 0x788   :  { %5747 = vmatpush.msrb.mxu3 %v5213_v11  ;;  %5776 = vmatpush.msrb.mxu2 %v5255_v60  ;;  %v4980_v37 = vld [vmem:[#allocation23 + $0x6e0] sm:$0xff]  ;;  %v5226_v11 = vld [vmem:[#allocation23 + $0xe90] sm:$0xff] }
 0x789   :  { %5787 = vmatpush.msrb.mxu0 %v4830_v8  ;;  %5735 = vmatpush.msrb.mxu1 %v5069_v61  ;;  %v4890_v60 = vld [vmem:[#allocation23 + $0x410] sm:$0xff]  ;;  %v5124_v61 = vld [vmem:[#allocation23 + $0xb60] sm:$0xff] }
 0x78a   :  { %5748 = vmatpush.msrb.mxu3 %v5207_v17  ;;  %5777 = vmatpush.msrb.mxu2 %v5249_v54  ;;  %v4974_v8 = vld [vmem:[#allocation23 + $0x6b0] sm:$0xff]  ;;  %v5220_v17 = vld [vmem:[#allocation23 + $0xe60] sm:$0xff] }
 0x78b   :  { %5788 = vmatpush.msrb.mxu0 %v4824_v31  ;;  %5736 = vmatpush.msrb.mxu1 %v5063_v36  ;;  %v4884_v54 = vld [vmem:[#allocation23 + $0x3e0] sm:$0xff]  ;;  %v5118_v36 = vld [vmem:[#allocation23 + $0xb30] sm:$0xff] }
 0x78c   :  { %5749 = vmatpush.msrb.mxu3 %v5201_v47  ;;  %5778 = vmatpush.msrb.mxu2 %v5243_v0  ;;  %v4968_v31 = vld [vmem:[#allocation23 + $0x680] sm:$0xff]  ;;  %v5214_v47 = vld [vmem:[#allocation23 + $0xe30] sm:$0xff] }
 0x78d   :  { %7265 = vmatmul.msk.f32.vlgmr.msrb.gmra.mxu2 %vm4193_vm9, %v8907_v48  ;;  %5789 = vmatpush.msrb.mxu0 %v4818_v58  ;;  %v4878_v0 = vld [vmem:[#allocation23 + $0x3b0] sm:$0xff] }
 0x78e   :  { %5823 = vmatpush.msra.mxu2 %v5046_v52  ;;  %5737 = vmatpush.msrb.mxu1 %v5057_v44  ;;  %v4962_v58 = vld [vmem:[#allocation23 + $0x650] sm:$0xff]  ;;  %v5112_v52 = vld [vmem:[#allocation23 + $0xb00] sm:$0xff] }
 0x78f   :  { %5750 = vmatpush.msrb.mxu3 %v5195_v4  ;;  %5790 = vmatpush.msrb.mxu0 %v4812_v49  ;;  %v5208_v44 = vld [vmem:[#allocation23 + $0xe00] sm:$0xff] }
 0x790   :  { %5824 = vmatpush.msra.mxu2 %v5040_v63  ;;  %5738 = vmatpush.msrb.mxu1 %v5051_v1  ;;  %v4872_v4 = vld [vmem:[#allocation23 + $0x380] sm:$0xff]  ;;  %v5106_v63 = vld [vmem:[#allocation23 + $0xad0] sm:$0xff] }
 0x791   :  { %5751 = vmatpush.msrb.mxu3 %v5189_v53  ;;  %5739 = vmatmul.f32.vlgmr.msrb.gmra.mxu1 %v8905_v43  ;;  %v4956_v49 = vld [vmem:[#allocation23 + $0x620] sm:$0xff]  ;;  %v5202_v1 = vld [vmem:[#allocation23 + $0xdd0] sm:$0xff]  ;;  %v4855_v53 = vld [vmem:[#allocation23 + $0x2f8] sm:$0xff] }
 0x792   :  { %5791 = vmatpush.msrb.mxu0 %v4806_v26  ;;  %5803 = vmatpush.msra.mxu1 %v4950_v51  ;;  %v4866_v26 = vld [vmem:[#allocation23 + $0x350] sm:$0xff]  ;;  %v5100_v51 = vld [vmem:[#allocation23 + $0xaa0] sm:$0xff] }
 0x793   :  { %5825 = vmatpush.msra.mxu2 %v5034_v28  ;;  %5752 = vmatpush.msrb.mxu3 %v5183_v19  ;;  %v5196_v28 = vld [vmem:[#allocation23 + $0xda0] sm:$0xff]  ;;  %v4849_v19 = vld [vmem:[#allocation23 + $0x2c8] sm:$0xff] }
 0x794   :  { %5792 = vmatpush.msrb.mxu0 %v4800_v3  ;;  %5804 = vmatpush.msra.mxu1 %v4944_v34  ;;  %v4860_v3 = vld [vmem:[#allocation23 + $0x320] sm:$0xff]  ;;  %v5094_v34 = vld [vmem:[#allocation23 + $0xa70] sm:$0xff] }
 0x795   :  { %5826 = vmatpush.msra.mxu2 %v5028_v27  ;;  %5753 = vmatpush.msrb.mxu3 %v5177_v33  ;;  %v5190_v27 = vld [vmem:[#allocation23 + $0xd70] sm:$0xff] }
 0x796   :  { %5793 = vmatpush.msrb.mxu0 %v4794_v56  ;;  %5805 = vmatpush.msra.mxu1 %v4938_v35  ;;  %v5298_v33 = vld [vmem:[#allocation23 + $0x10d0] sm:$0xff]  ;;  %v4843_v56 = vld [vmem:[#allocation23 + $0x298] sm:$0xff]  ;;  %v5088_v35 = vld [vmem:[#allocation23 + $0xa40] sm:$0xff] }
 0x797   :  { %5827 = vmatpush.msra.mxu2 %v5022_v20  ;;  %5754 = vmatpush.msrb.mxu3 %v5171_v9  ;;  %v5184_v20 = vld [vmem:[#allocation23 + $0xd40] sm:$0xff] }
 0x798   :  { %5794 = vmatpush.msrb.mxu0 %v4788_v55  ;;  %5806 = vmatpush.msra.mxu1 %v4932_v25  ;;  %v5292_v9 = vld [vmem:[#allocation23 + $0x10a0] sm:$0xff]  ;;  %v4837_v55 = vld [vmem:[#allocation23 + $0x268] sm:$0xff]  ;;  %v5082_v25 = vld [vmem:[#allocation23 + $0xa10] sm:$0xff] }
 0x799   :  { %5828 = vmatpush.msra.mxu2 %v5016_v16  ;;  %5755 = vmatpush.msrb.mxu3 %v5165_v2  ;;  %v5178_v16 = vld [vmem:[#allocation23 + $0xd10] sm:$0xff] }
 0x79a   :  { %5795 = vmatpush.msrb.mxu0 %v4782_v30  ;;  %5807 = vmatpush.msra.mxu1 %v4926_v12  ;;  %v5286_v2 = vld [vmem:[#allocation23 + $0x1070] sm:$0xff]  ;;  %v4831_v30 = vld [vmem:[#allocation23 + $0x238] sm:$0xff]  ;;  %v5076_v12 = vld [vmem:[#allocation23 + $0x9e0] sm:$0xff] }
 0x79b   :  { %5829 = vmatpush.msra.mxu2 %v5010_v10  ;;  %5756 = vmatpush.msrb.mxu3 %v5159_v42  ;;  %v5172_v10 = vld [vmem:[#allocation23 + $0xce0] sm:$0xff] }
 0x79c   :  { %5796 = vmatpush.msrb.mxu0 %v4776_v62  ;;  %5808 = vmatpush.msra.mxu1 %v4920_v21  ;;  %v5280_v42 = vld [vmem:[#allocation23 + $0x1040] sm:$0xff]  ;;  %v4825_v62 = vld [vmem:[#allocation23 + $0x208] sm:$0xff]  ;;  %v5070_v21 = vld [vmem:[#allocation23 + $0x9b0] sm:$0xff] }
 0x79d   :  { %5830 = vmatpush.msra.mxu2 %v5004_v45  ;;  %5757 = vmatpush.msrb.mxu3 %v5153_v57  ;;  %v5166_v45 = vld [vmem:[#allocation23 + $0xcb0] sm:$0xff] }
 0x79e   :  { %5797 = vmatpush.msrb.mxu0 %v4770_v38  ;;  %5809 = vmatpush.msra.mxu1 %v4914_v59  ;;  %v5274_v57 = vld [vmem:[#allocation23 + $0x1010] sm:$0xff]  ;;  %v4819_v38 = vld [vmem:[#allocation23 + $0x1d8] sm:$0xff]  ;;  %v5064_v59 = vld [vmem:[#allocation23 + $0x980] sm:$0xff] }
 0x79f   :  { %5831 = vmatpush.msra.mxu2 %v4998_v46  ;;  %5758 = vmatpush.msrb.mxu3 %v5147_v6  ;;  %v5160_v46 = vld [vmem:[#allocation23 + $0xc80] sm:$0xff] }
 0x7a0   :  { %5759 = vmatmul.f32.vlgmr.msrb.gmra.mxu3 %v8920_v22  ;;  %5798 = vmatpush.msrb.mxu0 %v4764_v13  ;;  %v5268_v6 = vld [vmem:[#allocation23 + $0xfe0] sm:$0xff]  ;;  %v4813_v13 = vld [vmem:[#allocation23 + $0x1a8] sm:$0xff] }
 0x7a1   :  { %5810 = vmatpush.msra.mxu1 %v4908_v18  ;;  %5832 = vmatpush.msra.mxu2 %v4992_v41  ;;  %v5058_v18 = vld [vmem:[#allocation23 + $0x950] sm:$0xff] }
 0x7a2   :  { %5843 = vmatpush.msra.mxu3 %v5142_v50  ;;  %5799 = vmatmul.f32.vlgmr.msrb.gmra.mxu0 %v8914_v23  ;;  %v5154_v41 = vld [vmem:[#allocation23 + $0xc50] sm:$0xff] }
 0x7a3   :  { %5863 = vmatpush.msra.mxu0 %v5238_v24  ;;  %5811 = vmatpush.msra.mxu1 %v4902_v32  ;;  %v5262_v50 = vld [vmem:[#allocation23 + $0xfb0] sm:$0xff]  ;;  %v4807_v24 = vld [vmem:[#allocation23 + $0x178] sm:$0xff]  ;;  %v5052_v32 = vld [vmem:[#allocation23 + $0x920] sm:$0xff] }
 0x7a4   :  { %5833 = vmatpush.msra.mxu2 %v4986_v29  ;;  %5844 = vmatpush.msra.mxu3 %v5136_v15  ;;  %v5148_v29 = vld [vmem:[#allocation23 + $0xc20] sm:$0xff] }
 0x7a5   :  { %5864 = vmatpush.msra.mxu0 %v5232_v5  ;;  %5812 = vmatpush.msra.mxu1 %v4896_v40  ;;  %v5256_v15 = vld [vmem:[#allocation23 + $0xf80] sm:$0xff]  ;;  %v4801_v5 = vld [vmem:[#allocation23 + $0x148] sm:$0xff]  ;;  %v4951_v40 = vld [vmem:[#allocation23 + $0x5f8] sm:$0xff] }
 0x7a6   :  { %5834 = vmatpush.msra.mxu2 %v4980_v37  ;;  %5845 = vmatpush.msra.mxu3 %v5130_v7  ;;  %v5143_v37 = vld [vmem:[#allocation23 + $0xbf8] sm:$0xff]  ;;  %v5250_v7 = vld [vmem:[#allocation23 + $0xf50] sm:$0xff] }
 0x7a7   :  { %5865 = vmatpush.msra.mxu0 %v5226_v11  ;;  %5813 = vmatpush.msra.mxu1 %v4890_v60  ;;  %v4795_v11 = vld [vmem:[#allocation23 + $0x118] sm:$0xff]  ;;  %v4945_v60 = vld [vmem:[#allocation23 + $0x5c8] sm:$0xff] }
 0x7a8   :  { %5835 = vmatpush.msra.mxu2 %v4974_v8  ;;  %5846 = vmatpush.msra.mxu3 %v5124_v61  ;;  %v5137_v8 = vld [vmem:[#allocation23 + $0xbc8] sm:$0xff]  ;;  %v5244_v61 = vld [vmem:[#allocation23 + $0xf20] sm:$0xff] }
 0x7a9   :  { %5866 = vmatpush.msra.mxu0 %v5220_v17  ;;  %5814 = vmatpush.msra.mxu1 %v4884_v54  ;;  %v4789_v17 = vld [vmem:[#allocation23 + $0xe8] sm:$0xff]  ;;  %v4939_v54 = vld [vmem:[#allocation23 + $0x598] sm:$0xff] }
 0x7aa   :  { %5836 = vmatpush.msra.mxu2 %v4968_v31  ;;  %5847 = vmatpush.msra.mxu3 %v5118_v36  ;;  %v5131_v31 = vld [vmem:[#allocation23 + $0xb98] sm:$0xff] }
 0x7ab   :  { %5867 = vmatpush.msra.mxu0 %v5214_v47  ;;  %5815 = vmatpush.msra.mxu1 %v4878_v0  ;;  %v5047_v36 = vld [vmem:[#allocation23 + $0x8f8] sm:$0xff]  ;;  %v4933_v0 = vld [vmem:[#allocation23 + $0x568] sm:$0xff] }
 0x7ac   :  { %5837 = vmatpush.msra.mxu2 %v4962_v58  ;;  %5848 = vmatpush.msra.mxu3 %v5112_v52  ;;  %v4783_v47 = vld [vmem:[#allocation23 + $0xb8] sm:$0xff]  ;;  %v5125_v58 = vld [vmem:[#allocation23 + $0xb68] sm:$0xff] }
 0x7ad   :  { %5868 = vmatpush.msra.mxu0 %v5208_v44  ;;  %5816 = vmatpush.msra.mxu1 %v4872_v4  ;;  %v5041_v52 = vld [vmem:[#allocation23 + $0x8c8] sm:$0xff]  ;;  %v4927_v4 = vld [vmem:[#allocation23 + $0x538] sm:$0xff] }
 0x7ae   :  { %5838 = vmatpush.msra.mxu2 %v4956_v49  ;;  %5849 = vmatpush.msra.mxu3 %v5106_v63  ;;  %v4777_v44 = vld [vmem:[#allocation23 + $0x88] sm:$0xff]  ;;  %v5119_v49 = vld [vmem:[#allocation23 + $0xb38] sm:$0xff] }
 0x7af   :  { %5839 = vmatmul.f32.vlgmr.msra.gmra.mxu2 %v8903_v14  ;;  %5869 = vmatpush.msra.mxu0 %v5202_v1  ;;  %v5035_v63 = vld [vmem:[#allocation23 + $0x898] sm:$0xff] }
 0x7b0   :  { %5903 = vmatpush.msrb.mxu2 %v4855_v53  ;;  %5817 = vmatpush.msra.mxu1 %v4866_v26  ;;  %v4771_v1 = vld [vmem:[#allocation23 + $0x58] sm:$0xff]  ;;  %v8949_v53 = vpop.f32.mrf.mxu1  ;;  %v4921_v26 = vld [vmem:[#allocation23 + $0x508] sm:$0xff] }
 0x7b1   :  { %5850 = vmatpush.msra.mxu3 %v5100_v51  ;;  %5870 = vmatpush.msra.mxu0 %v5196_v28  ;;  %v5113_v51 = vld [vmem:[#allocation23 + $0xb08] sm:$0xff] }
 0x7b2   :  { %5904 = vmatpush.msrb.mxu2 %v4849_v19  ;;  %5818 = vmatpush.msra.mxu1 %v4860_v3  ;;  %v5029_v28 = vld [vmem:[#allocation23 + $0x868] sm:$0xff]  ;;  %v8951_v3 = vpop.f32.mrf.mxu3 }
 0x7b3   :  { %5851 = vmatpush.msra.mxu3 %v5094_v34  ;;  %5819 = vmatmul.f32.vlgmr.msra.gmra.mxu1 %v8896_v39  ;;  %v4765_v19 = vld [vmem:[#allocation23 + $0x28] sm:$0xff]  ;;  %v4915_v34 = vld [vmem:[#allocation23 + $0x4d8] sm:$0xff] }
 0x7b4   :  { %5871 = vmatpush.msra.mxu0 %v5190_v27  ;;  %5889 = vmatpush.msrb.mxu1 %v5298_v33  ;;  %v5023_v27 = vld [vmem:[#allocation23 + $0x838] sm:$0xff] }
 0x7b5   :  { %5905 = vmatpush.msrb.mxu2 %v4843_v56  ;;  %5852 = vmatpush.msra.mxu3 %v5088_v35  ;;  %v5107_v33 = vld [vmem:[#allocation23 + $0xad8] sm:$0xff]  ;;  %v4909_v35 = vld [vmem:[#allocation23 + $0x4a8] sm:$0xff] }
 0x7b6   :  { %5872 = vmatpush.msra.mxu0 %v5184_v20  ;;  %5890 = vmatpush.msrb.mxu1 %v5292_v9  ;;  %v5239_v56 = vld [vmem:[#allocation23 + $0xef8] sm:$0xff]  ;;  %v5017_v20 = vld [vmem:[#allocation23 + $0x808] sm:$0xff] }
 0x7b7   :  { %5906 = vmatpush.msrb.mxu2 %v4837_v55  ;;  %5853 = vmatpush.msra.mxu3 %v5082_v25  ;;  %v5101_v9 = vld [vmem:[#allocation23 + $0xaa8] sm:$0xff]  ;;  %v8954_v55 = vpop.f32.mrf.mxu2 }
 0x7b8   :  { %5873 = vmatpush.msra.mxu0 %v5178_v16  ;;  %5891 = vmatpush.msrb.mxu1 %v5286_v2  ;;  %v5233_v25 = vld [vmem:[#allocation23 + $0xec8] sm:$0xff]  ;;  %v4903_v16 = vld [vmem:[#allocation23 + $0x478] sm:$0xff] }
 0x7b9   :  { %5907 = vmatpush.msrb.mxu2 %v4831_v30  ;;  %5854 = vmatpush.msra.mxu3 %v5076_v12  ;;  %v5011_v2 = vld [vmem:[#allocation23 + $0x7d8] sm:$0xff]  ;;  %v8956_v12 = vpop.f32.mrf.mxu0 }
 0x7ba   :  { %5874 = vmatpush.msra.mxu0 %v5172_v10  ;;  %5892 = vmatpush.msrb.mxu1 %v5280_v42  ;;  %v5095_v30 = vld [vmem:[#allocation23 + $0xa78] sm:$0xff]  ;;  %v4897_v42 = vld [vmem:[#allocation23 + $0x448] sm:$0xff] }
 0x7bb   :  { %5908 = vmatpush.msrb.mxu2 %v4825_v62  ;;  %5855 = vmatpush.msra.mxu3 %v5070_v21  ;;  %v5227_v10 = vld [vmem:[#allocation23 + $0xe98] sm:$0xff]  ;;  %v5089_v62 = vld [vmem:[#allocation23 + $0xa48] sm:$0xff]  ;;  %v8958_v21 = vpop.f32.mrf.mxu1 }
 0x7bc   :  { %5875 = vmatpush.msra.mxu0 %v5166_v45  ;;  %5893 = vmatpush.msrb.mxu1 %v5274_v57  ;;  %v5221_v45 = vld [vmem:[#allocation23 + $0xe68] sm:$0xff]  ;;  %v4891_v57 = vld [vmem:[#allocation23 + $0x418] sm:$0xff] }
 0x7bd   :  { %5909 = vmatpush.msrb.mxu2 %v4819_v38  ;;  %5856 = vmatpush.msra.mxu3 %v5064_v59  ;;  %v4999_v38 = vld [vmem:[#allocation23 + $0x778] sm:$0xff] }
 0x7be   :  { %5876 = vmatpush.msra.mxu0 %v5160_v46  ;;  %5894 = vmatpush.msrb.mxu1 %v5268_v6  ;;  %v5083_v59 = vld [vmem:[#allocation23 + $0xa18] sm:$0xff]  ;;  %v8960_v46 = vpop.f32.mrf.mxu3 }
 0x7bf   :  { %5910 = vmatpush.msrb.mxu2 %v4813_v13  ;;  %5857 = vmatpush.msra.mxu3 %v5058_v18  ;;  %v5215_v6 = vld [vmem:[#allocation23 + $0xe38] sm:$0xff]  ;;  %v4885_v13 = vld [vmem:[#allocation23 + $0x3e8] sm:$0xff] }
 0x7c0   :  { %5877 = vmatpush.msra.mxu0 %v5154_v41  ;;  %5895 = vmatpush.msrb.mxu1 %v5262_v50  ;;  %v4993_v18 = vld [vmem:[#allocation23 + $0x748] sm:$0xff] }
 0x7c1   :  { %5911 = vmatpush.msrb.mxu2 %v4807_v24  ;;  %5858 = vmatpush.msra.mxu3 %v5052_v32  ;;  %v5077_v41 = vld [vmem:[#allocation23 + $0x9e8] sm:$0xff]  ;;  %v4879_v24 = vld [vmem:[#allocation23 + $0x3b8] sm:$0xff] }
 0x7c2   :  { %5859 = vmatmul.f32.vlgmr.msra.gmra.mxu3 %v8905_v43  ;;  %5878 = vmatpush.msra.mxu0 %v5148_v29  ;;  %v5209_v50 = vld [vmem:[#allocation23 + $0xe08] sm:$0xff]  ;;  %v4987_v32 = vld [vmem:[#allocation23 + $0x718] sm:$0xff] }
 0x7c3   :  { %5896 = vmatpush.msrb.mxu1 %v5256_v15  ;;  %5912 = vmatpush.msrb.mxu2 %v4801_v5  ;;  %v5071_v29 = vld [vmem:[#allocation23 + $0x9b8] sm:$0xff]  ;;  %v5440_v15 = vpop.f32.mrf.mxu2 }
 0x7c4   :  { %5923 = vmatpush.msrb.mxu3 %v4951_v40  ;;  %5879 = vmatmul.f32.vlgmr.msra.gmra.mxu0 %v8920_v22  ;;  %v5203_v5 = vld [vmem:[#allocation23 + $0xdd8] sm:$0xff]  ;;  %v4873_v40 = vld [vmem:[#allocation23 + $0x388] sm:$0xff] }
 0x7c5   :  { %5963 = vmatpush.msrb.mxu0 %v5143_v37  ;;  %5897 = vmatpush.msrb.mxu1 %v5250_v7  ;;  %v4981_v37 = vld [vmem:[#allocation23 + $0x6e8] sm:$0xff] }
 0x7c6   :  { %5913 = vmatpush.msrb.mxu2 %v4795_v11  ;;  %5924 = vmatpush.msrb.mxu3 %v4945_v60  ;;  %v5065_v7 = vld [vmem:[#allocation23 + $0x988] sm:$0xff]  ;;  %v5460_v11 = vpop.f32.mrf.mxu0  ;;  %v5480_v60 = vpop.f32.mrf.mxu1 }
 0x7c7   :  { %5964 = vmatpush.msrb.mxu0 %v5137_v8  ;;  %5898 = vmatpush.msrb.mxu1 %v5244_v61  ;;  %v5197_v8 = vld [vmem:[#allocation23 + $0xda8] sm:$0xff]  ;;  %v4867_v61 = vld [vmem:[#allocation23 + $0x358] sm:$0xff] }
 0x7c8   :  { %5914 = vmatpush.msrb.mxu2 %v4789_v17  ;;  %5925 = vmatpush.msrb.mxu3 %v4939_v54  ;;  %v5461_v17 = vadd.f32 %v5460_v11, %v5440_v15  ;;  %v4975_v54 = vld [vmem:[#allocation23 + $0x6b8] sm:$0xff]  ;;  %v9018_v11 = vld [vmem:[#allocation25 + $0xc0] sm:$0xff] }
 0x7c9   :  { %7266 = vmatmul.msk.f32.vlgmr.msrb.gmra.mxu1 %vm4193_vm9, %v8907_v48  ;;  %5965 = vmatpush.msrb.mxu0 %v5131_v31  ;;  %v5059_v31 = vld [vmem:[#allocation23 + $0x958] sm:$0xff] }
 0x7ca   :  { %5943 = vmatpush.msra.mxu1 %v5047_v36  ;;  %5915 = vmatpush.msrb.mxu2 %v4783_v47  ;;  %v5341_v36 = vadd.f32 %v8949_v53, %v8951_v3  ;;  %v5500_v47 = vpop.f32.mrf.mxu3  ;;  %v8966_v53 = vld [vmem:[#allocation25 + $0xf8] sm:$0xff] }
 0x7cb   :  { %5926 = vmatpush.msrb.mxu3 %v4933_v0  ;;  %5966 = vmatpush.msrb.mxu0 %v5125_v58  ;;  %v5191_v0 = vld [vmem:[#allocation23 + $0xd78] sm:$0xff]  ;;  %v4861_v58 = vld [vmem:[#allocation23 + $0x328] sm:$0xff]  ;;  %v5520_v3 = vpop.f32.mrf.mxu2 }
 0x7cc   :  { %5944 = vmatpush.msra.mxu1 %v5041_v52  ;;  %5916 = vmatpush.msrb.mxu2 %v4777_v44  ;;  %v5481_v52 = vadd.f32 %v5480_v60, %v5461_v17  ;;  %v4969_v44 = vld [vmem:[#allocation23 + $0x688] sm:$0xff]  ;;  %v5251_v60 = vld [vmem:[#allocation23 + $0xf58] sm:$0xff] }
 0x7cd   :  { %5927 = vmatpush.msrb.mxu3 %v4927_v4  ;;  %5967 = vmatpush.msrb.mxu0 %v5119_v49  ;;  %v5053_v4 = vld [vmem:[#allocation23 + $0x928] sm:$0xff] }
 0x7ce   :  { %5945 = vmatpush.msra.mxu1 %v5035_v63  ;;  %5917 = vmatpush.msrb.mxu2 %v4771_v1  ;;  %v5185_v49 = vld [vmem:[#allocation23 + $0xd48] sm:$0xff]  ;;  %v5501_v63 = vadd.f32 %v5500_v47, %v5481_v52  ;;  %v5299_v1 = vld [vmem:[#allocation23 + $0x10d8] sm:$0xff]  ;;  %v9033_v52 = vld [vmem:[#allocation25 + $0x40] sm:$0xff] }
 0x7cf   :  { %5928 = vmatpush.msrb.mxu3 %v4921_v26  ;;  %5968 = vmatpush.msrb.mxu0 %v5113_v51  ;;  %v5361_v26 = vadd.f32 %v8954_v55, %v5341_v36  ;;  %v4963_v51 = vld [vmem:[#allocation23 + $0x658] sm:$0xff]  ;;  %v9024_v17 = vld [vmem:[#allocation25 + $0x48] sm:$0xff] }
 0x7d0   :  { %5946 = vmatpush.msra.mxu1 %v5029_v28  ;;  %5918 = vmatpush.msrb.mxu2 %v4765_v19  ;;  %v5179_v28 = vld [vmem:[#allocation23 + $0xd18] sm:$0xff]  ;;  %v5293_v19 = vld [vmem:[#allocation23 + $0x10a8] sm:$0xff] }
 0x7d1   :  { %5929 = vmatpush.msrb.mxu3 %v4915_v34  ;;  %5919 = vmatmul.f32.vlgmr.msrb.gmra.mxu2 %v8914_v23  ;;  %v5005_v23 = vld [vmem:[#allocation23 + $0x7a8] sm:$0xff]  ;;  %v8969_v34 = vld [vmem:[#allocation25 + $0xf0] sm:$0xff]  ;;  %v5167_v55 = vld [vmem:[#allocation23 + $0xcb8] sm:$0xff] }
 0x7d2   :  { %5947 = vmatpush.msra.mxu1 %v5023_v27  ;;  %5969 = vmatpush.msrb.mxu0 %v5107_v33  ;;  %v4957_v27 = vld [vmem:[#allocation23 + $0x628] sm:$0xff]  ;;  %v5521_v33 = vadd.f32 %v5520_v3, %v5501_v63  ;;  %v9056_v3 = vld [vmem:[#allocation25 + $0x30] sm:$0xff] }
 0x7d3   :  { %5983 = vmatpush.msra.mxu2 %v5239_v56  ;;  %5930 = vmatpush.msrb.mxu3 %v4909_v35  ;;  %v5287_v56 = vld [vmem:[#allocation23 + $0x1078] sm:$0xff]  ;;  %v5540_v35 = vpop.f32.mrf.mxu0  ;;  %v5245_v47 = vld [vmem:[#allocation23 + $0xf28] sm:$0xff] }
 0x7d4   :  { %5948 = vmatpush.msra.mxu1 %v5017_v20  ;;  %5970 = vmatpush.msrb.mxu0 %v5101_v9  ;;  %v5381_v20 = vadd.f32 %v8956_v12, %v5361_v26  ;;  %v8973_v9 = vld [vmem:[#allocation25 + $0xe8] sm:$0xff]  ;;  %v8985_v12 = vld [vmem:[#allocation25 + $0x70] sm:$0xff]  ;;  %v9045_v26 = vld [vmem:[#allocation25 + $0x1e0] sm:$0xff] }
 0x7d5   :  { %5984 = vmatpush.msra.mxu2 %v5233_v25  ;;  %5931 = vmatpush.msrb.mxu3 %v4903_v16  ;;  %v5281_v16 = vld [vmem:[#allocation23 + $0x1048] sm:$0xff] }
 0x7d6   :  { %5949 = vmatpush.msra.mxu1 %v5011_v2  ;;  %5971 = vmatpush.msrb.mxu0 %v5095_v30  ;;  %v5401_v25 = vadd.f32 %v8960_v46, %v5381_v20  ;;  %v8979_v2 = vld [vmem:[#allocation25 + $0xe0] sm:$0xff]  ;;  %v8981_v30 = vadd.f32 %v5540_v35, %v5521_v33  ;;  %v9070_v20 = vld [vmem:[#allocation25 + $0x28] sm:$0xff] }
 0x7d7   :  { %5985 = vmatpush.msra.mxu2 %v5227_v10  ;;  %5932 = vmatpush.msrb.mxu3 %v4897_v42  ;;  %v5161_v10 = vld [vmem:[#allocation23 + $0xc88] sm:$0xff]  ;;  %v5275_v42 = vld [vmem:[#allocation23 + $0x1018] sm:$0xff] }
 0x7d8   :  { %5950 = vmatpush.msra.mxu1 %v5005_v23  ;;  %5972 = vmatpush.msrb.mxu0 %v5089_v62  ;;  %v8988_v23 = vld [vmem:[#allocation25 + $0xd8] sm:$0xff]  ;;  %v8991_v62 = vld [vmem:[#allocation25 + $0x68] sm:$0xff]  ;;  %v6030_v46 = vsel %vm341_vm0, %v8981_v30, 0.0 }
 0x7d9   :  { %5986 = vmatpush.msra.mxu2 %v5221_v45  ;;  %5933 = vmatpush.msrb.mxu3 %v4891_v57  ;;  %v5155_v45 = vld [vmem:[#allocation23 + $0xc58] sm:$0xff]  ;;  %v8994_v57 = vadd.f32 %v8958_v21, %v5401_v25  ;;  %v6031_v15 = vrot.slane %v6030_v46, 4 }
 0x7da   :  { %5951 = vmatpush.msra.mxu1 %v4999_v38  ;;  %5973 = vmatpush.msrb.mxu0 %v5083_v59  ;;  %v5269_v38 = vld [vmem:[#allocation23 + $0xfe8] sm:$0xff]  ;;  %v8997_v59 = vld [vmem:[#allocation25 + $0xd0] sm:$0xff]  ;;  %v5263_v21 = vld [vmem:[#allocation23 + $0xfb8] sm:$0xff] }
 0x7db   :  { %5987 = vmatpush.msra.mxu2 %v5215_v6  ;;  %5934 = vmatpush.msrb.mxu3 %v4885_v13  ;;  %9537 = vst [vmem:[#allocation40_spill] sm:$0xff] %v8994_v57  ;;  %v9002_v6 = vld [vmem:[#allocation25 + $0x60] sm:$0xff]  ;;  %v5149_v13 = vld [vmem:[#allocation23 + $0xc28] sm:$0xff] }
 0x7dc   :  { %5952 = vmatpush.msra.mxu1 %v4993_v18  ;;  %5974 = vmatpush.msrb.mxu0 %v5077_v41  ;;  %v5580_v18 = vpop.f32.mrf.mxu0 }
 0x7dd   :  { %5988 = vmatpush.msra.mxu2 %v5209_v50  ;;  %5935 = vmatpush.msrb.mxu3 %v4879_v24  ;;  %v9006_v24 = vld [vmem:[#allocation25 + $0x58] sm:$0xff] }
 0x7de   :  { %5953 = vmatpush.msra.mxu1 %v4987_v32  ;;  %5975 = vmatpush.msrb.mxu0 %v5071_v29  ;;  %v9008_v32 = vld [vmem:[#allocation25 + $0xc8] sm:$0xff]  ;;  %v6023_v29 = vsel %vm341_vm0, %v8994_v57, 0.0 }
 0x7df   :  { %5989 = vmatpush.msra.mxu2 %v5203_v5  ;;  %5936 = vmatpush.msrb.mxu3 %v4873_v40  ;;  %v5600_v41 = vpop.f32.mrf.mxu3  ;;  %v5257_v5 = vld [vmem:[#allocation23 + $0xf88] sm:$0xff]  ;;  %v9013_v40 = vld [vmem:[#allocation25 + $0x1f8] sm:$0xff] }
 0x7e0   :  { %5954 = vmatpush.msra.mxu1 %v4981_v37  ;;  %5976 = vmatpush.msrb.mxu0 %v5065_v7  ;;  %v9016_v7 = vld [vmem:[#allocation25 + $0x50] sm:$0xff] }
 0x7e1   :  { %5990 = vmatpush.msra.mxu2 %v5197_v8  ;;  %5937 = vmatpush.msrb.mxu3 %v4867_v61  ;;  %v9022_v8 = vld [vmem:[#allocation25 + $0x1f0] sm:$0xff]  ;;  %v6024_v61 = vrot.slane %v6023_v29, 4 }
 0x7e2   :  { %5955 = vmatpush.msra.mxu1 %v4975_v54  ;;  %5977 = vmatpush.msrb.mxu0 %v5059_v31  ;;  %v9026_v54 = vld [vmem:[#allocation25 + $0xb8] sm:$0xff]  ;;  %v5620_v31 = vpop.f32.mrf.mxu2 }
 0x7e3   :  { %5991 = vmatpush.msra.mxu2 %v5191_v0  ;;  %5938 = vmatpush.msrb.mxu3 %v4861_v58  ;;  %v9031_v0 = vld [vmem:[#allocation25 + $0x1e8] sm:$0xff] }
 0x7e4   :  { %5939 = vmatmul.f32.vlgmr.msrb.gmra.mxu3 %v8896_v39  ;;  %5956 = vmatpush.msra.mxu1 %v4969_v44  ;;  %v5173_v39 = vld [vmem:[#allocation23 + $0xce8] sm:$0xff]  ;;  %v9038_v44 = vld [vmem:[#allocation25 + $0xb0] sm:$0xff]  ;;  %v5660_v33 = vpop.f32.mrf.mxu0 }
 0x7e5   :  { %5978 = vmatpush.msrb.mxu0 %v5053_v4  ;;  %5992 = vmatpush.msra.mxu2 %v5185_v49  ;;  %v9040_v4 = vld [vmem:[#allocation25 + $0x178] sm:$0xff]  ;;  %v6025_v49 = vadd.f32 %v6024_v61, %v6023_v29  ;;  %v9115_v61 = vld [vmem:[#allocation25 + $0x148] sm:$0xff] }
 0x7e6   :  { %6009 = vmatpush.msra.mxu3 %v5299_v1  ;;  %5979 = vmatmul.f32.vlgmr.msrb.gmra.mxu0 %v8905_v43  ;;  %v8976_v43 = vld [vmem:[#allocation25 + $0x78] sm:$0xff]  ;;  %9538 = vst [vmem:[#allocation41_spill] sm:$0xff] %v9040_v4 }
 0x7e7   :  { %6227 = vmatpush.msra.mxu0 %v8966_v53  ;;  %5957 = vmatpush.msra.mxu1 %v4963_v51  ;;  %v9042_v1 = vld [vmem:[#allocation25 + $0x38] sm:$0xff]  ;;  %9545 = vst [vmem:[#allocation38_spill] sm:$0xff] %v9115_v61 }
 0x7e8   :  { %5993 = vmatpush.msra.mxu2 %v5179_v28  ;;  %6010 = vmatpush.msra.mxu3 %v5293_v19  ;;  %v9050_v28 = vld [vmem:[#allocation25 + $0xa8] sm:$0xff]  ;;  %v9052_v19 = vld [vmem:[#allocation25 + $0x170] sm:$0xff] }
 0x7e9   :  { %6228 = vmatpush.msra.mxu0 %v8969_v34  ;;  %5958 = vmatpush.msra.mxu1 %v4957_v27  ;;  %9539 = vst [vmem:[#allocation42_spill] sm:$0xff] %v9052_v19  ;;  %v9058_v27 = vld [vmem:[#allocation25 + $0x1d8] sm:$0xff] }
 0x7ea   :  { %5994 = vmatpush.msra.mxu2 %v5173_v39  ;;  %6011 = vmatpush.msra.mxu3 %v5287_v56  ;;  %v9061_v39 = vld [vmem:[#allocation25 + $0xa0] sm:$0xff]  ;;  %v6026_v56 = vrot.slane %v6025_v49, 2 }
 0x7eb   :  { %5959 = vmatmul.f32.vlgmr.msra.gmra.mxu1 %v8903_v14  ;;  %6229 = vmatpush.msra.mxu0 %v8973_v9  ;;  %v5560_v14 = vpop.f32.mrf.mxu1 }
 0x7ec   :  { %6207 = vmatpush.msrb.mxu1 %v8976_v43  ;;  %5995 = vmatpush.msra.mxu2 %v5167_v55  ;;  %v5581_v50 = vadd.f32 %v5580_v18, %v5560_v14  ;;  %v9072_v55 = vld [vmem:[#allocation25 + $0x1d0] sm:$0xff]  ;;  %v9096_v18 = vld [vmem:[#allocation25 + $0x18] sm:$0xff] }
 0x7ed   :  { %6012 = vmatpush.msra.mxu3 %v5281_v16  ;;  %6230 = vmatpush.msra.mxu0 %v8979_v2  ;;  %v9075_v16 = vld [vmem:[#allocation25 + $0x98] sm:$0xff]  ;;  %v9087_v14 = vld [vmem:[#allocation25 + $0x90] sm:$0xff] }
 0x7ee   :  { %6208 = vmatpush.msrb.mxu1 %v8985_v12  ;;  %5996 = vmatpush.msra.mxu2 %v5161_v10  ;;  %v5601_v37 = vadd.f32 %v5600_v41, %v5581_v50  ;;  %v9077_v10 = vld [vmem:[#allocation25 + $0x160] sm:$0xff]  ;;  %v9103_v50 = vld [vmem:[#allocation25 + $0x150] sm:$0xff] }
 0x7ef   :  { %6013 = vmatpush.msra.mxu3 %v5275_v42  ;;  %6231 = vmatpush.msra.mxu0 %v8988_v23  ;;  %9542 = vst [vmem:[#allocation47_spill] sm:$0xff] %v9077_v10  ;;  %v9082_v42 = vld [vmem:[#allocation25 + $0x20] sm:$0xff] }
 0x7f0   :  { %6209 = vmatpush.msrb.mxu1 %v8991_v62  ;;  %5997 = vmatpush.msra.mxu2 %v5155_v45  ;;  %v5621_v58 = vadd.f32 %v5620_v31, %v5601_v37  ;;  %v9084_v45 = vld [vmem:[#allocation25 + $0x1c8] sm:$0xff]  ;;  %v9098_v41 = vld [vmem:[#allocation25 + $0x1c0] sm:$0xff]  ;;  %9544 = vst [vmem:[#allocation49_spill] sm:$0xff] %v9103_v50 }
 0x7f1   :  { %6014 = vmatpush.msra.mxu3 %v5269_v38  ;;  %6232 = vmatpush.msra.mxu0 %v8997_v59  ;;  %v9089_v38 = vld [vmem:[#allocation25 + $0x158] sm:$0xff]  ;;  %v9120_v31 = vld [vmem:[#allocation25 + $0x8] sm:$0xff] }
 0x7f2   :  { %6210 = vmatpush.msrb.mxu1 %v9002_v6  ;;  %5998 = vmatpush.msra.mxu2 %v5149_v13  ;;  %9543 = vst [vmem:[#allocation48_spill] sm:$0xff] %v9089_v38 }
 0x7f3   :  { %6015 = vmatpush.msra.mxu3 %v5263_v21  ;;  %5999 = vmatmul.f32.vlgmr.msra.gmra.mxu2 %v8920_v22  ;;  %v6032_v22 = vadd.f32 %v6031_v15, %v6030_v46  ;;  %v5640_v36 = vpop.f32.mrf.mxu1  ;;  %v6027_v46 = vadd.f32 %v6026_v56, %v6025_v49  ;;  %v9101_v21 = vld [vmem:[#allocation25 + $0x88] sm:$0xff]  ;;  %v9108_v15 = vld [vmem:[#allocation25 + $0x10] sm:$0xff]  ;;  %v9130_v49 = vld [vmem:[#allocation25] sm:$0xff] }
 0x7f4   :  { %6211 = vmatpush.msrb.mxu1 %v9006_v24  ;;  %6233 = vmatpush.msra.mxu0 %v9008_v32  ;;  %v5641_v63 = vadd.f32 %v5640_v36, %v5621_v58  ;;  %v9126_v58 = vld [vmem:[#allocation25 + $0x1b0] sm:$0xff]  ;;  %v9137_v56 = vld [vmem:[#allocation25 + $0x1a8] sm:$0xff] }
 0x7f5   :  { %6016 = vmatpush.msra.mxu3 %v5257_v5  ;;  %6267 = vmatpush.msrb.mxu2 %v9013_v40  ;;  %v6033_v51 = vrot.slane %v6032_v22, 2  ;;  %v9110_v5 = vld [vmem:[#allocation25 + $0x1b8] sm:$0xff] }
 0x7f6   :  { %6212 = vmatpush.msrb.mxu1 %v9016_v7  ;;  %6234 = vmatpush.msra.mxu0 %v9018_v11  ;;  %v9066_v35 = vadd.f32 %v5660_v33, %v5641_v63 }
 0x7f7   :  { %6017 = vmatpush.msra.mxu3 %v5251_v60  ;;  %6268 = vmatpush.msrb.mxu2 %v9022_v8  ;;  %v6034_v25 = vadd.f32 %v6033_v51, %v6032_v22  ;;  %v9113_v60 = vld [vmem:[#allocation25 + $0x80] sm:$0xff]  ;;  %v6028_v22 = vrot.slane %v6027_v46, 1  ;;  %v9133_v51 = vld [vmem:[#allocation25 + $0x138] sm:$0xff] }
 0x7f8   :  { %6213 = vmatpush.msrb.mxu1 %v9024_v17  ;;  %6235 = vmatpush.msra.mxu0 %v9026_v54  ;;  %9541 = vst [vmem:[#allocation46_spill] sm:$0xff] %v9066_v35  ;;  %v6037_v13 = vsel %vm341_vm0, %v9066_v35, 0.0  ;;  %v9149_v35 = vld [vmem:[#allocation25 + $0x128] sm:$0xff] }
 0x7f9   :  { %6018 = vmatpush.msra.mxu3 %v5245_v47  ;;  %6269 = vmatpush.msrb.mxu2 %v9031_v0  ;;  %v6035_v29 = vrot.slane %v6034_v25, 1  ;;  %v6038_v37 = vrot.slane %v6037_v13, 4  ;;  %v9123_v47 = vld [vmem:[#allocation25 + $0x140] sm:$0xff]  ;;  %9547 = vst [vmem:[#allocation43_spill] sm:$0xff] %v9133_v51  ;;  %v6029_v33 = vadd.f32 %v6028_v22, %v6027_v46  ;;  %v9154_v46 = vld [vmem:[#allocation25 + $0x198] sm:$0xff] }
 0x7fa   :  { %7267 = vmatmul.msk.f32.vlgmr.msra.gmra.mxu3 %vm4193_vm9, %v8907_v48  ;;  %6214 = vmatpush.msrb.mxu1 %v9033_v52  ;;  %v9063_v48 = vld [vmem:[#allocation25 + $0x168] sm:$0xff]  ;;  %9546 = vst [vmem:[#allocation39_spill] sm:$0xff] %v9123_v47  ;;  %v9156_v22 = vld [vmem:[#allocation25 + $0x120] sm:$0xff]  ;;  %vm6476_vm9 = vcmask 64512  }
 0x7fb   :  { %6236 = vmatpush.msra.mxu0 %v9038_v44  ;;  %6247 = vmatpush.msrb.mxu3 %v9040_v4  ;;  %9540 = vst [vmem:[#allocation44_spill] sm:$0xff] %v9063_v48  ;;  %v6036_v36 = vadd.f32 %v6035_v29, %v6034_v25  ;;  %v6039_v63 = vadd.f32 %v6038_v37, %v6037_v13  ;;  %v9139_v25 = vld [vmem:[#allocation25 + $0x278] sm:$0xff]  ;;  %v9142_v29 = vld [vmem:[#allocation25 + $0x130] sm:$0xff]  ;;  %v9145_v13 = vld [vmem:[#allocation25 + $0x1a0] sm:$0xff] }
 0x7fc   :  { %6215 = vmatpush.msrb.mxu1 %v9042_v1  ;;  %6270 = vmatpush.msrb.mxu2 %v9045_v26  ;;  %9548 = vst [vmem:[#allocation45_spill] sm:$0xff] %v9142_v29  ;;  %v9147_v37 = vld [vmem:[#allocation25 + $0x270] sm:$0xff] }
 0x7fd   :  { %6237 = vmatpush.msra.mxu0 %v9050_v28  ;;  %6248 = vmatpush.msrb.mxu3 %v9052_v19  ;;  %9549 = vst [vmem:[#allocation50_spill] sm:$0xff] %v9149_v35  ;;  %v9192_v19 = vld [vmem:[#allocation25 + $0x100] sm:$0xff] }
 0x7fe   :  { %6216 = vmatpush.msrb.mxu1 %v9056_v3  ;;  %6271 = vmatpush.msrb.mxu2 %v9058_v27  ;;  %9550 = vst [vmem:[#allocation51_spill] sm:$0xff] %v9156_v22 }
 0x7ff   :  { %6238 = vmatpush.msra.mxu0 %v9061_v39  ;;  %6249 = vmatpush.msrb.mxu3 %v9063_v48  ;;  %v9185_v48 = vld [vmem:[#allocation25 + $0x108] sm:$0xff] }
 0x800   :  { %6217 = vmatpush.msrb.mxu1 %v9070_v20  ;;  %6272 = vmatpush.msrb.mxu2 %v9072_v55 }
 0x801   :  { %6239 = vmatpush.msra.mxu0 %v9075_v16  ;;  %6250 = vmatpush.msrb.mxu3 %v9077_v10  ;;  %v9176_v10 = vld [vmem:[#allocation25 + $0x110] sm:$0xff] }
 0x802   :  { %6218 = vmatpush.msrb.mxu1 %v9082_v42  ;;  %6273 = vmatpush.msrb.mxu2 %v9084_v45  ;;  %9553 = vst [vmem:[#allocation54_spill] sm:$0xff] %v9176_v10 }
 0x803   :  { %6240 = vmatpush.msra.mxu0 %v9087_v14  ;;  %6251 = vmatpush.msrb.mxu3 %v9089_v38  ;;  %v9174_v38 = vld [vmem:[#allocation25 + $0x258] sm:$0xff] }
 0x804   :  { %6219 = vmatpush.msrb.mxu1 %v9096_v18  ;;  %6274 = vmatpush.msrb.mxu2 %v9098_v41 }
 0x805   :  { %6241 = vmatpush.msra.mxu0 %v9101_v21  ;;  %6252 = vmatpush.msrb.mxu3 %v9103_v50  ;;  %v9172_v50 = vld [vmem:[#allocation25 + $0x188] sm:$0xff] }
 0x806   :  { %6220 = vmatpush.msrb.mxu1 %v9108_v15  ;;  %6275 = vmatpush.msrb.mxu2 %v9110_v5  ;;  %9552 = vst [vmem:[#allocation53_spill] sm:$0xff] %v9172_v50 }
 0x807   :  { %6242 = vmatpush.msra.mxu0 %v9113_v60  ;;  %6253 = vmatpush.msrb.mxu3 %v9115_v61  ;;  %v9165_v61 = vld [vmem:[#allocation25 + $0x118] sm:$0xff] }
 0x808   :  { %6243 = vmatmul.f32.vlgmr.msra.gmra.mxu0 %v6036_v36  ;;  %6221 = vmatpush.msrb.mxu1 %v9120_v31  ;;  %v6040_v36 = vrot.slane %v6039_v63, 2  ;;  %9551 = vst [vmem:[#allocation52_spill] sm:$0xff] %v9165_v61 }
 0x809   :  { %6254 = vmatpush.msrb.mxu3 %v9123_v47  ;;  %6276 = vmatpush.msrb.mxu2 %v9126_v58 }
 0x80a   :  { %6222 = vmatpush.msrb.mxu1 %v9130_v49  ;;  %v6041_v47 = vadd.f32 %v6040_v36, %v6039_v63  ;;  %v9181_v63 = vld [vmem:[#allocation25 + $0x180] sm:$0xff]  ;;  %v9183_v36 = vld [vmem:[#allocation25 + $0x250] sm:$0xff] }
 0x80b   :  { %6255 = vmatpush.msrb.mxu3 %v9133_v51  ;;  %6223 = vmatmul.f32.vlgmr.msrb.gmra.mxu1 %v6029_v33  ;;  %v9160_v33 = vld [vmem:[#allocation25 + $0x268] sm:$0xff]  ;;  %v9163_v51 = vld [vmem:[#allocation25 + $0x190] sm:$0xff]  ;;  %9554 = vst [vmem:[#allocation55_spill] sm:$0xff] %v9181_v63 }
 0x80c   :  { %6277 = vmatpush.msrb.mxu2 %v9137_v56  ;;  %6287 = vmatpush.msra.mxu1 %v9139_v25 }
 0x80d   :  { %6256 = vmatpush.msrb.mxu3 %v9142_v29  ;;  %v9169_v29 = vld [vmem:[#allocation25 + $0x260] sm:$0xff] }
 0x80e   :  { %6278 = vmatpush.msrb.mxu2 %v9145_v13  ;;  %6288 = vmatpush.msra.mxu1 %v9147_v37 }
 0x80f   :  { %6257 = vmatpush.msrb.mxu3 %v9149_v35  ;;  %v6042_v35 = vrot.slane %v6041_v47, 1 }
 0x810   :  { %6279 = vmatpush.msrb.mxu2 %v9154_v46  ;;  %6289 = vmatpush.msra.mxu1 %v9160_v33 }
 0x811   :  { %6258 = vmatpush.msrb.mxu3 %v9156_v22  ;;  %v9190_v22 = vld [vmem:[#allocation25 + $0x248] sm:$0xff]  ;;  %v6043_v4 = vadd.f32 %v6042_v35, %v6041_v47  ;;  %v6066_v47 = vmul.f32 %v8994_v57, %v8994_v57 }
 0x812   :  { %6280 = vmatpush.msrb.mxu2 %v9163_v51  ;;  %6290 = vmatpush.msra.mxu1 %v9169_v29 }
 0x813   :  { %6259 = vmatpush.msrb.mxu3 %v9165_v61  ;;  %v9198_v61 = vld [vmem:[#allocation25 + $0x240] sm:$0xff] }
 0x814   :  { %6281 = vmatpush.msrb.mxu2 %v9172_v50  ;;  %6291 = vmatpush.msra.mxu1 %v9174_v38  ;;  %v5680_v50 = vpop.f32.mrf.mxu3 }
 0x815   :  { %6260 = vmatpush.msrb.mxu3 %v9176_v10  ;;  %v9204_v10 = vld [vmem:[#allocation25 + $0x238] sm:$0xff] }
 0x816   :  { %6282 = vmatpush.msrb.mxu2 %v9181_v63  ;;  %6292 = vmatpush.msra.mxu1 %v9183_v36  ;;  %v5700_v63 = vpop.f32.mrf.mxu2 }
 0x817   :  { %6261 = vmatpush.msrb.mxu3 %v9185_v48  ;;  %v5701_v35 = vadd.f32 %v5700_v63, %v5680_v50  ;;  %v6067_v50 = vmul.f32 %v8981_v30, %v8981_v30 }
 0x818   :  { %6350 = vmatpush.msra.mxu2 %v8966_v53  ;;  %6293 = vmatpush.msra.mxu1 %v9190_v22  ;;  %v9208_v53 = vld [vmem:[#allocation25 + $0x230] sm:$0xff] }
 0x819   :  { %6262 = vmatpush.msrb.mxu3 %v9192_v19 }
 0x81a   :  { %6351 = vmatpush.msra.mxu2 %v8969_v34  ;;  %6263 = vmatmul.f32.vlgmr.msrb.gmra.mxu3 %v6043_v4  ;;  %v9215_v34 = vld [vmem:[#allocation25 + $0x228] sm:$0xff]  ;;  %v5720_v4 = vpop.f32.mrf.mxu0 }
 0x81b   :  { %6294 = vmatpush.msra.mxu1 %v9198_v61  ;;  %6330 = vmatpush.msra.mxu3 %v8976_v43  ;;  %v5740_v43 = vpop.f32.mrf.mxu1  ;;  %v5721_v63 = vadd.f32 %v5720_v4, %v5701_v35  ;;  %v6079_v4 = vsel %vm341_vm0, %v6067_v50, 0.0 }
 0x81c   :  { %6352 = vmatpush.msra.mxu2 %v8973_v9  ;;  %v9220_v9 = vld [vmem:[#allocation25 + $0x220] sm:$0xff] }
 0x81d   :  { %6295 = vmatpush.msra.mxu1 %v9204_v10  ;;  %6331 = vmatpush.msra.mxu3 %v8985_v12  ;;  %v9228_v12 = vld [vmem:[#allocation25 + $0x218] sm:$0xff]  ;;  %v5741_v57 = vadd.f32 %v5740_v43, %v5721_v63 }
 0x81e   :  { %6353 = vmatpush.msra.mxu2 %v8979_v2  ;;  %v6072_v2 = vsel %vm341_vm0, %v6066_v47, 0.0 }
 0x81f   :  { %6296 = vmatpush.msra.mxu1 %v9208_v53  ;;  %6332 = vmatpush.msra.mxu3 %v8991_v62  ;;  %v9233_v62 = vld [vmem:[#allocation25 + $0x210] sm:$0xff]  ;;  %v6073_v35 = vrot.slane %v6072_v2, 4 }
 0x820   :  { %6354 = vmatpush.msra.mxu2 %v8988_v23 }
 0x821   :  { %6297 = vmatpush.msra.mxu1 %v9215_v34  ;;  %6333 = vmatpush.msra.mxu3 %v9002_v6  ;;  %v5780_v6 = vpop.f32.mrf.mxu2 }
 0x822   :  { %6355 = vmatpush.msra.mxu2 %v8997_v59  ;;  %v9239_v59 = vld [vmem:[#allocation25 + $0x208] sm:$0xff] }
 0x823   :  { %6298 = vmatpush.msra.mxu1 %v9220_v9  ;;  %6334 = vmatpush.msra.mxu3 %v9006_v24  ;;  %v5760_v23 = vpop.f32.mrf.mxu3  ;;  %v6080_v24 = vrot.slane %v6079_v4, 4 }
 0x824   :  { %6356 = vmatpush.msra.mxu2 %v9008_v32  ;;  %v5761_v47 = vadd.f32 %v5760_v23, %v5741_v57  ;;  %v9246_v32 = vld [vmem:[#allocation25 + $0x200] sm:$0xff]  ;;  %v6074_v57 = vadd.f32 %v6073_v35, %v6072_v2  ;;  %v6195_v23 = vld [vmem:[#allocation25 + $0x288] sm:$0xff] }
 0x825   :  { %6299 = vmatpush.msra.mxu1 %v9228_v12  ;;  %6335 = vmatpush.msra.mxu3 %v9016_v7 }
 0x826   :  { %6357 = vmatpush.msra.mxu2 %v9018_v11  ;;  %v9241_v43 = vadd.f32 %v5780_v6, %v5761_v47  ;;  %v6081_v11 = vadd.f32 %v6080_v24, %v6079_v4  ;;  %v6194_v47 = vld [vmem:[#allocation25 + $0x280] sm:$0xff] }
 0x827   :  { %6300 = vmatpush.msra.mxu1 %v9233_v62  ;;  %6336 = vmatpush.msra.mxu3 %v9024_v17 }
 0x828   :  { %6358 = vmatpush.msra.mxu2 %v9026_v54  ;;  %v6044_v50 = vsel %vm341_vm0, %v9241_v43, 0.0  ;;  %v6075_v54 = vrot.slane %v6074_v57, 2 }
 0x829   :  { %6301 = vmatpush.msra.mxu1 %v9239_v59  ;;  %6337 = vmatpush.msra.mxu3 %v9033_v52  ;;  %v6045_v7 = vrot.slane %v6044_v50, 4  ;;  %v6082_v52 = vrot.slane %v6081_v11, 2 }
 0x82a   :  { %6359 = vmatpush.msra.mxu2 %v9038_v44 }
 0x82b   :  { %6302 = vmatpush.msra.mxu1 %v9246_v32  ;;  %6338 = vmatpush.msra.mxu3 %v9042_v1  ;;  %v6046_v17 = vadd.f32 %v6045_v7, %v6044_v50  ;;  %v6076_v1 = vadd.f32 %v6075_v54, %v6074_v57  ;;  %v9557_v50 = vld [vmem:[#allocation41_spill] sm:$0xff]  ;;  %v9559_v54 = vld [vmem:[#allocation44_spill] sm:$0xff] }
 0x82c   :  { %6360 = vmatpush.msra.mxu2 %v9050_v28 }
 0x82d   :  { %6390 = vmatpush.msrb.mxu1 %v9013_v40  ;;  %6339 = vmatpush.msra.mxu3 %v9056_v3  ;;  %v6047_v63 = vrot.slane %v6046_v17, 2  ;;  %v6077_v3 = vrot.slane %v6076_v1, 1 }
 0x82e   :  { %6361 = vmatpush.msra.mxu2 %v9061_v39 }
 0x82f   :  { %6391 = vmatpush.msrb.mxu1 %v9022_v8  ;;  %v6048_v44 = vadd.f32 %v6047_v63, %v6046_v17  ;;  %6340 = vmatpush.msra.mxu3 %v9070_v20  ;;  %v6083_v8 = vadd.f32 %v6082_v52, %v6081_v11  ;;  %v5800_v20 = vpop.f32.mrf.mxu0  ;;  %v9558_v17 = vld [vmem:[#allocation42_spill] sm:$0xff]  ;;  %v9560_v63 = vld [vmem:[#allocation47_spill] sm:$0xff]  ;;  %v9561_v52 = vld [vmem:[#allocation48_spill] sm:$0xff] }
 0x830   :  { %6362 = vmatpush.msra.mxu2 %v9075_v16  ;;  %v5820_v39 = vpop.f32.mrf.mxu1 }
 0x831   :  { %6392 = vmatpush.msrb.mxu1 %v9031_v0  ;;  %v6049_v28 = vrot.slane %v6048_v44, 1  ;;  %6341 = vmatpush.msra.mxu3 %v9082_v42  ;;  %v6084_v0 = vrot.slane %v6083_v8, 1  ;;  %v6202_v42 = vld [vmem:[#allocation25 + $0x2c0] sm:$0xff] }
 0x832   :  { %6363 = vmatpush.msra.mxu2 %v9087_v14  ;;  %v5840_v16 = vpop.f32.mrf.mxu2  ;;  %v6069_v14 = vmul.f32 %v9241_v43, %v9241_v43  ;;  %6314 = vmatpush.msrb.mxu0 %v6202_v42 }
 0x833   :  { %6393 = vmatpush.msrb.mxu1 %v9045_v26  ;;  %6342 = vmatpush.msra.mxu3 %v9096_v18  ;;  %v6050_v40 = vadd.f32 %v6049_v28, %v6048_v44  ;;  %v6078_v26 = vadd.f32 %v6077_v3, %v6076_v1  ;;  %v9562_v1 = vld [vmem:[#allocation49_spill] sm:$0xff]  ;;  %v9564_v28 = vld [vmem:[#allocation39_spill] sm:$0xff] }
 0x834   :  { %6364 = vmatpush.msra.mxu2 %v9101_v21  ;;  %v9568_v3 = vld [vmem:[#allocation51_spill] sm:$0xff] }
 0x835   :  { %6394 = vmatpush.msrb.mxu1 %v9058_v27  ;;  %6343 = vmatpush.msra.mxu3 %v9108_v15  ;;  %v6085_v27 = vadd.f32 %v6084_v0, %v6083_v8  ;;  %v9567_v8 = vld [vmem:[#allocation50_spill] sm:$0xff]  ;;  %v9569_v0 = vld [vmem:[#allocation52_spill] sm:$0xff] }
 0x836   :  { %6283 = vmatmul.f32.vlgmr.msrb.gmra.mxu2 %v6050_v40  ;;  %v9565_v40 = vld [vmem:[#allocation43_spill] sm:$0xff] }
 0x837   :  { %6365 = vmatpush.msra.mxu2 %v9113_v60  ;;  %6395 = vmatpush.msrb.mxu1 %v9072_v55  ;;  %v5821_v55 = vadd.f32 %v5820_v39, %v5800_v20  ;;  %v9555_v60 = vld [vmem:[#allocation53_spill] sm:$0xff] }
 0x838   :  { %6344 = vmatpush.msra.mxu3 %v9120_v31  ;;  %v6200_v31 = vld [vmem:[#allocation25 + $0x2b0] sm:$0xff] }
 0x839   :  { %6396 = vmatpush.msrb.mxu1 %v9084_v45  ;;  %v6201_v45 = vld [vmem:[#allocation25 + $0x2b8] sm:$0xff]  ;;  %v5841_v18 = vadd.f32 %v5840_v16, %v5821_v55  ;;  %6437 = vmatpush.msrb.mxu2 %v6202_v42  ;;  %v9571_v42 = vld [vmem:[#allocation46_spill] sm:$0xff] }
 0x83a   :  { %6345 = vmatpush.msra.mxu3 %v9130_v49  ;;  %6315 = vmatpush.msrb.mxu0 %v6201_v45 }
 0x83b   :  { %6346 = vmatmul.f32.vlgmr.msra.gmra.mxu3 %v6078_v26  ;;  %6397 = vmatpush.msrb.mxu1 %v9098_v41 }
 0x83c   :  { %6410 = vmatpush.msrb.mxu3 %v9139_v25  ;;  %6438 = vmatpush.msrb.mxu2 %v6201_v45  ;;  %v6198_v25 = vld [vmem:[#allocation25 + $0x2a0] sm:$0xff]  ;;  %v6068_v45 = vmul.f32 %v9571_v42, %v9571_v42 }
 0x83d   :  { %6398 = vmatpush.msrb.mxu1 %v9110_v5  ;;  %6316 = vmatpush.msrb.mxu0 %v6200_v31 }
 0x83e   :  { %6411 = vmatpush.msrb.mxu3 %v9147_v37  ;;  %6366 = vmatmul.f32.vlgmr.msra.gmra.mxu2 %v6085_v27  ;;  %v9570_v27 = vld [vmem:[#allocation54_spill] sm:$0xff] }
 0x83f   :  { %6399 = vmatpush.msrb.mxu1 %v9126_v58  ;;  %6439 = vmatpush.msrb.mxu2 %v6200_v31 }
 0x840   :  { %6412 = vmatpush.msrb.mxu3 %v9160_v33  ;;  %v6196_v33 = vld [vmem:[#allocation25 + $0x290] sm:$0xff] }
 0x841   :  { %6400 = vmatpush.msrb.mxu1 %v9137_v56  ;;  %v5880_v15 = vpop.f32.mrf.mxu0  ;;  %v9556_v56 = vld [vmem:[#allocation55_spill] sm:$0xff] }
 0x842   :  { %6413 = vmatpush.msrb.mxu3 %v9169_v29 }
 0x843   :  { %6401 = vmatpush.msrb.mxu1 %v9145_v13 }
 0x844   :  { %6414 = vmatpush.msrb.mxu3 %v9174_v38  ;;  %v6093_v38 = vsel %vm341_vm0, %v6069_v14, 0.0 }
 0x845   :  { %6402 = vmatpush.msrb.mxu1 %v9154_v46  ;;  %v5860_v41 = vpop.f32.mrf.mxu3  ;;  %v6094_v29 = vrot.slane %v6093_v38, 4  ;;  %v6197_v46 = vld [vmem:[#allocation25 + $0x298] sm:$0xff] }
 0x846   :  { %6415 = vmatpush.msrb.mxu3 %v9183_v36  ;;  %v5861_v21 = vadd.f32 %v5860_v41, %v5841_v18  ;;  %v5900_v58 = vpop.f32.mrf.mxu1 }
 0x847   :  { %6403 = vmatpush.msrb.mxu1 %v9163_v51  ;;  %v6199_v51 = vld [vmem:[#allocation25 + $0x2a8] sm:$0xff]  ;;  %v6095_v36 = vadd.f32 %v6094_v29, %v6093_v38 }
 0x848   :  { %6416 = vmatpush.msrb.mxu3 %v9190_v22  ;;  %v5881_v5 = vadd.f32 %v5880_v15, %v5861_v21  ;;  %6317 = vmatpush.msrb.mxu0 %v6199_v51  ;;  %v6086_v21 = vsel %vm341_vm0, %v6068_v45, 0.0 }
 0x849   :  { %6404 = vmatpush.msrb.mxu1 %v9555_v60  ;;  %6440 = vmatpush.msrb.mxu2 %v6199_v51  ;;  %v6087_v60 = vrot.slane %v6086_v21, 4 }
 0x84a   :  { %6417 = vmatpush.msrb.mxu3 %v9198_v61  ;;  %v9294_v49 = vadd.f32 %v5900_v58, %v5881_v5  ;;  %6318 = vmatpush.msrb.mxu0 %v6198_v25 }
 0x84b   :  { %6405 = vmatpush.msrb.mxu1 %v9556_v56  ;;  %6441 = vmatpush.msrb.mxu2 %v6198_v25  ;;  %v6088_v56 = vadd.f32 %v6087_v60, %v6086_v21 }
 0x84c   :  { %6418 = vmatpush.msrb.mxu3 %v9204_v10  ;;  %v6051_v13 = vsel %vm341_vm0, %v9294_v49, 0.0  ;;  %v6070_v37 = vmul.f32 %v9294_v49, %v9294_v49  ;;  %6319 = vmatpush.msrb.mxu0 %v6197_v46 }
 0x84d   :  { %v6052_v61 = vrot.slane %v6051_v13, 4  ;;  %6442 = vmatpush.msrb.mxu2 %v6197_v46 }
 0x84e   :  { %6419 = vmatpush.msrb.mxu3 %v9208_v53  ;;  %v6100_v22 = vsel %vm341_vm0, %v6070_v37, 0.0  ;;  %6320 = vmatpush.msrb.mxu0 %v6196_v33  ;;  %v6096_v53 = vrot.slane %v6095_v36, 2  ;;  %v6089_v37 = vrot.slane %v6088_v56, 2 }
 0x84f   :  { %v6053_v2 = vadd.f32 %v6052_v61, %v6051_v13  ;;  %v6101_v10 = vrot.slane %v6100_v22, 4  ;;  %6443 = vmatpush.msrb.mxu2 %v6196_v33 }
 0x850   :  { %6420 = vmatpush.msrb.mxu3 %v9215_v34  ;;  %6321 = vmatpush.msrb.mxu0 %v6195_v23  ;;  %v6097_v7 = vadd.f32 %v6096_v53, %v6095_v36  ;;  %v6090_v36 = vadd.f32 %v6089_v37, %v6088_v56  ;;  %v6859_v37 = vld [vmem:[#allocation28 + $0x2f0] sm:$0xff] }
 0x851   :  { %v6054_v35 = vrot.slane %v6053_v2, 2  ;;  %v6102_v4 = vadd.f32 %v6101_v10, %v6100_v22  ;;  %6444 = vmatpush.msrb.mxu2 %v6195_v23 }
 0x852   :  { %6421 = vmatpush.msrb.mxu3 %v9220_v9  ;;  %6322 = vmatpush.msrb.mxu0 %v6194_v47 }
 0x853   :  { %v6055_v6 = vadd.f32 %v6054_v35, %v6053_v2  ;;  %v6103_v24 = vrot.slane %v6102_v4, 2  ;;  %6445 = vmatpush.msrb.mxu2 %v6194_v47  ;;  %v6091_v35 = vrot.slane %v6090_v36, 1 }
 0x854   :  { %6422 = vmatpush.msrb.mxu3 %v9228_v12  ;;  %6370 = vmatpush.msra.mxu0 %v9557_v50  ;;  %v5920_v39 = vpop.f32.mrf.mxu2 }
 0x855   :  { %v6056_v34 = vrot.slane %v6055_v6, 1  ;;  %v6104_v57 = vadd.f32 %v6103_v24, %v6102_v4  ;;  %v6092_v4 = vadd.f32 %v6091_v35, %v6090_v36  ;;  %v6823_v36 = vld [vmem:[#allocation28 + $0x1d0] sm:$0xff]  ;;  %v6821_v35 = vld [vmem:[#allocation28 + $0x1c0] sm:$0xff] }
 0x856   :  { %6423 = vmatpush.msrb.mxu3 %v9233_v62  ;;  %6371 = vmatpush.msra.mxu0 %v9558_v17  ;;  %v6098_v62 = vrot.slane %v6097_v7, 1 }
 0x857   :  { %v6057_v9 = vadd.f32 %v6056_v34, %v6055_v6  ;;  %v6105_v11 = vrot.slane %v6104_v57, 1 }
 0x858   :  { %6424 = vmatpush.msrb.mxu3 %v9239_v59  ;;  %6372 = vmatpush.msra.mxu0 %v9559_v54  ;;  %v6099_v44 = vadd.f32 %v6098_v62, %v6097_v7  ;;  %v9563_v59 = vld [vmem:[#allocation38_spill] sm:$0xff] }
 0x859   :  { %6303 = vmatmul.f32.vlgmr.msra.gmra.mxu1 %v6057_v9  ;;  %v6106_v12 = vadd.f32 %v6105_v11, %v6104_v57 }
 0x85a   :  { %6425 = vmatpush.msrb.mxu3 %v9246_v32  ;;  %6373 = vmatpush.msra.mxu0 %v9560_v63  ;;  %v9566_v32 = vld [vmem:[#allocation45_spill] sm:$0xff] }
 0x85b   :  { %6426 = vmatmul.f32.vlgmr.msrb.gmra.mxu3 %v6106_v12 }
 0x85c   :  { %6374 = vmatpush.msra.mxu0 %v9561_v52 }
 0x85e   :  { %6375 = vmatpush.msra.mxu0 %v9562_v1  ;;  %v6472_v1 = vld [vmem:[#allocation26 + $0x10] sm:$0xff] }
 0x85f   :  { %6535 = vmatpush.msra.mxu2 %v6472_v1 }
 0x860   :  { %6376 = vmatpush.msra.mxu0 %v9563_v59  ;;  %v6473_v59 = vld [vmem:[#allocation26 + $0x18] sm:$0xff] }
 0x861   :  { %6406 = vmatmul.f32.vlgmr.msrb.gmra.mxu1 %v6099_v44  ;;  %v6470_v44 = vld [vmem:[#allocation26] sm:$0xff] }
 0x862   :  { %6377 = vmatpush.msra.mxu0 %v9564_v28  ;;  %6555 = vmatpush.msra.mxu1 %v6473_v59 }
 0x863   :  { %v5980_v14 = vpop.f32.mrf.mxu0 }
 0x864   :  { %6378 = vmatpush.msra.mxu0 %v9565_v40  ;;  %6618 = vmatpush.msrb.mxu1 %v6470_v44 }
 0x866   :  { %6379 = vmatpush.msra.mxu0 %v9566_v32  ;;  %v6471_v32 = vld [vmem:[#allocation26 + $0x8] sm:$0xff] }
 0x867   :  { %v5940_v26 = vpop.f32.mrf.mxu3  ;;  %6638 = vmatpush.msra.mxu3 %v6471_v32 }
 0x868   :  { %6380 = vmatpush.msra.mxu0 %v9567_v8  ;;  %v5941_v20 = vadd.f32 %v5940_v26, %v5920_v39  ;;  %v5960_v55 = vpop.f32.mrf.mxu1  ;;  %v6475_v39 = vld [vmem:[#allocation26 + $0x28] sm:$0xff] }
 0x869   :  { %6718 = vmatpush.msrb.mxu3 %v6475_v39 }
 0x86a   :  { %6381 = vmatpush.msra.mxu0 %v9568_v3  ;;  %v5961_v16 = vadd.f32 %v5960_v55, %v5941_v20 }
 0x86c   :  { %6382 = vmatpush.msra.mxu0 %v9569_v0  ;;  %v5981_v41 = vadd.f32 %v5980_v14, %v5961_v16 }
 0x86e   :  { %6383 = vmatpush.msra.mxu0 %v9570_v27 }
 0x870   :  { %6384 = vmatpush.msra.mxu0 %v9185_v48 }
 0x872   :  { %6385 = vmatpush.msra.mxu0 %v9192_v19 }
 0x876   :  { %v6000_v18 = vpop.f32.mrf.mxu2 }
 0x877   :  { %v6001_v15 = vadd.f32 %v6000_v18, %v5981_v41 }
 0x87d   :  { %v6020_v38 = vpop.f32.mrf.mxu3 }
 0x87e   :  { %v9329_v5 = vadd.f32 %v6020_v38, %v6001_v15  ;;  %v6454_v38 = vld [vmem:[%s9419_s20] sm:$0x1] }
 0x880   :  { %v6059_v48 = vsel %vm6058_vm4, %v9329_v5, 0.0  ;;  %v6071_v19 = vmul.f32 %v9329_v5, %v9329_v5 }
 0x881   :  { %v6060_v31 = vrot.slane %v6059_v48, 4 }
 0x882   :  { %v6107_v58 = vsel %vm6058_vm4, %v6071_v19, 0.0 }
 0x883   :  { %v6061_v51 = vadd.f32 %v6060_v31, %v6059_v48  ;;  %v6108_v25 = vrot.slane %v6107_v58, 4  ;;  %v6474_v31 = vld [vmem:[#allocation26 + $0x20] sm:$0xff] }
 0x885   :  { %v6062_v29 = vrot.slane %v6061_v51, 2  ;;  %v6109_v13 = vadd.f32 %v6108_v25, %v6107_v58  ;;  %v6244_v47 = vpop.f32.mrf.mxu0  ;;  %v6467_v58 = vld [vmem:[%s9572_s24] sm:$0x1]  ;;  %v6891_v25 = vld [vmem:[#allocation28 + $0x3f0] sm:$0xff] }
 0x887   :  { %v6063_v46 = vadd.f32 %v6062_v29, %v6061_v51  ;;  %v6110_v61 = vrot.slane %v6109_v13, 2  ;;  %v6889_v29 = vld [vmem:[#allocation28 + $0x3e0] sm:$0xff] }
 0x888   :  { %v6224_v53 = vpop.f32.mrf.mxu1 }
 0x889   :  { %v6064_v22 = vrot.slane %v6063_v46, 1  ;;  %v6111_v33 = vadd.f32 %v6110_v61, %v6109_v13  ;;  %v6245_v50 = vadd.f32 %v6244_v47, %v6224_v53  ;;  %v6827_v13 = vld [vmem:[#allocation28 + $0x1f0] sm:$0xff]  ;;  %v6825_v61 = vld [vmem:[#allocation28 + $0x1e0] sm:$0xff] }
 0x88a   :  { %v6793_v47 = vld [vmem:[#allocation28 + $0xe0] sm:$0xff] }
 0x88b   :  { %v6065_v2 = vadd.f32 %v6064_v22, %v6063_v46  ;;  %v6112_v10 = vrot.slane %v6111_v33, 1  ;;  %v6887_v46 = vld [vmem:[#allocation28 + $0x3d0] sm:$0xff]  ;;  %v6857_v22 = vld [vmem:[#allocation28 + $0x2e0] sm:$0xff] }
 0x88c   :  { %v6881_v53 = vld [vmem:[#allocation28 + $0x3a0] sm:$0xff] }
 0x88d   :  { %v6113_v23 = vadd.f32 %v6112_v10, %v6111_v33  ;;  %7268 = vmatmul.msk.f32.vlgmr.msrb.gmra.mxu0 %vm6203_vm5, %v6065_v2  ;;  %v6885_v33 = vld [vmem:[#allocation28 + $0x3c0] sm:$0xff]  ;;  %v6855_v2 = vld [vmem:[#allocation28 + $0x2d0] sm:$0xff] }
 0x88e   :  { %6495 = vmatpush.msrb.mxu0 %v6470_v44  ;;  %v6883_v10 = vld [vmem:[#allocation28 + $0x3b0] sm:$0xff]  ;;  %v6845_v44 = vld [vmem:[#allocation28 + $0x280] sm:$0xff] }
 0x88f   :  { %7269 = vmatmul.msk.f32.vlgmr.msrb.gmra.mxu2 %vm6203_vm5, %v6113_v23  ;;  %v6795_v23 = vld [vmem:[#allocation28 + $0xf0] sm:$0xff] }
 0x890   :  { %6595 = vmatpush.msrb.mxu2 %v6475_v39  ;;  %v6779_v39 = vld [vmem:[#allocation28 + $0x70] sm:$0xff] }
 0x895   :  { %6386 = vmatmul.f32.vlgmr.msra.gmra.mxu0 %v6092_v4  ;;  %v6853_v4 = vld [vmem:[#allocation28 + $0x2c0] sm:$0xff] }
 0x896   :  { %6515 = vmatpush.msra.mxu0 %v6471_v32  ;;  %v6809_v32 = vld [vmem:[#allocation28 + $0x160] sm:$0xff] }
 0x89d   :  { %v6264_v24 = vpop.f32.mrf.mxu3 }
 0x89e   :  { %v6265_v7 = vadd.f32 %v6264_v24, %v6245_v50  ;;  %v6851_v24 = vld [vmem:[#allocation28 + $0x2b0] sm:$0xff]  ;;  %v6817_v50 = vld [vmem:[#allocation28 + $0x1a0] sm:$0xff] }
 0x8b9   :  { %v6284_v6 = vpop.f32.mrf.mxu2 }
 0x8ba   :  { %v6285_v17 = vadd.f32 %v6284_v6, %v6265_v7  ;;  %v6819_v6 = vld [vmem:[#allocation28 + $0x1b0] sm:$0xff]  ;;  %v6849_v7 = vld [vmem:[#allocation28 + $0x2a0] sm:$0xff] }
 0x8be   :  { %v6347_v9 = vpop.f32.mrf.mxu3 }
 0x8c1   :  { %v6367_v11 = vpop.f32.mrf.mxu2 }
 0x8c2   :  { %v6368_v12 = vadd.f32 %v6367_v11, %v6347_v9  ;;  %v6789_v9 = vld [vmem:[#allocation28 + $0xc0] sm:$0xff] }
 0x8c3   :  { %v6877_v11 = vld [vmem:[#allocation28 + $0x380] sm:$0xff] }
 0x8d6   :  { %v6304_v34 = vpop.f32.mrf.mxu1 }
 0x8d7   :  { %v6305_v54 = vadd.f32 %v6304_v34, %v6285_v17  ;;  %v6791_v34 = vld [vmem:[#allocation28 + $0xd0] sm:$0xff] }
 0x8d8   :  { %v6815_v17 = vld [vmem:[#allocation28 + $0x190] sm:$0xff] }
 0x8de   :  { %v6407_v28 = vpop.f32.mrf.mxu1  ;;  %v6427_v8 = vpop.f32.mrf.mxu3 }
 0x90a   :  { %v6324_v57 = vpop.f32.mrf.mxu0 }
 0x90b   :  { %v6325_v63 = vadd.f32 %v6324_v57, %v6305_v54  ;;  %v6879_v57 = vld [vmem:[#allocation28 + $0x390] sm:$0xff] }
 0x90c   :  { %v6847_v54 = vld [vmem:[#allocation28 + $0x290] sm:$0xff] }
 0x90d   :  { %v6450_v3 = vmul.f32 0.0056179776, %v6325_v63  ;;  %v6875_v63 = vld [vmem:[#allocation28 + $0x370] sm:$0xff] }
 0x90f   :  { %v6452_v20 = vmul.f32 %v6450_v3, %v6450_v3 }
 0x912   :  { %v6387_v62 = vpop.f32.mrf.mxu0  ;;  %v6447_v26 = vpop.f32.mrf.mxu2 }
 0x913   :  { %v6388_v52 = vadd.f32 %v6387_v62, %v6368_v12  ;;  %v6787_v12 = vld [vmem:[#allocation28 + $0xb0] sm:$0xff]  ;;  %v6813_v62 = vld [vmem:[#allocation28 + $0x180] sm:$0xff] }
 0x915   :  { %v6408_v40 = vadd.f32 %v6407_v28, %v6388_v52  ;;  %v6785_v52 = vld [vmem:[#allocation28 + $0xa0] sm:$0xff]  ;;  %v6783_v28 = vld [vmem:[#allocation28 + $0x90] sm:$0xff] }
 0x917   :  { %v6428_v0 = vadd.f32 %v6427_v8, %v6408_v40  ;;  %v6843_v40 = vld [vmem:[#allocation28 + $0x270] sm:$0xff] }
 0x918   :  { %v6871_v8 = vld [vmem:[#allocation28 + $0x350] sm:$0xff] }
 0x919   :  { %v6448_v27 = vadd.f32 %v6447_v26, %v6428_v0  ;;  %v6841_v0 = vld [vmem:[#allocation28 + $0x260] sm:$0xff]  ;;  %v6807_v26 = vld [vmem:[#allocation28 + $0x150] sm:$0xff] }
 0x91b   :  { %v6451_v55 = vmul.f32 0.0056179776, %v6448_v27  ;;  %v6869_v27 = vld [vmem:[#allocation28 + $0x340] sm:$0xff] }
 0x91d   :  { %v6453_v16 = vsub.f32 %v6451_v55, %v6452_v20  ;;  %v6839_v20 = vld [vmem:[#allocation28 + $0x250] sm:$0xff]  ;;  %v6805_v55 = vld [vmem:[#allocation28 + $0x140] sm:$0xff] }
 0x91f   :  { %v6455_v45 = vadd.f32 1e-05, %v6453_v16  ;;  %v6867_v16 = vld [vmem:[#allocation28 + $0x330] sm:$0xff] }
 0x921   :  { %7315 = vrsqrt.f32 %v6455_v45  ;;  %vm6462_vm7 = vweird.f32 %v6455_v45 }
 0x927   :  { %v7316_v14 = vpop.eup %7315 }
 0x928   :  { %v6457_v18 = vmul.f32 %v7316_v14, %v6455_v45  ;;  %vm6463_vm6 = vweird.f32 %v7316_v14  ;;  %v6777_v45 = vld [vmem:[#allocation28 + $0x60] sm:$0xff] }
 0x929   :  { %vm6464_vm8 = vmor %vm6462_vm7, %vm6463_vm6 }
 0x92a   :  { %v6458_v41 = vmul.f32 %v7316_v14, %v6457_v18  ;;  %v6803_v18 = vld [vmem:[#allocation28 + $0x130] sm:$0xff] }
 0x92c   :  { %v6459_v21 = vmul.f32 0.5, %v6458_v41  ;;  %v6865_v41 = vld [vmem:[#allocation28 + $0x320] sm:$0xff] }
 0x92e   :  { %v6460_v15 = vsub.f32 1.5, %v6459_v21  ;;  %v6775_v21 = vld [vmem:[#allocation28 + $0x50] sm:$0xff] }
 0x930   :  { %v6461_v60 = vmul.f32 %v7316_v14, %v6460_v15  ;;  %v6835_v15 = vld [vmem:[#allocation28 + $0x230] sm:$0xff] }
 0x932   :  { %v6465_v48 = vsel %vm6464_vm8, %v7316_v14, %v6461_v60  ;;  %v6837_v14 = vld [vmem:[#allocation28 + $0x240] sm:$0xff]  ;;  %v6863_v60 = vld [vmem:[#allocation28 + $0x310] sm:$0xff] }
 0x933   :  { %v6466_v19 = vmul.f32 %v6465_v48, %v6454_v38  ;;  %v6801_v38 = vld [vmem:[#allocation28 + $0x120] sm:$0xff] }
 0x934   :  { %v6773_v48 = vld [vmem:[#allocation28 + $0x40] sm:$0xff] }
 0x935   :  { %7270 = vmatmul.msk.f32.vlgmr.msrb.gmra.mxu0 %vm6476_vm9, %v6466_v19  ;;  %7272 = vmatmul.msk.f32.vlgmr.msra.gmra.mxu2 %vm6476_vm9, %v6466_v19  ;;  %v6468_v56 = vmul.f32 %v6466_v19, %v6450_v3  ;;  %v6781_v3 = vld [vmem:[#allocation28 + $0x80] sm:$0xff] }
 0x936   :  { %7273 = vmatmul.msk.f32.vlgmr.msra.gmra.mxu1 %vm6476_vm9, %v6466_v19  ;;  %6575 = vmatpush.msrb.mxu0 %v6474_v31 }
 0x937   :  { %v9345_v51 = vsub.f32 %v6467_v58, %v6468_v56  ;;  %6678 = vmatpush.msra.mxu2 %v6473_v59  ;;  %6698 = vmatpush.msra.mxu1 %v6474_v31  ;;  %v6873_v59 = vld [vmem:[#allocation28 + $0x360] sm:$0xff]  ;;  %v6799_v31 = vld [vmem:[#allocation28 + $0x110] sm:$0xff] }
 0x938   :  { %v6861_v58 = vld [vmem:[#allocation28 + $0x300] sm:$0xff]  ;;  %v6771_v56 = vld [vmem:[#allocation28 + $0x30] sm:$0xff] }
 0x939   :  { %7277 = vmatmul.msk.f32.vlgmr.msra.gmra.mxu3 %vm6476_vm9, %v9345_v51 }
 0x93a   :  { %7013 = vmatpush.msra.mxu3 %v6891_v25  ;;  %v6828_v25 = vld [vmem:[#allocation28 + $0x1f8] sm:$0xff] }
 0x93c   :  { %7014 = vmatpush.msra.mxu3 %v6889_v29  ;;  %v6769_v29 = vld [vmem:[#allocation28 + $0x20] sm:$0xff] }
 0x93d   :  { %7271 = vmatmul.msk.f32.vlgmr.msra.gmra.mxu0 %vm6476_vm9, %v6466_v19  ;;  %7275 = vmatmul.msk.f32.vlgmr.msrb.gmra.mxu2 %vm6476_vm9, %v6466_v19 }
 0x93e   :  { %7276 = vmatmul.msk.f32.vlgmr.msrb.gmra.mxu1 %vm6476_vm9, %v9345_v51  ;;  %6658 = vmatpush.msra.mxu0 %v6472_v1  ;;  %v6811_v1 = vld [vmem:[#allocation28 + $0x170] sm:$0xff] }
 0x93f   :  { %6973 = vmatpush.msrb.mxu2 %v6827_v13  ;;  %6993 = vmatpush.msrb.mxu1 %v6859_v37  ;;  %v6767_v13 = vld [vmem:[#allocation28 + $0x10] sm:$0xff]  ;;  %v6765_v37 = vld [vmem:[#allocation28] sm:$0xff] }
 0x940   :  { %7015 = vmatpush.msra.mxu3 %v6887_v46  ;;  %v6923_v46 = vld [vmem:[#allocation28 + $0x4f0] sm:$0xff] }
 0x941   :  { %7281 = vmatmul.msk.f32.vlgmr.msrb.gmra.mxu3 %vm6476_vm9, %v9345_v51  ;;  %6974 = vmatpush.msrb.mxu2 %v6825_v61  ;;  %v6921_v61 = vld [vmem:[#allocation28 + $0x4e0] sm:$0xff] }
 0x942   :  { %6994 = vmatpush.msrb.mxu1 %v6857_v22  ;;  %7016 = vmatpush.msra.mxu3 %v6885_v33  ;;  %v6919_v22 = vld [vmem:[#allocation28 + $0x4d0] sm:$0xff]  ;;  %v6917_v33 = vld [vmem:[#allocation28 + $0x4c0] sm:$0xff] }
 0x943   :  { %6975 = vmatpush.msrb.mxu2 %v6823_v36  ;;  %v6915_v36 = vld [vmem:[#allocation28 + $0x4b0] sm:$0xff] }
 0x944   :  { %6995 = vmatpush.msrb.mxu1 %v6855_v2  ;;  %7017 = vmatpush.msra.mxu3 %v6883_v10  ;;  %v6913_v2 = vld [vmem:[#allocation28 + $0x4a0] sm:$0xff]  ;;  %v6911_v10 = vld [vmem:[#allocation28 + $0x490] sm:$0xff] }
 0x945   :  { %7274 = vmatmul.msk.f32.vlgmr.msrb.gmra.mxu0 %vm6476_vm9, %v6466_v19  ;;  %7279 = vmatmul.msk.f32.vlgmr.msra.gmra.mxu2 %vm6476_vm9, %v9345_v51  ;;  %v6833_v19 = vld [vmem:[#allocation28 + $0x220] sm:$0xff] }
 0x946   :  { %7280 = vmatmul.msk.f32.vlgmr.msra.gmra.mxu1 %vm6476_vm9, %v9345_v51  ;;  %6953 = vmatpush.msrb.mxu0 %v6795_v23  ;;  %v6909_v23 = vld [vmem:[#allocation28 + $0x480] sm:$0xff] }
 0x947   :  { %6976 = vmatpush.msrb.mxu2 %v6821_v35  ;;  %6996 = vmatpush.msrb.mxu1 %v6853_v4  ;;  %v6797_v35 = vld [vmem:[#allocation28 + $0x100] sm:$0xff] }
 0x948   :  { %6954 = vmatpush.msrb.mxu0 %v6793_v47  ;;  %7018 = vmatpush.msra.mxu3 %v6881_v53  ;;  %v6829_v4 = vld [vmem:[#allocation28 + $0x200] sm:$0xff]  ;;  %v6907_v47 = vld [vmem:[#allocation28 + $0x470] sm:$0xff] }
 0x949   :  { %6977 = vmatpush.msrb.mxu2 %v6819_v6  ;;  %6997 = vmatpush.msrb.mxu1 %v6851_v24  ;;  %v6941_v53 = vld [vmem:[#allocation28 + $0x580] sm:$0xff]  ;;  %v6796_v6 = vld [vmem:[#allocation28 + $0xf8] sm:$0xff]  ;;  %v6826_v24 = vld [vmem:[#allocation28 + $0x1e8] sm:$0xff] }
 0x94a   :  { %6955 = vmatpush.msrb.mxu0 %v6791_v34  ;;  %7019 = vmatpush.msra.mxu3 %v6879_v57  ;;  %v6905_v34 = vld [vmem:[#allocation28 + $0x460] sm:$0xff]  ;;  %v6939_v57 = vld [vmem:[#allocation28 + $0x570] sm:$0xff] }
 0x94b   :  { %6978 = vmatpush.msrb.mxu2 %v6817_v50  ;;  %6998 = vmatpush.msrb.mxu1 %v6849_v7  ;;  %v6794_v50 = vld [vmem:[#allocation28 + $0xe8] sm:$0xff]  ;;  %v6824_v7 = vld [vmem:[#allocation28 + $0x1d8] sm:$0xff] }
 0x94c   :  { %6956 = vmatpush.msrb.mxu0 %v6789_v9  ;;  %7020 = vmatpush.msra.mxu3 %v6877_v11  ;;  %v6903_v9 = vld [vmem:[#allocation28 + $0x450] sm:$0xff]  ;;  %v6937_v11 = vld [vmem:[#allocation28 + $0x560] sm:$0xff] }
 0x94d   :  { %7278 = vmatmul.msk.f32.vlgmr.msra.gmra.mxu0 %vm6476_vm9, %v9345_v51  ;;  %6979 = vmatpush.msrb.mxu2 %v6815_v17  ;;  %v6831_v51 = vld [vmem:[#allocation28 + $0x210] sm:$0xff]  ;;  %v6792_v17 = vld [vmem:[#allocation28 + $0xd8] sm:$0xff] }
 0x94e   :  { %6957 = vmatpush.msrb.mxu0 %v6787_v12  ;;  %6999 = vmatpush.msrb.mxu1 %v6847_v54  ;;  %v6822_v12 = vld [vmem:[#allocation28 + $0x1c8] sm:$0xff]  ;;  %v6901_v54 = vld [vmem:[#allocation28 + $0x440] sm:$0xff] }
 0x94f   :  { %6980 = vmatpush.msrb.mxu2 %v6813_v62  ;;  %7021 = vmatpush.msra.mxu3 %v6875_v63  ;;  %v6935_v62 = vld [vmem:[#allocation28 + $0x550] sm:$0xff]  ;;  %v6790_v63 = vld [vmem:[#allocation28 + $0xc8] sm:$0xff] }
 0x950   :  { %6958 = vmatpush.msrb.mxu0 %v6785_v52  ;;  %7000 = vmatpush.msrb.mxu1 %v6845_v44  ;;  %v6820_v52 = vld [vmem:[#allocation28 + $0x1b8] sm:$0xff]  ;;  %v6899_v44 = vld [vmem:[#allocation28 + $0x430] sm:$0xff] }
 0x951   :  { %6981 = vmatpush.msrb.mxu2 %v6811_v1  ;;  %7022 = vmatpush.msra.mxu3 %v6873_v59  ;;  %v6933_v1 = vld [vmem:[#allocation28 + $0x540] sm:$0xff]  ;;  %v6788_v59 = vld [vmem:[#allocation28 + $0xb8] sm:$0xff] }
 0x952   :  { %6959 = vmatpush.msrb.mxu0 %v6783_v28  ;;  %7001 = vmatpush.msrb.mxu1 %v6843_v40  ;;  %v6818_v28 = vld [vmem:[#allocation28 + $0x1a8] sm:$0xff]  ;;  %v6897_v40 = vld [vmem:[#allocation28 + $0x420] sm:$0xff] }
 0x953   :  { %6982 = vmatpush.msrb.mxu2 %v6809_v32  ;;  %7023 = vmatpush.msra.mxu3 %v6871_v8  ;;  %v6931_v32 = vld [vmem:[#allocation28 + $0x530] sm:$0xff]  ;;  %v6786_v8 = vld [vmem:[#allocation28 + $0xa8] sm:$0xff] }
 0x954   :  { %6960 = vmatpush.msrb.mxu0 %v6781_v3  ;;  %7002 = vmatpush.msrb.mxu1 %v6841_v0  ;;  %v6816_v3 = vld [vmem:[#allocation28 + $0x198] sm:$0xff]  ;;  %v6895_v0 = vld [vmem:[#allocation28 + $0x410] sm:$0xff] }
 0x955   :  { %6983 = vmatpush.msrb.mxu2 %v6807_v26  ;;  %7024 = vmatpush.msra.mxu3 %v6869_v27  ;;  %v6929_v26 = vld [vmem:[#allocation28 + $0x520] sm:$0xff]  ;;  %v6784_v27 = vld [vmem:[#allocation28 + $0x98] sm:$0xff] }
 0x956   :  { %6961 = vmatpush.msrb.mxu0 %v6779_v39  ;;  %7003 = vmatpush.msrb.mxu1 %v6839_v20  ;;  %v6814_v39 = vld [vmem:[#allocation28 + $0x188] sm:$0xff]  ;;  %v6893_v20 = vld [vmem:[#allocation28 + $0x400] sm:$0xff] }
 0x957   :  { %6984 = vmatpush.msrb.mxu2 %v6805_v55  ;;  %7025 = vmatpush.msra.mxu3 %v6867_v16  ;;  %v6927_v55 = vld [vmem:[#allocation28 + $0x510] sm:$0xff]  ;;  %v6782_v16 = vld [vmem:[#allocation28 + $0x88] sm:$0xff] }
 0x958   :  { %6962 = vmatpush.msrb.mxu0 %v6777_v45  ;;  %7004 = vmatpush.msrb.mxu1 %v6837_v14  ;;  %v6812_v45 = vld [vmem:[#allocation28 + $0x178] sm:$0xff]  ;;  %v6925_v14 = vld [vmem:[#allocation28 + $0x500] sm:$0xff] }
 0x959   :  { %6985 = vmatpush.msrb.mxu2 %v6803_v18  ;;  %7026 = vmatpush.msra.mxu3 %v6865_v41  ;;  %v6780_v18 = vld [vmem:[#allocation28 + $0x78] sm:$0xff]  ;;  %v6810_v41 = vld [vmem:[#allocation28 + $0x168] sm:$0xff] }
 0x95a   :  { %6963 = vmatpush.msrb.mxu0 %v6775_v21  ;;  %7005 = vmatpush.msrb.mxu1 %v6835_v15  ;;  %v6778_v21 = vld [vmem:[#allocation28 + $0x68] sm:$0xff]  ;;  %v6808_v15 = vld [vmem:[#allocation28 + $0x158] sm:$0xff] }
 0x95b   :  { %6986 = vmatpush.msrb.mxu2 %v6801_v38  ;;  %7027 = vmatpush.msra.mxu3 %v6863_v60  ;;  %v6776_v38 = vld [vmem:[#allocation28 + $0x58] sm:$0xff]  ;;  %v6806_v60 = vld [vmem:[#allocation28 + $0x148] sm:$0xff] }
 0x95c   :  { %6964 = vmatpush.msrb.mxu0 %v6773_v48  ;;  %7006 = vmatpush.msrb.mxu1 %v6833_v19  ;;  %v6774_v48 = vld [vmem:[#allocation28 + $0x48] sm:$0xff]  ;;  %v6804_v19 = vld [vmem:[#allocation28 + $0x138] sm:$0xff] }
 0x95d   :  { %6987 = vmatpush.msrb.mxu2 %v6799_v31  ;;  %7028 = vmatpush.msra.mxu3 %v6861_v58  ;;  %v6772_v31 = vld [vmem:[#allocation28 + $0x38] sm:$0xff]  ;;  %v6802_v58 = vld [vmem:[#allocation28 + $0x128] sm:$0xff] }
 0x95e   :  { %6965 = vmatpush.msrb.mxu0 %v6771_v56  ;;  %7007 = vmatpush.msrb.mxu1 %v6831_v51  ;;  %v7310_v56 = vld [vmem:[#allocation2] ss:$0 sm:$0xff] }
 0x95f   :  { %7093 = vmatpush.msrb.mxu3 %v6828_v25  ;;  %6988 = vmatpush.msrb.mxu2 %v6797_v35  ;;  %v6770_v51 = vld [vmem:[#allocation28 + $0x28] sm:$0xff]  ;;  %v6800_v25 = vld [vmem:[#allocation28 + $0x118] sm:$0xff]  ;;  %v9573_v35 = vld [vmem:[#allocation40_spill] sm:$0xff] }
 0x960   :  { %6966 = vmatpush.msrb.mxu0 %v6769_v29  ;;  %7008 = vmatpush.msrb.mxu1 %v6829_v4  ;;  %v7766_v29 = vmov 0  }
 0x961   :  { %7060 = vmatpush.msra.mxu2 %v6941_v53  ;;  %7094 = vmatpush.msrb.mxu3 %v6826_v24 }
 0x962   :  { %6967 = vmatpush.msrb.mxu0 %v6767_v13  ;;  %7073 = vmatpush.msra.mxu1 %v6796_v6  ;;  %v6768_v13 = vld [vmem:[#allocation28 + $0x18] sm:$0xff] }
 0x963   :  { %7061 = vmatpush.msra.mxu2 %v6939_v57  ;;  %7095 = vmatpush.msrb.mxu3 %v6824_v7 }
 0x964   :  { %6968 = vmatpush.msrb.mxu0 %v6765_v37  ;;  %7074 = vmatpush.msra.mxu1 %v6794_v50  ;;  %v6798_v37 = vld [vmem:[#allocation28 + $0x108] sm:$0xff] }
 0x965   :  { %7062 = vmatpush.msra.mxu2 %v6937_v11  ;;  %7096 = vmatpush.msrb.mxu3 %v6822_v12 }
 0x966   :  { %7033 = vmatpush.msra.mxu0 %v6923_v46  ;;  %7075 = vmatpush.msra.mxu1 %v6792_v17  ;;  %v6892_v17 = vld [vmem:[#allocation28 + $0x3f8] sm:$0xff] }
 0x967   :  { %7063 = vmatpush.msra.mxu2 %v6935_v62  ;;  %7097 = vmatpush.msrb.mxu3 %v6820_v52  ;;  %v6860_v62 = vld [vmem:[#allocation28 + $0x2f8] sm:$0xff] }
 0x968   :  { %7034 = vmatpush.msra.mxu0 %v6921_v61  ;;  %7076 = vmatpush.msra.mxu1 %v6790_v63  ;;  %v6766_v61 = vld [vmem:[#allocation28 + $0x8] sm:$0xff] }
 0x969   :  { %7064 = vmatpush.msra.mxu2 %v6933_v1  ;;  %7098 = vmatpush.msrb.mxu3 %v6818_v28 }
 0x96a   :  { %7035 = vmatpush.msra.mxu0 %v6919_v22  ;;  %7077 = vmatpush.msra.mxu1 %v6788_v59  ;;  %v6858_v59 = vld [vmem:[#allocation28 + $0x2e8] sm:$0xff] }
 0x96b   :  { %7065 = vmatpush.msra.mxu2 %v6931_v32  ;;  %7099 = vmatpush.msrb.mxu3 %v6816_v3  ;;  %v6888_v3 = vld [vmem:[#allocation28 + $0x3d8] sm:$0xff] }
 0x96c   :  { %7036 = vmatpush.msra.mxu0 %v6917_v33  ;;  %7078 = vmatpush.msra.mxu1 %v6786_v8 }
 0x96d   :  { %7066 = vmatpush.msra.mxu2 %v6929_v26  ;;  %7100 = vmatpush.msrb.mxu3 %v6814_v39  ;;  %v6856_v26 = vld [vmem:[#allocation28 + $0x2d8] sm:$0xff] }
 0x96e   :  { %7037 = vmatpush.msra.mxu0 %v6915_v36  ;;  %7079 = vmatpush.msra.mxu1 %v6784_v27 }
 0x96f   :  { %7067 = vmatpush.msra.mxu2 %v6927_v55  ;;  %7101 = vmatpush.msrb.mxu3 %v6812_v45  ;;  %v6886_v55 = vld [vmem:[#allocation28 + $0x3c8] sm:$0xff] }
 0x970   :  { %7038 = vmatpush.msra.mxu0 %v6913_v2  ;;  %7080 = vmatpush.msra.mxu1 %v6782_v16  ;;  %v6854_v45 = vld [vmem:[#allocation28 + $0x2c8] sm:$0xff] }
 0x971   :  { %7068 = vmatpush.msra.mxu2 %v6925_v14  ;;  %7102 = vmatpush.msrb.mxu3 %v6810_v41  ;;  %v6884_v14 = vld [vmem:[#allocation28 + $0x3b8] sm:$0xff] }
 0x972   :  { %7039 = vmatpush.msra.mxu0 %v6911_v10  ;;  %7081 = vmatpush.msra.mxu1 %v6780_v18 }
 0x973   :  { %7103 = vmatpush.msrb.mxu3 %v6808_v15  ;;  %7308 = vset.pattern.permute.xlu0 %v7766_v29  ;;  %v6852_v15 = vld [vmem:[#allocation28 + $0x2b8] sm:$0xff] }
 0x974   :  { %7040 = vmatpush.msra.mxu0 %v6909_v23  ;;  %7082 = vmatpush.msra.mxu1 %v6778_v21 }
 0x975   :  { %7104 = vmatpush.msrb.mxu3 %v6806_v60  ;;  %6947 = vperm.xlu0 %7308, %v7310_v56   ;;  %v6850_v56 = vld [vmem:[#allocation28 + $0x2a8] sm:$0xff] }
 0x976   :  { %7041 = vmatpush.msra.mxu0 %v6907_v47  ;;  %7083 = vmatpush.msra.mxu1 %v6776_v38 }
 0x977   :  { %7105 = vmatpush.msrb.mxu3 %v6804_v19 }
 0x978   :  { %7042 = vmatpush.msra.mxu0 %v6905_v34  ;;  %7084 = vmatpush.msra.mxu1 %v6774_v48 }
 0x979   :  { %7106 = vmatpush.msrb.mxu3 %v6802_v58 }
 0x97a   :  { %7043 = vmatpush.msra.mxu0 %v6903_v9  ;;  %7085 = vmatpush.msra.mxu1 %v6772_v31  ;;  %v6882_v31 = vld [vmem:[#allocation28 + $0x3a8] sm:$0xff] }
 0x97b   :  { %7107 = vmatpush.msrb.mxu3 %v6800_v25  ;;  %v6848_v25 = vld [vmem:[#allocation28 + $0x298] sm:$0xff] }
 0x97c   :  { %7044 = vmatpush.msra.mxu0 %v6901_v54  ;;  %7086 = vmatpush.msra.mxu1 %v6770_v51  ;;  %v6880_v51 = vld [vmem:[#allocation28 + $0x398] sm:$0xff] }
 0x97d   :  { %7108 = vmatpush.msrb.mxu3 %v6798_v37  ;;  %v6942_v37 = vld [vmem:[#allocation28 + $0x588] sm:$0xff] }
 0x97e   :  { %7045 = vmatpush.msra.mxu0 %v6899_v44  ;;  %7087 = vmatpush.msra.mxu1 %v6768_v13  ;;  %v6878_v13 = vld [vmem:[#allocation28 + $0x388] sm:$0xff] }
 0x980   :  { %7046 = vmatpush.msra.mxu0 %v6897_v40  ;;  %7088 = vmatpush.msra.mxu1 %v6766_v61  ;;  %v6846_v61 = vld [vmem:[#allocation28 + $0x288] sm:$0xff] }
 0x982   :  { %7047 = vmatpush.msra.mxu0 %v6895_v0 }
 0x984   :  { %7048 = vmatpush.msra.mxu0 %v6893_v20 }
 0x9b2   :  { %v6497_v46 = vpop.f32.mrf.mxu0 }
 0x9b3   :  { %v6557_v22 = vpop.f32.mrf.mxu1  ;;  %v6723_v33 = vperm.slane %v6497_v46, 0 }
 0x9b4   :  { %v6726_v0 = vperm.slane %v6557_v22, 0 }
 0x9b5   :  { %v6729_v4 = vmul.f32 %v6723_v33, %v9573_v35  ;;  %v6876_v33 = vld [vmem:[#allocation28 + $0x378] sm:$0xff]  ;;  %v6922_v35 = vld [vmem:[#allocation28 + $0x4e8] sm:$0xff] }
 0x9b6   :  { %v6732_v18 = vmul.f32 %v6726_v0, %v9241_v43  ;;  %v6908_v0 = vld [vmem:[#allocation28 + $0x478] sm:$0xff] }
 0x9b8   :  { %v6537_v36 = vpop.f32.mrf.mxu2 }
 0x9b9   :  { %v6725_v27 = vperm.slane %v6537_v36, 0  ;;  %v6924_v36 = vld [vmem:[#allocation28 + $0x4f8] sm:$0xff] }
 0x9ba   :  { %v6517_v2 = vpop.f32.mrf.mxu0 }
 0x9bb   :  { %v6724_v10 = vperm.slane %v6517_v2, 0  ;;  %v6620_v23 = vpop.f32.mrf.mxu1  ;;  %v6731_v38 = vmul.f32 %v6725_v27, %v9571_v42  ;;  %v6940_v2 = vld [vmem:[#allocation28 + $0x578] sm:$0xff] }
 0x9bc   :  { %v6735_v47 = vperm.slane %v6620_v23, 0  ;;  %v6640_v53 = vpop.f32.mrf.mxu3  ;;  %v6874_v23 = vld [vmem:[#allocation28 + $0x368] sm:$0xff]  ;;  %v6904_v27 = vld [vmem:[#allocation28 + $0x458] sm:$0xff] }
 0x9bd   :  { %v6730_v6 = vmul.f32 %v6724_v10, %v8981_v30  ;;  %v6736_v24 = vperm.slane %v6640_v53, 0  ;;  %v6890_v30 = vld [vmem:[#allocation28 + $0x3e8] sm:$0xff]  ;;  %v6844_v10 = vld [vmem:[#allocation28 + $0x278] sm:$0xff] }
 0x9be   :  { %v6741_v34 = vadd.f32 %v6735_v47, %v6729_v4  ;;  %v6938_v4 = vld [vmem:[#allocation28 + $0x568] sm:$0xff]  ;;  %v6872_v53 = vld [vmem:[#allocation28 + $0x358] sm:$0xff] }
 0x9bf   :  { %v6742_v57 = vadd.f32 %v6736_v24, %v6730_v6  ;;  %v6842_v47 = vld [vmem:[#allocation28 + $0x268] sm:$0xff]  ;;  %v6920_v6 = vld [vmem:[#allocation28 + $0x4d8] sm:$0xff] }
 0x9c0   :  { %vm6747_vm10 = vcmp.gt.f32.partialorder %v6741_v34, 0.0  ;;  %v6753_v50 = vmul.f32 0.2, %v6741_v34  ;;  %v6597_v7 = vpop.f32.mrf.mxu2  ;;  %v6936_v24 = vld [vmem:[#allocation28 + $0x558] sm:$0xff] }
 0x9c1   :  { %vm6748_vm11 = vcmp.gt.f32.partialorder %v6742_v57, 0.0  ;;  %v6754_v9 = vmul.f32 0.2, %v6742_v57  ;;  %v6728_v11 = vperm.slane %v6597_v7, 0  ;;  %v6934_v7 = vld [vmem:[#allocation28 + $0x548] sm:$0xff] }
 0x9c2   :  { %v6577_v12 = vpop.f32.mrf.mxu0  ;;  %v9364_v54 = vsel %vm6747_vm10, %v6741_v34, %v6753_v50  ;;  %v6840_v34 = vld [vmem:[#allocation28 + $0x258] sm:$0xff]  ;;  %v6918_v50 = vld [vmem:[#allocation28 + $0x4c8] sm:$0xff] }
 0x9c3   :  { %v6727_v63 = vperm.slane %v6577_v12, 0  ;;  %v6700_v52 = vpop.f32.mrf.mxu1  ;;  %6969 = vmatmul.f32.vlgmr.msrb.gmra.mxu0 %v9364_v54  ;;  %v9367_v44 = vsel %vm6748_vm11, %v6742_v57, %v6754_v9  ;;  %v6734_v28 = vmul.f32 %v6728_v11, %v9329_v5  ;;  %v6870_v57 = vld [vmem:[#allocation28 + $0x348] sm:$0xff]  ;;  %v6868_v11 = vld [vmem:[#allocation28 + $0x338] sm:$0xff] }
 0x9c4   :  { %7133 = vmatpush.msrb.mxu0 %v6892_v17  ;;  %v6720_v1 = vpop.f32.mrf.mxu3  ;;  %6989 = vmatmul.f32.vlgmr.msrb.gmra.mxu2 %v9367_v44  ;;  %v6739_v32 = vperm.slane %v6700_v52, 0  ;;  %v6838_v9 = vld [vmem:[#allocation28 + $0x248] sm:$0xff]  ;;  %v6916_v17 = vld [vmem:[#allocation28 + $0x4b8] sm:$0xff] }
 0x9c5   :  { %v6733_v40 = vmul.f32 %v6727_v63, %v9294_v49  ;;  %v6740_v8 = vperm.slane %v6720_v1, 0  ;;  %7113 = vmatpush.msrb.mxu2 %v6860_v62  ;;  %v6932_v12 = vld [vmem:[#allocation28 + $0x538] sm:$0xff]  ;;  %v6866_v63 = vld [vmem:[#allocation28 + $0x328] sm:$0xff] }
 0x9c6   :  { %7134 = vmatpush.msrb.mxu0 %v6890_v30  ;;  %v6836_v62 = vld [vmem:[#allocation28 + $0x238] sm:$0xff]  ;;  %v6914_v52 = vld [vmem:[#allocation28 + $0x4a8] sm:$0xff] }
 0x9c7   :  { %v6745_v39 = vadd.f32 %v6739_v32, %v6733_v40  ;;  %v6746_v20 = vadd.f32 %v6740_v8, %v6734_v28  ;;  %7114 = vmatpush.msrb.mxu2 %v6858_v59  ;;  %v6930_v30 = vld [vmem:[#allocation28 + $0x528] sm:$0xff]  ;;  %v6864_v59 = vld [vmem:[#allocation28 + $0x318] sm:$0xff] }
 0x9c8   :  { %7135 = vmatpush.msrb.mxu0 %v6888_v3  ;;  %v6680_v16 = vpop.f32.mrf.mxu2  ;;  %v6834_v1 = vld [vmem:[#allocation28 + $0x228] sm:$0xff]  ;;  %v6928_v28 = vld [vmem:[#allocation28 + $0x518] sm:$0xff] }
 0x9c9   :  { %vm6751_vm12 = vcmp.gt.f32.partialorder %v6745_v39, 0.0  ;;  %v6757_v5 = vmul.f32 0.2, %v6745_v39  ;;  %vm6752_vm3 = vcmp.gt.f32.partialorder %v6746_v20, 0.0  ;;  %v6758_v49 = vmul.f32 0.2, %v6746_v20  ;;  %7115 = vmatpush.msrb.mxu2 %v6856_v26 }
 0x9ca   :  { %v6738_v41 = vperm.slane %v6680_v16, 0  ;;  %7136 = vmatpush.msrb.mxu0 %v6886_v55  ;;  %v6660_v21 = vpop.f32.mrf.mxu0  ;;  %v6832_v40 = vld [vmem:[#allocation28 + $0x218] sm:$0xff]  ;;  %v6862_v32 = vld [vmem:[#allocation28 + $0x308] sm:$0xff] }
 0x9cb   :  { %v9374_v60 = vsel %vm6752_vm3, %v6746_v20, %v6758_v49  ;;  %v6737_v48 = vperm.slane %v6660_v21, 0  ;;  %7116 = vmatpush.msrb.mxu2 %v6854_v45  ;;  %v9376_v19 = vsel %vm6751_vm12, %v6745_v39, %v6757_v5  ;;  %v6910_v8 = vld [vmem:[#allocation28 + $0x488] sm:$0xff]  ;;  %v6900_v20 = vld [vmem:[#allocation28 + $0x438] sm:$0xff] }
 0x9cc   :  { %v6744_v58 = vadd.f32 %v6738_v41, %v6732_v18  ;;  %7137 = vmatpush.msrb.mxu0 %v6884_v14  ;;  %7282 = vmatmul.msk.f32.vlgmr.msra.gmra.mxu2 %vm6203_vm5, %v9374_v60  ;;  %v6830_v3 = vld [vmem:[#allocation28 + $0x208] sm:$0xff]  ;;  %v6896_v16 = vld [vmem:[#allocation28 + $0x418] sm:$0xff] }
 0x9cd   :  { %v6743_v43 = vadd.f32 %v6737_v48, %v6731_v38  ;;  %7049 = vmatmul.f32.vlgmr.msra.gmra.mxu0 %v9376_v19  ;;  %7117 = vmatpush.msrb.mxu2 %v6852_v15  ;;  %v6906_v26 = vld [vmem:[#allocation28 + $0x468] sm:$0xff] }
 0x9ce   :  { %vm6750_vm13 = vcmp.gt.f32.partialorder %v6744_v58, 0.0  ;;  %v6756_v42 = vmul.f32 0.2, %v6744_v58  ;;  %7138 = vmatpush.msrb.mxu0 %v6882_v31  ;;  %v6902_v39 = vld [vmem:[#allocation28 + $0x448] sm:$0xff] }
 0x9cf   :  { %vm6749_vm14 = vcmp.gt.f32.partialorder %v6743_v43, 0.0  ;;  %v6755_v29 = vmul.f32 0.2, %v6743_v43  ;;  %7118 = vmatpush.msrb.mxu2 %v6850_v56  ;;  %v6898_v55 = vld [vmem:[#allocation28 + $0x428] sm:$0xff] }
 0x9d0   :  { %7139 = vmatpush.msrb.mxu0 %v6880_v51  ;;  %v9381_v46 = vsel %vm6750_vm13, %v6744_v58, %v6756_v42  ;;  %v6894_v45 = vld [vmem:[#allocation28 + $0x408] sm:$0xff] }
 0x9d1   :  { %7029 = vmatmul.f32.vlgmr.msra.gmra.mxu3 %v9381_v46  ;;  %7119 = vmatpush.msrb.mxu2 %v6848_v25  ;;  %v9384_v22 = vsel %vm6749_vm14, %v6743_v43, %v6755_v29 }
 0x9d2   :  { %7140 = vmatpush.msrb.mxu0 %v6878_v13  ;;  %7180 = vmatpush.msra.mxu3 %v6942_v37 }
 0x9d3   :  { %7009 = vmatmul.f32.vlgmr.msrb.gmra.mxu1 %v9384_v22  ;;  %7120 = vmatpush.msrb.mxu2 %v6846_v61 }
 0x9d4   :  { %7141 = vmatpush.msrb.mxu0 %v6876_v33  ;;  %7153 = vmatpush.msrb.mxu1 %v6924_v36 }
 0x9d5   :  { %7181 = vmatpush.msra.mxu3 %v6940_v2  ;;  %7121 = vmatpush.msrb.mxu2 %v6844_v10 }
 0x9d6   :  { %7142 = vmatpush.msrb.mxu0 %v6874_v23  ;;  %7154 = vmatpush.msrb.mxu1 %v6922_v35 }
 0x9d7   :  { %7182 = vmatpush.msra.mxu3 %v6938_v4  ;;  %7122 = vmatpush.msrb.mxu2 %v6842_v47 }
 0x9d8   :  { %7143 = vmatpush.msrb.mxu0 %v6872_v53  ;;  %7155 = vmatpush.msrb.mxu1 %v6920_v6 }
 0x9d9   :  { %7183 = vmatpush.msra.mxu3 %v6936_v24  ;;  %7123 = vmatpush.msrb.mxu2 %v6840_v34 }
 0x9da   :  { %7109 = vmatmul.f32.vlgmr.msrb.gmra.mxu3 %v9367_v44  ;;  %7144 = vmatpush.msrb.mxu0 %v6870_v57  ;;  %v6912_v44 = vld [vmem:[#allocation28 + $0x498] sm:$0xff] }
 0x9db   :  { %7156 = vmatpush.msrb.mxu1 %v6918_v50  ;;  %7184 = vmatpush.msra.mxu3 %v6934_v7 }
 0x9dc   :  { %7089 = vmatmul.f32.vlgmr.msra.gmra.mxu1 %v9364_v54  ;;  %7124 = vmatpush.msrb.mxu2 %v6838_v9  ;;  %v6926_v54 = vld [vmem:[#allocation28 + $0x508] sm:$0xff] }
 0x9dd   :  { %7145 = vmatpush.msrb.mxu0 %v6868_v11  ;;  %7157 = vmatpush.msrb.mxu1 %v6916_v17 }
 0x9de   :  { %7185 = vmatpush.msra.mxu3 %v6932_v12  ;;  %7125 = vmatpush.msrb.mxu2 %v6836_v62 }
 0x9df   :  { %7146 = vmatpush.msrb.mxu0 %v6866_v63  ;;  %7158 = vmatpush.msrb.mxu1 %v6914_v52 }
 0x9e0   :  { %7186 = vmatpush.msra.mxu3 %v6930_v30  ;;  %7126 = vmatpush.msrb.mxu2 %v6834_v1 }
 0x9e1   :  { %7147 = vmatpush.msrb.mxu0 %v6864_v59  ;;  %7159 = vmatpush.msrb.mxu1 %v6912_v44 }
 0x9e2   :  { %7187 = vmatpush.msra.mxu3 %v6928_v28  ;;  %7127 = vmatpush.msrb.mxu2 %v6832_v40 }
 0x9e3   :  { %7148 = vmatpush.msrb.mxu0 %v6862_v32  ;;  %7160 = vmatpush.msrb.mxu1 %v6910_v8 }
 0x9e4   :  { %7188 = vmatpush.msra.mxu3 %v6926_v54  ;;  %7149 = vmatmul.f32.vlgmr.msrb.gmra.mxu0 %v9381_v46 }
 0x9e5   :  { %7283 = vmatmul.msk.f32.vlgmr.msra.gmra.mxu3 %vm6203_vm5, %v9374_v60  ;;  %7128 = vmatpush.msrb.mxu2 %v6830_v3 }
 0x9e6   :  { %7161 = vmatpush.msrb.mxu1 %v6908_v0  ;;  %7129 = vmatmul.f32.vlgmr.msrb.gmra.mxu2 %v9384_v22 }
 0x9e7   :  { %v6948_v21 = vpop.permute.xlu0 %6947 }
 0x9e8   :  { %7162 = vmatpush.msrb.mxu1 %v6906_v26 }
 0x9ea   :  { %7163 = vmatpush.msrb.mxu1 %v6904_v27 }
 0x9ec   :  { %7164 = vmatpush.msrb.mxu1 %v6902_v39 }
 0x9ee   :  { %7165 = vmatpush.msrb.mxu1 %v6900_v20 }
 0x9f0   :  { %7166 = vmatpush.msrb.mxu1 %v6898_v55 }
 0x9f2   :  { %7167 = vmatpush.msrb.mxu1 %v6896_v16 }
 0x9f4   :  { %7168 = vmatpush.msrb.mxu1 %v6894_v45 }
 0x9f5   :  { %7169 = vmatmul.f32.vlgmr.msrb.gmra.mxu1 %v9376_v19 }
 0xa40   :  { %v6970_v18 = vpop.f32.mrf.mxu0 }
 0xa41   :  { %v6971_v48 = vadd.f32 %v6970_v18, %v6948_v21 }
 0xa47   :  { %v6990_v14 = vpop.f32.mrf.mxu2 }
 0xa48   :  { %v6991_v56 = vadd.f32 %v6990_v14, %v6971_v48 }
 0xa4a   :  { %v7050_v38 = vpop.f32.mrf.mxu0 }
 0xa4f   :  { %v7070_v41 = vpop.f32.mrf.mxu2 }
 0xa50   :  { %v7010_v5 = vpop.f32.mrf.mxu1 }
 0xa51   :  { %v7011_v51 = vadd.f32 %v7010_v5, %v6991_v56 }
 0xa54   :  { %v7030_v49 = vpop.f32.mrf.mxu3 }
 0xa55   :  { %v7031_v25 = vadd.f32 %v7030_v49, %v7011_v51 }
 0xa57   :  { %v7051_v37 = vadd.f32 %v7050_v38, %v7031_v25 }
 0xa59   :  { %v7090_v15 = vpop.f32.mrf.mxu1  ;;  %v7071_v33 = vadd.f32 %v7070_v41, %v7051_v37 }
 0xa5a   :  { %v7091_v31 = vadd.f32 %v7090_v15, %v6948_v21 }
 0xa5d   :  { %v7110_v60 = vpop.f32.mrf.mxu3 }
 0xa5e   :  { %v7111_v43 = vadd.f32 %v7110_v60, %v7091_v31 }
 0xa61   :  { %v7150_v29 = vpop.f32.mrf.mxu0 }
 0xa68   :  { %v7190_v61 = vpop.f32.mrf.mxu3 }
 0xa69   :  { %v7130_v58 = vpop.f32.mrf.mxu2 }
 0xa6a   :  { %v7131_v42 = vadd.f32 %v7130_v58, %v7111_v43 }
 0xa6c   :  { %v7151_v13 = vadd.f32 %v7150_v29, %v7131_v42 }
 0xa72   :  { %v7170_v19 = vpop.f32.mrf.mxu1 }
 0xa73   :  { %v7171_v46 = vadd.f32 %v7170_v19, %v7151_v13 }
 0xa75   :  { %v7191_v22 = vadd.f32 %v7190_v61, %v7171_v46 }
 0xa77   :  { %v7195_v36 = vrot.slane %v7191_v22, 6 }
 0xa79   :  { %v7196_v2 = vsel %vm341_vm0, %v7071_v33, %v7195_v36 }
 0xa7a   :  { %7200 = vst.msk [vmem:[%s9574_s25] sm:$0xf] %vm7199_vm1, %v7196_v2 }
 0xa7b   :  { %7205 = vsyncpa [#allocation4], 1 }
 0xa7c   :  { %7206 = vsyncpa [#allocation6], 1 }
 0xa7d   :  { %7207 = vsyncpa [#allocation9], 1 }
 0xa7e   :  { %7208 = vsyncpa [#allocation12], 1 }
 0xa7f   :  { %7209 = vsyncpa [#allocation15], 1 }
 0xa80   :  { %7210 = vsyncpa [#allocation18], 1 }
 0xa81   :  { %7211 = vsyncpa [#allocation21], 1 }
 0xa82   :  { %7212 = vsyncpa [#allocation24], 1 }
 0xa83   :  { %7213 = vsyncpa [#allocation27], 1 }

</bundles_post_ra>
